<compile_context>
chip_gen: v5e
topology: v5e:2x2
jax: 0.10.0
libtpu: 0.0.40
codegen_flags: <defaults>
</compile_context>

<pallas_src>
import jax
import jax.numpy as jnp
from jax.experimental import pallas as pl
from jax.experimental.pallas import tpu as pltpu

EPS = 1e-5
K_CLASSES = 13
K_PAD = 16       # lane width of the final logits block (full last dim of the output array)
C3_PAD = 128     # head conv3 output channels padded 64 -> 128 for lane-dense stores/loads

_COMPILER_PARAMS = pltpu.CompilerParams(
    dimension_semantics=("parallel",),
    vmem_limit_bytes=48 * 1024 * 1024,  # headroom under v7x's 64 MiB physical VMEM
)


def _const_spec(shape):
    # whole-array block, same block every grid step -> stays resident in VMEM
    return pl.BlockSpec(shape, lambda i: (0,) * len(shape))


def _cost(flops, bytes_accessed, transcendentals=0):
    return pl.CostEstimate(flops=int(flops), transcendentals=int(transcendentals),
                           bytes_accessed=int(bytes_accessed))


def _pick_row_tile(total_rows, target=1024):
    for t in (2048, 1024, 512, 256, 128, 64, 32, 16, 8):
        if t <= target and total_rows % t == 0:
            return t
    return total_rows


def _inorm(h):
    # InstanceNorm1d: stats over points (axis 0 of the (N, C) block), biased var, no affine.
    mu = jnp.mean(h, axis=0, keepdims=True)
    d = h - mu
    var = jnp.mean(d * d, axis=0, keepdims=True)
    return d * jax.lax.rsqrt(var + EPS)


# --------------------------------------------------------------------------------------
# Phase 1: PointNet feature extractor + first head conv (rank-1 split of the 320->256 layer)
# Gridded over the batch (per-batch InstanceNorm and max need whole N resident).
# --------------------------------------------------------------------------------------
def _feat_kernel(x_ref, w1_ref, b1_ref, w2_ref, b2_ref, w3_ref, b3_ref,
                 hw1g_ref, hw1p_ref, hb1_ref,
                 y1_ref, stats_ref):
    x = x_ref[...]                                   # (N, 3) f32
    w1 = w1_ref[...]                                 # (3, 64) f32

    # conv1 (3->64): K=3 contraction as 3 broadcast VPU FMAs (don't waste the MXU).
    h = (x[:, 0:1] * w1[0:1, :]
         + x[:, 1:2] * w1[1:2, :]
         + x[:, 2:3] * w1[2:3, :]
         + b1_ref[...])
    h1 = jnp.maximum(_inorm(h), 0.0)                 # (N, 64) f32
    h1b = h1.astype(jnp.bfloat16)                    # cast once, reused by two MXU matmuls

    # conv2 (64->128), conv3 (128->256) on the MXU in bf16, f32 accumulation.
    h = jnp.dot(h1b, w2_ref[...], preferred_element_type=jnp.float32) + b2_ref[...]
    h2 = jnp.maximum(_inorm(h), 0.0)                 # (N, 128)

    h = jnp.dot(h2.astype(jnp.bfloat16), w3_ref[...],
                preferred_element_type=jnp.float32) + b3_ref[...]
    h3 = _inorm(h)                                   # (N, 256)

    g = jnp.max(h3, axis=0, keepdims=True)           # (1, 256) global feature

    # head conv1 on concat([g, h1]) via rank-1 split: g term computed once per batch.
    g_term = jnp.dot(g.astype(jnp.bfloat16), hw1g_ref[...],
                     preferred_element_type=jnp.float32)                     # (1, 256)
    y1 = (jnp.dot(h1b, hw1p_ref[...], preferred_element_type=jnp.float32)
          + g_term + hb1_ref[...])                                           # (N, 256) pre-BN

    # f32 partial stats, bf16 activation write
    stats_ref[0:1, :] = jnp.sum(y1, axis=0, keepdims=True)
    stats_ref[1:2, :] = jnp.sum(y1 * y1, axis=0, keepdims=True)
    y1_ref[...] = y1.astype(y1_ref.dtype)


# --------------------------------------------------------------------------------------
# Phases 2/3: BatchNorm (stats supplied) + ReLU + next pointwise conv, emit partial stats.
# Operates on row-flattened (tile, C) blocks of the (B*N, C) activations.
# --------------------------------------------------------------------------------------
def _head_mid_kernel(y_ref, mu_ref, var_ref, w_ref, b_ref, out_ref, stats_ref):
    y_in = y_ref[...].astype(jnp.float32)                            # bf16 -> f32
    z = (y_in - mu_ref[...]) * jax.lax.rsqrt(var_ref[...] + EPS)
    a = jnp.maximum(z, 0.0).astype(jnp.bfloat16)
    y = jnp.dot(a, w_ref[...], preferred_element_type=jnp.float32) + b_ref[...]
    stats_ref[0:1, :] = jnp.sum(y, axis=0, keepdims=True)
    stats_ref[1:2, :] = jnp.sum(y * y, axis=0, keepdims=True)
    out_ref[...] = y.astype(out_ref.dtype)


# --------------------------------------------------------------------------------------
# Phase 4: last BatchNorm + ReLU + conv 64->k (channels/classes zero-padded) + log_softmax.
# Output block last dim == full array last dim (16), so no 128-lane padding on the write.
# --------------------------------------------------------------------------------------
def _head_final_kernel(y_ref, mu_ref, var_ref, w_ref, b_ref, out_ref):
    y_in = y_ref[...].astype(jnp.float32)                            # (T, 128)
    z = (y_in - mu_ref[...]) * jax.lax.rsqrt(var_ref[...] + EPS)
    a = jnp.maximum(z, 0.0).astype(jnp.bfloat16)
    logits = jnp.dot(a, w_ref[...], preferred_element_type=jnp.float32) + b_ref[...]  # (T, 16)

    # mask padded classes so log_softmax only sees the real k columns
    col = jax.lax.broadcasted_iota(jnp.int32, logits.shape, 1)
    logits = jnp.where(col < K_CLASSES, logits, jnp.float32(-1e30))

    m = jnp.max(logits, axis=-1, keepdims=True)
    zl = logits - m
    lse = jnp.log(jnp.sum(jnp.exp(zl), axis=-1, keepdims=True))
    out_ref[...] = zl - lse                           # padded cols ~ -1e30, sliced off in wrapper


def _reduce_bn_stats(stats, count):
    # stats: (tiles, 2, C) per-tile partial [sum, sumsq]; tiny cross-tile reduction in f32.
    # TODO(synk): E[x^2]-mu^2 can cancel for |mu| >> std; fine for fresh-init weights.
    s = jnp.sum(stats[:, 0, :], axis=0)
    ss = jnp.sum(stats[:, 1, :], axis=0)
    mu = s / count
    var = jnp.maximum(ss / count - mu * mu, 0.0)
    return mu.reshape(1, -1), var.reshape(1, -1)


@jax.jit
def pointnet_dense_cls(x_ncl, params):
    """x_ncl: (B, 3, N) float32 in the PyTorch NCL layout. Returns (B, N, k) log-probs."""
    B, _, N = x_ncl.shape
    R = B * N
    T = _pick_row_tile(R)            # row tile for the head phases
    n_tiles = R // T if R % T == 0 else 1

    x = jnp.transpose(x_ncl, (0, 2, 1)).astype(jnp.float32)   # (B, N, 3)
    count = jnp.float32(R)

    f32 = jnp.float32
    bf16 = jnp.bfloat16

    w1 = params["w1"].astype(f32)                 # (3, 64)   used in VPU FMAs -> keep f32
    b1 = params["b1"].astype(f32)
    w2 = params["w2"].astype(bf16)                # MXU operands in bf16
    b2 = params["b2"].astype(f32)
    w3 = params["w3"].astype(bf16)
    b3 = params["b3"].astype(f32)
    hw1 = params["hw1"]                           # (320, 256): [global 256 | point 64]
    hw1_g = hw1[:256, :].astype(bf16)
    hw1_p = hw1[256:, :].astype(bf16)
    hb1 = params["hb1"].astype(f32)
    hw2 = params["hw2"].astype(bf16)
    hb2 = params["hb2"].astype(f32)
    # head conv3 padded 64 -> 128 output channels: padded channels are exactly zero,
    # normalize to zero, and hit zero rows of hw4_pad, so semantics are unchanged.
    hw3 = jnp.pad(params["hw3"], ((0, 0), (0, C3_PAD - 64))).astype(bf16)      # (128, 128)
    hb3 = jnp.pad(params["hb3"], ((0, 0), (0, C3_PAD - 64))).astype(f32)       # (1, 128)
    hw4 = jnp.pad(params["hw4"], ((0, C3_PAD - 64), (0, K_PAD - K_CLASSES))).astype(bf16)  # (128, 16)
    hb4 = jnp.pad(params["hb4"], ((0, 0), (0, K_PAD - K_CLASSES))).astype(f32)             # (1, 16)

    batch_spec = lambda C, dt=None: pl.BlockSpec((None, N, C), lambda b: (b, 0, 0))
    batch_stat_spec = pl.BlockSpec((None, 2, 256), lambda b: (b, 0, 0))
    row_spec = lambda C: pl.BlockSpec((T, C), lambda i: (i, 0))
    tile_stat_spec = lambda C: pl.BlockSpec((None, 2, C), lambda i: (i, 0, 0))

    # ---- phase 1: features + head conv1 pre-activation (per-batch grid) ----------------
    flops1 = B * (2 * N * (3 * 64 + 64 * 128 + 128 * 256 + 64 * 256) + 2 * 256 * 256)
    bytes1 = (B * N * 3 * 4 + B * N * 256 * 2 + B * 2 * 256 * 4
              + (3 * 64 + 64 * 128 + 128 * 256 + 256 * 256 + 64 * 256) * 2 + 5 * 256 * 4)
    y1_pre, st1 = pl.pallas_call(
        _feat_kernel,
        grid=(B,),
        in_specs=[
            batch_spec(3),
            _const_spec((3, 64)), _const_spec((1, 64)),
            _const_spec((64, 128)), _const_spec((1, 128)),
            _const_spec((128, 256)), _const_spec((1, 256)),
            _const_spec((256, 256)), _const_spec((64, 256)), _const_spec((1, 256)),
        ],
        out_specs=(batch_spec(256), batch_stat_spec),
        out_shape=(jax.ShapeDtypeStruct((B, N, 256), bf16),
                   jax.ShapeDtypeStruct((B, 2, 256), f32)),
        compiler_params=_COMPILER_PARAMS,
        cost_estimate=_cost(flops1, bytes1, transcendentals=B * (64 + 128 + 256)),
    )(x, w1, b1, w2, b2, w3, b3, hw1_g, hw1_p, hb1)
    mu1, var1 = _reduce_bn_stats(st1, count)

    y1_flat = y1_pre.reshape(R, 256)            # contiguous -> free

    # ---- phase 2: BN1 + relu + conv 256->128 (row-tiled grid) --------------------------
    y2_pre, st2 = pl.pallas_call(
        _head_mid_kernel,
        grid=(n_tiles,),
        in_specs=[row_spec(256),
                  _const_spec((1, 256)), _const_spec((1, 256)),
                  _const_spec((256, 128)), _const_spec((1, 128))],
        out_specs=(row_spec(128), tile_stat_spec(128)),
        out_shape=(jax.ShapeDtypeStruct((R, 128), bf16),
                   jax.ShapeDtypeStruct((n_tiles, 2, 128), f32)),
        compiler_params=_COMPILER_PARAMS,
        cost_estimate=_cost(2 * R * 256 * 128 + 8 * R * 256,
                            R * 256 * 2 + R * 128 * 2 + n_tiles * 2 * 128 * 4 + 256 * 128 * 2),
    )(y1_flat, mu1, var1, hw2, hb2)
    mu2, var2 = _reduce_bn_stats(st2, count)

    # ---- phase 3: BN2 + relu + conv 128->64 (padded to 128 lanes) -----------------------
    y3_pre, st3 = pl.pallas_call(
        _head_mid_kernel,
        grid=(n_tiles,),
        in_specs=[row_spec(128),
                  _const_spec((1, 128)), _const_spec((1, 128)),
                  _const_spec((128, C3_PAD)), _const_spec((1, C3_PAD))],
        out_specs=(row_spec(C3_PAD), tile_stat_spec(C3_PAD)),
        out_shape=(jax.ShapeDtypeStruct((R, C3_PAD), bf16),
                   jax.ShapeDtypeStruct((n_tiles, 2, C3_PAD), f32)),
        compiler_params=_COMPILER_PARAMS,
        cost_estimate=_cost(2 * R * 128 * C3_PAD + 8 * R * 128,
                            R * 128 * 2 + R * C3_PAD * 2 + n_tiles * 2 * C3_PAD * 4
                            + 128 * C3_PAD * 2),
    )(y2_pre, mu2, var2, hw3, hb3)
    mu3, var3 = _reduce_bn_stats(st3, count)

    # ---- phase 4: BN3 + relu + conv ->k + log_softmax (16-wide f32 output) --------------
    out16 = pl.pallas_call(
        _head_final_kernel,
        grid=(n_tiles,),
        in_specs=[row_spec(C3_PAD),
                  _const_spec((1, C3_PAD)), _const_spec((1, C3_PAD)),
                  _const_spec((C3_PAD, K_PAD)), _const_spec((1, K_PAD))],
        out_specs=row_spec(K_PAD),
        out_shape=jax.ShapeDtypeStruct((R, K_PAD), f32),
        compiler_params=_COMPILER_PARAMS,
        cost_estimate=_cost(2 * R * C3_PAD * K_PAD + 8 * R * K_PAD,
                            R * C3_PAD * 2 + R * K_PAD * 4 + C3_PAD * K_PAD * 2,
                            transcendentals=R * K_PAD),
    )(y3_pre, mu3, var3, hw4, hb4)

    return out16[:, :K_CLASSES].reshape(B, N, K_CLASSES)


def init_params(key, k=K_CLASSES):
    """Deterministic synthetic parameters; 1x1-conv weights stored as (Cin, Cout)."""
    dims = [
        ("w1", "b1", 3, 64),
        ("w2", "b2", 64, 128),
        ("w3", "b3", 128, 256),
        ("hw1", "hb1", 320, 256),
        ("hw2", "hb2", 256, 128),
        ("hw3", "hb3", 128, 64),
        ("hw4", "hb4", 64, k),
    ]
    params = {}
    keys = jax.random.split(key, len(dims))
    for kk, (wn, bn, cin, cout) in zip(keys, dims):
        kw, kb = jax.random.split(kk)
        scale = 1.0 / jnp.sqrt(jnp.float32(cin))
        params[wn] = jax.random.normal(kw, (cin, cout), jnp.float32) * scale
        params[bn] = jax.random.normal(kb, (1, cout), jnp.float32) * scale  # (1, Cout)
    return params


if __name__ == "__main__":
    key = jax.random.PRNGKey(0)
    k_in, k_par = jax.random.split(key)

    # small but MXU-friendly shapes: 2 point clouds, 256 points each
    B, C_IN, N = 2, 3, 256
    x = jax.random.normal(k_in, (B, C_IN, N), jnp.float32)    # PyTorch NCL layout
    params = init_params(k_par)

    out = jax.block_until_ready(pointnet_dense_cls(x, params))

    assert out.shape == (B, N, K_CLASSES), out.shape
    # log-softmax sanity: exp(row) sums to 1, all finite
    row_sums = jnp.sum(jnp.exp(out), axis=-1)
    assert bool(jnp.all(jnp.isfinite(out)))
    assert bool(jnp.all(jnp.abs(row_sums - 1.0) < 1e-3))
    print("KERNEL_OK")
</pallas_src>

<mosaic_0001>
module attributes {stable_mosaic.version = 11 : i64} {
  func.func @_head_mid_kernel(%arg0: i32, %arg1: memref<512x256xbf16, #tpu.memory_space<vmem>>, %arg2: memref<1x256xf32, #tpu.memory_space<vmem>>, %arg3: memref<1x256xf32, #tpu.memory_space<vmem>>, %arg4: memref<256x128xbf16, #tpu.memory_space<vmem>>, %arg5: memref<1x128xf32, #tpu.memory_space<vmem>>, %arg6: memref<512x128xbf16, #tpu.memory_space<vmem>>, %arg7: memref<1x2x128xf32, #tpu.memory_space<vmem>>) attributes {dimension_semantics = [#tpu.dimension_semantics<parallel>], iteration_bounds = array<i64: 1>, scalar_prefetch = 0 : i64, scratch_operands = 0 : i64, tpu.core_type = #tpu.core_type<tc>, window_params = [{transform_indices = @transform_0, window_bounds = array<i64: 512, 256>}, {pipeline_mode = #tpu.pipeline_mode<synchronous>, transform_indices = @transform_1, window_bounds = array<i64: 1, 256>}, {pipeline_mode = #tpu.pipeline_mode<synchronous>, transform_indices = @transform_2, window_bounds = array<i64: 1, 256>}, {pipeline_mode = #tpu.pipeline_mode<synchronous>, transform_indices = @transform_3, window_bounds = array<i64: 256, 128>}, {pipeline_mode = #tpu.pipeline_mode<synchronous>, transform_indices = @transform_4, window_bounds = array<i64: 1, 128>}, {transform_indices = @transform_5, window_bounds = array<i64: 512, 128>}, {transform_indices = @transform_6, window_bounds = array<i64: 1, 2, 128>}]} {
    %c0 = arith.constant 0 : index
    %c0_0 = arith.constant 0 : index
    %0 = vector.load %arg1[%c0, %c0_0] : memref<512x256xbf16, #tpu.memory_space<vmem>>, vector<512x256xbf16>
    %1 = arith.extf %0 : vector<512x256xbf16> to vector<512x256xf32>
    %c0_1 = arith.constant 0 : index
    %c0_2 = arith.constant 0 : index
    %2 = vector.load %arg2[%c0_1, %c0_2] : memref<1x256xf32, #tpu.memory_space<vmem>>, vector<1x256xf32>
    %3 = vector.broadcast %2 : vector<1x256xf32> to vector<512x256xf32>
    %4 = arith.subf %1, %3 : vector<512x256xf32>
    %c0_3 = arith.constant 0 : index
    %c0_4 = arith.constant 0 : index
    %5 = vector.load %arg3[%c0_3, %c0_4] : memref<1x256xf32, #tpu.memory_space<vmem>>, vector<1x256xf32>
    %cst = arith.constant 9.99999974E-6 : f32
    %6 = vector.broadcast %cst : f32 to vector<1x256xf32>
    %7 = arith.addf %5, %6 : vector<1x256xf32>
    %8 = math.rsqrt %7 : vector<1x256xf32>
    %9 = vector.broadcast %8 : vector<1x256xf32> to vector<512x256xf32>
    %10 = arith.mulf %4, %9 : vector<512x256xf32>
    %cst_5 = arith.constant 0.000000e+00 : f32
    %11 = vector.broadcast %cst_5 : f32 to vector<512x256xf32>
    %12 = arith.maximumf %10, %11 : vector<512x256xf32>
    %13 = arith.truncf %12 : vector<512x256xf32> to vector<512x256xbf16>
    %c0_6 = arith.constant 0 : index
    %c0_7 = arith.constant 0 : index
    %14 = vector.load %arg4[%c0_6, %c0_7] : memref<256x128xbf16, #tpu.memory_space<vmem>>, vector<256x128xbf16>
    %cst_8 = arith.constant dense<0.000000e+00> : vector<512x128xf32>
    %15 = tpu.matmul %13, %14, %cst_8 {dimension_numbers = #tpu.dot_dimension_numbers<[1], [0], [0], [1], [0, 0, 1, 1], [], []>} : vector<512x256xbf16>, vector<256x128xbf16>, vector<512x128xf32> -> vector<512x128xf32>
    %c0_9 = arith.constant 0 : index
    %c0_10 = arith.constant 0 : index
    %16 = vector.load %arg5[%c0_9, %c0_10] : memref<1x128xf32, #tpu.memory_space<vmem>>, vector<1x128xf32>
    %17 = vector.broadcast %16 : vector<1x128xf32> to vector<512x128xf32>
    %18 = arith.addf %15, %17 : vector<512x128xf32>
    %cst_11 = arith.constant dense<0.000000e+00> : vector<128xf32>
    %19 = vector.multi_reduction <add>, %18, %cst_11 [0] : vector<512x128xf32> to vector<128xf32>
    %20 = vector.shape_cast %19 : vector<128xf32> to vector<1x128xf32>
    %c0_12 = arith.constant 0 : index
    %c0_13 = arith.constant 0 : index
    %c0_14 = arith.constant 0 : index
    %21 = vector.load %arg7[%c0_12, %c0_13, %c0_14] : memref<1x2x128xf32, #tpu.memory_space<vmem>>, vector<1x1x128xf32>
    %22 = vector.shape_cast %21 : vector<1x1x128xf32> to vector<1x128xf32>
    %23 = vector.shape_cast %20 : vector<1x128xf32> to vector<1x1x128xf32>
    tpu.vector_store %arg7[%c0_12, %c0_13, %c0_14], %23 {strides = array<i32>} : memref<1x2x128xf32, #tpu.memory_space<vmem>>, vector<1x1x128xf32>,
    %24 = arith.mulf %18, %18 : vector<512x128xf32>
    %cst_15 = arith.constant dense<0.000000e+00> : vector<128xf32>
    %25 = vector.multi_reduction <add>, %24, %cst_15 [0] : vector<512x128xf32> to vector<128xf32>
    %26 = vector.shape_cast %25 : vector<128xf32> to vector<1x128xf32>
    %c0_16 = arith.constant 0 : index
    %c1 = arith.constant 1 : index
    %c0_17 = arith.constant 0 : index
    %27 = vector.load %arg7[%c0_16, %c1, %c0_17] : memref<1x2x128xf32, #tpu.memory_space<vmem>>, vector<1x1x128xf32>
    %28 = vector.shape_cast %27 : vector<1x1x128xf32> to vector<1x128xf32>
    %29 = vector.shape_cast %26 : vector<1x128xf32> to vector<1x1x128xf32>
    tpu.vector_store %arg7[%c0_16, %c1, %c0_17], %29 {strides = array<i32>} : memref<1x2x128xf32, #tpu.memory_space<vmem>>, vector<1x1x128xf32>,
    %30 = arith.truncf %18 : vector<512x128xf32> to vector<512x128xbf16>
    %c0_18 = arith.constant 0 : index
    %c0_19 = arith.constant 0 : index
    %31 = vector.load %arg6[%c0_18, %c0_19] : memref<512x128xbf16, #tpu.memory_space<vmem>>, vector<512x128xbf16>
    tpu.vector_store %arg6[%c0_18, %c0_19], %30 {strides = array<i32>} : memref<512x128xbf16, #tpu.memory_space<vmem>>, vector<512x128xbf16>,
    return
  }
  func.func @transform_0(%arg0: i32) -> (i32, i32) {
    %c0_i32 = arith.constant 0 : i32
    %c0_i32_0 = arith.constant 0 : i32
    return %arg0, %c0_i32 : i32, i32
  }
  func.func @transform_1(%arg0: i32) -> (i32, i32) {
    %c0_i32 = arith.constant 0 : i32
    %c0_i32_0 = arith.constant 0 : i32
    %c0_i32_1 = arith.constant 0 : i32
    return %c0_i32, %c0_i32_0 : i32, i32
  }
  func.func @transform_2(%arg0: i32) -> (i32, i32) {
    %c0_i32 = arith.constant 0 : i32
    %c0_i32_0 = arith.constant 0 : i32
    %c0_i32_1 = arith.constant 0 : i32
    return %c0_i32, %c0_i32_0 : i32, i32
  }
  func.func @transform_3(%arg0: i32) -> (i32, i32) {
    %c0_i32 = arith.constant 0 : i32
    %c0_i32_0 = arith.constant 0 : i32
    %c0_i32_1 = arith.constant 0 : i32
    return %c0_i32, %c0_i32_0 : i32, i32
  }
  func.func @transform_4(%arg0: i32) -> (i32, i32) {
    %c0_i32 = arith.constant 0 : i32
    %c0_i32_0 = arith.constant 0 : i32
    %c0_i32_1 = arith.constant 0 : i32
    return %c0_i32, %c0_i32_0 : i32, i32
  }
  func.func @transform_5(%arg0: i32) -> (i32, i32) {
    %c0_i32 = arith.constant 0 : i32
    %c0_i32_0 = arith.constant 0 : i32
    return %arg0, %c0_i32 : i32, i32
  }
  func.func @transform_6(%arg0: i32) -> (i32, i32, i32) {
    %c0_i32 = arith.constant 0 : i32
    %c0_i32_0 = arith.constant 0 : i32
    %c0_i32_1 = arith.constant 0 : i32
    return %arg0, %c0_i32, %c0_i32_0 : i32, i32, i32
  }
}

module attributes {stable_mosaic.version = 11 : i64} {
  func.func @_feat_kernel(%arg0: i32, %arg1: memref<1x256x3xf32, #tpu.memory_space<vmem>>, %arg2: memref<3x64xf32, #tpu.memory_space<vmem>>, %arg3: memref<1x64xf32, #tpu.memory_space<vmem>>, %arg4: memref<64x128xbf16, #tpu.memory_space<vmem>>, %arg5: memref<1x128xf32, #tpu.memory_space<vmem>>, %arg6: memref<128x256xbf16, #tpu.memory_space<vmem>>, %arg7: memref<1x256xf32, #tpu.memory_space<vmem>>, %arg8: memref<256x256xbf16, #tpu.memory_space<vmem>>, %arg9: memref<64x256xbf16, #tpu.memory_space<vmem>>, %arg10: memref<1x256xf32, #tpu.memory_space<vmem>>, %arg11: memref<1x256x256xbf16, #tpu.memory_space<vmem>>, %arg12: memref<1x2x256xf32, #tpu.memory_space<vmem>>) attributes {dimension_semantics = [#tpu.dimension_semantics<parallel>], iteration_bounds = array<i64: 2>, scalar_prefetch = 0 : i64, scratch_operands = 0 : i64, tpu.core_type = #tpu.core_type<tc>, window_params = [{transform_indices = @transform_0, window_bounds = array<i64: 1, 256, 3>}, {pipeline_mode = #tpu.pipeline_mode<synchronous>, transform_indices = @transform_1, window_bounds = array<i64: 3, 64>}, {pipeline_mode = #tpu.pipeline_mode<synchronous>, transform_indices = @transform_2, window_bounds = array<i64: 1, 64>}, {pipeline_mode = #tpu.pipeline_mode<synchronous>, transform_indices = @transform_3, window_bounds = array<i64: 64, 128>}, {pipeline_mode = #tpu.pipeline_mode<synchronous>, transform_indices = @transform_4, window_bounds = array<i64: 1, 128>}, {pipeline_mode = #tpu.pipeline_mode<synchronous>, transform_indices = @transform_5, window_bounds = array<i64: 128, 256>}, {pipeline_mode = #tpu.pipeline_mode<synchronous>, transform_indices = @transform_6, window_bounds = array<i64: 1, 256>}, {pipeline_mode = #tpu.pipeline_mode<synchronous>, transform_indices = @transform_7, window_bounds = array<i64: 256, 256>}, {pipeline_mode = #tpu.pipeline_mode<synchronous>, transform_indices = @transform_8, window_bounds = array<i64: 64, 256>}, {pipeline_mode = #tpu.pipeline_mode<synchronous>, transform_indices = @transform_9, window_bounds = array<i64: 1, 256>}, {transform_indices = @transform_10, window_bounds = array<i64: 1, 256, 256>}, {transform_indices = @transform_11, window_bounds = array<i64: 1, 2, 256>}]} {
    %c0 = arith.constant 0 : index
    %c0_0 = arith.constant 0 : index
    %c0_1 = arith.constant 0 : index
    %0 = vector.load %arg1[%c0, %c0_0, %c0_1] : memref<1x256x3xf32, #tpu.memory_space<vmem>>, vector<1x256x3xf32>
    %1 = vector.shape_cast %0 : vector<1x256x3xf32> to vector<256x3xf32>
    %c0_2 = arith.constant 0 : index
    %c0_3 = arith.constant 0 : index
    %2 = vector.load %arg2[%c0_2, %c0_3] : memref<3x64xf32, #tpu.memory_space<vmem>>, vector<3x64xf32>
    %3 = vector.extract_strided_slice %1 {offsets = [0, 0], sizes = [256, 1], strides = [1, 1]} : vector<256x3xf32> to vector<256x1xf32>
    %4 = vector.extract_strided_slice %2 {offsets = [0, 0], sizes = [1, 64], strides = [1, 1]} : vector<3x64xf32> to vector<1x64xf32>
    %5 = vector.broadcast %3 : vector<256x1xf32> to vector<256x64xf32>
    %6 = vector.broadcast %4 : vector<1x64xf32> to vector<256x64xf32>
    %7 = arith.mulf %5, %6 : vector<256x64xf32>
    %8 = vector.extract_strided_slice %1 {offsets = [0, 1], sizes = [256, 1], strides = [1, 1]} : vector<256x3xf32> to vector<256x1xf32>
    %9 = vector.extract_strided_slice %2 {offsets = [1, 0], sizes = [1, 64], strides = [1, 1]} : vector<3x64xf32> to vector<1x64xf32>
    %10 = vector.broadcast %8 : vector<256x1xf32> to vector<256x64xf32>
    %11 = vector.broadcast %9 : vector<1x64xf32> to vector<256x64xf32>
    %12 = arith.mulf %10, %11 : vector<256x64xf32>
    %13 = arith.addf %7, %12 : vector<256x64xf32>
    %14 = vector.extract_strided_slice %1 {offsets = [0, 2], sizes = [256, 1], strides = [1, 1]} : vector<256x3xf32> to vector<256x1xf32>
    %15 = vector.extract_strided_slice %2 {offsets = [2, 0], sizes = [1, 64], strides = [1, 1]} : vector<3x64xf32> to vector<1x64xf32>
    %16 = vector.broadcast %14 : vector<256x1xf32> to vector<256x64xf32>
    %17 = vector.broadcast %15 : vector<1x64xf32> to vector<256x64xf32>
    %18 = arith.mulf %16, %17 : vector<256x64xf32>
    %19 = arith.addf %13, %18 : vector<256x64xf32>
    %c0_4 = arith.constant 0 : index
    %c0_5 = arith.constant 0 : index
    %20 = vector.load %arg3[%c0_4, %c0_5] : memref<1x64xf32, #tpu.memory_space<vmem>>, vector<1x64xf32>
    %21 = vector.broadcast %20 : vector<1x64xf32> to vector<256x64xf32>
    %22 = arith.addf %19, %21 : vector<256x64xf32>
    %cst = arith.constant dense<0.000000e+00> : vector<64xf32>
    %23 = vector.multi_reduction <add>, %22, %cst [0] : vector<256x64xf32> to vector<64xf32>
    %24 = vector.shape_cast %23 : vector<64xf32> to vector<1x64xf32>
    %cst_6 = arith.constant 2.560000e+02 : f32
    %25 = vector.broadcast %cst_6 : f32 to vector<1x64xf32>
    %26 = arith.divf %24, %25 : vector<1x64xf32>
    %27 = vector.broadcast %26 : vector<1x64xf32> to vector<256x64xf32>
    %28 = arith.subf %22, %27 : vector<256x64xf32>
    %29 = arith.mulf %28, %28 : vector<256x64xf32>
    %cst_7 = arith.constant dense<0.000000e+00> : vector<64xf32>
    %30 = vector.multi_reduction <add>, %29, %cst_7 [0] : vector<256x64xf32> to vector<64xf32>
    %31 = vector.shape_cast %30 : vector<64xf32> to vector<1x64xf32>
    %cst_8 = arith.constant 2.560000e+02 : f32
    %32 = vector.broadcast %cst_8 : f32 to vector<1x64xf32>
    %33 = arith.divf %31, %32 : vector<1x64xf32>
    %cst_9 = arith.constant 9.99999974E-6 : f32
    %34 = vector.broadcast %cst_9 : f32 to vector<1x64xf32>
    %35 = arith.addf %33, %34 : vector<1x64xf32>
    %36 = math.rsqrt %35 : vector<1x64xf32>
    %37 = vector.broadcast %36 : vector<1x64xf32> to vector<256x64xf32>
    %38 = arith.mulf %28, %37 : vector<256x64xf32>
    %cst_10 = arith.constant 0.000000e+00 : f32
    %39 = vector.broadcast %cst_10 : f32 to vector<256x64xf32>
    %40 = arith.maximumf %38, %39 : vector<256x64xf32>
    %41 = arith.truncf %40 : vector<256x64xf32> to vector<256x64xbf16>
    %c0_11 = arith.constant 0 : index
    %c0_12 = arith.constant 0 : index
    %42 = vector.load %arg4[%c0_11, %c0_12] : memref<64x128xbf16, #tpu.memory_space<vmem>>, vector<64x128xbf16>
    %cst_13 = arith.constant dense<0.000000e+00> : vector<256x128xf32>
    %43 = tpu.matmul %41, %42, %cst_13 {dimension_numbers = #tpu.dot_dimension_numbers<[1], [0], [0], [1], [0, 0, 1, 1], [], []>} : vector<256x64xbf16>, vector<64x128xbf16>, vector<256x128xf32> -> vector<256x128xf32>
    %c0_14 = arith.constant 0 : index
    %c0_15 = arith.constant 0 : index
    %44 = vector.load %arg5[%c0_14, %c0_15] : memref<1x128xf32, #tpu.memory_space<vmem>>, vector<1x128xf32>
    %45 = vector.broadcast %44 : vector<1x128xf32> to vector<256x128xf32>
    %46 = arith.addf %43, %45 : vector<256x128xf32>
    %cst_16 = arith.constant dense<0.000000e+00> : vector<128xf32>
    %47 = vector.multi_reduction <add>, %46, %cst_16 [0] : vector<256x128xf32> to vector<128xf32>
    %48 = vector.shape_cast %47 : vector<128xf32> to vector<1x128xf32>
    %cst_17 = arith.constant 2.560000e+02 : f32
    %49 = vector.broadcast %cst_17 : f32 to vector<1x128xf32>
    %50 = arith.divf %48, %49 : vector<1x128xf32>
    %51 = vector.broadcast %50 : vector<1x128xf32> to vector<256x128xf32>
    %52 = arith.subf %46, %51 : vector<256x128xf32>
    %53 = arith.mulf %52, %52 : vector<256x128xf32>
    %cst_18 = arith.constant dense<0.000000e+00> : vector<128xf32>
    %54 = vector.multi_reduction <add>, %53, %cst_18 [0] : vector<256x128xf32> to vector<128xf32>
    %55 = vector.shape_cast %54 : vector<128xf32> to vector<1x128xf32>
    %cst_19 = arith.constant 2.560000e+02 : f32
    %56 = vector.broadcast %cst_19 : f32 to vector<1x128xf32>
    %57 = arith.divf %55, %56 : vector<1x128xf32>
    %cst_20 = arith.constant 9.99999974E-6 : f32
    %58 = vector.broadcast %cst_20 : f32 to vector<1x128xf32>
    %59 = arith.addf %57, %58 : vector<1x128xf32>
    %60 = math.rsqrt %59 : vector<1x128xf32>
    %61 = vector.broadcast %60 : vector<1x128xf32> to vector<256x128xf32>
    %62 = arith.mulf %52, %61 : vector<256x128xf32>
    %cst_21 = arith.constant 0.000000e+00 : f32
    %63 = vector.broadcast %cst_21 : f32 to vector<256x128xf32>
    %64 = arith.maximumf %62, %63 : vector<256x128xf32>
    %65 = arith.truncf %64 : vector<256x128xf32> to vector<256x128xbf16>
    %c0_22 = arith.constant 0 : index
    %c0_23 = arith.constant 0 : index
    %66 = vector.load %arg6[%c0_22, %c0_23] : memref<128x256xbf16, #tpu.memory_space<vmem>>, vector<128x256xbf16>
    %cst_24 = arith.constant dense<0.000000e+00> : vector<256x256xf32>
    %67 = tpu.matmul %65, %66, %cst_24 {dimension_numbers = #tpu.dot_dimension_numbers<[1], [0], [0], [1], [0, 0, 1, 1], [], []>} : vector<256x128xbf16>, vector<128x256xbf16>, vector<256x256xf32> -> vector<256x256xf32>
    %c0_25 = arith.constant 0 : index
    %c0_26 = arith.constant 0 : index
    %68 = vector.load %arg7[%c0_25, %c0_26] : memref<1x256xf32, #tpu.memory_space<vmem>>, vector<1x256xf32>
    %69 = vector.broadcast %68 : vector<1x256xf32> to vector<256x256xf32>
    %70 = arith.addf %67, %69 : vector<256x256xf32>
    %cst_27 = arith.constant dense<0.000000e+00> : vector<256xf32>
    %71 = vector.multi_reduction <add>, %70, %cst_27 [0] : vector<256x256xf32> to vector<256xf32>
    %72 = vector.shape_cast %71 : vector<256xf32> to vector<1x256xf32>
    %cst_28 = arith.constant 2.560000e+02 : f32
    %73 = vector.broadcast %cst_28 : f32 to vector<1x256xf32>
    %74 = arith.divf %72, %73 : vector<1x256xf32>
    %75 = vector.broadcast %74 : vector<1x256xf32> to vector<256x256xf32>
    %76 = arith.subf %70, %75 : vector<256x256xf32>
    %77 = arith.mulf %76, %76 : vector<256x256xf32>
    %cst_29 = arith.constant dense<0.000000e+00> : vector<256xf32>
    %78 = vector.multi_reduction <add>, %77, %cst_29 [0] : vector<256x256xf32> to vector<256xf32>
    %79 = vector.shape_cast %78 : vector<256xf32> to vector<1x256xf32>
    %cst_30 = arith.constant 2.560000e+02 : f32
    %80 = vector.broadcast %cst_30 : f32 to vector<1x256xf32>
    %81 = arith.divf %79, %80 : vector<1x256xf32>
    %cst_31 = arith.constant 9.99999974E-6 : f32
    %82 = vector.broadcast %cst_31 : f32 to vector<1x256xf32>
    %83 = arith.addf %81, %82 : vector<1x256xf32>
    %84 = math.rsqrt %83 : vector<1x256xf32>
    %85 = vector.broadcast %84 : vector<1x256xf32> to vector<256x256xf32>
    %86 = arith.mulf %76, %85 : vector<256x256xf32>
    %cst_32 = arith.constant dense<0xFF800000> : vector<256xf32>
    %87 = vector.multi_reduction <maximumf>, %86, %cst_32 [0] : vector<256x256xf32> to vector<256xf32>
    %88 = vector.shape_cast %87 : vector<256xf32> to vector<1x256xf32>
    %89 = arith.truncf %88 : vector<1x256xf32> to vector<1x256xbf16>
    %c0_33 = arith.constant 0 : index
    %c0_34 = arith.constant 0 : index
    %90 = vector.load %arg8[%c0_33, %c0_34] : memref<256x256xbf16, #tpu.memory_space<vmem>>, vector<256x256xbf16>
    %cst_35 = arith.constant dense<0.000000e+00> : vector<1x256xf32>
    %91 = tpu.matmul %89, %90, %cst_35 {dimension_numbers = #tpu.dot_dimension_numbers<[1], [0], [0], [1], [0, 0, 1, 1], [], []>} : vector<1x256xbf16>, vector<256x256xbf16>, vector<1x256xf32> -> vector<1x256xf32>
    %c0_36 = arith.constant 0 : index
    %c0_37 = arith.constant 0 : index
    %92 = vector.load %arg9[%c0_36, %c0_37] : memref<64x256xbf16, #tpu.memory_space<vmem>>, vector<64x256xbf16>
    %cst_38 = arith.constant dense<0.000000e+00> : vector<256x256xf32>
    %93 = tpu.matmul %41, %92, %cst_38 {dimension_numbers = #tpu.dot_dimension_numbers<[1], [0], [0], [1], [0, 0, 1, 1], [], []>} : vector<256x64xbf16>, vector<64x256xbf16>, vector<256x256xf32> -> vector<256x256xf32>
    %94 = vector.broadcast %91 : vector<1x256xf32> to vector<256x256xf32>
    %95 = arith.addf %93, %94 : vector<256x256xf32>
    %c0_39 = arith.constant 0 : index
    %c0_40 = arith.constant 0 : index
    %96 = vector.load %arg10[%c0_39, %c0_40] : memref<1x256xf32, #tpu.memory_space<vmem>>, vector<1x256xf32>
    %97 = vector.broadcast %96 : vector<1x256xf32> to vector<256x256xf32>
    %98 = arith.addf %95, %97 : vector<256x256xf32>
    %cst_41 = arith.constant dense<0.000000e+00> : vector<256xf32>
    %99 = vector.multi_reduction <add>, %98, %cst_41 [0] : vector<256x256xf32> to vector<256xf32>
    %100 = vector.shape_cast %99 : vector<256xf32> to vector<1x256xf32>
    %c0_42 = arith.constant 0 : index
    %c0_43 = arith.constant 0 : index
    %c0_44 = arith.constant 0 : index
    %101 = vector.load %arg12[%c0_42, %c0_43, %c0_44] : memref<1x2x256xf32, #tpu.memory_space<vmem>>, vector<1x1x256xf32>
    %102 = vector.shape_cast %101 : vector<1x1x256xf32> to vector<1x256xf32>
    %103 = vector.shape_cast %100 : vector<1x256xf32> to vector<1x1x256xf32>
    tpu.vector_store %arg12[%c0_42, %c0_43, %c0_44], %103 {strides = array<i32>} : memref<1x2x256xf32, #tpu.memory_space<vmem>>, vector<1x1x256xf32>,
    %104 = arith.mulf %98, %98 : vector<256x256xf32>
    %cst_45 = arith.constant dense<0.000000e+00> : vector<256xf32>
    %105 = vector.multi_reduction <add>, %104, %cst_45 [0] : vector<256x256xf32> to vector<256xf32>
    %106 = vector.shape_cast %105 : vector<256xf32> to vector<1x256xf32>
    %c0_46 = arith.constant 0 : index
    %c1 = arith.constant 1 : index
    %c0_47 = arith.constant 0 : index
    %107 = vector.load %arg12[%c0_46, %c1, %c0_47] : memref<1x2x256xf32, #tpu.memory_space<vmem>>, vector<1x1x256xf32>
    %108 = vector.shape_cast %107 : vector<1x1x256xf32> to vector<1x256xf32>
    %109 = vector.shape_cast %106 : vector<1x256xf32> to vector<1x1x256xf32>
    tpu.vector_store %arg12[%c0_46, %c1, %c0_47], %109 {strides = array<i32>} : memref<1x2x256xf32, #tpu.memory_space<vmem>>, vector<1x1x256xf32>,
    %110 = arith.truncf %98 : vector<256x256xf32> to vector<256x256xbf16>
    %c0_48 = arith.constant 0 : index
    %c0_49 = arith.constant 0 : index
    %c0_50 = arith.constant 0 : index
    %111 = vector.load %arg11[%c0_48, %c0_49, %c0_50] : memref<1x256x256xbf16, #tpu.memory_space<vmem>>, vector<1x256x256xbf16>
    %112 = vector.shape_cast %111 : vector<1x256x256xbf16> to vector<256x256xbf16>
    %113 = vector.shape_cast %110 : vector<256x256xbf16> to vector<1x256x256xbf16>
    tpu.vector_store %arg11[%c0_48, %c0_49, %c0_50], %113 {strides = array<i32>} : memref<1x256x256xbf16, #tpu.memory_space<vmem>>, vector<1x256x256xbf16>,
    return
  }
  func.func @transform_0(%arg0: i32) -> (i32, i32, i32) {
    %c0_i32 = arith.constant 0 : i32
    %c0_i32_0 = arith.constant 0 : i32
    %c0_i32_1 = arith.constant 0 : i32
    return %arg0, %c0_i32, %c0_i32_0 : i32, i32, i32
  }
  func.func @transform_1(%arg0: i32) -> (i32, i32) {
    %c0_i32 = arith.constant 0 : i32
    %c0_i32_0 = arith.constant 0 : i32
    %c0_i32_1 = arith.constant 0 : i32
    return %c0_i32, %c0_i32_0 : i32, i32
  }
  func.func @transform_2(%arg0: i32) -> (i32, i32) {
    %c0_i32 = arith.constant 0 : i32
    %c0_i32_0 = arith.constant 0 : i32
    %c0_i32_1 = arith.constant 0 : i32
    return %c0_i32, %c0_i32_0 : i32, i32
  }
  func.func @transform_3(%arg0: i32) -> (i32, i32) {
    %c0_i32 = arith.constant 0 : i32
    %c0_i32_0 = arith.constant 0 : i32
    %c0_i32_1 = arith.constant 0 : i32
    return %c0_i32, %c0_i32_0 : i32, i32
  }
  func.func @transform_4(%arg0: i32) -> (i32, i32) {
    %c0_i32 = arith.constant 0 : i32
    %c0_i32_0 = arith.constant 0 : i32
    %c0_i32_1 = arith.constant 0 : i32
    return %c0_i32, %c0_i32_0 : i32, i32
  }
  func.func @transform_5(%arg0: i32) -> (i32, i32) {
    %c0_i32 = arith.constant 0 : i32
    %c0_i32_0 = arith.constant 0 : i32
    %c0_i32_1 = arith.constant 0 : i32
    return %c0_i32, %c0_i32_0 : i32, i32
  }
  func.func @transform_6(%arg0: i32) -> (i32, i32) {
    %c0_i32 = arith.constant 0 : i32
    %c0_i32_0 = arith.constant 0 : i32
    %c0_i32_1 = arith.constant 0 : i32
    return %c0_i32, %c0_i32_0 : i32, i32
  }
  func.func @transform_7(%arg0: i32) -> (i32, i32) {
    %c0_i32 = arith.constant 0 : i32
    %c0_i32_0 = arith.constant 0 : i32
    %c0_i32_1 = arith.constant 0 : i32
    return %c0_i32, %c0_i32_0 : i32, i32
  }
  func.func @transform_8(%arg0: i32) -> (i32, i32) {
    %c0_i32 = arith.constant 0 : i32
    %c0_i32_0 = arith.constant 0 : i32
    %c0_i32_1 = arith.constant 0 : i32
    return %c0_i32, %c0_i32_0 : i32, i32
  }
  func.func @transform_9(%arg0: i32) -> (i32, i32) {
    %c0_i32 = arith.constant 0 : i32
    %c0_i32_0 = arith.constant 0 : i32
    %c0_i32_1 = arith.constant 0 : i32
    return %c0_i32, %c0_i32_0 : i32, i32
  }
  func.func @transform_10(%arg0: i32) -> (i32, i32, i32) {
    %c0_i32 = arith.constant 0 : i32
    %c0_i32_0 = arith.constant 0 : i32
    %c0_i32_1 = arith.constant 0 : i32
    return %arg0, %c0_i32, %c0_i32_0 : i32, i32, i32
  }
  func.func @transform_11(%arg0: i32) -> (i32, i32, i32) {
    %c0_i32 = arith.constant 0 : i32
    %c0_i32_0 = arith.constant 0 : i32
    %c0_i32_1 = arith.constant 0 : i32
    return %arg0, %c0_i32, %c0_i32_0 : i32, i32, i32
  }
}

module attributes {stable_mosaic.version = 11 : i64} {
  func.func @_head_mid_kernel(%arg0: i32, %arg1: memref<512x128xbf16, #tpu.memory_space<vmem>>, %arg2: memref<1x128xf32, #tpu.memory_space<vmem>>, %arg3: memref<1x128xf32, #tpu.memory_space<vmem>>, %arg4: memref<128x128xbf16, #tpu.memory_space<vmem>>, %arg5: memref<1x128xf32, #tpu.memory_space<vmem>>, %arg6: memref<512x128xbf16, #tpu.memory_space<vmem>>, %arg7: memref<1x2x128xf32, #tpu.memory_space<vmem>>) attributes {dimension_semantics = [#tpu.dimension_semantics<parallel>], iteration_bounds = array<i64: 1>, scalar_prefetch = 0 : i64, scratch_operands = 0 : i64, tpu.core_type = #tpu.core_type<tc>, window_params = [{transform_indices = @transform_0, window_bounds = array<i64: 512, 128>}, {pipeline_mode = #tpu.pipeline_mode<synchronous>, transform_indices = @transform_1, window_bounds = array<i64: 1, 128>}, {pipeline_mode = #tpu.pipeline_mode<synchronous>, transform_indices = @transform_2, window_bounds = array<i64: 1, 128>}, {pipeline_mode = #tpu.pipeline_mode<synchronous>, transform_indices = @transform_3, window_bounds = array<i64: 128, 128>}, {pipeline_mode = #tpu.pipeline_mode<synchronous>, transform_indices = @transform_4, window_bounds = array<i64: 1, 128>}, {transform_indices = @transform_5, window_bounds = array<i64: 512, 128>}, {transform_indices = @transform_6, window_bounds = array<i64: 1, 2, 128>}]} {
    %c0 = arith.constant 0 : index
    %c0_0 = arith.constant 0 : index
    %0 = vector.load %arg1[%c0, %c0_0] : memref<512x128xbf16, #tpu.memory_space<vmem>>, vector<512x128xbf16>
    %1 = arith.extf %0 : vector<512x128xbf16> to vector<512x128xf32>
    %c0_1 = arith.constant 0 : index
    %c0_2 = arith.constant 0 : index
    %2 = vector.load %arg2[%c0_1, %c0_2] : memref<1x128xf32, #tpu.memory_space<vmem>>, vector<1x128xf32>
    %3 = vector.broadcast %2 : vector<1x128xf32> to vector<512x128xf32>
    %4 = arith.subf %1, %3 : vector<512x128xf32>
    %c0_3 = arith.constant 0 : index
    %c0_4 = arith.constant 0 : index
    %5 = vector.load %arg3[%c0_3, %c0_4] : memref<1x128xf32, #tpu.memory_space<vmem>>, vector<1x128xf32>
    %cst = arith.constant 9.99999974E-6 : f32
    %6 = vector.broadcast %cst : f32 to vector<1x128xf32>
    %7 = arith.addf %5, %6 : vector<1x128xf32>
    %8 = math.rsqrt %7 : vector<1x128xf32>
    %9 = vector.broadcast %8 : vector<1x128xf32> to vector<512x128xf32>
    %10 = arith.mulf %4, %9 : vector<512x128xf32>
    %cst_5 = arith.constant 0.000000e+00 : f32
    %11 = vector.broadcast %cst_5 : f32 to vector<512x128xf32>
    %12 = arith.maximumf %10, %11 : vector<512x128xf32>
    %13 = arith.truncf %12 : vector<512x128xf32> to vector<512x128xbf16>
    %c0_6 = arith.constant 0 : index
    %c0_7 = arith.constant 0 : index
    %14 = vector.load %arg4[%c0_6, %c0_7] : memref<128x128xbf16, #tpu.memory_space<vmem>>, vector<128x128xbf16>
    %cst_8 = arith.constant dense<0.000000e+00> : vector<512x128xf32>
    %15 = tpu.matmul %13, %14, %cst_8 {dimension_numbers = #tpu.dot_dimension_numbers<[1], [0], [0], [1], [0, 0, 1, 1], [], []>} : vector<512x128xbf16>, vector<128x128xbf16>, vector<512x128xf32> -> vector<512x128xf32>
    %c0_9 = arith.constant 0 : index
    %c0_10 = arith.constant 0 : index
    %16 = vector.load %arg5[%c0_9, %c0_10] : memref<1x128xf32, #tpu.memory_space<vmem>>, vector<1x128xf32>
    %17 = vector.broadcast %16 : vector<1x128xf32> to vector<512x128xf32>
    %18 = arith.addf %15, %17 : vector<512x128xf32>
    %cst_11 = arith.constant dense<0.000000e+00> : vector<128xf32>
    %19 = vector.multi_reduction <add>, %18, %cst_11 [0] : vector<512x128xf32> to vector<128xf32>
    %20 = vector.shape_cast %19 : vector<128xf32> to vector<1x128xf32>
    %c0_12 = arith.constant 0 : index
    %c0_13 = arith.constant 0 : index
    %c0_14 = arith.constant 0 : index
    %21 = vector.load %arg7[%c0_12, %c0_13, %c0_14] : memref<1x2x128xf32, #tpu.memory_space<vmem>>, vector<1x1x128xf32>
    %22 = vector.shape_cast %21 : vector<1x1x128xf32> to vector<1x128xf32>
    %23 = vector.shape_cast %20 : vector<1x128xf32> to vector<1x1x128xf32>
    tpu.vector_store %arg7[%c0_12, %c0_13, %c0_14], %23 {strides = array<i32>} : memref<1x2x128xf32, #tpu.memory_space<vmem>>, vector<1x1x128xf32>,
    %24 = arith.mulf %18, %18 : vector<512x128xf32>
    %cst_15 = arith.constant dense<0.000000e+00> : vector<128xf32>
    %25 = vector.multi_reduction <add>, %24, %cst_15 [0] : vector<512x128xf32> to vector<128xf32>
    %26 = vector.shape_cast %25 : vector<128xf32> to vector<1x128xf32>
    %c0_16 = arith.constant 0 : index
    %c1 = arith.constant 1 : index
    %c0_17 = arith.constant 0 : index
    %27 = vector.load %arg7[%c0_16, %c1, %c0_17] : memref<1x2x128xf32, #tpu.memory_space<vmem>>, vector<1x1x128xf32>
    %28 = vector.shape_cast %27 : vector<1x1x128xf32> to vector<1x128xf32>
    %29 = vector.shape_cast %26 : vector<1x128xf32> to vector<1x1x128xf32>
    tpu.vector_store %arg7[%c0_16, %c1, %c0_17], %29 {strides = array<i32>} : memref<1x2x128xf32, #tpu.memory_space<vmem>>, vector<1x1x128xf32>,
    %30 = arith.truncf %18 : vector<512x128xf32> to vector<512x128xbf16>
    %c0_18 = arith.constant 0 : index
    %c0_19 = arith.constant 0 : index
    %31 = vector.load %arg6[%c0_18, %c0_19] : memref<512x128xbf16, #tpu.memory_space<vmem>>, vector<512x128xbf16>
    tpu.vector_store %arg6[%c0_18, %c0_19], %30 {strides = array<i32>} : memref<512x128xbf16, #tpu.memory_space<vmem>>, vector<512x128xbf16>,
    return
  }
  func.func @transform_0(%arg0: i32) -> (i32, i32) {
    %c0_i32 = arith.constant 0 : i32
    %c0_i32_0 = arith.constant 0 : i32
    return %arg0, %c0_i32 : i32, i32
  }
  func.func @transform_1(%arg0: i32) -> (i32, i32) {
    %c0_i32 = arith.constant 0 : i32
    %c0_i32_0 = arith.constant 0 : i32
    %c0_i32_1 = arith.constant 0 : i32
    return %c0_i32, %c0_i32_0 : i32, i32
  }
  func.func @transform_2(%arg0: i32) -> (i32, i32) {
    %c0_i32 = arith.constant 0 : i32
    %c0_i32_0 = arith.constant 0 : i32
    %c0_i32_1 = arith.constant 0 : i32
    return %c0_i32, %c0_i32_0 : i32, i32
  }
  func.func @transform_3(%arg0: i32) -> (i32, i32) {
    %c0_i32 = arith.constant 0 : i32
    %c0_i32_0 = arith.constant 0 : i32
    %c0_i32_1 = arith.constant 0 : i32
    return %c0_i32, %c0_i32_0 : i32, i32
  }
  func.func @transform_4(%arg0: i32) -> (i32, i32) {
    %c0_i32 = arith.constant 0 : i32
    %c0_i32_0 = arith.constant 0 : i32
    %c0_i32_1 = arith.constant 0 : i32
    return %c0_i32, %c0_i32_0 : i32, i32
  }
  func.func @transform_5(%arg0: i32) -> (i32, i32) {
    %c0_i32 = arith.constant 0 : i32
    %c0_i32_0 = arith.constant 0 : i32
    return %arg0, %c0_i32 : i32, i32
  }
  func.func @transform_6(%arg0: i32) -> (i32, i32, i32) {
    %c0_i32 = arith.constant 0 : i32
    %c0_i32_0 = arith.constant 0 : i32
    %c0_i32_1 = arith.constant 0 : i32
    return %arg0, %c0_i32, %c0_i32_0 : i32, i32, i32
  }
}

module attributes {stable_mosaic.version = 11 : i64} {
  func.func @_head_final_kernel(%arg0: i32, %arg1: memref<512x128xbf16, #tpu.memory_space<vmem>>, %arg2: memref<1x128xf32, #tpu.memory_space<vmem>>, %arg3: memref<1x128xf32, #tpu.memory_space<vmem>>, %arg4: memref<128x16xbf16, #tpu.memory_space<vmem>>, %arg5: memref<1x16xf32, #tpu.memory_space<vmem>>, %arg6: memref<512x16xf32, #tpu.memory_space<vmem>>) attributes {dimension_semantics = [#tpu.dimension_semantics<parallel>], iteration_bounds = array<i64: 1>, scalar_prefetch = 0 : i64, scratch_operands = 0 : i64, tpu.core_type = #tpu.core_type<tc>, window_params = [{transform_indices = @transform_0, window_bounds = array<i64: 512, 128>}, {pipeline_mode = #tpu.pipeline_mode<synchronous>, transform_indices = @transform_1, window_bounds = array<i64: 1, 128>}, {pipeline_mode = #tpu.pipeline_mode<synchronous>, transform_indices = @transform_2, window_bounds = array<i64: 1, 128>}, {pipeline_mode = #tpu.pipeline_mode<synchronous>, transform_indices = @transform_3, window_bounds = array<i64: 128, 16>}, {pipeline_mode = #tpu.pipeline_mode<synchronous>, transform_indices = @transform_4, window_bounds = array<i64: 1, 16>}, {transform_indices = @transform_5, window_bounds = array<i64: 512, 16>}]} {
    %c0 = arith.constant 0 : index
    %c0_0 = arith.constant 0 : index
    %0 = vector.load %arg1[%c0, %c0_0] : memref<512x128xbf16, #tpu.memory_space<vmem>>, vector<512x128xbf16>
    %1 = arith.extf %0 : vector<512x128xbf16> to vector<512x128xf32>
    %c0_1 = arith.constant 0 : index
    %c0_2 = arith.constant 0 : index
    %2 = vector.load %arg2[%c0_1, %c0_2] : memref<1x128xf32, #tpu.memory_space<vmem>>, vector<1x128xf32>
    %3 = vector.broadcast %2 : vector<1x128xf32> to vector<512x128xf32>
    %4 = arith.subf %1, %3 : vector<512x128xf32>
    %c0_3 = arith.constant 0 : index
    %c0_4 = arith.constant 0 : index
    %5 = vector.load %arg3[%c0_3, %c0_4] : memref<1x128xf32, #tpu.memory_space<vmem>>, vector<1x128xf32>
    %cst = arith.constant 9.99999974E-6 : f32
    %6 = vector.broadcast %cst : f32 to vector<1x128xf32>
    %7 = arith.addf %5, %6 : vector<1x128xf32>
    %8 = math.rsqrt %7 : vector<1x128xf32>
    %9 = vector.broadcast %8 : vector<1x128xf32> to vector<512x128xf32>
    %10 = arith.mulf %4, %9 : vector<512x128xf32>
    %cst_5 = arith.constant 0.000000e+00 : f32
    %11 = vector.broadcast %cst_5 : f32 to vector<512x128xf32>
    %12 = arith.maximumf %10, %11 : vector<512x128xf32>
    %13 = arith.truncf %12 : vector<512x128xf32> to vector<512x128xbf16>
    %c0_6 = arith.constant 0 : index
    %c0_7 = arith.constant 0 : index
    %14 = vector.load %arg4[%c0_6, %c0_7] : memref<128x16xbf16, #tpu.memory_space<vmem>>, vector<128x16xbf16>
    %cst_8 = arith.constant dense<0.000000e+00> : vector<512x16xf32>
    %15 = tpu.matmul %13, %14, %cst_8 {dimension_numbers = #tpu.dot_dimension_numbers<[1], [0], [0], [1], [0, 0, 1, 1], [], []>} : vector<512x128xbf16>, vector<128x16xbf16>, vector<512x16xf32> -> vector<512x16xf32>
    %c0_9 = arith.constant 0 : index
    %c0_10 = arith.constant 0 : index
    %16 = vector.load %arg5[%c0_9, %c0_10] : memref<1x16xf32, #tpu.memory_space<vmem>>, vector<1x16xf32>
    %17 = vector.broadcast %16 : vector<1x16xf32> to vector<512x16xf32>
    %18 = arith.addf %15, %17 : vector<512x16xf32>
    %19 = tpu.iota {dimensions = array<i32: 1>} : vector<512x16xi32>
    %c13_i32 = arith.constant 13 : i32
    %20 = vector.broadcast %c13_i32 : i32 to vector<512x16xi32>
    %21 = arith.cmpi slt, %19, %20 : vector<512x16xi32>
    %cst_11 = arith.constant -1.000000e+30 : f32
    %22 = vector.broadcast %cst_11 : f32 to vector<512x16xf32>
    %23 = arith.select %21, %18, %22 : vector<512x16xi1>, vector<512x16xf32>
    %cst_12 = arith.constant dense<0xFF800000> : vector<512xf32>
    %24 = vector.multi_reduction <maximumf>, %23, %cst_12 [1] : vector<512x16xf32> to vector<512xf32>
    %25 = vector.shape_cast %24 : vector<512xf32> to vector<512x1xf32>
    %26 = vector.broadcast %25 : vector<512x1xf32> to vector<512x16xf32>
    %27 = arith.subf %23, %26 : vector<512x16xf32>
    %28 = math.exp %27 : vector<512x16xf32>
    %cst_13 = arith.constant dense<0.000000e+00> : vector<512xf32>
    %29 = vector.multi_reduction <add>, %28, %cst_13 [1] : vector<512x16xf32> to vector<512xf32>
    %30 = vector.shape_cast %29 : vector<512xf32> to vector<512x1xf32>
    %31 = math.log %30 : vector<512x1xf32>
    %32 = vector.broadcast %31 : vector<512x1xf32> to vector<512x16xf32>
    %33 = arith.subf %27, %32 : vector<512x16xf32>
    %c0_14 = arith.constant 0 : index
    %c0_15 = arith.constant 0 : index
    %34 = vector.load %arg6[%c0_14, %c0_15] : memref<512x16xf32, #tpu.memory_space<vmem>>, vector<512x16xf32>
    tpu.vector_store %arg6[%c0_14, %c0_15], %33 {strides = array<i32>} : memref<512x16xf32, #tpu.memory_space<vmem>>, vector<512x16xf32>,
    return
  }
  func.func @transform_0(%arg0: i32) -> (i32, i32) {
    %c0_i32 = arith.constant 0 : i32
    %c0_i32_0 = arith.constant 0 : i32
    return %arg0, %c0_i32 : i32, i32
  }
  func.func @transform_1(%arg0: i32) -> (i32, i32) {
    %c0_i32 = arith.constant 0 : i32
    %c0_i32_0 = arith.constant 0 : i32
    %c0_i32_1 = arith.constant 0 : i32
    return %c0_i32, %c0_i32_0 : i32, i32
  }
  func.func @transform_2(%arg0: i32) -> (i32, i32) {
    %c0_i32 = arith.constant 0 : i32
    %c0_i32_0 = arith.constant 0 : i32
    %c0_i32_1 = arith.constant 0 : i32
    return %c0_i32, %c0_i32_0 : i32, i32
  }
  func.func @transform_3(%arg0: i32) -> (i32, i32) {
    %c0_i32 = arith.constant 0 : i32
    %c0_i32_0 = arith.constant 0 : i32
    %c0_i32_1 = arith.constant 0 : i32
    return %c0_i32, %c0_i32_0 : i32, i32
  }
  func.func @transform_4(%arg0: i32) -> (i32, i32) {
    %c0_i32 = arith.constant 0 : i32
    %c0_i32_0 = arith.constant 0 : i32
    %c0_i32_1 = arith.constant 0 : i32
    return %c0_i32, %c0_i32_0 : i32, i32
  }
  func.func @transform_5(%arg0: i32) -> (i32, i32) {
    %c0_i32 = arith.constant 0 : i32
    %c0_i32_0 = arith.constant 0 : i32
    return %arg0, %c0_i32 : i32, i32
  }
}

</mosaic_0001>

<bundles_post_ra>
// kernel: pointnet_dense_cls.6
= control target key start
LH: loop header
LB: loop body
LE: loop exit
PB: predicated region body
PF: predicated region fallthrough
CT: control target
= control target key end

     0   :  { %s2182_s3 = inlined_call_operand.vmem [shape: bf16[128,128], index: 3, kind: input, shape index: {}]   ;;  %s2183_s2 = inlined_call_operand.vmem [shape: f32[1,128], index: 2, kind: input, shape index: {}]   ;;  %s2184_s1 = inlined_call_operand.vmem [shape: f32[1,128], index: 1, kind: input, shape index: {}]   ;;  %s2185_s0 = inlined_call_operand.vmem [shape: bf16[512,128], index: 0, kind: input, shape index: {}]   ;;  %s2186_s4 = inlined_call_operand.vmem [shape: f32[1,128], index: 4, kind: input, shape index: {}]   ;;  %s2187_s5 = inlined_call_operand.vmem [shape: bf16[512,128], index: 5, kind: output, shape index: {0}]   ;;  %s2188_s6 = inlined_call_operand.vmem [shape: f32[1,2,128], index: 6, kind: output, shape index: {1}]  }
   0x1   :  { %v1009_v0 = vld [vmem:[%s2182_s3 + $0x38] sm:$0xff]  ;;  %v1008_v1 = vld [vmem:[%s2182_s3 + $0x30] sm:$0xff]  ;;  %v218_v2 = vld [vmem:[%s2183_s2] sm:$0x1] }
   0x2   :  { %461 = vmatpush.bf16.msra.mxu0 %v1009_v0  ;;  %1360 = vmatpush.bf16.msra.mxu1 %v1009_v0  ;;  %v219_v3 = vadd.f32 1e-05, %v218_v2  ;;  %v1007_v4 = vld [vmem:[%s2182_s3 + $0x28] sm:$0xff]  ;;  %v1006_v5 = vld [vmem:[%s2182_s3 + $0x20] sm:$0xff]  ;;  %v1005_v8 = vld [vmem:[%s2182_s3 + $0x18] sm:$0xff] }
   0x3   :  { %1361 = vmatpush.bf16.msra.mxu2 %v1009_v0  ;;  %1362 = vmatpush.bf16.msra.mxu3 %v1009_v0  ;;  %v1011_v9 = vld [vmem:[%s2185_s0] sm:$0xff]   ;;  %v1004_v13 = vld [vmem:[%s2182_s3 + $0x10] sm:$0xff]  ;;  %v1003_v21 = vld [vmem:[%s2182_s3 + $0x8] sm:$0xff] }
   0x4   :  { %1386 = vrsqrt.f32 %v219_v3  ;;  %v1305_v11 = vld [vmem:[%s2185_s0 + $0x40] sm:$0xff]   ;;  %vm226_vm0 = vweird.f32 %v219_v3  ;;  %v1012_v14 = vunpack.c.l.bf16 %v1011_v9  ;;  %v1013_v15 = vunpack.c.h.bf16 %v1011_v9  ;;  %v1298_v31 = vld [vmem:[%s2185_s0 + $0x8] sm:$0xff]   ;;  %v1299_v56 = vld [vmem:[%s2185_s0 + $0x10] sm:$0xff]  }
   0x5   :  { %v1453_v16 = vld [vmem:[%s2184_s1] ss:$0 sm:$0xff]  ;;  %v1044_v18 = vunpack.c.l.bf16 %v1305_v11  ;;  %v1045_v19 = vunpack.c.h.bf16 %v1305_v11  ;;  %v1016_v36 = vunpack.c.l.bf16 %v1298_v31  ;;  %v1017_v37 = vunpack.c.h.bf16 %v1298_v31  ;;  %v1306_v41 = vld [vmem:[%s2185_s0 + $0x48] sm:$0xff]  }
   0x6   :  { %462 = vmatpush.bf16.msra.mxu0 %v1008_v1  ;;  %1363 = vmatpush.bf16.msra.mxu1 %v1008_v1  ;;  %v154_v22 = vsub.f32 %v1012_v14, %v1453_v16  ;;  %v155_v23 = vsub.f32 %v1013_v15, %v1453_v16  ;;  %v1002_v28 = vld [vmem:[%s2182_s3] sm:$0xff]  ;;  %v1048_v43 = vunpack.c.l.bf16 %v1306_v41  ;;  %v1049_v44 = vunpack.c.h.bf16 %v1306_v41 }
   0x7   :  { %1364 = vmatpush.bf16.msra.mxu2 %v1008_v1  ;;  %1365 = vmatpush.bf16.msra.mxu3 %v1008_v1  ;;  %v170_v25 = vsub.f32 %v1044_v18, %v1453_v16  ;;  %v171_v26 = vsub.f32 %v1045_v19, %v1453_v16  ;;  %v156_v45 = vsub.f32 %v1016_v36, %v1453_v16  ;;  %v1313_v53 = vld [vmem:[%s2185_s0 + $0x80] sm:$0xff]   ;;  %v1020_v63 = vunpack.c.l.bf16 %v1299_v56 }
   0x8   :  { %v157_v46 = vsub.f32 %v1017_v37, %v1453_v16  ;;  %v172_v47 = vsub.f32 %v1048_v43, %v1453_v16  ;;  %v173_v48 = vsub.f32 %v1049_v44, %v1453_v16  ;;  %v1076_v57 = vunpack.c.l.bf16 %v1313_v53  ;;  %v1308_v37 = vld [vmem:[%s2185_s0 + $0x58] sm:$0xff]  }
   0x9   :  { %v1077_v58 = vunpack.c.h.bf16 %v1313_v53  ;;  %v1021_v1 = vunpack.c.h.bf16 %v1299_v56  ;;  %v1057_v41 = vunpack.c.h.bf16 %v1308_v37  ;;  %v1315_v53 = vld [vmem:[%s2185_s0 + $0x90] sm:$0xff]  }
   0xa   :  { %463 = vmatpush.bf16.msra.mxu0 %v1007_v4  ;;  %1366 = vmatpush.bf16.msra.mxu1 %v1007_v4  ;;  %v1387_v6 = vpop.eup %1386  ;;  %v186_v61 = vsub.f32 %v1076_v57, %v1453_v16  ;;  %v1084_v56 = vunpack.c.l.bf16 %v1315_v53  ;;  %v1085_v57 = vunpack.c.h.bf16 %v1315_v53 }
   0xb   :  { %1367 = vmatpush.bf16.msra.mxu2 %v1007_v4  ;;  %1368 = vmatpush.bf16.msra.mxu3 %v1007_v4  ;;  %v221_v7 = vmul.f32 %v1387_v6, %v219_v3  ;;  %vm227_vm1 = vweird.f32 %v1387_v6  ;;  %v187_v62 = vsub.f32 %v1077_v58, %v1453_v16  ;;  %v159_v11 = vsub.f32 %v1021_v1, %v1453_v16 }
   0xc   :  { %vm228_vm2 = vmor %vm226_vm0, %vm227_vm1 }
   0xd   :  { %v222_v10 = vmul.f32 %v1387_v6, %v221_v7 }
   0xe   :  { %464 = vmatpush.bf16.msra.mxu0 %v1006_v5  ;;  %1369 = vmatpush.bf16.msra.mxu1 %v1006_v5 }
   0xf   :  { %1370 = vmatpush.bf16.msra.mxu2 %v1006_v5  ;;  %1371 = vmatpush.bf16.msra.mxu3 %v1006_v5  ;;  %v223_v12 = vmul.f32 0.5, %v222_v10  ;;  %v1307_v5 = vld [vmem:[%s2185_s0 + $0x50] sm:$0xff]   ;;  %v158_v10 = vsub.f32 %v1020_v63, %v1453_v16  ;;  %v191_v63 = vsub.f32 %v1085_v57, %v1453_v16 }
  0x10   :  { %v1053_v9 = vunpack.c.h.bf16 %v1307_v5 }
  0x11   :  { %v224_v17 = vsub.f32 1.5, %v223_v12 }
  0x12   :  { %465 = vmatpush.bf16.msra.mxu0 %v1005_v8  ;;  %1372 = vmatpush.bf16.msra.mxu1 %v1005_v8  ;;  %v175_v14 = vsub.f32 %v1053_v9, %v1453_v16 }
  0x13   :  { %1373 = vmatpush.bf16.msra.mxu2 %v1005_v8  ;;  %1374 = vmatpush.bf16.msra.mxu3 %v1005_v8  ;;  %v225_v20 = vmul.f32 %v1387_v6, %v224_v17  ;;  %v1052_v8 = vunpack.c.l.bf16 %v1307_v5 }
  0x15   :  { %v229_v24 = vsel %vm228_vm2, %v1387_v6, %v225_v20  ;;  %v1314_v20 = vld [vmem:[%s2185_s0 + $0x88] sm:$0xff]  }
  0x16   :  { %466 = vmatpush.bf16.msra.mxu0 %v1004_v13  ;;  %1375 = vmatpush.bf16.msra.mxu1 %v1004_v13  ;;  %v1462_v27 = vperm.slane %v229_v24, 0  ;;  %v1080_v24 = vunpack.c.l.bf16 %v1314_v20 }
  0x17   :  { %1376 = vmatpush.bf16.msra.mxu2 %v1004_v13  ;;  %1377 = vmatpush.bf16.msra.mxu3 %v1004_v13  ;;  %v174_v13 = vsub.f32 %v1052_v8, %v1453_v16 }
  0x18   :  { %v233_v29 = vmul.f32 %v1462_v27, %v154_v22  ;;  %v234_v30 = vmul.f32 %v1462_v27, %v155_v23  ;;  %v249_v32 = vmul.f32 %v1462_v27, %v170_v25  ;;  %v250_v33 = vmul.f32 %v1462_v27, %v171_v26  ;;  %v1300_v23 = vld [vmem:[%s2185_s0 + $0x18] sm:$0xff]  }
  0x19   :  { %v235_v49 = vmul.f32 %v1462_v27, %v156_v45  ;;  %v236_v50 = vmul.f32 %v1462_v27, %v157_v46  ;;  %v251_v51 = vmul.f32 %v1462_v27, %v172_v47  ;;  %v252_v52 = vmul.f32 %v1462_v27, %v173_v48 }
  0x1a   :  { %467 = vmatpush.bf16.msra.mxu0 %v1003_v21  ;;  %1378 = vmatpush.bf16.msra.mxu1 %v1003_v21  ;;  %v297_v34 = vmax.f32 %v233_v29, 0.0  ;;  %v298_v35 = vmax.f32 %v234_v30, 0.0  ;;  %v313_v38 = vmax.f32 %v249_v32, 0.0  ;;  %v314_v39 = vmax.f32 %v250_v33, 0.0 }
  0x1b   :  { %1379 = vmatpush.bf16.msra.mxu2 %v1003_v21  ;;  %1380 = vmatpush.bf16.msra.mxu3 %v1003_v21  ;;  %v299_v54 = vmax.f32 %v235_v49, 0.0  ;;  %v300_v55 = vmax.f32 %v236_v50, 0.0  ;;  %v315_v59 = vmax.f32 %v251_v51, 0.0  ;;  %v316_v60 = vmax.f32 %v252_v52, 0.0 }
  0x1c   :  { %v361_v40 = vpack.c.bf16 %v298_v35, %v297_v34  ;;  %v369_v42 = vpack.c.bf16 %v314_v39, %v313_v38  ;;  %v265_v2 = vmul.f32 %v1462_v27, %v186_v61  ;;  %v266_v3 = vmul.f32 %v1462_v27, %v187_v62 }
  0x1d   :  { %v362_v0 = vpack.c.bf16 %v300_v55, %v299_v54  ;;  %v370_v4 = vpack.c.bf16 %v316_v60, %v315_v59  ;;  %v237_v15 = vmul.f32 %v1462_v27, %v158_v10  ;;  %v238_v17 = vmul.f32 %v1462_v27, %v159_v11  ;;  %v1321_v54 = vld [vmem:[%s2185_s0 + $0xc0] sm:$0xff]  }
  0x1e   :  { %468 = vmatpush.bf16.msra.mxu0 %v1002_v28  ;;  %1381 = vmatpush.bf16.msra.mxu1 %v1002_v28  ;;  %v329_v6 = vmax.f32 %v265_v2, 0.0  ;;  %v330_v7 = vmax.f32 %v266_v3, 0.0  ;;  %v253_v18 = vmul.f32 %v1462_v27, %v174_v13  ;;  %v254_v19 = vmul.f32 %v1462_v27, %v175_v14  ;;  %v1301_v55 = vld [vmem:[%s2185_s0 + $0x20] sm:$0xff]  }
  0x1f   :  { %1382 = vmatpush.bf16.msra.mxu2 %v1002_v28  ;;  %1383 = vmatpush.bf16.msra.mxu3 %v1002_v28  ;;  %v301_v21 = vmax.f32 %v237_v15, 0.0  ;;  %v302_v22 = vmax.f32 %v238_v17, 0.0  ;;  %v1081_v25 = vunpack.c.h.bf16 %v1314_v20  ;;  %v188_v29 = vsub.f32 %v1080_v24, %v1453_v16  ;;  %v1309_v10 = vld [vmem:[%s2185_s0 + $0x60] sm:$0xff]  }
  0x20   :  { %v377_v12 = vpack.c.bf16 %v330_v7, %v329_v6  ;;  %v317_v26 = vmax.f32 %v253_v18, 0.0  ;;  %v318_v28 = vmax.f32 %v254_v19, 0.0  ;;  %v1024_v31 = vunpack.c.l.bf16 %v1300_v23 }
  0x21   :  { %469 = vmatmul.bf16.vlgmr.msra.gmra.mxu0 %v361_v40  ;;  %509 = vmatmul.bf16.vlgmr.msra.gmra.mxu1 %v369_v42  ;;  %v189_v30 = vsub.f32 %v1081_v25, %v1453_v16  ;;  %v1025_v32 = vunpack.c.h.bf16 %v1300_v23  ;;  %v363_v33 = vpack.c.bf16 %v302_v22, %v301_v21  ;;  %v267_v34 = vmul.f32 %v1462_v27, %v188_v29 }
  0x22   :  { %549 = vmatmul.bf16.vlgmr.msra.gmra.mxu2 %v377_v12  ;;  %v371_v36 = vpack.c.bf16 %v318_v28, %v317_v26  ;;  %v1056_v40 = vunpack.c.l.bf16 %v1308_v37  ;;  %v160_v42 = vsub.f32 %v1024_v31, %v1453_v16  ;;  %v177_v46 = vsub.f32 %v1057_v41, %v1453_v16  ;;  %v1316_v31 = vld [vmem:[%s2185_s0 + $0x98] sm:$0xff]  }
  0x23   :  { %v268_v35 = vmul.f32 %v1462_v27, %v189_v30  ;;  %v331_v38 = vmax.f32 %v267_v34, 0.0  ;;  %v161_v43 = vsub.f32 %v1025_v32, %v1453_v16  ;;  %v1108_v58 = vunpack.c.l.bf16 %v1321_v54  ;;  %v1322_v32 = vld [vmem:[%s2185_s0 + $0xc8] sm:$0xff]  }
  0x24   :  { %v176_v45 = vsub.f32 %v1056_v40, %v1453_v16  ;;  %v239_v47 = vmul.f32 %v1462_v27, %v160_v42  ;;  %v256_v50 = vmul.f32 %v1462_v27, %v177_v46  ;;  %v1109_v59 = vunpack.c.h.bf16 %v1321_v54 }
  0x25   :  { %v332_v39 = vmax.f32 %v268_v35, 0.0  ;;  %v240_v48 = vmul.f32 %v1462_v27, %v161_v43  ;;  %v190_v62 = vsub.f32 %v1084_v56, %v1453_v16  ;;  %v1028_v3 = vunpack.c.l.bf16 %v1301_v55 }
  0x26   :  { %v255_v49 = vmul.f32 %v1462_v27, %v176_v45  ;;  %v303_v51 = vmax.f32 %v239_v47, 0.0  ;;  %v320_v61 = vmax.f32 %v256_v50, 0.0  ;;  %v203_v1 = vsub.f32 %v1109_v59, %v1453_v16 }
  0x27   :  { %v378_v44 = vpack.c.bf16 %v332_v39, %v331_v38  ;;  %v304_v52 = vmax.f32 %v240_v48, 0.0  ;;  %v269_v5 = vmul.f32 %v1462_v27, %v190_v62  ;;  %v270_v6 = vmul.f32 %v1462_v27, %v191_v63 }
  0x28   :  { %v319_v60 = vmax.f32 %v255_v49, 0.0  ;;  %v282_v8 = vmul.f32 %v1462_v27, %v203_v1  ;;  %v162_v15 = vsub.f32 %v1028_v3, %v1453_v16  ;;  %v1060_v18 = vunpack.c.l.bf16 %v1309_v10 }
  0x29   :  { %v364_v2 = vpack.c.bf16 %v304_v52, %v303_v51  ;;  %v333_v11 = vmax.f32 %v269_v5, 0.0  ;;  %v334_v12 = vmax.f32 %v270_v6, 0.0  ;;  %v1061_v19 = vunpack.c.h.bf16 %v1309_v10  ;;  %v1310_v52 = vld [vmem:[%s2185_s0 + $0x68] sm:$0xff]  }
  0x2a   :  { %v372_v9 = vpack.c.bf16 %v320_v61, %v319_v60  ;;  %v346_v14 = vmax.f32 %v282_v8, 0.0  ;;  %v178_v22 = vsub.f32 %v1060_v18, %v1453_v16  ;;  %v241_v24 = vmul.f32 %v1462_v27, %v162_v15  ;;  %v1323_v8 = vld [vmem:[%s2185_s0 + $0xd0] sm:$0xff]  }
  0x2b   :  { %v379_v20 = vpack.c.bf16 %v334_v12, %v333_v11  ;;  %v179_v23 = vsub.f32 %v1061_v19, %v1453_v16  ;;  %v1088_v34 = vunpack.c.l.bf16 %v1316_v31  ;;  %v1089_v35 = vunpack.c.h.bf16 %v1316_v31 }
  0x2c   :  { %v257_v26 = vmul.f32 %v1462_v27, %v178_v22  ;;  %v305_v29 = vmax.f32 %v241_v24, 0.0  ;;  %v1113_v37 = vunpack.c.h.bf16 %v1322_v32  ;;  %v1064_v59 = vunpack.c.l.bf16 %v1310_v52 }
  0x2d   :  { %v258_v28 = vmul.f32 %v1462_v27, %v179_v23  ;;  %v192_v40 = vsub.f32 %v1088_v34, %v1453_v16  ;;  %v193_v41 = vsub.f32 %v1089_v35, %v1453_v16  ;;  %v1065_v60 = vunpack.c.h.bf16 %v1310_v52 }
  0x2e   :  { %v321_v38 = vmax.f32 %v257_v26, 0.0  ;;  %v205_v43 = vsub.f32 %v1113_v37, %v1453_v16  ;;  %v180_v63 = vsub.f32 %v1064_v59, %v1453_v16  ;;  %v1116_v12 = vunpack.c.l.bf16 %v1323_v8 }
  0x2f   :  { %v322_v39 = vmax.f32 %v258_v28, 0.0  ;;  %v271_v47 = vmul.f32 %v1462_v27, %v192_v40  ;;  %v272_v48 = vmul.f32 %v1462_v27, %v193_v41 }
  0x30   :  { %v284_v50 = vmul.f32 %v1462_v27, %v205_v43  ;;  %v259_v3 = vmul.f32 %v1462_v27, %v180_v63  ;;  %v206_v19 = vsub.f32 %v1116_v12, %v1453_v16 }
  0x31   :  { %474 = vmatmul.bf16.gmra.mxu0 %v362_v0  ;;  %514 = vmatmul.bf16.gmra.mxu1 %v370_v4  ;;  %v202_v0 = vsub.f32 %v1108_v58, %v1453_v16  ;;  %v1029_v4 = vunpack.c.h.bf16 %v1301_v55  ;;  %v373_v51 = vpack.c.bf16 %v322_v39, %v321_v38  ;;  %v335_v53 = vmax.f32 %v271_v47, 0.0 }
  0x32   :  { %554 = vmatmul.bf16.gmra.mxu2 %v378_v44  ;;  %v336_v54 = vmax.f32 %v272_v48, 0.0  ;;  %v348_v56 = vmax.f32 %v284_v50, 0.0  ;;  %v285_v26 = vmul.f32 %v1462_v27, %v206_v19  ;;  %v1324_v50 = vld [vmem:[%s2185_s0 + $0xd8] sm:$0xff]  }
  0x33   :  { %v281_v7 = vmul.f32 %v1462_v27, %v202_v0  ;;  %v163_v17 = vsub.f32 %v1029_v4, %v1453_v16  ;;  %v181_v0 = vsub.f32 %v1065_v60, %v1453_v16 }
  0x34   :  { %v380_v61 = vpack.c.bf16 %v336_v54, %v335_v53  ;;  %v1120_v54 = vunpack.c.l.bf16 %v1324_v50 }
  0x35   :  { %v345_v13 = vmax.f32 %v281_v7, 0.0  ;;  %v242_v25 = vmul.f32 %v1462_v27, %v163_v17  ;;  %v260_v4 = vmul.f32 %v1462_v27, %v181_v0  ;;  %v1317_v7 = vld [vmem:[%s2185_s0 + $0xa0] sm:$0xff]  }
  0x36   :  { %v1092_v10 = vunpack.c.l.bf16 %v1317_v7  ;;  %v1093_v11 = vunpack.c.h.bf16 %v1317_v7  ;;  %v208_v60 = vsub.f32 %v1120_v54, %v1453_v16 }
  0x37   :  { %v385_v21 = vpack.c.bf16 %v346_v14, %v345_v13  ;;  %v306_v30 = vmax.f32 %v242_v25, 0.0  ;;  %v1117_v13 = vunpack.c.h.bf16 %v1323_v8  ;;  %v323_v14 = vmax.f32 %v259_v3, 0.0 }
  0x38   :  { %v324_v15 = vmax.f32 %v260_v4, 0.0  ;;  %v194_v17 = vsub.f32 %v1092_v10, %v1453_v16  ;;  %v195_v18 = vsub.f32 %v1093_v11, %v1453_v16  ;;  %v287_v3 = vmul.f32 %v1462_v27, %v208_v60 }
  0x39   :  { %589 = vmatmul.bf16.vlgmr.msra.gmra.mxu3 %v385_v21  ;;  %v365_v44 = vpack.c.bf16 %v306_v30, %v305_v29  ;;  %v1311_v30 = vld [vmem:[%s2185_s0 + $0x70] sm:$0xff]  }
  0x3a   :  { %v273_v24 = vmul.f32 %v1462_v27, %v194_v17  ;;  %v274_v25 = vmul.f32 %v1462_v27, %v195_v18  ;;  %v374_v29 = vpack.c.bf16 %v324_v15, %v323_v14  ;;  %v1068_v37 = vunpack.c.l.bf16 %v1311_v30 }
  0x3b   :  { %v1069_v38 = vunpack.c.h.bf16 %v1311_v30 }
  0x3c   :  { %v337_v31 = vmax.f32 %v273_v24, 0.0  ;;  %v182_v41 = vsub.f32 %v1068_v37, %v1453_v16 }
  0x41   :  { %479 = vmatmul.bf16.gmra.mxu0 %v363_v33  ;;  %519 = vmatmul.bf16.gmra.mxu1 %v371_v36  ;;  %v1302_v33 = vld [vmem:[%s2185_s0 + $0x28] sm:$0xff]   ;;  %v1112_v36 = vunpack.c.l.bf16 %v1322_v32  ;;  %v338_v32 = vmax.f32 %v274_v25, 0.0 }
  0x42   :  { %559 = vmatmul.bf16.gmra.mxu2 %v379_v20  ;;  %v1032_v45 = vunpack.c.l.bf16 %v1302_v33  ;;  %v1033_v46 = vunpack.c.h.bf16 %v1302_v33  ;;  %v207_v20 = vsub.f32 %v1117_v13, %v1453_v16  ;;  %v349_v33 = vmax.f32 %v285_v26, 0.0  ;;  %v1319_v26 = vld [vmem:[%s2185_s0 + $0xb0] sm:$0xff]  }
  0x43   :  { %v204_v42 = vsub.f32 %v1112_v36, %v1453_v16  ;;  %v381_v39 = vpack.c.bf16 %v338_v32, %v337_v31  ;;  %v1101_v30 = vunpack.c.h.bf16 %v1319_v26 }
  0x44   :  { %v164_v57 = vsub.f32 %v1032_v45, %v1453_v16  ;;  %v165_v58 = vsub.f32 %v1033_v46, %v1453_v16  ;;  %v286_v28 = vmul.f32 %v1462_v27, %v207_v20  ;;  %v261_v45 = vmul.f32 %v1462_v27, %v182_v41 }
  0x45   :  { %v283_v49 = vmul.f32 %v1462_v27, %v204_v42  ;;  %v183_v42 = vsub.f32 %v1069_v38, %v1453_v16 }
  0x46   :  { %v243_v1 = vmul.f32 %v1462_v27, %v164_v57  ;;  %v350_v34 = vmax.f32 %v286_v28, 0.0  ;;  %v1325_v28 = vld [vmem:[%s2185_s0 + $0xe0] sm:$0xff]  }
  0x47   :  { %v347_v55 = vmax.f32 %v283_v49, 0.0  ;;  %v262_v46 = vmul.f32 %v1462_v27, %v183_v42  ;;  %v1318_v49 = vld [vmem:[%s2185_s0 + $0xa8] sm:$0xff]   ;;  %v1124_v31 = vunpack.c.l.bf16 %v1325_v28  ;;  %v1125_v32 = vunpack.c.h.bf16 %v1325_v28 }
  0x48   :  { %v307_v5 = vmax.f32 %v243_v1, 0.0  ;;  %v387_v40 = vpack.c.bf16 %v350_v34, %v349_v33  ;;  %v1096_v52 = vunpack.c.l.bf16 %v1318_v49  ;;  %v1097_v53 = vunpack.c.h.bf16 %v1318_v49 }
  0x49   :  { %v386_v62 = vpack.c.bf16 %v348_v56, %v347_v55  ;;  %v1121_v55 = vunpack.c.h.bf16 %v1324_v50  ;;  %v325_v56 = vmax.f32 %v261_v45, 0.0  ;;  %v326_v57 = vmax.f32 %v262_v46, 0.0 }
  0x4a   :  { %v197_v59 = vsub.f32 %v1097_v53, %v1453_v16  ;;  %v210_v37 = vsub.f32 %v1124_v31, %v1453_v16  ;;  %v211_v38 = vsub.f32 %v1125_v32, %v1453_v16 }
  0x4b   :  { %594 = vmatmul.bf16.gmra.mxu3 %v386_v62 }
  0x4c   :  { %v289_v42 = vmul.f32 %v1462_v27, %v210_v37 }
  0x51   :  { %484 = vmatmul.bf16.gmra.mxu0 %v364_v2  ;;  %524 = vmatmul.bf16.gmra.mxu1 %v372_v9  ;;  %v244_v2 = vmul.f32 %v1462_v27, %v165_v58  ;;  %v1303_v9 = vld [vmem:[%s2185_s0 + $0x30] sm:$0xff]   ;;  %v196_v58 = vsub.f32 %v1096_v52, %v1453_v16  ;;  %v1326_v52 = vld [vmem:[%s2185_s0 + $0xe8] sm:$0xff]  }
  0x52   :  { %564 = vmatmul.bf16.gmra.mxu2 %v380_v61  ;;  %v1036_v22 = vunpack.c.l.bf16 %v1303_v9  ;;  %v1037_v23 = vunpack.c.h.bf16 %v1303_v9  ;;  %v209_v61 = vsub.f32 %v1121_v55, %v1453_v16  ;;  %v351_v9 = vmax.f32 %v287_v3, 0.0 }
  0x53   :  { %v308_v6 = vmax.f32 %v244_v2, 0.0  ;;  %v275_v1 = vmul.f32 %v1462_v27, %v196_v58  ;;  %v276_v2 = vmul.f32 %v1462_v27, %v197_v59  ;;  %v1128_v55 = vunpack.c.l.bf16 %v1326_v52 }
  0x54   :  { %v166_v35 = vsub.f32 %v1036_v22, %v1453_v16  ;;  %v167_v36 = vsub.f32 %v1037_v23, %v1453_v16  ;;  %v288_v4 = vmul.f32 %v1462_v27, %v209_v61 }
  0x55   :  { %v366_v21 = vpack.c.bf16 %v308_v6, %v307_v5  ;;  %v375_v5 = vpack.c.bf16 %v326_v57, %v325_v56  ;;  %v1312_v6 = vld [vmem:[%s2185_s0 + $0x78] sm:$0xff]   ;;  %v339_v7 = vmax.f32 %v275_v1, 0.0  ;;  %v340_v8 = vmax.f32 %v276_v2, 0.0 }
  0x56   :  { %v245_v43 = vmul.f32 %v1462_v27, %v166_v35  ;;  %v352_v10 = vmax.f32 %v288_v4, 0.0  ;;  %v1072_v13 = vunpack.c.l.bf16 %v1312_v6  ;;  %v1073_v14 = vunpack.c.h.bf16 %v1312_v6  ;;  %v1670_v6 = vld [vmem:[%s2186_s4] ss:$0 sm:$0xff] }
  0x57   :  { %v382_v15 = vpack.c.bf16 %v340_v8, %v339_v7  ;;  %v1129_v56 = vunpack.c.h.bf16 %v1326_v52  ;;  %v212_v59 = vsub.f32 %v1128_v55, %v1453_v16 }
  0x58   :  { %v309_v47 = vmax.f32 %v245_v43, 0.0  ;;  %v388_v17 = vpack.c.bf16 %v352_v10, %v351_v9  ;;  %v184_v18 = vsub.f32 %v1072_v13, %v1453_v16  ;;  %v185_v19 = vsub.f32 %v1073_v14, %v1453_v16 }
  0x59   :  { %v290_v43 = vmul.f32 %v1462_v27, %v211_v38  ;;  %v213_v60 = vsub.f32 %v1129_v56, %v1453_v16 }
  0x5a   :  { %v263_v22 = vmul.f32 %v1462_v27, %v184_v18  ;;  %v264_v23 = vmul.f32 %v1462_v27, %v185_v19  ;;  %v1327_v18 = vld [vmem:[%s2185_s0 + $0xf0] sm:$0xff]  }
  0x5b   :  { %599 = vmatmul.bf16.gmra.mxu3 %v387_v40 }
  0x5c   :  { %v327_v33 = vmax.f32 %v263_v22, 0.0  ;;  %v328_v34 = vmax.f32 %v264_v23, 0.0  ;;  %v1132_v22 = vunpack.c.l.bf16 %v1327_v18 }
  0x61   :  { %489 = vmatmul.bf16.gmra.mxu0 %v365_v44  ;;  %529 = vmatmul.bf16.gmra.mxu1 %v373_v51  ;;  %v246_v44 = vmul.f32 %v1462_v27, %v167_v36  ;;  %v1304_v51 = vld [vmem:[%s2185_s0 + $0x38] sm:$0xff]   ;;  %v199_v36 = vsub.f32 %v1101_v30, %v1453_v16 }
  0x62   :  { %569 = vmatmul.bf16.gmra.mxu2 %v381_v39  ;;  %v1040_v63 = vunpack.c.l.bf16 %v1304_v51  ;;  %v1041_v0 = vunpack.c.h.bf16 %v1304_v51  ;;  %v1320_v51 = vld [vmem:[%s2185_s0 + $0xb8] sm:$0xff]  }
  0x63   :  { %v310_v48 = vmax.f32 %v246_v44, 0.0  ;;  %v278_v41 = vmul.f32 %v1462_v27, %v199_v36  ;;  %v376_v44 = vpack.c.bf16 %v328_v34, %v327_v33  ;;  %v1104_v53 = vunpack.c.l.bf16 %v1320_v51 }
  0x64   :  { %v168_v11 = vsub.f32 %v1040_v63, %v1453_v16  ;;  %v169_v12 = vsub.f32 %v1041_v0, %v1453_v16  ;;  %v1105_v54 = vunpack.c.h.bf16 %v1320_v51  ;;  %v291_v63 = vmul.f32 %v1462_v27, %v212_v59 }
  0x65   :  { %v367_v62 = vpack.c.bf16 %v310_v48, %v309_v47  ;;  %v342_v46 = vmax.f32 %v278_v41, 0.0  ;;  %v353_v47 = vmax.f32 %v289_v42, 0.0  ;;  %v354_v48 = vmax.f32 %v290_v43, 0.0 }
  0x66   :  { %v247_v20 = vmul.f32 %v1462_v27, %v168_v11  ;;  %v200_v57 = vsub.f32 %v1104_v53, %v1453_v16  ;;  %v201_v58 = vsub.f32 %v1105_v54, %v1453_v16  ;;  %v292_v0 = vmul.f32 %v1462_v27, %v213_v60 }
  0x67   :  { %v389_v50 = vpack.c.bf16 %v354_v48, %v353_v47 }
  0x68   :  { %v311_v24 = vmax.f32 %v247_v20, 0.0  ;;  %v279_v61 = vmul.f32 %v1462_v27, %v200_v57  ;;  %v356_v7 = vmax.f32 %v292_v0, 0.0 }
  0x6a   :  { %v343_v3 = vmax.f32 %v279_v61, 0.0 }
  0x6b   :  { %604 = vmatmul.bf16.gmra.mxu3 %v388_v17 }
  0x71   :  { %494 = vmatmul.bf16.gmra.mxu0 %v366_v21  ;;  %534 = vmatmul.bf16.gmra.mxu1 %v374_v29  ;;  %v248_v21 = vmul.f32 %v1462_v27, %v169_v12  ;;  %v1100_v29 = vunpack.c.l.bf16 %v1319_v26  ;;  %v214_v26 = vsub.f32 %v1132_v22, %v1453_v16 }
  0x72   :  { %574 = vmatmul.bf16.gmra.mxu2 %v382_v15 }
  0x73   :  { %v312_v25 = vmax.f32 %v248_v21, 0.0  ;;  %v198_v35 = vsub.f32 %v1100_v29, %v1453_v16  ;;  %v293_v29 = vmul.f32 %v1462_v27, %v214_v26 }
  0x75   :  { %v368_v39 = vpack.c.bf16 %v312_v25, %v311_v24  ;;  %v277_v40 = vmul.f32 %v1462_v27, %v198_v35  ;;  %v1133_v24 = vunpack.c.h.bf16 %v1327_v18  ;;  %v357_v34 = vmax.f32 %v293_v29, 0.0 }
  0x77   :  { %v341_v45 = vmax.f32 %v277_v40, 0.0  ;;  %v215_v28 = vsub.f32 %v1133_v24, %v1453_v16 }
  0x79   :  { %v383_v49 = vpack.c.bf16 %v342_v46, %v341_v45  ;;  %v294_v31 = vmul.f32 %v1462_v27, %v215_v28  ;;  %v1328_v46 = vld [vmem:[%s2185_s0 + $0xf8] sm:$0xff]  }
  0x7a   :  { %v1137_v52 = vunpack.c.h.bf16 %v1328_v46 }
  0x7b   :  { %609 = vmatmul.bf16.gmra.mxu3 %v389_v50  ;;  %v358_v35 = vmax.f32 %v294_v31, 0.0  ;;  %v1136_v50 = vunpack.c.l.bf16 %v1328_v46 }
  0x7c   :  { %v217_v55 = vsub.f32 %v1137_v52, %v1453_v16 }
  0x7d   :  { %v391_v38 = vpack.c.bf16 %v358_v35, %v357_v34  ;;  %v216_v54 = vsub.f32 %v1136_v50, %v1453_v16 }
  0x7e   :  { %v296_v60 = vmul.f32 %v1462_v27, %v217_v55 }
  0x7f   :  { %v295_v57 = vmul.f32 %v1462_v27, %v216_v54 }
  0x80   :  { %v360_v0 = vmax.f32 %v296_v60, 0.0 }
  0x81   :  { %499 = vmatmul.bf16.gmra.mxu0 %v367_v62  ;;  %539 = vmatmul.bf16.gmra.mxu1 %v375_v5  ;;  %v280_v62 = vmul.f32 %v1462_v27, %v201_v58  ;;  %v355_v5 = vmax.f32 %v291_v63, 0.0  ;;  %v359_v63 = vmax.f32 %v295_v57, 0.0 }
  0x82   :  { %579 = vmatmul.bf16.gmra.mxu2 %v383_v49 }
  0x83   :  { %v344_v4 = vmax.f32 %v280_v62, 0.0  ;;  %v390_v9 = vpack.c.bf16 %v356_v7, %v355_v5 }
  0x85   :  { %v384_v8 = vpack.c.bf16 %v344_v4, %v343_v3 }
  0x8b   :  { %614 = vmatmul.bf16.gmra.mxu3 %v390_v9 }
  0x91   :  { %504 = vmatmul.bf16.gmra.mxu0 %v368_v39  ;;  %544 = vmatmul.bf16.gmra.mxu1 %v376_v44 }
  0x92   :  { %584 = vmatmul.bf16.gmra.mxu2 %v384_v8 }
  0x9b   :  { %619 = vmatmul.bf16.gmra.mxu3 %v391_v38 }
  0x9e   :  { %v470_v1 = vpop.f32.mrf.mxu0  ;;  %v510_v2 = vpop.f32.mrf.mxu1 }
  0x9f   :  { %v471_v10 = vadd.f32 %v1670_v6, %v470_v1  ;;  %v1674_v12 = vadd.f32 %v1670_v6, %v510_v2  ;;  %v392_v2 = vpack.c.bf16 %v360_v0, %v359_v63 }
  0xa1   :  { %v700_v15 = vmul.f32 %v471_v10, %v471_v10 }
  0xa5   :  { %v550_v42 = vpop.f32.mrf.mxu2 }
  0xa6   :  { %v472_v11 = vpop.f32.mrf.mxu0  ;;  %v512_v14 = vpop.f32.mrf.mxu1  ;;  %v1721_v56 = vadd.f32 %v1670_v6, %v550_v42 }
  0xa7   :  { %v473_v13 = vadd.f32 %v1670_v6, %v472_v11  ;;  %v1678_v17 = vadd.f32 %v1670_v6, %v512_v14 }
  0xa9   :  { %v630_v19 = vadd.f32 %v473_v13, %v471_v10  ;;  %v701_v20 = vmul.f32 %v473_v13, %v473_v13  ;;  %v1141_v21 = vpack.c.bf16 %v473_v13, %v471_v10  ;;  %v1181_v23 = vpack.c.bf16 %v1678_v17, %v1674_v12 }
  0xab   :  { %v764_v25 = vadd.f32 %v701_v20, %v700_v15  ;;  %1142 = vst [vmem:[%s2187_s5] sm:$0xff] %v1141_v21   ;;  %624 = vmatmul.bf16.gmra.mxu3 %v392_v2 }
  0xac   :  { %1336 = vst [vmem:[%s2187_s5 + $0x40] sm:$0xff] %v1181_v23  }
  0xad   :  { %v552_v59 = vpop.f32.mrf.mxu2 }
  0xae   :  { %v475_v30 = vpop.f32.mrf.mxu0  ;;  %v515_v33 = vpop.f32.mrf.mxu1  ;;  %v1726_v62 = vadd.f32 %v1670_v6, %v552_v59 }
  0xaf   :  { %v476_v32 = vadd.f32 %v1670_v6, %v475_v30  ;;  %v1697_v41 = vadd.f32 %v1670_v6, %v515_v33 }
  0xb0   :  { %v1221_v1 = vpack.c.bf16 %v1726_v62, %v1721_v56 }
  0xb1   :  { %v631_v36 = vadd.f32 %v630_v19, %v476_v32  ;;  %v702_v37 = vmul.f32 %v476_v32, %v476_v32 }
  0xb2   :  { %1344 = vst [vmem:[%s2187_s5 + $0x80] sm:$0xff] %v1221_v1  }
  0xb3   :  { %v765_v39 = vadd.f32 %v764_v25, %v702_v37 }
  0xb5   :  { %v555_v27 = vpop.f32.mrf.mxu2 }
  0xb6   :  { %v477_v40 = vpop.f32.mrf.mxu0  ;;  %v517_v44 = vpop.f32.mrf.mxu1  ;;  %v1756_v11 = vadd.f32 %v1670_v6, %v555_v27 }
  0xb7   :  { %v478_v43 = vadd.f32 %v1670_v6, %v477_v40  ;;  %v1701_v45 = vadd.f32 %v1670_v6, %v517_v44 }
  0xb9   :  { %v1706_v47 = vadd.f32 %v631_v36, %v478_v43  ;;  %v703_v48 = vmul.f32 %v478_v43, %v478_v43  ;;  %v1146_v49 = vpack.c.bf16 %v478_v43, %v476_v32  ;;  %v1186_v51 = vpack.c.bf16 %v1701_v45, %v1697_v41 }
  0xbb   :  { %v1710_v53 = vadd.f32 %v765_v39, %v703_v48  ;;  %1329 = vst [vmem:[%s2187_s5 + $0x8] sm:$0xff] %v1146_v49  }
  0xbc   :  { %1337 = vst [vmem:[%s2187_s5 + $0x48] sm:$0xff] %v1186_v51   ;;  %v590_v26 = vpop.f32.mrf.mxu3 }
  0xbd   :  { %v557_v14 = vpop.f32.mrf.mxu2  ;;  %v1792_v33 = vadd.f32 %v1670_v6, %v590_v26 }
  0xbe   :  { %v480_v58 = vpop.f32.mrf.mxu0  ;;  %v520_v61 = vpop.f32.mrf.mxu1  ;;  %v1759_v18 = vadd.f32 %v1670_v6, %v557_v14 }
  0xbf   :  { %v1734_v3 = vadd.f32 %v1670_v6, %v520_v61  ;;  %v1737_v4 = vadd.f32 %v1670_v6, %v480_v58 }
  0xc0   :  { %v1226_v19 = vpack.c.bf16 %v1759_v18, %v1756_v11 }
  0xc2   :  { %1345 = vst [vmem:[%s2187_s5 + $0x88] sm:$0xff] %v1226_v19  }
  0xc4   :  { %v592_v37 = vpop.f32.mrf.mxu3 }
  0xc5   :  { %v560_v22 = vpop.f32.mrf.mxu2  ;;  %v1798_v38 = vadd.f32 %v1670_v6, %v592_v37 }
  0xc6   :  { %v482_v16 = vpop.f32.mrf.mxu0  ;;  %v522_v7 = vpop.f32.mrf.mxu1  ;;  %v1789_v31 = vadd.f32 %v1670_v6, %v560_v22 }
  0xc7   :  { %v1740_v5 = vadd.f32 %v1670_v6, %v482_v16  ;;  %v1743_v8 = vadd.f32 %v1670_v6, %v522_v7  ;;  %v1261_v40 = vpack.c.bf16 %v1798_v38, %v1792_v33 }
  0xc9   :  { %v1151_v9 = vpack.c.bf16 %v1740_v5, %v1737_v4  ;;  %v1191_v10 = vpack.c.bf16 %v1743_v8, %v1734_v3  ;;  %1352 = vst [vmem:[%s2187_s5 + $0xc0] sm:$0xff] %v1261_v40   ;;  %v705_v40 = vmul.f32 %v1740_v5, %v1740_v5 }
  0xcb   :  { %1330 = vst [vmem:[%s2187_s5 + $0x10] sm:$0xff] %v1151_v9  }
  0xcc   :  { %1338 = vst [vmem:[%s2187_s5 + $0x50] sm:$0xff] %v1191_v10  }
  0xcd   :  { %v562_v34 = vpop.f32.mrf.mxu2 }
  0xce   :  { %v485_v13 = vpop.f32.mrf.mxu0  ;;  %v525_v15 = vpop.f32.mrf.mxu1  ;;  %v1795_v36 = vadd.f32 %v1670_v6, %v562_v34 }
  0xcf   :  { %v1767_v21 = vadd.f32 %v1670_v6, %v525_v15  ;;  %v1770_v23 = vadd.f32 %v1670_v6, %v485_v13  ;;  %v595_v50 = vpop.f32.mrf.mxu3 }
  0xd0   :  { %v1231_v39 = vpack.c.bf16 %v1795_v36, %v1789_v31  ;;  %v1836_v58 = vadd.f32 %v1670_v6, %v595_v50 }
  0xd2   :  { %1346 = vst [vmem:[%s2187_s5 + $0x90] sm:$0xff] %v1231_v39   ;;  %v633_v39 = vadd.f32 %v1706_v47, %v1737_v4 }
  0xd4   :  { %v634_v50 = vadd.f32 %v633_v39, %v1740_v5 }
  0xd5   :  { %v565_v44 = vpop.f32.mrf.mxu2 }
  0xd6   :  { %v487_v20 = vpop.f32.mrf.mxu0  ;;  %v527_v25 = vpop.f32.mrf.mxu1  ;;  %v1833_v55 = vadd.f32 %v1670_v6, %v565_v44 }
  0xd7   :  { %v1773_v24 = vadd.f32 %v1670_v6, %v487_v20  ;;  %v1776_v28 = vadd.f32 %v1670_v6, %v527_v25  ;;  %v597_v63 = vpop.f32.mrf.mxu3 }
  0xd8   :  { %v1842_v0 = vadd.f32 %v1670_v6, %v597_v63 }
  0xd9   :  { %v1156_v29 = vpack.c.bf16 %v1773_v24, %v1770_v23  ;;  %v1196_v30 = vpack.c.bf16 %v1776_v28, %v1767_v21 }
  0xda   :  { %v1266_v2 = vpack.c.bf16 %v1842_v0, %v1836_v58 }
  0xdb   :  { %1331 = vst [vmem:[%s2187_s5 + $0x18] sm:$0xff] %v1156_v29  }
  0xdc   :  { %1339 = vst [vmem:[%s2187_s5 + $0x58] sm:$0xff] %v1196_v30  }
  0xdd   :  { %v567_v59 = vpop.f32.mrf.mxu2  ;;  %1353 = vst [vmem:[%s2187_s5 + $0xc8] sm:$0xff] %v1266_v2  }
  0xde   :  { %v490_v32 = vpop.f32.mrf.mxu0  ;;  %v530_v35 = vpop.f32.mrf.mxu1  ;;  %v1839_v61 = vadd.f32 %v1670_v6, %v567_v59 }
  0xdf   :  { %v1811_v43 = vadd.f32 %v1670_v6, %v530_v35  ;;  %v1814_v46 = vadd.f32 %v1670_v6, %v490_v32  ;;  %v600_v14 = vpop.f32.mrf.mxu3  ;;  %v704_v35 = vmul.f32 %v1737_v4, %v1737_v4  ;;  %v635_v4 = vadd.f32 %v634_v50, %v1770_v23 }
  0xe0   :  { %v1236_v1 = vpack.c.bf16 %v1839_v61, %v1833_v55  ;;  %v1874_v30 = vadd.f32 %v1670_v6, %v600_v14 }
  0xe2   :  { %1347 = vst [vmem:[%s2187_s5 + $0x98] sm:$0xff] %v1236_v1  }
  0xe5   :  { %v570_v7 = vpop.f32.mrf.mxu2 }
  0xe6   :  { %v492_v42 = vpop.f32.mrf.mxu0  ;;  %v532_v49 = vpop.f32.mrf.mxu1  ;;  %v1871_v29 = vadd.f32 %v1670_v6, %v570_v7 }
  0xe7   :  { %v1817_v48 = vadd.f32 %v1670_v6, %v492_v42  ;;  %v1820_v51 = vadd.f32 %v1670_v6, %v532_v49  ;;  %v602_v34 = vpop.f32.mrf.mxu3  ;;  %v767_v49 = vadd.f32 %v1710_v53, %v704_v35 }
  0xe8   :  { %v1882_v37 = vadd.f32 %v1670_v6, %v602_v34 }
  0xe9   :  { %v1161_v52 = vpack.c.bf16 %v1817_v48, %v1814_v46  ;;  %v1201_v54 = vpack.c.bf16 %v1820_v51, %v1811_v43  ;;  %v768_v47 = vadd.f32 %v767_v49, %v705_v40 }
  0xea   :  { %v1271_v44 = vpack.c.bf16 %v1882_v37, %v1874_v30 }
  0xeb   :  { %1332 = vst [vmem:[%s2187_s5 + $0x20] sm:$0xff] %v1161_v52   ;;  %v706_v52 = vmul.f32 %v1770_v23, %v1770_v23  ;;  %v708_v23 = vmul.f32 %v1814_v46, %v1814_v46 }
  0xec   :  { %1340 = vst [vmem:[%s2187_s5 + $0x60] sm:$0xff] %v1201_v54   ;;  %v707_v54 = vmul.f32 %v1773_v24, %v1773_v24 }
  0xed   :  { %v572_v25 = vpop.f32.mrf.mxu2  ;;  %1354 = vst [vmem:[%s2187_s5 + $0xd0] sm:$0xff] %v1271_v44   ;;  %v769_v2 = vadd.f32 %v768_v47, %v706_v52 }
  0xee   :  { %v495_v57 = vpop.f32.mrf.mxu0  ;;  %v535_v60 = vpop.f32.mrf.mxu1  ;;  %v1877_v32 = vadd.f32 %v1670_v6, %v572_v25 }
  0xef   :  { %v1855_v27 = vadd.f32 %v1670_v6, %v535_v60  ;;  %v496_v9 = vadd.f32 %v1670_v6, %v495_v57  ;;  %v605_v1 = vpop.f32.mrf.mxu3  ;;  %v770_v14 = vadd.f32 %v769_v2, %v707_v54 }
  0xf0   :  { %v1241_v42 = vpack.c.bf16 %v1877_v32, %v1871_v29  ;;  %v1932_v49 = vadd.f32 %v1670_v6, %v605_v1 }
  0xf2   :  { %1348 = vst [vmem:[%s2187_s5 + $0xa0] sm:$0xff] %v1241_v42  }
  0xf5   :  { %v575_v57 = vpop.f32.mrf.mxu2 }
  0xf6   :  { %v497_v16 = vpop.f32.mrf.mxu0  ;;  %v537_v13 = vpop.f32.mrf.mxu1  ;;  %v1929_v44 = vadd.f32 %v1670_v6, %v575_v57 }
  0xf7   :  { %v498_v10 = vadd.f32 %v1670_v6, %v497_v16  ;;  %v1860_v15 = vadd.f32 %v1670_v6, %v537_v13  ;;  %v636_v16 = vadd.f32 %v635_v4, %v1773_v24  ;;  %v771_v24 = vadd.f32 %v770_v14, %v708_v23 }
  0xf9   :  { %v1166_v19 = vpack.c.bf16 %v498_v10, %v496_v9  ;;  %v1206_v20 = vpack.c.bf16 %v1860_v15, %v1855_v27  ;;  %v711_v40 = vmul.f32 %v498_v10, %v498_v10 }
  0xfb   :  { %1333 = vst [vmem:[%s2187_s5 + $0x28] sm:$0xff] %v1166_v19   ;;  %v637_v19 = vadd.f32 %v636_v16, %v1814_v46 }
  0xfc   :  { %1341 = vst [vmem:[%s2187_s5 + $0x68] sm:$0xff] %v1206_v20   ;;  %v709_v20 = vmul.f32 %v1817_v48, %v1817_v48 }
  0xfd   :  { %v638_v25 = vadd.f32 %v637_v19, %v1817_v48  ;;  %v577_v39 = vpop.f32.mrf.mxu2  ;;  %v607_v48 = vpop.f32.mrf.mxu3 }
  0xfe   :  { %v500_v22 = vpop.f32.mrf.mxu0  ;;  %v540_v26 = vpop.f32.mrf.mxu1  ;;  %v772_v34 = vadd.f32 %v771_v24, %v709_v20  ;;  %v1935_v50 = vadd.f32 %v1670_v6, %v577_v39  ;;  %v1938_v52 = vadd.f32 %v1670_v6, %v607_v48 }
  0xff   :  { %v1906_v5 = vadd.f32 %v1670_v6, %v540_v26  ;;  %v501_v59 = vadd.f32 %v1670_v6, %v500_v22  ;;  %v710_v26 = vmul.f32 %v496_v9, %v496_v9  ;;  %v639_v46 = vadd.f32 %v638_v25, %v496_v9 }
 0x100   :  { %v1276_v1 = vpack.c.bf16 %v1938_v52, %v1932_v49 }
 0x101   :  { %v773_v47 = vadd.f32 %v772_v34, %v710_v26  ;;  %v640_v4 = vadd.f32 %v639_v46, %v498_v10  ;;  %v712_v9 = vmul.f32 %v501_v59, %v501_v59 }
 0x102   :  { %1355 = vst [vmem:[%s2187_s5 + $0xd8] sm:$0xff] %v1276_v1  }
 0x103   :  { %v774_v57 = vadd.f32 %v773_v47, %v711_v40  ;;  %v716_v40 = vmul.f32 %v1674_v12, %v1674_v12  ;;  %v717_v47 = vmul.f32 %v1678_v17, %v1678_v17 }
 0x105   :  { %v775_v16 = vadd.f32 %v774_v57, %v712_v9  ;;  %v610_v25 = vpop.f32.mrf.mxu3 }
 0x106   :  { %v502_v53 = vpop.f32.mrf.mxu0  ;;  %v542_v63 = vpop.f32.mrf.mxu1 }
 0x107   :  { %v503_v60 = vadd.f32 %v1670_v6, %v502_v53  ;;  %v1914_v7 = vadd.f32 %v1670_v6, %v542_v63  ;;  %v1246_v53 = vpack.c.bf16 %v1935_v50, %v1929_v44  ;;  %v641_v63 = vadd.f32 %v640_v4, %v501_v59 }
 0x109   :  { %v1171_v13 = vpack.c.bf16 %v503_v60, %v501_v59  ;;  %v1211_v22 = vpack.c.bf16 %v1914_v7, %v1906_v5  ;;  %v713_v2 = vmul.f32 %v503_v60, %v503_v60  ;;  %1349 = vst [vmem:[%s2187_s5 + $0xa8] sm:$0xff] %v1246_v53   ;;  %v642_v23 = vadd.f32 %v641_v63, %v503_v60  ;;  %v580_v59 = vpop.f32.mrf.mxu2 }
 0x10a   :  { %v1976_v63 = vadd.f32 %v1670_v6, %v580_v59 }
 0x10b   :  { %1334 = vst [vmem:[%s2187_s5 + $0x30] sm:$0xff] %v1171_v13   ;;  %v776_v19 = vadd.f32 %v775_v16, %v713_v2  ;;  %v1979_v2 = vadd.f32 %v1670_v6, %v610_v25 }
 0x10c   :  { %1342 = vst [vmem:[%s2187_s5 + $0x70] sm:$0xff] %v1211_v22  }
 0x10d   :  { %v612_v1 = vpop.f32.mrf.mxu3 }
 0x10e   :  { %v505_v35 = vpop.f32.mrf.mxu0  ;;  %v545_v42 = vpop.f32.mrf.mxu1 }
 0x10f   :  { %v506_v54 = vadd.f32 %v1670_v6, %v505_v35  ;;  %v1952_v14 = vadd.f32 %v1670_v6, %v545_v42 }
 0x111   :  { %v714_v13 = vmul.f32 %v506_v54, %v506_v54  ;;  %v643_v20 = vadd.f32 %v642_v23, %v506_v54  ;;  %v582_v53 = vpop.f32.mrf.mxu2  ;;  %v719_v23 = vmul.f32 %v1701_v45, %v1701_v45 }
 0x112   :  { %v1982_v16 = vadd.f32 %v1670_v6, %v582_v53 }
 0x113   :  { %v777_v60 = vadd.f32 %v776_v19, %v714_v13  ;;  %v720_v19 = vmul.f32 %v1734_v3, %v1734_v3 }
 0x116   :  { %v507_v10 = vpop.f32.mrf.mxu0  ;;  %v547_v24 = vpop.f32.mrf.mxu1 }
 0x117   :  { %v508_v22 = vadd.f32 %v1670_v6, %v507_v10  ;;  %v1956_v26 = vadd.f32 %v1670_v6, %v547_v24  ;;  %v1251_v10 = vpack.c.bf16 %v1982_v16, %v1976_v63 }
 0x119   :  { %v644_v34 = vadd.f32 %v643_v20, %v508_v22  ;;  %v715_v46 = vmul.f32 %v508_v22, %v508_v22  ;;  %v1176_v35 = vpack.c.bf16 %v508_v22, %v506_v54  ;;  %v1216_v39 = vpack.c.bf16 %v1956_v26, %v1952_v14  ;;  %1350 = vst [vmem:[%s2187_s5 + $0xb0] sm:$0xff] %v1251_v10  }
 0x11a   :  { %v718_v54 = vmul.f32 %v1697_v41, %v1697_v41 }
 0x11b   :  { %v645_v42 = vadd.f32 %v644_v34, %v1674_v12  ;;  %v778_v48 = vadd.f32 %v777_v60, %v715_v46  ;;  %1335 = vst [vmem:[%s2187_s5 + $0x38] sm:$0xff] %v1176_v35   ;;  %v585_v60 = vpop.f32.mrf.mxu2  ;;  %v722_v34 = vmul.f32 %v1767_v21, %v1767_v21  ;;  %v615_v35 = vpop.f32.mrf.mxu3 }
 0x11c   :  { %1343 = vst [vmem:[%s2187_s5 + $0x78] sm:$0xff] %v1216_v39   ;;  %v723_v39 = vmul.f32 %v1776_v28, %v1776_v28 }
 0x11d   :  { %v646_v4 = vadd.f32 %v645_v42, %v1678_v17  ;;  %v779_v9 = vadd.f32 %v778_v48, %v716_v40  ;;  %v1985_v17 = vadd.f32 %v1670_v6, %v612_v1  ;;  %v2025_v1 = vadd.f32 %v1670_v6, %v615_v35 }
 0x11e   :  { %v731_v35 = vmul.f32 %v1956_v26, %v1956_v26 }
 0x11f   :  { %v647_v12 = vadd.f32 %v646_v4, %v1697_v41  ;;  %v780_v57 = vadd.f32 %v779_v9, %v717_v47  ;;  %v1281_v59 = vpack.c.bf16 %v1985_v17, %v1979_v2  ;;  %v725_v4 = vmul.f32 %v1820_v51, %v1820_v51 }
 0x121   :  { %v648_v13 = vadd.f32 %v647_v12, %v1701_v45  ;;  %v781_v41 = vadd.f32 %v780_v57, %v718_v54  ;;  %v721_v45 = vmul.f32 %v1743_v8, %v1743_v8  ;;  %1356 = vst [vmem:[%s2187_s5 + $0xe0] sm:$0xff] %v1281_v59   ;;  %v2022_v57 = vadd.f32 %v1670_v6, %v585_v60 }
 0x123   :  { %v649_v20 = vadd.f32 %v648_v13, %v1734_v3  ;;  %v782_v22 = vadd.f32 %v781_v41, %v719_v23  ;;  %v587_v53 = vpop.f32.mrf.mxu2  ;;  %v727_v13 = vmul.f32 %v1860_v15, %v1860_v15 }
 0x124   :  { %v2028_v23 = vadd.f32 %v1670_v6, %v587_v53 }
 0x125   :  { %v650_v24 = vadd.f32 %v649_v20, %v1743_v8  ;;  %v783_v25 = vadd.f32 %v782_v22, %v720_v19  ;;  %v724_v8 = vmul.f32 %v1811_v43, %v1811_v43  ;;  %v728_v20 = vmul.f32 %v1906_v5, %v1906_v5 }
 0x126   :  { %v1256_v10 = vpack.c.bf16 %v2028_v23, %v2022_v57 }
 0x127   :  { %v784_v3 = vadd.f32 %v783_v25, %v721_v45  ;;  %v651_v46 = vadd.f32 %v650_v24, %v1767_v21  ;;  %v726_v21 = vmul.f32 %v1855_v27, %v1855_v27  ;;  %v729_v24 = vmul.f32 %v1914_v7, %v1914_v7 }
 0x128   :  { %1351 = vst [vmem:[%s2187_s5 + $0xb8] sm:$0xff] %v1256_v10  }
 0x129   :  { %v652_v40 = vadd.f32 %v651_v46, %v1776_v28  ;;  %v785_v42 = vadd.f32 %v784_v3, %v722_v34 }
 0x12b   :  { %v653_v48 = vadd.f32 %v652_v40, %v1811_v43  ;;  %v786_v47 = vadd.f32 %v785_v42, %v723_v39  ;;  %v617_v43 = vpop.f32.mrf.mxu3  ;;  %v733_v42 = vmul.f32 %v1726_v62, %v1726_v62 }
 0x12d   :  { %v654_v9 = vadd.f32 %v653_v48, %v1820_v51  ;;  %v787_v54 = vadd.f32 %v786_v47, %v724_v8  ;;  %v2031_v51 = vadd.f32 %v1670_v6, %v617_v43  ;;  %v737_v43 = vmul.f32 %v1795_v36, %v1795_v36 }
 0x12f   :  { %v655_v12 = vadd.f32 %v654_v9, %v1855_v27  ;;  %v788_v28 = vadd.f32 %v787_v54, %v725_v4  ;;  %v1286_v59 = vpack.c.bf16 %v2031_v51, %v2025_v1 }
 0x131   :  { %v656_v41 = vadd.f32 %v655_v12, %v1860_v15  ;;  %v789_v27 = vadd.f32 %v788_v28, %v726_v21  ;;  %1357 = vst [vmem:[%s2187_s5 + $0xe8] sm:$0xff] %v1286_v59  }
 0x133   :  { %v657_v19 = vadd.f32 %v656_v41, %v1906_v5  ;;  %v790_v22 = vadd.f32 %v789_v27, %v727_v13  ;;  %v730_v5 = vmul.f32 %v1952_v14, %v1952_v14  ;;  %v620_v34 = vpop.f32.mrf.mxu3  ;;  %v738_v41 = vmul.f32 %v1833_v55, %v1833_v55 }
 0x135   :  { %v791_v45 = vadd.f32 %v790_v22, %v728_v20  ;;  %v658_v15 = vadd.f32 %v657_v19, %v1914_v7  ;;  %v732_v7 = vmul.f32 %v1721_v56, %v1721_v56  ;;  %v740_v22 = vmul.f32 %v1871_v29, %v1871_v29 }
 0x137   :  { %v792_v25 = vadd.f32 %v791_v45, %v729_v24  ;;  %v659_v60 = vadd.f32 %v658_v15, %v1952_v14  ;;  %v734_v14 = vmul.f32 %v1756_v11, %v1756_v11 }
 0x139   :  { %v793_v3 = vadd.f32 %v792_v25, %v730_v5  ;;  %v660_v46 = vadd.f32 %v659_v60, %v1956_v26  ;;  %v2068_v26 = vadd.f32 %v1670_v6, %v620_v34  ;;  %v742_v25 = vmul.f32 %v1929_v44, %v1929_v44 }
 0x13b   :  { %v661_v39 = vadd.f32 %v660_v46, %v1721_v56  ;;  %v794_v40 = vadd.f32 %v793_v3, %v731_v35  ;;  %v622_v9 = vpop.f32.mrf.mxu3  ;;  %v735_v56 = vmul.f32 %v1759_v18, %v1759_v18  ;;  %v743_v46 = vmul.f32 %v1935_v50, %v1935_v50 }
 0x13c   :  { %v2071_v54 = vadd.f32 %v1670_v6, %v622_v9 }
 0x13d   :  { %v662_v8 = vadd.f32 %v661_v39, %v1726_v62  ;;  %v795_v48 = vadd.f32 %v794_v40, %v732_v7  ;;  %v744_v39 = vmul.f32 %v1976_v63, %v1976_v63 }
 0x13e   :  { %v1291_v53 = vpack.c.bf16 %v2071_v54, %v2068_v26 }
 0x13f   :  { %v663_v47 = vadd.f32 %v662_v8, %v1756_v11  ;;  %v796_v4 = vadd.f32 %v795_v48, %v733_v42  ;;  %v736_v11 = vmul.f32 %v1789_v31, %v1789_v31  ;;  %v746_v48 = vmul.f32 %v2022_v57, %v2022_v57 }
 0x140   :  { %1358 = vst [vmem:[%s2187_s5 + $0xf0] sm:$0xff] %v1291_v53  }
 0x141   :  { %v664_v21 = vadd.f32 %v663_v47, %v1759_v18  ;;  %v797_v62 = vadd.f32 %v796_v4, %v734_v14  ;;  %v748_v4 = vmul.f32 %v1792_v33, %v1792_v33 }
 0x143   :  { %v665_v12 = vadd.f32 %v664_v21, %v1789_v31  ;;  %v798_v28 = vadd.f32 %v797_v62, %v735_v56  ;;  %v625_v59 = vpop.f32.mrf.mxu3  ;;  %v739_v31 = vmul.f32 %v1839_v61, %v1839_v61 }
 0x145   :  { %v799_v13 = vadd.f32 %v798_v28, %v736_v11  ;;  %v666_v18 = vadd.f32 %v665_v12, %v1795_v36  ;;  %v741_v36 = vmul.f32 %v1877_v32, %v1877_v32 }
 0x147   :  { %v667_v27 = vadd.f32 %v666_v18, %v1833_v55  ;;  %v800_v10 = vadd.f32 %v799_v13, %v737_v43 }
 0x149   :  { %v668_v19 = vadd.f32 %v667_v27, %v1839_v61  ;;  %v801_v20 = vadd.f32 %v800_v10, %v738_v41  ;;  %v2103_v61 = vadd.f32 %v1670_v6, %v625_v59 }
 0x14b   :  { %v669_v45 = vadd.f32 %v668_v19, %v1871_v29  ;;  %v802_v15 = vadd.f32 %v801_v20, %v739_v31  ;;  %v627_v34 = vpop.f32.mrf.mxu3 }
 0x14c   :  { %v2106_v3 = vadd.f32 %v1670_v6, %v627_v34  ;;  %v761_v34 = vmul.f32 %v2071_v54, %v2071_v54 }
 0x14d   :  { %v670_v24 = vadd.f32 %v669_v45, %v1877_v32  ;;  %v803_v55 = vadd.f32 %v802_v15, %v740_v22 }
 0x14e   :  { %v1296_v35 = vpack.c.bf16 %v2106_v3, %v2103_v61 }
 0x14f   :  { %v671_v60 = vadd.f32 %v670_v24, %v1929_v44  ;;  %v804_v5 = vadd.f32 %v803_v55, %v741_v36  ;;  %v759_v24 = vmul.f32 %v2031_v51, %v2031_v51 }
 0x150   :  { %1359 = vst [vmem:[%s2187_s5 + $0xf8] sm:$0xff] %v1296_v35   ;;  %v763_v35 = vmul.f32 %v2106_v3, %v2106_v3 }
 0x151   :  { %v672_v29 = vadd.f32 %v671_v60, %v1935_v50  ;;  %v805_v32 = vadd.f32 %v804_v5, %v742_v25  ;;  %v745_v50 = vmul.f32 %v1982_v16, %v1982_v16  ;;  %v760_v60 = vmul.f32 %v2068_v26, %v2068_v26 }
 0x153   :  { %v806_v7 = vadd.f32 %v805_v32, %v743_v46  ;;  %v673_v44 = vadd.f32 %v672_v29, %v1976_v63  ;;  %v747_v63 = vmul.f32 %v2028_v23, %v2028_v23  ;;  %v762_v46 = vmul.f32 %v2103_v61, %v2103_v61 }
 0x155   :  { %v807_v6 = vadd.f32 %v806_v7, %v744_v39  ;;  %v674_v40 = vadd.f32 %v673_v44, %v1982_v16  ;;  %v749_v16 = vmul.f32 %v1798_v38, %v1798_v38 }
 0x157   :  { %v808_v42 = vadd.f32 %v807_v6, %v745_v50  ;;  %v675_v8 = vadd.f32 %v674_v40, %v2022_v57  ;;  %v750_v57 = vmul.f32 %v1836_v58, %v1836_v58 }
 0x159   :  { %v809_v14 = vadd.f32 %v808_v42, %v746_v48  ;;  %v676_v47 = vadd.f32 %v675_v8, %v2028_v23  ;;  %v751_v23 = vmul.f32 %v1842_v0, %v1842_v0 }
 0x15b   :  { %v677_v9 = vadd.f32 %v676_v47, %v1792_v33  ;;  %v810_v56 = vadd.f32 %v809_v14, %v747_v63  ;;  %v752_v33 = vmul.f32 %v1874_v30, %v1874_v30 }
 0x15d   :  { %v678_v21 = vadd.f32 %v677_v9, %v1798_v38  ;;  %v811_v62 = vadd.f32 %v810_v56, %v748_v4  ;;  %v753_v38 = vmul.f32 %v1882_v37, %v1882_v37 }
 0x15f   :  { %v679_v53 = vadd.f32 %v678_v21, %v1836_v58  ;;  %v812_v11 = vadd.f32 %v811_v62, %v749_v16  ;;  %v754_v58 = vmul.f32 %v1932_v49, %v1932_v49 }
 0x161   :  { %v680_v12 = vadd.f32 %v679_v53, %v1842_v0  ;;  %v813_v28 = vadd.f32 %v812_v11, %v750_v57  ;;  %v755_v0 = vmul.f32 %v1938_v52, %v1938_v52 }
 0x163   :  { %v681_v43 = vadd.f32 %v680_v12, %v1874_v30  ;;  %v814_v13 = vadd.f32 %v813_v28, %v751_v23  ;;  %v756_v30 = vmul.f32 %v1979_v2, %v1979_v2 }
 0x165   :  { %v815_v18 = vadd.f32 %v814_v13, %v752_v33  ;;  %v682_v41 = vadd.f32 %v681_v43, %v1882_v37  ;;  %v757_v37 = vmul.f32 %v1985_v17, %v1985_v17 }
 0x167   :  { %v683_v27 = vadd.f32 %v682_v41, %v1932_v49  ;;  %v816_v10 = vadd.f32 %v815_v18, %v753_v38  ;;  %v758_v49 = vmul.f32 %v2025_v1, %v2025_v1 }
 0x169   :  { %v684_v59 = vadd.f32 %v683_v27, %v1938_v52  ;;  %v817_v31 = vadd.f32 %v816_v10, %v754_v58 }
 0x16b   :  { %v685_v19 = vadd.f32 %v684_v59, %v1979_v2  ;;  %v818_v20 = vadd.f32 %v817_v31, %v755_v0 }
 0x16d   :  { %v686_v22 = vadd.f32 %v685_v19, %v1985_v17  ;;  %v819_v45 = vadd.f32 %v818_v20, %v756_v30 }
 0x16f   :  { %v687_v15 = vadd.f32 %v686_v22, %v2025_v1  ;;  %v820_v36 = vadd.f32 %v819_v45, %v757_v37 }
 0x171   :  { %v688_v52 = vadd.f32 %v687_v15, %v2031_v51  ;;  %v821_v55 = vadd.f32 %v820_v36, %v758_v49 }
 0x173   :  { %v822_v2 = vadd.f32 %v821_v55, %v759_v24  ;;  %v689_v25 = vadd.f32 %v688_v52, %v2068_v26 }
 0x175   :  { %v823_v17 = vadd.f32 %v822_v2, %v760_v60  ;;  %v690_v5 = vadd.f32 %v689_v25, %v2071_v54 }
 0x177   :  { %v824_v1 = vadd.f32 %v823_v17, %v761_v34  ;;  %v691_v29 = vadd.f32 %v690_v5, %v2103_v61 }
 0x179   :  { %v825_v51 = vadd.f32 %v824_v1, %v762_v46  ;;  %v692_v32 = vadd.f32 %v691_v29, %v2106_v3 }
 0x17b   :  { %v693_v7 = vrot.slane %v692_v32, 4  ;;  %v826_v26 = vadd.f32 %v825_v51, %v763_v35 }
 0x17d   :  { %v694_v44 = vadd.f32 %v693_v7, %v692_v32  ;;  %v827_v39 = vrot.slane %v826_v26, 4 }
 0x17f   :  { %v695_v6 = vrot.slane %v694_v44, 2  ;;  %v828_v40 = vadd.f32 %v827_v39, %v826_v26 }
 0x181   :  { %v696_v50 = vadd.f32 %v695_v6, %v694_v44  ;;  %v829_v54 = vrot.slane %v828_v40, 2 }
 0x183   :  { %v697_v42 = vrot.slane %v696_v50, 1  ;;  %v830_v8 = vadd.f32 %v829_v54, %v828_v40 }
 0x185   :  { %v698_v48 = vadd.f32 %v697_v42, %v696_v50  ;;  %v831_v14 = vrot.slane %v830_v8, 1 }
 0x187   :  { %699 = vst [vmem:[%s2188_s6] sm:$0x1] %v698_v48  ;;  %v832_v61 = vadd.f32 %v831_v14, %v830_v8 }
 0x189   :  { %833 = vst [vmem:[%s2188_s6 + $0x1] sm:$0x1] %v832_v61 }

// kernel: pointnet_dense_cls.5
= control target key start
LH: loop header
LB: loop body
LE: loop exit
PB: predicated region body
PF: predicated region fallthrough
CT: control target
= control target key end

     0   :  { %s2723_s3 = inlined_call_operand.vmem [shape: bf16[256,128], index: 3, kind: input, shape index: {}]   ;;  %s2724_s2 = inlined_call_operand.vmem [shape: f32[1,256], index: 2, kind: input, shape index: {}]   ;;  %s2725_s0 = inlined_call_operand.vmem [shape: bf16[512,256], index: 0, kind: input, shape index: {}]   ;;  %s2726_s1 = inlined_call_operand.vmem [shape: f32[1,256], index: 1, kind: input, shape index: {}]   ;;  %s2727_s4 = inlined_call_operand.vmem [shape: f32[1,128], index: 4, kind: input, shape index: {}]   ;;  %s2728_s5 = inlined_call_operand.vmem [shape: bf16[512,128], index: 5, kind: output, shape index: {0}]   ;;  %s2729_s6 = inlined_call_operand.vmem [shape: f32[1,2,128], index: 6, kind: output, shape index: {1}]  }
   0x1   :  { %v1566_v0 = vld [vmem:[%s2723_s3 + $0x38] sm:$0xff]  ;;  %v1565_v2 = vld [vmem:[%s2723_s3 + $0x30] sm:$0xff]  ;;  %v1564_v4 = vld [vmem:[%s2723_s3 + $0x28] sm:$0xff] }
   0x2   :  { %v1574_v1 = vld [vmem:[%s2723_s3 + $0x78] sm:$0xff]  ;;  %817 = vmatpush.bf16.msra.mxu0 %v1566_v0  ;;  %v1573_v3 = vld [vmem:[%s2723_s3 + $0x70] sm:$0xff]  ;;  %1766 = vmatpush.bf16.msra.mxu2 %v1566_v0  ;;  %v1572_v5 = vld [vmem:[%s2723_s3 + $0x68] sm:$0xff] }
   0x3   :  { %986 = vmatpush.bf16.msra.mxu1 %v1574_v1  ;;  %1774 = vmatpush.bf16.msra.mxu3 %v1574_v1  ;;  %v348_v6 = vld [vmem:[%s2724_s2] sm:$0x3]  ;;  %v1562_v10 = vld [vmem:[%s2723_s3 + $0x18] sm:$0xff]  ;;  %v23_v15 = vld [vmem:[%s2725_s0 + $0x8] sm:$0xff] }
   0x4   :  { %v349_v7 = vadd.f32 1e-05, %v348_v6  ;;  %v1563_v8 = vld [vmem:[%s2723_s3 + $0x20] sm:$0xff]  ;;  %v1570_v11 = vld [vmem:[%s2723_s3 + $0x58] sm:$0xff]  ;;  %v1561_v16 = vld [vmem:[%s2723_s3 + $0x10] sm:$0xff]  ;;  %v88_v21 = vunpack.c.l.bf16 %v23_v15  ;;  %v89_v25 = vunpack.c.h.bf16 %v23_v15 }
   0x5   :  { %v1571_v9 = vld [vmem:[%s2723_s3 + $0x60] sm:$0xff]  ;;  %v1569_v17 = vld [vmem:[%s2723_s3 + $0x50] sm:$0xff]  ;;  %v1560_v27 = vld [vmem:[%s2723_s3 + $0x8] sm:$0xff] }
   0x6   :  { %818 = vmatpush.bf16.msra.mxu0 %v1565_v2  ;;  %1767 = vmatpush.bf16.msra.mxu2 %v1565_v2  ;;  %1783 = vrsqrt.f32 %v349_v7  ;;  %v22_v13 = vld [vmem:[%s2725_s0] sm:$0xff]  ;;  %vm356_vm0 = vweird.f32 %v349_v7  ;;  %v1568_v28 = vld [vmem:[%s2723_s3 + $0x48] sm:$0xff]  ;;  %v24_v40 = vld [vmem:[%s2725_s0 + $0x10] sm:$0xff] }
   0x7   :  { %987 = vmatpush.bf16.msra.mxu1 %v1573_v3  ;;  %1775 = vmatpush.bf16.msra.mxu3 %v1573_v3  ;;  %v214_v18 = vld [vmem:[%s2726_s1] sm:$0x3]  ;;  %v86_v20 = vunpack.c.l.bf16 %v22_v13  ;;  %v87_v24 = vunpack.c.h.bf16 %v22_v13  ;;  %v25_v41 = vld [vmem:[%s2725_s0 + $0x18] sm:$0xff]  ;;  %v90_v46 = vunpack.c.l.bf16 %v24_v40  ;;  %v91_v48 = vunpack.c.h.bf16 %v24_v40  ;;  %v27_v2 = vld [vmem:[%s2725_s0 + $0x28] sm:$0xff] }
   0x8   :  { %v1869_v23 = vperm.slane %v214_v18, 0  ;;  %v1871_v26 = vperm.slane %v214_v18, 1  ;;  %v1559_v35 = vld [vmem:[%s2723_s3] sm:$0xff]  ;;  %v92_v47 = vunpack.c.l.bf16 %v25_v41  ;;  %v93_v49 = vunpack.c.h.bf16 %v25_v41 }
   0x9   :  { %v1567_v36 = vld [vmem:[%s2723_s3 + $0x40] sm:$0xff] }
   0xa   :  { %819 = vmatpush.bf16.msra.mxu0 %v1564_v4  ;;  %1768 = vmatpush.bf16.msra.mxu2 %v1564_v4  ;;  %v220_v31 = vsub.f32 %v86_v20, %v1869_v23  ;;  %v222_v32 = vsub.f32 %v88_v21, %v1869_v23  ;;  %v221_v33 = vsub.f32 %v87_v24, %v1871_v26  ;;  %v26_v0 = vld [vmem:[%s2725_s0 + $0x20] sm:$0xff]  ;;  %v55_v4 = vld [vmem:[%s2725_s0 + $0x108] sm:$0xff] }
   0xb   :  { %988 = vmatpush.bf16.msra.mxu1 %v1572_v5  ;;  %1776 = vmatpush.bf16.msra.mxu3 %v1572_v5  ;;  %v223_v34 = vsub.f32 %v89_v25, %v1871_v26  ;;  %v224_v56 = vsub.f32 %v90_v46, %v1869_v23  ;;  %v226_v57 = vsub.f32 %v92_v47, %v1869_v23  ;;  %v54_v3 = vld [vmem:[%s2725_s0 + $0x100] sm:$0xff]  ;;  %v95_v13 = vunpack.c.h.bf16 %v26_v0  ;;  %v28_v46 = vld [vmem:[%s2725_s0 + $0x30] sm:$0xff] }
   0xc   :  { %v1784_v12 = vpop.eup %1783  ;;  %v225_v58 = vsub.f32 %v91_v48, %v1871_v26  ;;  %v227_v59 = vsub.f32 %v93_v49, %v1871_v26  ;;  %v151_v15 = vunpack.c.h.bf16 %v54_v3  ;;  %v56_v47 = vld [vmem:[%s2725_s0 + $0x110] sm:$0xff]  ;;  %v57_v48 = vld [vmem:[%s2725_s0 + $0x118] sm:$0xff] }
   0xd   :  { %v351_v14 = vmul.f32 %v1784_v12, %v349_v7  ;;  %vm357_vm1 = vweird.f32 %v1784_v12 }
   0xe   :  { %820 = vmatpush.bf16.msra.mxu0 %v1563_v8  ;;  %1769 = vmatpush.bf16.msra.mxu2 %v1563_v8  ;;  %vm358_vm2 = vmor %vm356_vm0, %vm357_vm1  ;;  %v150_v8 = vunpack.c.l.bf16 %v54_v3 }
   0xf   :  { %989 = vmatpush.bf16.msra.mxu1 %v1571_v9  ;;  %1777 = vmatpush.bf16.msra.mxu3 %v1571_v9  ;;  %v352_v19 = vmul.f32 %v1784_v12, %v351_v14  ;;  %v152_v9 = vunpack.c.l.bf16 %v55_v4 }
  0x11   :  { %v353_v22 = vmul.f32 0.5, %v352_v19  ;;  %v286_v14 = vsub.f32 %v152_v9, %v1869_v23  ;;  %v97_v19 = vunpack.c.h.bf16 %v27_v2 }
  0x12   :  { %821 = vmatpush.bf16.msra.mxu0 %v1562_v10  ;;  %1770 = vmatpush.bf16.msra.mxu2 %v1562_v10  ;;  %v94_v10 = vunpack.c.l.bf16 %v26_v0 }
  0x13   :  { %990 = vmatpush.bf16.msra.mxu1 %v1570_v11  ;;  %1778 = vmatpush.bf16.msra.mxu3 %v1570_v11  ;;  %v354_v29 = vsub.f32 1.5, %v353_v22  ;;  %v96_v11 = vunpack.c.l.bf16 %v27_v2  ;;  %v285_v22 = vsub.f32 %v151_v15, %v1871_v26 }
  0x14   :  { %v228_v25 = vsub.f32 %v94_v10, %v1869_v23 }
  0x15   :  { %v355_v30 = vmul.f32 %v1784_v12, %v354_v29 }
  0x16   :  { %822 = vmatpush.bf16.msra.mxu0 %v1561_v16  ;;  %1771 = vmatpush.bf16.msra.mxu2 %v1561_v16  ;;  %v153_v16 = vunpack.c.h.bf16 %v55_v4 }
  0x17   :  { %991 = vmatpush.bf16.msra.mxu1 %v1569_v17  ;;  %1779 = vmatpush.bf16.msra.mxu3 %v1569_v17  ;;  %v359_v37 = vsel %vm358_vm2, %v1784_v12, %v355_v30  ;;  %v284_v12 = vsub.f32 %v150_v8, %v1869_v23 }
  0x18   :  { %v1889_v38 = vperm.slane %v359_v37, 0  ;;  %v1891_v39 = vperm.slane %v359_v37, 1  ;;  %v287_v24 = vsub.f32 %v153_v16, %v1871_v26 }
  0x1a   :  { %823 = vmatpush.bf16.msra.mxu0 %v1560_v27  ;;  %1772 = vmatpush.bf16.msra.mxu2 %v1560_v27  ;;  %v365_v42 = vmul.f32 %v1889_v38, %v220_v31  ;;  %v367_v43 = vmul.f32 %v1889_v38, %v222_v32  ;;  %v366_v44 = vmul.f32 %v1891_v39, %v221_v33 }
  0x1b   :  { %992 = vmatpush.bf16.msra.mxu1 %v1568_v28  ;;  %1780 = vmatpush.bf16.msra.mxu3 %v1568_v28  ;;  %v368_v45 = vmul.f32 %v1891_v39, %v223_v34  ;;  %v369_v60 = vmul.f32 %v1889_v38, %v224_v56  ;;  %v371_v61 = vmul.f32 %v1889_v38, %v226_v57 }
  0x1c   :  { %v493_v50 = vmax.f32 %v365_v42, 0.0  ;;  %v495_v51 = vmax.f32 %v367_v43, 0.0  ;;  %v494_v52 = vmax.f32 %v366_v44, 0.0  ;;  %v370_v62 = vmul.f32 %v1891_v39, %v225_v58 }
  0x1d   :  { %v496_v53 = vmax.f32 %v368_v45, 0.0  ;;  %v372_v63 = vmul.f32 %v1891_v39, %v227_v59  ;;  %v497_v1 = vmax.f32 %v369_v60, 0.0  ;;  %v499_v5 = vmax.f32 %v371_v61, 0.0 }
  0x1e   :  { %824 = vmatpush.bf16.msra.mxu0 %v1559_v35  ;;  %1773 = vmatpush.bf16.msra.mxu2 %v1559_v35  ;;  %v621_v54 = vpack.c.bf16 %v495_v51, %v493_v50  ;;  %v498_v6 = vmax.f32 %v370_v62, 0.0  ;;  %v429_v20 = vmul.f32 %v1889_v38, %v284_v12  ;;  %v431_v21 = vmul.f32 %v1889_v38, %v286_v14  ;;  %v29_v51 = vld [vmem:[%s2725_s0 + $0x38] sm:$0xff] }
  0x1f   :  { %993 = vmatpush.bf16.msra.mxu1 %v1567_v36  ;;  %1781 = vmatpush.bf16.msra.mxu3 %v1567_v36  ;;  %v622_v55 = vpack.c.bf16 %v496_v53, %v494_v52  ;;  %v500_v7 = vmax.f32 %v372_v63, 0.0  ;;  %v623_v17 = vpack.c.bf16 %v499_v5, %v497_v1  ;;  %v230_v27 = vsub.f32 %v96_v11, %v1869_v23 }
  0x20   :  { %v557_v28 = vmax.f32 %v429_v20, 0.0  ;;  %v559_v29 = vmax.f32 %v431_v21, 0.0  ;;  %v430_v30 = vmul.f32 %v1891_v39, %v285_v22  ;;  %v432_v31 = vmul.f32 %v1891_v39, %v287_v24  ;;  %v30_v20 = vld [vmem:[%s2725_s0 + $0x40] sm:$0xff]  ;;  %v31_v24 = vld [vmem:[%s2725_s0 + $0x48] sm:$0xff] }
  0x21   :  { %825 = vmatmul.bf16.vlgmr.msra.gmra.mxu0 %v621_v54  ;;  %v624_v18 = vpack.c.bf16 %v500_v7, %v498_v6  ;;  %v229_v32 = vsub.f32 %v95_v13, %v1871_v26  ;;  %v231_v33 = vsub.f32 %v97_v19, %v1871_v26  ;;  %v373_v37 = vmul.f32 %v1889_v38, %v228_v25  ;;  %v58_v25 = vld [vmem:[%s2725_s0 + $0x120] sm:$0xff] }
  0x22   :  { %994 = vmatmul.bf16.vlgmr.msra.gmra.mxu1 %v622_v55  ;;  %v653_v34 = vpack.c.bf16 %v559_v29, %v557_v28  ;;  %v558_v35 = vmax.f32 %v430_v30, 0.0  ;;  %v560_v36 = vmax.f32 %v432_v31, 0.0  ;;  %v375_v40 = vmul.f32 %v1889_v38, %v230_v27  ;;  %v59_v27 = vld [vmem:[%s2725_s0 + $0x128] sm:$0xff] }
  0x23   :  { %v374_v42 = vmul.f32 %v1891_v39, %v229_v32  ;;  %v376_v43 = vmul.f32 %v1891_v39, %v231_v33  ;;  %v501_v44 = vmax.f32 %v373_v37, 0.0  ;;  %v154_v52 = vunpack.c.l.bf16 %v56_v47 }
  0x24   :  { %905 = vmatmul.bf16.vlgmr.msra.gmra.mxu2 %v653_v34  ;;  %v654_v41 = vpack.c.bf16 %v560_v36, %v558_v35  ;;  %v503_v45 = vmax.f32 %v375_v40, 0.0  ;;  %v156_v53 = vunpack.c.l.bf16 %v57_v48  ;;  %v98_v55 = vunpack.c.l.bf16 %v28_v46 }
  0x25   :  { %v502_v49 = vmax.f32 %v374_v42, 0.0  ;;  %v504_v50 = vmax.f32 %v376_v43, 0.0  ;;  %v288_v56 = vsub.f32 %v154_v52, %v1869_v23  ;;  %v100_v57 = vunpack.c.l.bf16 %v29_v51 }
  0x26   :  { %1074 = vmatmul.bf16.vlgmr.msra.gmra.mxu3 %v654_v41  ;;  %v625_v54 = vpack.c.bf16 %v503_v45, %v501_v44  ;;  %v290_v58 = vsub.f32 %v156_v53, %v1869_v23  ;;  %v155_v59 = vunpack.c.h.bf16 %v56_v47  ;;  %v157_v60 = vunpack.c.h.bf16 %v57_v48 }
  0x27   :  { %v626_v61 = vpack.c.bf16 %v504_v50, %v502_v49  ;;  %v99_v62 = vunpack.c.h.bf16 %v28_v46  ;;  %v101_v63 = vunpack.c.h.bf16 %v29_v51  ;;  %v433_v0 = vmul.f32 %v1889_v38, %v288_v56 }
  0x28   :  { %v435_v1 = vmul.f32 %v1889_v38, %v290_v58  ;;  %v289_v2 = vsub.f32 %v155_v59, %v1871_v26  ;;  %v291_v3 = vsub.f32 %v157_v60, %v1871_v26  ;;  %v232_v4 = vsub.f32 %v98_v55, %v1869_v23 }
  0x29   :  { %v561_v5 = vmax.f32 %v433_v0, 0.0  ;;  %v234_v6 = vsub.f32 %v100_v57, %v1869_v23  ;;  %v233_v10 = vsub.f32 %v99_v62, %v1871_v26  ;;  %v235_v11 = vsub.f32 %v101_v63, %v1871_v26 }
  0x2a   :  { %v563_v7 = vmax.f32 %v435_v1, 0.0  ;;  %v434_v8 = vmul.f32 %v1891_v39, %v289_v2  ;;  %v436_v9 = vmul.f32 %v1891_v39, %v291_v3  ;;  %v377_v15 = vmul.f32 %v1889_v38, %v232_v4  ;;  %v32_v2 = vld [vmem:[%s2725_s0 + $0x50] sm:$0xff]  ;;  %v61_v4 = vld [vmem:[%s2725_s0 + $0x138] sm:$0xff] }
  0x2b   :  { %v379_v16 = vmul.f32 %v1889_v38, %v234_v6  ;;  %v380_v19 = vmul.f32 %v1891_v39, %v235_v11  ;;  %v158_v30 = vunpack.c.l.bf16 %v58_v25  ;;  %v160_v31 = vunpack.c.l.bf16 %v59_v27  ;;  %v60_v3 = vld [vmem:[%s2725_s0 + $0x130] sm:$0xff] }
  0x2c   :  { %v655_v12 = vpack.c.bf16 %v563_v7, %v561_v5  ;;  %v562_v13 = vmax.f32 %v434_v8, 0.0  ;;  %v564_v14 = vmax.f32 %v436_v9, 0.0  ;;  %v505_v21 = vmax.f32 %v377_v15, 0.0  ;;  %v33_v7 = vld [vmem:[%s2725_s0 + $0x58] sm:$0xff] }
  0x2d   :  { %v507_v22 = vmax.f32 %v379_v16, 0.0  ;;  %v508_v29 = vmax.f32 %v380_v19, 0.0  ;;  %v102_v32 = vunpack.c.l.bf16 %v30_v20  ;;  %v104_v33 = vunpack.c.l.bf16 %v31_v24 }
  0x2e   :  { %v292_v34 = vsub.f32 %v158_v30, %v1869_v23  ;;  %v294_v36 = vsub.f32 %v160_v31, %v1869_v23  ;;  %v159_v37 = vunpack.c.h.bf16 %v58_v25  ;;  %v161_v40 = vunpack.c.h.bf16 %v59_v27 }
  0x2f   :  { %v627_v35 = vpack.c.bf16 %v507_v22, %v505_v21  ;;  %v103_v42 = vunpack.c.h.bf16 %v30_v20  ;;  %v105_v43 = vunpack.c.h.bf16 %v31_v24  ;;  %v236_v48 = vsub.f32 %v102_v32, %v1869_v23 }
  0x30   :  { %v437_v44 = vmul.f32 %v1889_v38, %v292_v34  ;;  %v439_v45 = vmul.f32 %v1889_v38, %v294_v36  ;;  %v293_v46 = vsub.f32 %v159_v37, %v1871_v26  ;;  %v295_v47 = vsub.f32 %v161_v40, %v1871_v26 }
  0x31   :  { %830 = vmatmul.bf16.gmra.mxu0 %v623_v17  ;;  %v656_v17 = vpack.c.bf16 %v564_v14, %v562_v13  ;;  %v238_v49 = vsub.f32 %v104_v33, %v1869_v23  ;;  %v239_v55 = vsub.f32 %v105_v43, %v1871_v26  ;;  %v381_v59 = vmul.f32 %v1889_v38, %v236_v48  ;;  %v62_v48 = vld [vmem:[%s2725_s0 + $0x140] sm:$0xff] }
  0x32   :  { %999 = vmatmul.bf16.gmra.mxu1 %v624_v18  ;;  %v378_v18 = vmul.f32 %v1891_v39, %v233_v10  ;;  %v565_v50 = vmax.f32 %v437_v44, 0.0  ;;  %v567_v51 = vmax.f32 %v439_v45, 0.0  ;;  %v438_v52 = vmul.f32 %v1891_v39, %v293_v46  ;;  %v34_v44 = vld [vmem:[%s2725_s0 + $0x60] sm:$0xff] }
  0x33   :  { %v440_v53 = vmul.f32 %v1891_v39, %v295_v47  ;;  %v383_v60 = vmul.f32 %v1889_v38, %v238_v49  ;;  %v384_v63 = vmul.f32 %v1891_v39, %v239_v55  ;;  %v509_v0 = vmax.f32 %v381_v59, 0.0  ;;  %v35_v47 = vld [vmem:[%s2725_s0 + $0x68] sm:$0xff] }
  0x34   :  { %910 = vmatmul.bf16.gmra.mxu2 %v655_v12  ;;  %v506_v28 = vmax.f32 %v378_v18, 0.0  ;;  %v657_v56 = vpack.c.bf16 %v567_v51, %v565_v50  ;;  %v566_v57 = vmax.f32 %v438_v52, 0.0  ;;  %v162_v8 = vunpack.c.l.bf16 %v60_v3  ;;  %v63_v49 = vld [vmem:[%s2725_s0 + $0x148] sm:$0xff] }
  0x35   :  { %v568_v58 = vmax.f32 %v440_v53, 0.0  ;;  %v511_v1 = vmax.f32 %v383_v60, 0.0  ;;  %v512_v6 = vmax.f32 %v384_v63, 0.0  ;;  %v164_v9 = vunpack.c.l.bf16 %v61_v4 }
  0x36   :  { %1079 = vmatmul.bf16.gmra.mxu3 %v656_v17  ;;  %v628_v41 = vpack.c.bf16 %v508_v29, %v506_v28  ;;  %v106_v11 = vunpack.c.l.bf16 %v32_v2  ;;  %v296_v12 = vsub.f32 %v162_v8, %v1869_v23  ;;  %v108_v13 = vunpack.c.l.bf16 %v33_v7 }
  0x37   :  { %v629_v10 = vpack.c.bf16 %v511_v1, %v509_v0  ;;  %v298_v14 = vsub.f32 %v164_v9, %v1869_v23  ;;  %v163_v15 = vunpack.c.h.bf16 %v60_v3  ;;  %v165_v16 = vunpack.c.h.bf16 %v61_v4 }
  0x38   :  { %v107_v18 = vunpack.c.h.bf16 %v32_v2  ;;  %v109_v19 = vunpack.c.h.bf16 %v33_v7  ;;  %v441_v20 = vmul.f32 %v1889_v38, %v296_v12  ;;  %v240_v25 = vsub.f32 %v106_v11, %v1869_v23 }
  0x39   :  { %v443_v21 = vmul.f32 %v1889_v38, %v298_v14  ;;  %v297_v22 = vsub.f32 %v163_v15, %v1871_v26  ;;  %v299_v24 = vsub.f32 %v165_v16, %v1871_v26  ;;  %v242_v28 = vsub.f32 %v108_v13, %v1869_v23 }
  0x3a   :  { %v569_v27 = vmax.f32 %v441_v20, 0.0  ;;  %v241_v32 = vsub.f32 %v107_v18, %v1871_v26  ;;  %v243_v33 = vsub.f32 %v109_v19, %v1871_v26  ;;  %v385_v37 = vmul.f32 %v1889_v38, %v240_v25  ;;  %v65_v25 = vld [vmem:[%s2725_s0 + $0x158] sm:$0xff] }
  0x3b   :  { %v571_v29 = vmax.f32 %v443_v21, 0.0  ;;  %v442_v30 = vmul.f32 %v1891_v39, %v297_v22  ;;  %v444_v31 = vmul.f32 %v1891_v39, %v299_v24  ;;  %v387_v40 = vmul.f32 %v1889_v38, %v242_v28  ;;  %v36_v22 = vld [vmem:[%s2725_s0 + $0x70] sm:$0xff] }
  0x3c   :  { %v388_v43 = vmul.f32 %v1891_v39, %v243_v33  ;;  %v513_v45 = vmax.f32 %v385_v37, 0.0  ;;  %v166_v52 = vunpack.c.l.bf16 %v62_v48  ;;  %v168_v53 = vunpack.c.l.bf16 %v63_v49  ;;  %v64_v24 = vld [vmem:[%s2725_s0 + $0x150] sm:$0xff] }
  0x3d   :  { %v659_v34 = vpack.c.bf16 %v571_v29, %v569_v27  ;;  %v572_v36 = vmax.f32 %v444_v31, 0.0  ;;  %v515_v46 = vmax.f32 %v387_v40, 0.0  ;;  %v112_v55 = vunpack.c.l.bf16 %v35_v47  ;;  %v37_v29 = vld [vmem:[%s2725_s0 + $0x78] sm:$0xff] }
  0x3e   :  { %v516_v51 = vmax.f32 %v388_v43, 0.0  ;;  %v167_v59 = vunpack.c.h.bf16 %v62_v48  ;;  %v169_v60 = vunpack.c.h.bf16 %v63_v49  ;;  %v113_v63 = vunpack.c.h.bf16 %v35_v47 }
  0x3f   :  { %v172_v31 = vunpack.c.l.bf16 %v65_v25  ;;  %v114_v33 = vunpack.c.l.bf16 %v36_v22  ;;  %v173_v37 = vunpack.c.h.bf16 %v65_v25  ;;  %v117_v43 = vunpack.c.h.bf16 %v37_v29 }
  0x40   :  { %v301_v2 = vsub.f32 %v167_v59, %v1871_v26  ;;  %v303_v3 = vsub.f32 %v169_v60, %v1871_v26  ;;  %v247_v11 = vsub.f32 %v113_v63, %v1871_v26 }
  0x41   :  { %835 = vmatmul.bf16.gmra.mxu0 %v625_v54  ;;  %v237_v54 = vsub.f32 %v103_v42, %v1871_v26  ;;  %v386_v42 = vmul.f32 %v1891_v39, %v241_v32  ;;  %v307_v47 = vsub.f32 %v173_v37, %v1871_v26  ;;  %v248_v48 = vsub.f32 %v114_v33, %v1869_v23 }
  0x42   :  { %1004 = vmatmul.bf16.gmra.mxu1 %v626_v61  ;;  %v658_v61 = vpack.c.bf16 %v568_v58, %v566_v57  ;;  %v631_v57 = vpack.c.bf16 %v515_v46, %v513_v45  ;;  %v302_v58 = vsub.f32 %v168_v53, %v1869_v23  ;;  %v446_v8 = vmul.f32 %v1891_v39, %v301_v2  ;;  %v66_v2 = vld [vmem:[%s2725_s0 + $0x160] sm:$0xff] }
  0x43   :  { %v382_v62 = vmul.f32 %v1891_v39, %v237_v54  ;;  %v514_v50 = vmax.f32 %v386_v42, 0.0  ;;  %v110_v54 = vunpack.c.l.bf16 %v34_v44  ;;  %v448_v9 = vmul.f32 %v1891_v39, %v303_v3  ;;  %v67_v3 = vld [vmem:[%s2725_s0 + $0x168] sm:$0xff] }
  0x44   :  { %915 = vmatmul.bf16.gmra.mxu2 %v657_v56  ;;  %v300_v56 = vsub.f32 %v166_v52, %v1869_v23  ;;  %v447_v1 = vmul.f32 %v1889_v38, %v302_v58  ;;  %v574_v13 = vmax.f32 %v446_v8, 0.0  ;;  %v392_v19 = vmul.f32 %v1891_v39, %v247_v11 }
  0x45   :  { %v510_v5 = vmax.f32 %v382_v62, 0.0  ;;  %v111_v62 = vunpack.c.h.bf16 %v34_v44  ;;  %v244_v4 = vsub.f32 %v110_v54, %v1869_v23  ;;  %v576_v14 = vmax.f32 %v448_v9, 0.0 }
  0x46   :  { %1084 = vmatmul.bf16.gmra.mxu3 %v658_v61  ;;  %v632_v61 = vpack.c.bf16 %v516_v51, %v514_v50  ;;  %v445_v0 = vmul.f32 %v1889_v38, %v300_v56  ;;  %v575_v7 = vmax.f32 %v447_v1, 0.0  ;;  %v520_v28 = vmax.f32 %v392_v19, 0.0  ;;  %v39_v1 = vld [vmem:[%s2725_s0 + $0x88] sm:$0xff] }
  0x47   :  { %v630_v17 = vpack.c.bf16 %v512_v6, %v510_v5  ;;  %v246_v5 = vsub.f32 %v112_v55, %v1869_v23  ;;  %v389_v15 = vmul.f32 %v1889_v38, %v244_v4  ;;  %v115_v42 = vunpack.c.h.bf16 %v36_v22 }
  0x48   :  { %v573_v6 = vmax.f32 %v445_v0, 0.0  ;;  %v452_v52 = vmul.f32 %v1891_v39, %v307_v47  ;;  %v251_v55 = vsub.f32 %v117_v43, %v1871_v26  ;;  %v393_v60 = vmul.f32 %v1889_v38, %v248_v48  ;;  %v38_v0 = vld [vmem:[%s2725_s0 + $0x80] sm:$0xff] }
  0x49   :  { %v391_v16 = vmul.f32 %v1889_v38, %v246_v5  ;;  %v517_v20 = vmax.f32 %v389_v15, 0.0  ;;  %v249_v54 = vsub.f32 %v115_v42, %v1871_v26  ;;  %v174_v8 = vunpack.c.l.bf16 %v66_v2 }
  0x4a   :  { %v661_v12 = vpack.c.bf16 %v575_v7, %v573_v6  ;;  %v580_v58 = vmax.f32 %v452_v52, 0.0  ;;  %v396_v63 = vmul.f32 %v1891_v39, %v251_v55  ;;  %v521_v4 = vmax.f32 %v393_v60, 0.0 }
  0x4b   :  { %v519_v21 = vmax.f32 %v391_v16, 0.0  ;;  %v176_v9 = vunpack.c.l.bf16 %v67_v3  ;;  %v120_v11 = vunpack.c.l.bf16 %v39_v1  ;;  %v175_v16 = vunpack.c.h.bf16 %v66_v2 }
  0x4c   :  { %v524_v7 = vmax.f32 %v396_v63, 0.0 }
  0x4d   :  { %v633_v32 = vpack.c.bf16 %v519_v21, %v517_v20  ;;  %v310_v15 = vsub.f32 %v176_v9, %v1869_v23  ;;  %v309_v22 = vsub.f32 %v175_v16, %v1871_v26 }
  0x4f   :  { %v455_v21 = vmul.f32 %v1889_v38, %v310_v15 }
  0x51   :  { %840 = vmatmul.bf16.gmra.mxu0 %v627_v35  ;;  %v570_v35 = vmax.f32 %v442_v30, 0.0  ;;  %v170_v30 = vunpack.c.l.bf16 %v64_v24 }
  0x52   :  { %1009 = vmatmul.bf16.gmra.mxu1 %v628_v41 }
  0x53   :  { %v660_v41 = vpack.c.bf16 %v572_v36, %v570_v35  ;;  %v306_v35 = vsub.f32 %v172_v31, %v1869_v23  ;;  %v171_v36 = vunpack.c.h.bf16 %v64_v24  ;;  %v583_v31 = vmax.f32 %v455_v21, 0.0 }
  0x54   :  { %920 = vmatmul.bf16.gmra.mxu2 %v659_v34  ;;  %v304_v34 = vsub.f32 %v170_v30, %v1869_v23 }
  0x55   :  { %v451_v45 = vmul.f32 %v1889_v38, %v306_v35  ;;  %v305_v46 = vsub.f32 %v171_v36, %v1871_v26 }
  0x56   :  { %1089 = vmatmul.bf16.gmra.mxu3 %v660_v41  ;;  %v116_v41 = vunpack.c.l.bf16 %v37_v29  ;;  %v449_v44 = vmul.f32 %v1889_v38, %v304_v34 }
  0x57   :  { %v579_v50 = vmax.f32 %v451_v45, 0.0  ;;  %v450_v51 = vmul.f32 %v1891_v39, %v305_v46  ;;  %v41_v45 = vld [vmem:[%s2725_s0 + $0x98] sm:$0xff] }
  0x58   :  { %v577_v49 = vmax.f32 %v449_v44, 0.0  ;;  %v250_v53 = vsub.f32 %v116_v41, %v1869_v23  ;;  %v40_v44 = vld [vmem:[%s2725_s0 + $0x90] sm:$0xff] }
  0x59   :  { %v122_v52 = vunpack.c.l.bf16 %v40_v44 }
  0x5a   :  { %v663_v56 = vpack.c.bf16 %v579_v50, %v577_v49  ;;  %v68_v50 = vld [vmem:[%s2725_s0 + $0x170] sm:$0xff] }
  0x5b   :  { %v179_v60 = vunpack.c.h.bf16 %v68_v50 }
  0x61   :  { %845 = vmatmul.bf16.gmra.mxu0 %v629_v10  ;;  %v245_v10 = vsub.f32 %v111_v62, %v1871_v26  ;;  %v394_v62 = vmul.f32 %v1891_v39, %v249_v54  ;;  %v178_v54 = vunpack.c.l.bf16 %v68_v50 }
  0x62   :  { %1014 = vmatmul.bf16.gmra.mxu1 %v630_v17  ;;  %v662_v17 = vpack.c.bf16 %v576_v14, %v574_v13  ;;  %v121_v13 = vunpack.c.h.bf16 %v39_v1  ;;  %v308_v14 = vsub.f32 %v174_v8, %v1869_v23  ;;  %v125_v1 = vunpack.c.h.bf16 %v41_v45  ;;  %v2130_v8 = vld [vmem:[%s2727_s4] ss:$0 sm:$0xff] }
  0x63   :  { %v390_v18 = vmul.f32 %v1891_v39, %v245_v10  ;;  %v522_v6 = vmax.f32 %v394_v62, 0.0  ;;  %v118_v10 = vunpack.c.l.bf16 %v38_v0  ;;  %v256_v62 = vsub.f32 %v122_v52, %v1869_v23 }
  0x64   :  { %925 = vmatmul.bf16.gmra.mxu2 %v661_v12  ;;  %v119_v12 = vunpack.c.h.bf16 %v38_v0  ;;  %v453_v20 = vmul.f32 %v1889_v38, %v308_v14  ;;  %v255_v29 = vsub.f32 %v121_v13, %v1871_v26  ;;  %v123_v0 = vunpack.c.h.bf16 %v40_v44 }
  0x65   :  { %v518_v27 = vmax.f32 %v390_v18, 0.0  ;;  %v636_v19 = vpack.c.bf16 %v524_v7, %v522_v6  ;;  %v252_v25 = vsub.f32 %v118_v10, %v1869_v23  ;;  %v313_v6 = vsub.f32 %v179_v60, %v1871_v26 }
  0x66   :  { %1094 = vmatmul.bf16.gmra.mxu3 %v662_v17  ;;  %v177_v17 = vunpack.c.h.bf16 %v67_v3  ;;  %v581_v30 = vmax.f32 %v453_v20, 0.0  ;;  %v400_v42 = vmul.f32 %v1891_v39, %v255_v29  ;;  %v401_v13 = vmul.f32 %v1889_v38, %v256_v62 }
  0x67   :  { %v634_v40 = vpack.c.bf16 %v520_v28, %v518_v27  ;;  %v254_v27 = vsub.f32 %v120_v11, %v1869_v23  ;;  %v253_v28 = vsub.f32 %v119_v12, %v1871_v26  ;;  %v397_v37 = vmul.f32 %v1889_v38, %v252_v25 }
  0x68   :  { %v311_v24 = vsub.f32 %v177_v17, %v1871_v26  ;;  %v665_v34 = vpack.c.bf16 %v583_v31, %v581_v30  ;;  %v528_v49 = vmax.f32 %v400_v42, 0.0  ;;  %v458_v11 = vmul.f32 %v1891_v39, %v313_v6 }
  0x69   :  { %v398_v41 = vmul.f32 %v1891_v39, %v253_v28  ;;  %v525_v46 = vmax.f32 %v397_v37, 0.0  ;;  %v257_v14 = vsub.f32 %v123_v0, %v1871_v26  ;;  %v259_v15 = vsub.f32 %v125_v1, %v1871_v26 }
  0x6a   :  { %v456_v33 = vmul.f32 %v1891_v39, %v311_v24  ;;  %v529_v28 = vmax.f32 %v401_v13, 0.0 }
  0x6b   :  { %v526_v48 = vmax.f32 %v398_v41, 0.0  ;;  %v404_v24 = vmul.f32 %v1891_v39, %v259_v15 }
  0x6c   :  { %v584_v36 = vmax.f32 %v456_v33, 0.0  ;;  %v70_v33 = vld [vmem:[%s2725_s0 + $0x180] sm:$0xff] }
  0x6d   :  { %v532_v37 = vmax.f32 %v404_v24, 0.0 }
  0x71   :  { %850 = vmatmul.bf16.gmra.mxu0 %v631_v57  ;;  %v578_v57 = vmax.f32 %v450_v51, 0.0  ;;  %v69_v51 = vld [vmem:[%s2725_s0 + $0x178] sm:$0xff] }
  0x72   :  { %1019 = vmatmul.bf16.gmra.mxu1 %v632_v61  ;;  %v395_v61 = vmul.f32 %v1889_v38, %v250_v53  ;;  %v124_v53 = vunpack.c.l.bf16 %v41_v45  ;;  %v180_v55 = vunpack.c.l.bf16 %v69_v51 }
  0x73   :  { %v664_v59 = vpack.c.bf16 %v580_v58, %v578_v57  ;;  %v638_v57 = vpack.c.bf16 %v528_v49, %v526_v48  ;;  %v312_v58 = vsub.f32 %v178_v54, %v1869_v23 }
  0x74   :  { %930 = vmatmul.bf16.gmra.mxu2 %v663_v56  ;;  %v523_v5 = vmax.f32 %v395_v61, 0.0  ;;  %v181_v61 = vunpack.c.h.bf16 %v69_v51  ;;  %v258_v63 = vsub.f32 %v124_v53, %v1869_v23 }
  0x76   :  { %1099 = vmatmul.bf16.gmra.mxu3 %v664_v59  ;;  %v635_v18 = vpack.c.bf16 %v523_v5, %v521_v4  ;;  %v314_v59 = vsub.f32 %v180_v55, %v1869_v23  ;;  %v457_v4 = vmul.f32 %v1889_v38, %v312_v58  ;;  %v315_v7 = vsub.f32 %v181_v61, %v1871_v26 }
  0x77   :  { %v403_v16 = vmul.f32 %v1889_v38, %v258_v63 }
  0x78   :  { %v459_v5 = vmul.f32 %v1889_v38, %v314_v59  ;;  %v585_v9 = vmax.f32 %v457_v4, 0.0  ;;  %v460_v12 = vmul.f32 %v1891_v39, %v315_v7 }
  0x79   :  { %v531_v29 = vmax.f32 %v403_v16, 0.0 }
  0x7a   :  { %v587_v10 = vmax.f32 %v459_v5, 0.0 }
  0x7b   :  { %v639_v41 = vpack.c.bf16 %v531_v29, %v529_v28 }
  0x7c   :  { %v667_v17 = vpack.c.bf16 %v587_v10, %v585_v9 }
  0x81   :  { %855 = vmatmul.bf16.gmra.mxu0 %v633_v32  ;;  %v454_v32 = vmul.f32 %v1891_v39, %v309_v22  ;;  %v402_v22 = vmul.f32 %v1891_v39, %v257_v14 }
  0x82   :  { %1024 = vmatmul.bf16.gmra.mxu1 %v634_v40  ;;  %v399_v40 = vmul.f32 %v1889_v38, %v254_v27 }
  0x83   :  { %v582_v35 = vmax.f32 %v454_v32, 0.0  ;;  %v42_v32 = vld [vmem:[%s2725_s0 + $0xa0] sm:$0xff] }
  0x84   :  { %935 = vmatmul.bf16.gmra.mxu2 %v665_v34  ;;  %v527_v47 = vmax.f32 %v399_v40, 0.0  ;;  %v71_v34 = vld [vmem:[%s2725_s0 + $0x188] sm:$0xff]  ;;  %v126_v42 = vunpack.c.l.bf16 %v42_v32  ;;  %v127_v50 = vunpack.c.h.bf16 %v42_v32  ;;  %v72_v32 = vld [vmem:[%s2725_s0 + $0x190] sm:$0xff] }
  0x85   :  { %v666_v43 = vpack.c.bf16 %v584_v36, %v582_v35  ;;  %v530_v36 = vmax.f32 %v402_v22, 0.0  ;;  %v43_v40 = vld [vmem:[%s2725_s0 + $0xa8] sm:$0xff]  ;;  %v184_v44 = vunpack.c.l.bf16 %v71_v34  ;;  %v185_v63 = vunpack.c.h.bf16 %v71_v34 }
  0x86   :  { %v637_v56 = vpack.c.bf16 %v527_v47, %v525_v46  ;;  %v128_v49 = vunpack.c.l.bf16 %v43_v40  ;;  %v129_v51 = vunpack.c.h.bf16 %v43_v40  ;;  %v260_v59 = vsub.f32 %v126_v42, %v1869_v23 }
  0x87   :  { %1104 = vmatmul.bf16.gmra.mxu3 %v666_v43  ;;  %v182_v43 = vunpack.c.l.bf16 %v70_v33  ;;  %v640_v54 = vpack.c.bf16 %v532_v37, %v530_v36  ;;  %v318_v55 = vsub.f32 %v184_v44, %v1869_v23  ;;  %v319_v7 = vsub.f32 %v185_v63, %v1871_v26 }
  0x88   :  { %v262_v1 = vsub.f32 %v128_v49, %v1869_v23  ;;  %v405_v14 = vmul.f32 %v1889_v38, %v260_v59  ;;  %v186_v40 = vunpack.c.l.bf16 %v72_v32 }
  0x89   :  { %v316_v52 = vsub.f32 %v182_v43, %v1869_v23  ;;  %v463_v62 = vmul.f32 %v1889_v38, %v318_v55  ;;  %v464_v13 = vmul.f32 %v1891_v39, %v319_v7 }
  0x8a   :  { %v407_v15 = vmul.f32 %v1889_v38, %v262_v1 }
  0x8b   :  { %v461_v60 = vmul.f32 %v1889_v38, %v316_v52  ;;  %v591_v6 = vmax.f32 %v463_v62, 0.0 }
  0x8d   :  { %v589_v4 = vmax.f32 %v461_v60, 0.0 }
  0x91   :  { %860 = vmatmul.bf16.gmra.mxu0 %v635_v18  ;;  %v586_v18 = vmax.f32 %v458_v11, 0.0 }
  0x92   :  { %1029 = vmatmul.bf16.gmra.mxu1 %v636_v19  ;;  %v588_v19 = vmax.f32 %v460_v12, 0.0  ;;  %v669_v12 = vpack.c.bf16 %v591_v6, %v589_v4 }
  0x94   :  { %940 = vmatmul.bf16.gmra.mxu2 %v667_v17  ;;  %v668_v21 = vpack.c.bf16 %v588_v19, %v586_v18 }
  0x97   :  { %1109 = vmatmul.bf16.gmra.mxu3 %v668_v21 }
  0x9e   :  { %v826_v2 = vpop.f32.mrf.mxu0 }
  0x9f   :  { %v995_v3 = vpop.f32.mrf.mxu1  ;;  %v827_v20 = vadd.f32 %v2130_v8, %v826_v2  ;;  %v261_v2 = vsub.f32 %v127_v50, %v1871_v26  ;;  %v320_v50 = vsub.f32 %v186_v40, %v1869_v23 }
  0xa1   :  { %865 = vmatmul.bf16.gmra.mxu0 %v637_v56  ;;  %v996_v30 = vadd.f32 %v995_v3, %v827_v20  ;;  %v183_v56 = vunpack.c.h.bf16 %v70_v33  ;;  %v263_v3 = vsub.f32 %v129_v51, %v1871_v26  ;;  %v406_v18 = vmul.f32 %v1891_v39, %v261_v2  ;;  %v73_v33 = vld [vmem:[%s2725_s0 + $0x198] sm:$0xff] }
  0xa2   :  { %1034 = vmatmul.bf16.gmra.mxu1 %v638_v57  ;;  %v592_v20 = vmax.f32 %v464_v13, 0.0  ;;  %v188_v43 = vunpack.c.l.bf16 %v73_v33  ;;  %v465_v59 = vmul.f32 %v1889_v38, %v320_v50 }
  0xa3   :  { %v1225_v45 = vmul.f32 %v996_v30, %v996_v30  ;;  %v317_v0 = vsub.f32 %v183_v56, %v1871_v26  ;;  %v408_v19 = vmul.f32 %v1891_v39, %v263_v3 }
  0xa4   :  { %945 = vmatmul.bf16.gmra.mxu2 %v669_v12  ;;  %v593_v4 = vmax.f32 %v465_v59, 0.0 }
  0xa5   :  { %v462_v9 = vmul.f32 %v1891_v39, %v317_v0  ;;  %v536_v36 = vmax.f32 %v408_v19, 0.0  ;;  %v187_v0 = vunpack.c.h.bf16 %v72_v32 }
  0xa6   :  { %v828_v25 = vpop.f32.mrf.mxu0 }
  0xa7   :  { %v997_v27 = vpop.f32.mrf.mxu1  ;;  %v829_v31 = vadd.f32 %v2130_v8, %v828_v25  ;;  %v590_v16 = vmax.f32 %v462_v9, 0.0  ;;  %v44_v25 = vld [vmem:[%s2725_s0 + $0xb0] sm:$0xff]  ;;  %v906_v29 = vpop.f32.mrf.mxu2  ;;  %v189_v9 = vunpack.c.h.bf16 %v73_v33 }
  0xa8   :  { %v907_v49 = vadd.f32 %v2130_v8, %v906_v29 }
  0xa9   :  { %v998_v35 = vadd.f32 %v997_v27, %v829_v31  ;;  %v45_v27 = vld [vmem:[%s2725_s0 + $0xb8] sm:$0xff]  ;;  %v670_v28 = vpack.c.bf16 %v592_v20, %v590_v16  ;;  %v535_v31 = vmax.f32 %v407_v15, 0.0  ;;  %v1075_v37 = vpop.f32.mrf.mxu3  ;;  %v323_v15 = vsub.f32 %v189_v9, %v1871_v26 }
  0xaa   :  { %v132_v42 = vunpack.c.l.bf16 %v45_v27  ;;  %v2200_v2 = vadd.f32 %v1075_v37, %v907_v49  ;;  %v75_v37 = vld [vmem:[%s2725_s0 + $0x1a8] sm:$0xff] }
  0xab   :  { %v1155_v46 = vadd.f32 %v998_v35, %v996_v30  ;;  %v1226_v47 = vmul.f32 %v998_v35, %v998_v35  ;;  %v1578_v48 = vpack.c.bf16 %v998_v35, %v996_v30  ;;  %v533_v30 = vmax.f32 %v405_v14, 0.0  ;;  %1114 = vmatmul.bf16.gmra.mxu3 %v670_v28 }
  0xac   :  { %v534_v35 = vmax.f32 %v406_v18, 0.0 }
  0xad   :  { %v1289_v53 = vadd.f32 %v1226_v47, %v1225_v45  ;;  %1579 = vst [vmem:[%s2728_s5] sm:$0xff] %v1578_v48   ;;  %v131_v47 = vunpack.c.h.bf16 %v44_v25  ;;  %v133_v48 = vunpack.c.h.bf16 %v45_v27  ;;  %v641_v52 = vpack.c.bf16 %v535_v31, %v533_v30  ;;  %v46_v30 = vld [vmem:[%s2725_s0 + $0xc0] sm:$0xff]  ;;  %v47_v31 = vld [vmem:[%s2725_s0 + $0xc8] sm:$0xff] }
  0xae   :  { %v831_v57 = vpop.f32.mrf.mxu0 }
  0xaf   :  { %v1000_v58 = vpop.f32.mrf.mxu1  ;;  %v832_v61 = vadd.f32 %v2130_v8, %v831_v57  ;;  %v908_v62 = vpop.f32.mrf.mxu2  ;;  %v267_v1 = vsub.f32 %v133_v48, %v1871_v26  ;;  %v192_v48 = vunpack.c.l.bf16 %v75_v37 }
  0xb0   :  { %v909_v3 = vadd.f32 %v2130_v8, %v908_v62 }
  0xb1   :  { %v1001_v5 = vadd.f32 %v1000_v58, %v832_v61  ;;  %870 = vmatmul.bf16.gmra.mxu0 %v639_v41  ;;  %v130_v41 = vunpack.c.l.bf16 %v44_v25  ;;  %v266_v58 = vsub.f32 %v132_v42, %v1869_v23  ;;  %v265_v61 = vsub.f32 %v131_v47, %v1871_v26  ;;  %v1077_v6 = vpop.f32.mrf.mxu3 }
  0xb2   :  { %1039 = vmatmul.bf16.gmra.mxu1 %v640_v54  ;;  %v322_v54 = vsub.f32 %v188_v43, %v1869_v23  ;;  %v326_v59 = vsub.f32 %v192_v48, %v1869_v23 }
  0xb3   :  { %v1156_v10 = vadd.f32 %v1155_v46, %v1001_v5  ;;  %v1227_v11 = vmul.f32 %v1001_v5, %v1001_v5  ;;  %v264_v57 = vsub.f32 %v130_v41, %v1869_v23 }
  0xb4   :  { %v467_v63 = vmul.f32 %v1889_v38, %v322_v54 }
  0xb5   :  { %v1290_v17 = vadd.f32 %v1289_v53, %v1227_v11  ;;  %v642_v53 = vpack.c.bf16 %v536_v36, %v534_v35  ;;  %v2204_v11 = vadd.f32 %v1077_v6, %v909_v3  ;;  %v409_v16 = vmul.f32 %v1889_v38, %v264_v57  ;;  %v74_v36 = vld [vmem:[%s2725_s0 + $0x1a0] sm:$0xff] }
  0xb6   :  { %v833_v21 = vpop.f32.mrf.mxu0  ;;  %v595_v7 = vmax.f32 %v467_v63, 0.0  ;;  %v190_v47 = vunpack.c.l.bf16 %v74_v36  ;;  %v191_v6 = vunpack.c.h.bf16 %v74_v36 }
  0xb7   :  { %v1002_v22 = vpop.f32.mrf.mxu1  ;;  %v834_v24 = vadd.f32 %v2130_v8, %v833_v21  ;;  %v1658_v18 = vpack.c.bf16 %v2204_v11, %v2200_v2  ;;  %v410_v21 = vmul.f32 %v1891_v39, %v265_v61  ;;  %v911_v33 = vpop.f32.mrf.mxu2 }
  0xb8   :  { %v671_v14 = vpack.c.bf16 %v595_v7, %v593_v4  ;;  %v912_v54 = vadd.f32 %v2130_v8, %v911_v33 }
  0xb9   :  { %v1003_v34 = vadd.f32 %v1002_v22, %v834_v24  ;;  %v412_v22 = vmul.f32 %v1891_v39, %v267_v1  ;;  %v468_v24 = vmul.f32 %v1891_v39, %v323_v15  ;;  %1750 = vst [vmem:[%s2728_s5 + $0x80] sm:$0xff] %v1658_v18   ;;  %v538_v41 = vmax.f32 %v410_v21, 0.0 }
  0xba   :  { %950 = vmatmul.bf16.gmra.mxu2 %v671_v14 }
  0xbb   :  { %v1157_v44 = vadd.f32 %v1156_v10, %v1003_v34  ;;  %v1228_v45 = vmul.f32 %v1003_v34, %v1003_v34  ;;  %v1583_v46 = vpack.c.bf16 %v1003_v34, %v1001_v5  ;;  %v321_v10 = vsub.f32 %v187_v0, %v1871_v26 }
  0xbc   :  { %v596_v32 = vmax.f32 %v468_v24, 0.0  ;;  %v537_v34 = vmax.f32 %v409_v16, 0.0  ;;  %v540_v42 = vmax.f32 %v412_v22, 0.0  ;;  %v193_v16 = vunpack.c.h.bf16 %v75_v37  ;;  %v48_v37 = vld [vmem:[%s2725_s0 + $0xd0] sm:$0xff] }
  0xbd   :  { %v1291_v51 = vadd.f32 %v1290_v17, %v1228_v45  ;;  %1735 = vst [vmem:[%s2728_s5 + $0x8] sm:$0xff] %v1583_v46   ;;  %v411_v17 = vmul.f32 %v1889_v38, %v266_v58  ;;  %v466_v19 = vmul.f32 %v1891_v39, %v321_v10  ;;  %v134_v45 = vunpack.c.l.bf16 %v46_v30 }
  0xbe   :  { %v836_v55 = vpop.f32.mrf.mxu0  ;;  %v136_v46 = vunpack.c.l.bf16 %v47_v31  ;;  %v644_v58 = vpack.c.bf16 %v540_v42, %v538_v41  ;;  %v327_v22 = vsub.f32 %v193_v16, %v1871_v26 }
  0xbf   :  { %v1005_v56 = vpop.f32.mrf.mxu1  ;;  %v837_v60 = vadd.f32 %v2130_v8, %v836_v55  ;;  %v594_v28 = vmax.f32 %v466_v19, 0.0  ;;  %v539_v35 = vmax.f32 %v411_v17, 0.0  ;;  %v324_v55 = vsub.f32 %v190_v47, %v1869_v23  ;;  %v913_v4 = vpop.f32.mrf.mxu2 }
  0xc0   :  { %v268_v62 = vsub.f32 %v134_v45, %v1869_v23  ;;  %v270_v63 = vsub.f32 %v136_v46, %v1869_v23  ;;  %v914_v10 = vadd.f32 %v2130_v8, %v913_v4  ;;  %v325_v17 = vsub.f32 %v191_v6, %v1871_v26  ;;  %v76_v45 = vld [vmem:[%s2725_s0 + $0x1b0] sm:$0xff]  ;;  %v77_v46 = vld [vmem:[%s2725_s0 + $0x1b8] sm:$0xff] }
  0xc1   :  { %v1006_v5 = vadd.f32 %v1005_v56, %v837_v60  ;;  %875 = vmatmul.bf16.gmra.mxu0 %v641_v52  ;;  %v672_v43 = vpack.c.bf16 %v596_v32, %v594_v28  ;;  %v135_v52 = vunpack.c.h.bf16 %v46_v30  ;;  %v643_v57 = vpack.c.bf16 %v539_v35, %v537_v34 }
  0xc2   :  { %1044 = vmatmul.bf16.gmra.mxu1 %v642_v53  ;;  %v137_v53 = vunpack.c.h.bf16 %v47_v31  ;;  %v469_v0 = vmul.f32 %v1889_v38, %v324_v55  ;;  %v413_v24 = vmul.f32 %v1889_v38, %v268_v62  ;;  %v470_v28 = vmul.f32 %v1891_v39, %v325_v17 }
  0xc3   :  { %v1158_v12 = vadd.f32 %v1157_v44, %v1006_v5  ;;  %v1229_v13 = vmul.f32 %v1006_v5, %v1006_v5  ;;  %v1080_v44 = vpop.f32.mrf.mxu3  ;;  %1119 = vmatmul.bf16.gmra.mxu3 %v672_v43  ;;  %v269_v3 = vsub.f32 %v135_v52, %v1871_v26  ;;  %v472_v32 = vmul.f32 %v1891_v39, %v327_v22 }
  0xc4   :  { %v271_v7 = vsub.f32 %v137_v53, %v1871_v26  ;;  %v2244_v9 = vadd.f32 %v1080_v44, %v912_v54  ;;  %v598_v35 = vmax.f32 %v470_v28, 0.0  ;;  %v541_v43 = vmax.f32 %v413_v24, 0.0 }
  0xc5   :  { %v1292_v20 = vadd.f32 %v1291_v51, %v1229_v13  ;;  %v414_v30 = vmul.f32 %v1891_v39, %v269_v3  ;;  %v600_v41 = vmax.f32 %v472_v32, 0.0  ;;  %v138_v52 = vunpack.c.l.bf16 %v48_v37 }
  0xc6   :  { %v838_v25 = vpop.f32.mrf.mxu0  ;;  %v416_v31 = vmul.f32 %v1891_v39, %v271_v7  ;;  %v194_v54 = vunpack.c.l.bf16 %v76_v45  ;;  %v196_v55 = vunpack.c.l.bf16 %v77_v46  ;;  %v195_v16 = vunpack.c.h.bf16 %v76_v45 }
  0xc7   :  { %v1007_v27 = vpop.f32.mrf.mxu1  ;;  %v839_v29 = vadd.f32 %v2130_v8, %v838_v25  ;;  %v415_v25 = vmul.f32 %v1889_v38, %v270_v63  ;;  %v916_v42 = vpop.f32.mrf.mxu2  ;;  %v542_v48 = vmax.f32 %v414_v30, 0.0  ;;  %v272_v6 = vsub.f32 %v138_v52, %v1869_v23 }
  0xc8   :  { %v328_v62 = vsub.f32 %v194_v54, %v1869_v23  ;;  %v330_v3 = vsub.f32 %v196_v55, %v1869_v23  ;;  %v329_v28 = vsub.f32 %v195_v16, %v1871_v26  ;;  %v78_v54 = vld [vmem:[%s2725_s0 + $0x1c0] sm:$0xff]  ;;  %v79_v55 = vld [vmem:[%s2725_s0 + $0x1c8] sm:$0xff] }
  0xc9   :  { %v1008_v40 = vadd.f32 %v1007_v27, %v839_v29  ;;  %v543_v44 = vmax.f32 %v415_v25, 0.0 }
  0xcb   :  { %v1159_v49 = vadd.f32 %v1158_v12, %v1008_v40  ;;  %v1230_v50 = vmul.f32 %v1008_v40, %v1008_v40  ;;  %v1588_v51 = vpack.c.bf16 %v1008_v40, %v1006_v5  ;;  %v471_v5 = vmul.f32 %v1889_v38, %v326_v59  ;;  %v1082_v14 = vpop.f32.mrf.mxu3  ;;  %v49_v40 = vld [vmem:[%s2725_s0 + $0xd8] sm:$0xff] }
  0xcc   :  { %v597_v12 = vmax.f32 %v469_v0, 0.0  ;;  %v2248_v18 = vadd.f32 %v1082_v14, %v914_v10  ;;  %v140_v53 = vunpack.c.l.bf16 %v49_v40  ;;  %v139_v59 = vunpack.c.h.bf16 %v48_v37 }
  0xcd   :  { %v1293_v56 = vadd.f32 %v1292_v20, %v1230_v50  ;;  %1736 = vst [vmem:[%s2728_s5 + $0x10] sm:$0xff] %v1588_v51   ;;  %v599_v15 = vmax.f32 %v471_v5, 0.0  ;;  %v674_v50 = vpack.c.bf16 %v600_v41, %v598_v35  ;;  %v645_v0 = vpack.c.bf16 %v543_v44, %v541_v43 }
  0xce   :  { %v841_v60 = vpop.f32.mrf.mxu0  ;;  %v1663_v27 = vpack.c.bf16 %v2248_v18, %v2244_v9  ;;  %v274_v7 = vsub.f32 %v140_v53, %v1869_v23  ;;  %v473_v10 = vmul.f32 %v1889_v38, %v328_v62  ;;  %v474_v37 = vmul.f32 %v1891_v39, %v329_v28 }
  0xcf   :  { %v1010_v61 = vpop.f32.mrf.mxu1  ;;  %v842_v1 = vadd.f32 %v2130_v8, %v841_v60  ;;  %v673_v21 = vpack.c.bf16 %v599_v15, %v597_v12  ;;  %v141_v60 = vunpack.c.h.bf16 %v49_v40  ;;  %v918_v14 = vpop.f32.mrf.mxu2  ;;  %v475_v15 = vmul.f32 %v1889_v38, %v330_v3 }
  0xd0   :  { %1751 = vst [vmem:[%s2728_s5 + $0x88] sm:$0xff] %v1663_v27   ;;  %v197_v27 = vunpack.c.h.bf16 %v77_v46  ;;  %v419_v35 = vmul.f32 %v1889_v38, %v274_v7  ;;  %v602_v46 = vmax.f32 %v474_v37, 0.0 }
  0xd1   :  { %v1011_v13 = vadd.f32 %v1010_v61, %v842_v1  ;;  %880 = vmatmul.bf16.gmra.mxu0 %v643_v57  ;;  %955 = vmatmul.bf16.gmra.mxu2 %v673_v21  ;;  %v917_v61 = vadd.f32 %v2130_v8, %v916_v42  ;;  %v275_v17 = vsub.f32 %v141_v60, %v1871_v26  ;;  %v601_v21 = vmax.f32 %v473_v10, 0.0 }
  0xd2   :  { %1049 = vmatmul.bf16.gmra.mxu1 %v644_v58  ;;  %v603_v25 = vmax.f32 %v475_v15, 0.0  ;;  %v547_v53 = vmax.f32 %v419_v35, 0.0 }
  0xd3   :  { %v1160_v19 = vadd.f32 %v1159_v49, %v1011_v13  ;;  %v1231_v20 = vmul.f32 %v1011_v13, %v1011_v13  ;;  %v544_v49 = vmax.f32 %v416_v31, 0.0  ;;  %v1085_v51 = vpop.f32.mrf.mxu3  ;;  %1124 = vmatmul.bf16.gmra.mxu3 %v674_v50  ;;  %v420_v42 = vmul.f32 %v1891_v39, %v275_v17 }
  0xd4   :  { %v675_v32 = vpack.c.bf16 %v603_v25, %v601_v21 }
  0xd5   :  { %v1294_v29 = vadd.f32 %v1293_v56, %v1231_v20  ;;  %v646_v1 = vpack.c.bf16 %v544_v49, %v542_v48  ;;  %v919_v20 = vadd.f32 %v2130_v8, %v918_v14  ;;  %v50_v48 = vld [vmem:[%s2725_s0 + $0xe0] sm:$0xff]  ;;  %v51_v49 = vld [vmem:[%s2725_s0 + $0xe8] sm:$0xff] }
  0xd6   :  { %v843_v33 = vpop.f32.mrf.mxu0  ;;  %v144_v62 = vunpack.c.l.bf16 %v51_v49 }
  0xd7   :  { %v1012_v34 = vpop.f32.mrf.mxu1  ;;  %v844_v36 = vadd.f32 %v2130_v8, %v843_v33  ;;  %v331_v33 = vsub.f32 %v197_v27, %v1871_v26 }
  0xd8   :  { %v278_v21 = vsub.f32 %v144_v62, %v1869_v23  ;;  %v53_v62 = vld [vmem:[%s2725_s0 + $0xf8] sm:$0xff] }
  0xd9   :  { %v1013_v47 = vadd.f32 %v1012_v34, %v844_v36  ;;  %v417_v34 = vmul.f32 %v1889_v38, %v272_v6  ;;  %v476_v43 = vmul.f32 %v1891_v39, %v331_v33  ;;  %v145_v6 = vunpack.c.h.bf16 %v51_v49 }
  0xdb   :  { %v1161_v56 = vadd.f32 %v1160_v19, %v1013_v47  ;;  %v1232_v57 = vmul.f32 %v1013_v47, %v1013_v47  ;;  %v1593_v58 = vpack.c.bf16 %v1013_v47, %v1011_v13  ;;  %v273_v13 = vsub.f32 %v139_v59, %v1871_v26  ;;  %v1087_v24 = vpop.f32.mrf.mxu3 }
  0xdc   :  { %v2288_v19 = vadd.f32 %v1085_v51, %v917_v61  ;;  %v604_v50 = vmax.f32 %v476_v43, 0.0  ;;  %v921_v51 = vpop.f32.mrf.mxu2  ;;  %v545_v52 = vmax.f32 %v417_v34, 0.0  ;;  %v142_v61 = vunpack.c.l.bf16 %v50_v48 }
  0xdd   :  { %v1295_v63 = vadd.f32 %v1294_v29, %v1232_v57  ;;  %1737 = vst [vmem:[%s2728_s5 + $0x18] sm:$0xff] %v1593_v58   ;;  %v2292_v29 = vadd.f32 %v1087_v24, %v919_v20  ;;  %v418_v41 = vmul.f32 %v1891_v39, %v273_v13  ;;  %v548_v58 = vmax.f32 %v420_v42, 0.0 }
  0xde   :  { %v846_v4 = vpop.f32.mrf.mxu0  ;;  %v676_v59 = vpack.c.bf16 %v604_v50, %v602_v46  ;;  %v922_v7 = vadd.f32 %v2130_v8, %v921_v51  ;;  %v647_v13 = vpack.c.bf16 %v547_v53, %v545_v52  ;;  %v276_v20 = vsub.f32 %v142_v61, %v1869_v23 }
  0xdf   :  { %v1015_v5 = vpop.f32.mrf.mxu1  ;;  %v847_v12 = vadd.f32 %v2130_v8, %v846_v4  ;;  %v1668_v36 = vpack.c.bf16 %v2292_v29, %v2288_v19  ;;  %v546_v57 = vmax.f32 %v418_v41, 0.0  ;;  %v423_v43 = vmul.f32 %v1889_v38, %v278_v21 }
  0xe0   :  { %v421_v42 = vmul.f32 %v1889_v38, %v276_v20 }
  0xe1   :  { %v1016_v22 = vadd.f32 %v1015_v5, %v847_v12  ;;  %885 = vmatmul.bf16.gmra.mxu0 %v645_v0  ;;  %960 = vmatmul.bf16.gmra.mxu2 %v675_v32  ;;  %1752 = vst [vmem:[%s2728_s5 + $0x90] sm:$0xff] %v1668_v36   ;;  %v200_v0 = vunpack.c.l.bf16 %v79_v55  ;;  %v143_v5 = vunpack.c.h.bf16 %v50_v48  ;;  %v648_v14 = vpack.c.bf16 %v548_v58, %v546_v57 }
  0xe2   :  { %1054 = vmatmul.bf16.gmra.mxu1 %v646_v1  ;;  %v549_v58 = vmax.f32 %v421_v42, 0.0 }
  0xe3   :  { %v1162_v30 = vadd.f32 %v1161_v56, %v1016_v22  ;;  %v1233_v31 = vmul.f32 %v1016_v22, %v1016_v22  ;;  %v1090_v60 = vpop.f32.mrf.mxu3  ;;  %1129 = vmatmul.bf16.gmra.mxu3 %v676_v59  ;;  %v334_v15 = vsub.f32 %v200_v0, %v1869_v23  ;;  %v277_v25 = vsub.f32 %v143_v5, %v1871_v26  ;;  %v80_v5 = vld [vmem:[%s2725_s0 + $0x1d0] sm:$0xff] }
  0xe4   :  { %v923_v27 = vpop.f32.mrf.mxu2  ;;  %v2332_v32 = vadd.f32 %v1090_v60, %v922_v7  ;;  %v551_v59 = vmax.f32 %v423_v43, 0.0 }
  0xe5   :  { %v1296_v40 = vadd.f32 %v1295_v63, %v1233_v31  ;;  %v198_v63 = vunpack.c.l.bf16 %v78_v54  ;;  %v479_v28 = vmul.f32 %v1889_v38, %v334_v15  ;;  %v279_v31 = vsub.f32 %v145_v6, %v1871_v26  ;;  %v81_v6 = vld [vmem:[%s2725_s0 + $0x1d8] sm:$0xff] }
  0xe6   :  { %v848_v44 = vpop.f32.mrf.mxu0  ;;  %v924_v33 = vadd.f32 %v2130_v8, %v923_v27  ;;  %v422_v49 = vmul.f32 %v1891_v39, %v277_v25  ;;  %v649_v15 = vpack.c.bf16 %v551_v59, %v549_v58 }
  0xe7   :  { %v1017_v45 = vpop.f32.mrf.mxu1  ;;  %v849_v47 = vadd.f32 %v2130_v8, %v848_v44  ;;  %v332_v10 = vsub.f32 %v198_v63, %v1869_v23  ;;  %v607_v37 = vmax.f32 %v479_v28, 0.0  ;;  %v424_v50 = vmul.f32 %v1891_v39, %v279_v31 }
  0xe8   :  { %v205_v31 = vunpack.c.h.bf16 %v81_v6 }
  0xe9   :  { %v1018_v56 = vadd.f32 %v1017_v45, %v849_v47 }
  0xeb   :  { %v1163_v1 = vadd.f32 %v1162_v30, %v1018_v56  ;;  %v1234_v3 = vmul.f32 %v1018_v56, %v1018_v56  ;;  %v1598_v4 = vpack.c.bf16 %v1018_v56, %v1016_v22  ;;  %v477_v22 = vmul.f32 %v1889_v38, %v332_v10  ;;  %v1092_v36 = vpop.f32.mrf.mxu3 }
  0xec   :  { %v199_v30 = vunpack.c.h.bf16 %v78_v54  ;;  %v2338_v44 = vadd.f32 %v1092_v36, %v924_v33  ;;  %v52_v54 = vld [vmem:[%s2725_s0 + $0xf0] sm:$0xff]  ;;  %v926_v0 = vpop.f32.mrf.mxu2  ;;  %v149_v36 = vunpack.c.h.bf16 %v53_v62 }
  0xed   :  { %v1297_v12 = vadd.f32 %v1296_v40, %v1234_v3  ;;  %1738 = vst [vmem:[%s2728_s5 + $0x20] sm:$0xff] %v1598_v4   ;;  %v605_v34 = vmax.f32 %v477_v22, 0.0  ;;  %v201_v40 = vunpack.c.h.bf16 %v79_v55  ;;  %v552_v3 = vmax.f32 %v424_v50, 0.0 }
  0xee   :  { %v851_v16 = vpop.f32.mrf.mxu0  ;;  %v333_v41 = vsub.f32 %v199_v30, %v1871_v26  ;;  %v1673_v51 = vpack.c.bf16 %v2338_v44, %v2332_v32  ;;  %v146_v4 = vunpack.c.l.bf16 %v52_v54  ;;  %v927_v20 = vadd.f32 %v2130_v8, %v926_v0 }
  0xef   :  { %v1020_v17 = vpop.f32.mrf.mxu1  ;;  %v852_v24 = vadd.f32 %v2130_v8, %v851_v16  ;;  %v677_v47 = vpack.c.bf16 %v607_v37, %v605_v34  ;;  %v335_v48 = vsub.f32 %v201_v40, %v1871_v26  ;;  %v148_v16 = vunpack.c.l.bf16 %v53_v62 }
  0xf0   :  { %v478_v52 = vmul.f32 %v1891_v39, %v333_v41  ;;  %1753 = vst [vmem:[%s2728_s5 + $0x98] sm:$0xff] %v1673_v51   ;;  %v203_v30 = vunpack.c.h.bf16 %v80_v5  ;;  %v280_v34 = vsub.f32 %v146_v4, %v1869_v23 }
  0xf1   :  { %v1021_v35 = vadd.f32 %v1020_v17, %v852_v24  ;;  %890 = vmatmul.bf16.gmra.mxu0 %v647_v13  ;;  %965 = vmatmul.bf16.gmra.mxu2 %v677_v47  ;;  %v480_v55 = vmul.f32 %v1891_v39, %v335_v48  ;;  %v202_v13 = vunpack.c.l.bf16 %v80_v5  ;;  %v147_v17 = vunpack.c.h.bf16 %v52_v54 }
  0xf2   :  { %1059 = vmatmul.bf16.gmra.mxu1 %v648_v14  ;;  %v606_v60 = vmax.f32 %v478_v52, 0.0  ;;  %v204_v14 = vunpack.c.l.bf16 %v81_v6  ;;  %v282_v41 = vsub.f32 %v148_v16, %v1869_v23  ;;  %v337_v43 = vsub.f32 %v203_v30, %v1871_v26 }
  0xf3   :  { %v1164_v45 = vadd.f32 %v1163_v1, %v1021_v35  ;;  %v1235_v46 = vmul.f32 %v1021_v35, %v1021_v35  ;;  %v608_v63 = vmax.f32 %v480_v55, 0.0  ;;  %v550_v1 = vmax.f32 %v422_v49, 0.0 }
  0xf4   :  { %v336_v25 = vsub.f32 %v202_v13, %v1869_v23  ;;  %v338_v28 = vsub.f32 %v204_v14, %v1869_v23  ;;  %v281_v47 = vsub.f32 %v147_v17, %v1871_v26  ;;  %v928_v49 = vpop.f32.mrf.mxu2  ;;  %v425_v0 = vmul.f32 %v1889_v38, %v280_v34 }
  0xf5   :  { %v1298_v53 = vadd.f32 %v1297_v12, %v1235_v46  ;;  %v678_v10 = vpack.c.bf16 %v608_v63, %v606_v60  ;;  %v1095_v12 = vpop.f32.mrf.mxu3  ;;  %v650_v27 = vpack.c.bf16 %v552_v3, %v550_v1  ;;  %v929_v51 = vadd.f32 %v2130_v8, %v928_v49 }
  0xf6   :  { %v853_v56 = vpop.f32.mrf.mxu0  ;;  %v481_v37 = vmul.f32 %v1889_v38, %v336_v25  ;;  %v483_v42 = vmul.f32 %v1889_v38, %v338_v28  ;;  %v2377_v48 = vadd.f32 %v1095_v12, %v927_v20  ;;  %v427_v1 = vmul.f32 %v1889_v38, %v282_v41  ;;  %v82_v20 = vld [vmem:[%s2725_s0 + $0x1e0] sm:$0xff] }
  0xf7   :  { %v1022_v57 = vpop.f32.mrf.mxu1  ;;  %v854_v61 = vadd.f32 %v2130_v8, %v853_v56  ;;  %1134 = vmatmul.bf16.gmra.mxu3 %v678_v10  ;;  %v283_v56 = vsub.f32 %v149_v36, %v1871_v26  ;;  %v426_v3 = vmul.f32 %v1891_v39, %v281_v47 }
  0xf8   :  { %v609_v50 = vmax.f32 %v481_v37, 0.0  ;;  %v611_v52 = vmax.f32 %v483_v42, 0.0  ;;  %v555_v16 = vmax.f32 %v427_v1, 0.0 }
  0xf9   :  { %v1023_v7 = vadd.f32 %v1022_v57, %v854_v61  ;;  %v428_v6 = vmul.f32 %v1891_v39, %v283_v56  ;;  %v554_v17 = vmax.f32 %v426_v3, 0.0 }
  0xfa   :  { %v679_v59 = vpack.c.bf16 %v611_v52, %v609_v50 }
  0xfb   :  { %v1165_v21 = vadd.f32 %v1164_v45, %v1023_v7  ;;  %v1236_v22 = vmul.f32 %v1023_v7, %v1023_v7  ;;  %v1603_v24 = vpack.c.bf16 %v1023_v7, %v1021_v35  ;;  %v339_v45 = vsub.f32 %v205_v31, %v1871_v26 }
  0xfc   :  { %v931_v14 = vpop.f32.mrf.mxu2 }
  0xfd   :  { %v1299_v33 = vadd.f32 %v1298_v53, %v1236_v22  ;;  %1739 = vst [vmem:[%s2728_s5 + $0x28] sm:$0xff] %v1603_v24   ;;  %v482_v53 = vmul.f32 %v1891_v39, %v337_v43  ;;  %v484_v54 = vmul.f32 %v1891_v39, %v339_v45  ;;  %v1097_v57 = vpop.f32.mrf.mxu3  ;;  %v556_v24 = vmax.f32 %v428_v6, 0.0 }
  0xfe   :  { %v856_v40 = vpop.f32.mrf.mxu0  ;;  %v2383_v58 = vadd.f32 %v1097_v57, %v929_v51  ;;  %v932_v30 = vadd.f32 %v2130_v8, %v931_v14 }
  0xff   :  { %v1025_v35 = vpop.f32.mrf.mxu1  ;;  %v857_v46 = vadd.f32 %v2130_v8, %v856_v40  ;;  %v610_v62 = vmax.f32 %v482_v53, 0.0  ;;  %v612_v63 = vmax.f32 %v484_v54, 0.0  ;;  %v207_v40 = vunpack.c.h.bf16 %v82_v20 }
 0x100   :  { %v1678_v4 = vpack.c.bf16 %v2383_v58, %v2377_v48  ;;  %v652_v43 = vpack.c.bf16 %v556_v24, %v554_v17  ;;  %v85_v17 = vld [vmem:[%s2725_s0 + $0x1f8] sm:$0xff] }
 0x101   :  { %v1026_v55 = vadd.f32 %v1025_v35, %v857_v46  ;;  %895 = vmatmul.bf16.gmra.mxu0 %v649_v15  ;;  %970 = vmatmul.bf16.gmra.mxu2 %v679_v59  ;;  %v680_v13 = vpack.c.bf16 %v612_v63, %v610_v62  ;;  %v553_v15 = vmax.f32 %v425_v0, 0.0  ;;  %v341_v50 = vsub.f32 %v207_v40, %v1871_v26 }
 0x102   :  { %1064 = vmatmul.bf16.gmra.mxu1 %v650_v27  ;;  %1754 = vst [vmem:[%s2728_s5 + $0xa0] sm:$0xff] %v1678_v4   ;;  %v206_v27 = vunpack.c.l.bf16 %v82_v20  ;;  %v212_v24 = vunpack.c.l.bf16 %v85_v17 }
 0x103   :  { %v1166_v60 = vadd.f32 %v1165_v21, %v1026_v55  ;;  %v1237_v61 = vmul.f32 %v1026_v55, %v1026_v55  ;;  %v83_v21 = vld [vmem:[%s2725_s0 + $0x1e8] sm:$0xff]  ;;  %v651_v42 = vpack.c.bf16 %v555_v16, %v553_v15  ;;  %v486_v59 = vmul.f32 %v1891_v39, %v341_v50  ;;  %v84_v16 = vld [vmem:[%s2725_s0 + $0x1f0] sm:$0xff] }
 0x104   :  { %v208_v28 = vunpack.c.l.bf16 %v83_v21  ;;  %v340_v36 = vsub.f32 %v206_v27, %v1869_v23  ;;  %v209_v35 = vunpack.c.h.bf16 %v83_v21  ;;  %v933_v54 = vpop.f32.mrf.mxu2 }
 0x105   :  { %v1300_v5 = vadd.f32 %v1299_v33, %v1237_v61  ;;  %v1100_v25 = vpop.f32.mrf.mxu3  ;;  %v934_v56 = vadd.f32 %v2130_v8, %v933_v54  ;;  %v614_v4 = vmax.f32 %v486_v59, 0.0 }
 0x106   :  { %v858_v7 = vpop.f32.mrf.mxu0  ;;  %v342_v37 = vsub.f32 %v208_v28, %v1869_v23  ;;  %v485_v45 = vmul.f32 %v1889_v38, %v340_v36  ;;  %v343_v51 = vsub.f32 %v209_v35, %v1871_v26  ;;  %v2412_v53 = vadd.f32 %v1100_v25, %v932_v30 }
 0x107   :  { %v1027_v10 = vpop.f32.mrf.mxu1  ;;  %v859_v12 = vadd.f32 %v2130_v8, %v858_v7  ;;  %1139 = vmatmul.bf16.gmra.mxu3 %v680_v13  ;;  %v213_v36 = vunpack.c.h.bf16 %v85_v17 }
 0x108   :  { %v487_v49 = vmul.f32 %v1889_v38, %v342_v37 }
 0x109   :  { %v1028_v22 = vadd.f32 %v1027_v10, %v859_v12 }
 0x10a   :  { %v615_v57 = vmax.f32 %v487_v49, 0.0 }
 0x10b   :  { %v1167_v31 = vadd.f32 %v1166_v60, %v1028_v22  ;;  %v1238_v33 = vmul.f32 %v1028_v22, %v1028_v22  ;;  %v1608_v34 = vpack.c.bf16 %v1028_v22, %v1026_v55  ;;  %v613_v55 = vmax.f32 %v485_v45, 0.0 }
 0x10c   :  { %v488_v60 = vmul.f32 %v1891_v39, %v343_v51  ;;  %v936_v15 = vpop.f32.mrf.mxu2  ;;  %v210_v22 = vunpack.c.l.bf16 %v84_v16 }
 0x10d   :  { %v1301_v41 = vadd.f32 %v1300_v5, %v1238_v33  ;;  %1740 = vst [vmem:[%s2728_s5 + $0x30] sm:$0xff] %v1608_v34   ;;  %v1102_v62 = vpop.f32.mrf.mxu3  ;;  %v681_v0 = vpack.c.bf16 %v615_v57, %v613_v55  ;;  %v937_v25 = vadd.f32 %v2130_v8, %v936_v15  ;;  %v346_v33 = vsub.f32 %v212_v24, %v1869_v23 }
 0x10e   :  { %v861_v46 = vpop.f32.mrf.mxu0  ;;  %v2417_v63 = vadd.f32 %v1102_v62, %v934_v56  ;;  %v616_v5 = vmax.f32 %v488_v60, 0.0  ;;  %v211_v34 = vunpack.c.h.bf16 %v84_v16 }
 0x10f   :  { %v1030_v47 = vpop.f32.mrf.mxu1  ;;  %v862_v52 = vadd.f32 %v2130_v8, %v861_v46 }
 0x110   :  { %v1683_v6 = vpack.c.bf16 %v2417_v63, %v2412_v53  ;;  %v682_v14 = vpack.c.bf16 %v616_v5, %v614_v4 }
 0x111   :  { %v1031_v61 = vadd.f32 %v1030_v47, %v862_v52  ;;  %900 = vmatmul.bf16.gmra.mxu0 %v651_v42  ;;  %975 = vmatmul.bf16.gmra.mxu2 %v681_v0  ;;  %v345_v42 = vsub.f32 %v211_v34, %v1871_v26 }
 0x112   :  { %1069 = vmatmul.bf16.gmra.mxu1 %v652_v43  ;;  %1755 = vst [vmem:[%s2728_s5 + $0xa8] sm:$0xff] %v1683_v6   ;;  %v347_v43 = vsub.f32 %v213_v36, %v1871_v26 }
 0x113   :  { %v1168_v1 = vadd.f32 %v1167_v31, %v1031_v61  ;;  %v1239_v3 = vmul.f32 %v1031_v61, %v1031_v61  ;;  %v344_v31 = vsub.f32 %v210_v22, %v1869_v23  ;;  %v2444_v23 = vld [vmem:[%s2727_s4] ss:$0 sm:$0xff] }
 0x114   :  { %v938_v47 = vpop.f32.mrf.mxu2  ;;  %v492_v52 = vmul.f32 %v1891_v39, %v347_v43 }
 0x115   :  { %v1302_v7 = vadd.f32 %v1301_v41, %v1239_v3  ;;  %v1105_v21 = vpop.f32.mrf.mxu3  ;;  %v489_v40 = vmul.f32 %v1889_v38, %v344_v31  ;;  %v939_v50 = vadd.f32 %v2444_v23, %v938_v47 }
 0x116   :  { %v863_v10 = vpop.f32.mrf.mxu0  ;;  %v2447_v46 = vadd.f32 %v1105_v21, %v937_v25 }
 0x117   :  { %v1032_v12 = vpop.f32.mrf.mxu1  ;;  %v864_v13 = vadd.f32 %v2130_v8, %v863_v10  ;;  %1144 = vmatmul.bf16.gmra.mxu3 %v682_v14  ;;  %v491_v8 = vmul.f32 %v1889_v38, %v346_v33  ;;  %v617_v49 = vmax.f32 %v489_v40, 0.0  ;;  %v490_v38 = vmul.f32 %v1891_v39, %v345_v42 }
 0x119   :  { %v1033_v20 = vadd.f32 %v1032_v12, %v864_v13  ;;  %v619_v51 = vmax.f32 %v491_v8, 0.0  ;;  %v618_v60 = vmax.f32 %v490_v38, 0.0 }
 0x11b   :  { %v1169_v27 = vadd.f32 %v1168_v1, %v1033_v20  ;;  %v1240_v28 = vmul.f32 %v1033_v20, %v1033_v20  ;;  %v1613_v30 = vpack.c.bf16 %v1033_v20, %v1031_v61  ;;  %v683_v56 = vpack.c.bf16 %v619_v51, %v617_v49 }
 0x11c   :  { %v620_v61 = vmax.f32 %v492_v52, 0.0  ;;  %v941_v5 = vpop.f32.mrf.mxu2 }
 0x11d   :  { %v1303_v37 = vadd.f32 %v1302_v7, %v1240_v28  ;;  %1741 = vst [vmem:[%s2728_s5 + $0x38] sm:$0xff] %v1613_v30   ;;  %v1107_v26 = vpop.f32.mrf.mxu3  ;;  %v942_v14 = vadd.f32 %v2444_v23, %v941_v5 }
 0x11e   :  { %v866_v35 = vpop.f32.mrf.mxu0  ;;  %v2452_v55 = vadd.f32 %v1107_v26, %v939_v50  ;;  %v684_v4 = vpack.c.bf16 %v620_v61, %v618_v60 }
 0x11f   :  { %v1035_v41 = vpop.f32.mrf.mxu1  ;;  %v867_v45 = vadd.f32 %v2444_v23, %v866_v35 }
 0x120   :  { %v1688_v62 = vpack.c.bf16 %v2452_v55, %v2447_v46 }
 0x121   :  { %v1036_v54 = vadd.f32 %v1035_v41, %v867_v45  ;;  %980 = vmatmul.bf16.gmra.mxu2 %v683_v56 }
 0x122   :  { %1756 = vst [vmem:[%s2728_s5 + $0xb0] sm:$0xff] %v1688_v62  }
 0x123   :  { %v1170_v57 = vadd.f32 %v1169_v27, %v1036_v54  ;;  %v1241_v59 = vmul.f32 %v1036_v54, %v1036_v54 }
 0x124   :  { %v943_v21 = vpop.f32.mrf.mxu2 }
 0x125   :  { %v1304_v0 = vadd.f32 %v1303_v37, %v1241_v59  ;;  %v1110_v7 = vpop.f32.mrf.mxu3  ;;  %v944_v24 = vadd.f32 %v2444_v23, %v943_v21 }
 0x126   :  { %v868_v1 = vpop.f32.mrf.mxu0  ;;  %v2465_v22 = vadd.f32 %v1110_v7, %v942_v14 }
 0x127   :  { %v1037_v3 = vpop.f32.mrf.mxu1  ;;  %v869_v39 = vadd.f32 %v2444_v23, %v868_v1  ;;  %1149 = vmatmul.bf16.gmra.mxu3 %v684_v4 }
 0x129   :  { %v1038_v6 = vadd.f32 %v1037_v3, %v869_v39 }
 0x12b   :  { %v1171_v10 = vadd.f32 %v1170_v57, %v1038_v6  ;;  %v1242_v12 = vmul.f32 %v1038_v6, %v1038_v6  ;;  %v1618_v13 = vpack.c.bf16 %v1038_v6, %v1036_v54 }
 0x12c   :  { %v946_v35 = vpop.f32.mrf.mxu2 }
 0x12d   :  { %v1305_v15 = vadd.f32 %v1304_v0, %v1242_v12  ;;  %1742 = vst [vmem:[%s2728_s5 + $0x40] sm:$0xff] %v1618_v13   ;;  %v1112_v27 = vpop.f32.mrf.mxu3  ;;  %v947_v51 = vadd.f32 %v2444_v23, %v946_v35 }
 0x12e   :  { %v871_v16 = vpop.f32.mrf.mxu0  ;;  %v2468_v28 = vadd.f32 %v1112_v27, %v944_v24 }
 0x12f   :  { %v1040_v17 = vpop.f32.mrf.mxu1  ;;  %v872_v20 = vadd.f32 %v2444_v23, %v871_v16 }
 0x130   :  { %v1693_v33 = vpack.c.bf16 %v2468_v28, %v2465_v22 }
 0x131   :  { %v1041_v25 = vadd.f32 %v1040_v17, %v872_v20 }
 0x132   :  { %1757 = vst [vmem:[%s2728_s5 + $0xb8] sm:$0xff] %v1693_v33  }
 0x133   :  { %v1172_v30 = vadd.f32 %v1171_v10, %v1041_v25  ;;  %v1243_v31 = vmul.f32 %v1041_v25, %v1041_v25 }
 0x134   :  { %v948_v38 = vpop.f32.mrf.mxu2 }
 0x135   :  { %v1306_v34 = vadd.f32 %v1305_v15, %v1243_v31  ;;  %v1115_v45 = vpop.f32.mrf.mxu3  ;;  %v949_v52 = vadd.f32 %v2444_v23, %v948_v38 }
 0x136   :  { %v873_v36 = vpop.f32.mrf.mxu0  ;;  %v2485_v54 = vadd.f32 %v1115_v45, %v947_v51 }
 0x137   :  { %v1042_v37 = vpop.f32.mrf.mxu1  ;;  %v874_v40 = vadd.f32 %v2444_v23, %v873_v36 }
 0x139   :  { %v1043_v41 = vadd.f32 %v1042_v37, %v874_v40 }
 0x13b   :  { %v2476_v8 = vadd.f32 %v1172_v30, %v1043_v41  ;;  %v1244_v42 = vmul.f32 %v1043_v41, %v1043_v41  ;;  %v1623_v43 = vpack.c.bf16 %v1043_v41, %v1041_v25 }
 0x13d   :  { %v2478_v47 = vadd.f32 %v1306_v34, %v1244_v42  ;;  %1743 = vst [vmem:[%s2728_s5 + $0x48] sm:$0xff] %v1623_v43   ;;  %v1117_v26 = vpop.f32.mrf.mxu3  ;;  %v951_v0 = vpop.f32.mrf.mxu2 }
 0x13e   :  { %v876_v49 = vpop.f32.mrf.mxu0  ;;  %v2488_v57 = vadd.f32 %v1117_v26, %v949_v52  ;;  %v952_v10 = vadd.f32 %v2444_v23, %v951_v0 }
 0x13f   :  { %v1045_v50 = vpop.f32.mrf.mxu1  ;;  %v877_v56 = vadd.f32 %v2444_v23, %v876_v49 }
 0x140   :  { %v1698_v62 = vpack.c.bf16 %v2488_v57, %v2485_v54 }
 0x141   :  { %v2493_v1 = vadd.f32 %v1045_v50, %v877_v56 }
 0x142   :  { %1758 = vst [vmem:[%s2728_s5 + $0xc0] sm:$0xff] %v1698_v62  }
 0x145   :  { %v953_v7 = vpop.f32.mrf.mxu2 }
 0x146   :  { %v878_v59 = vpop.f32.mrf.mxu0  ;;  %v1120_v6 = vpop.f32.mrf.mxu3  ;;  %v954_v12 = vadd.f32 %v2444_v23, %v953_v7 }
 0x147   :  { %v1047_v60 = vpop.f32.mrf.mxu1  ;;  %v879_v61 = vadd.f32 %v2444_v23, %v878_v59  ;;  %v2508_v16 = vadd.f32 %v1120_v6, %v952_v10 }
 0x149   :  { %v2495_v3 = vadd.f32 %v1047_v60, %v879_v61 }
 0x14b   :  { %v1628_v39 = vpack.c.bf16 %v2495_v3, %v2493_v1 }
 0x14d   :  { %1744 = vst [vmem:[%s2728_s5 + $0x50] sm:$0xff] %v1628_v39  }
 0x14e   :  { %v881_v4 = vpop.f32.mrf.mxu0  ;;  %v1122_v20 = vpop.f32.mrf.mxu3 }
 0x14f   :  { %v1050_v5 = vpop.f32.mrf.mxu1  ;;  %v882_v13 = vadd.f32 %v2444_v23, %v881_v4  ;;  %v2511_v21 = vadd.f32 %v1122_v20, %v954_v12 }
 0x151   :  { %v2513_v25 = vadd.f32 %v1050_v5, %v882_v13  ;;  %v1703_v30 = vpack.c.bf16 %v2511_v21, %v2508_v16 }
 0x153   :  { %1759 = vst [vmem:[%s2728_s5 + $0xc8] sm:$0xff] %v1703_v30  }
 0x154   :  { %v956_v24 = vpop.f32.mrf.mxu2 }
 0x155   :  { %v957_v40 = vadd.f32 %v2444_v23, %v956_v24 }
 0x156   :  { %v883_v14 = vpop.f32.mrf.mxu0  ;;  %v1125_v36 = vpop.f32.mrf.mxu3 }
 0x157   :  { %v1052_v15 = vpop.f32.mrf.mxu1  ;;  %v884_v17 = vadd.f32 %v2444_v23, %v883_v14  ;;  %v2530_v45 = vadd.f32 %v1125_v36, %v957_v40 }
 0x159   :  { %v2515_v27 = vadd.f32 %v1052_v15, %v884_v17 }
 0x15b   :  { %v1633_v31 = vpack.c.bf16 %v2515_v27, %v2513_v25 }
 0x15c   :  { %v958_v37 = vpop.f32.mrf.mxu2 }
 0x15d   :  { %1745 = vst [vmem:[%s2728_s5 + $0x58] sm:$0xff] %v1633_v31   ;;  %v959_v35 = vadd.f32 %v2444_v23, %v958_v37  ;;  %v1245_v37 = vmul.f32 %v2493_v1, %v2493_v1 }
 0x15e   :  { %v886_v33 = vpop.f32.mrf.mxu0  ;;  %v1127_v50 = vpop.f32.mrf.mxu3 }
 0x15f   :  { %v1055_v34 = vpop.f32.mrf.mxu1  ;;  %v887_v41 = vadd.f32 %v2444_v23, %v886_v33  ;;  %v2533_v51 = vadd.f32 %v1127_v50, %v959_v35  ;;  %v1246_v35 = vmul.f32 %v2495_v3, %v2495_v3 }
 0x161   :  { %v1056_v52 = vadd.f32 %v1055_v34, %v887_v41  ;;  %v1708_v56 = vpack.c.bf16 %v2533_v51, %v2530_v45 }
 0x163   :  { %1760 = vst [vmem:[%s2728_s5 + $0xd0] sm:$0xff] %v1708_v56  }
 0x164   :  { %v961_v38 = vpop.f32.mrf.mxu2 }
 0x165   :  { %v962_v39 = vadd.f32 %v2444_v23, %v961_v38 }
 0x166   :  { %v888_v42 = vpop.f32.mrf.mxu0  ;;  %v1130_v62 = vpop.f32.mrf.mxu3 }
 0x167   :  { %v1057_v43 = vpop.f32.mrf.mxu1  ;;  %v889_v49 = vadd.f32 %v2444_v23, %v888_v42  ;;  %v2549_v10 = vadd.f32 %v1130_v62, %v962_v39  ;;  %v1174_v42 = vadd.f32 %v2476_v8, %v2493_v1 }
 0x169   :  { %v2535_v26 = vadd.f32 %v1057_v43, %v889_v49  ;;  %v1308_v49 = vadd.f32 %v2478_v47, %v1245_v37  ;;  %v1248_v47 = vmul.f32 %v2515_v27, %v2515_v27 }
 0x16b   :  { %v1638_v59 = vpack.c.bf16 %v2535_v26, %v1056_v52 }
 0x16c   :  { %v963_v0 = vpop.f32.mrf.mxu2 }
 0x16d   :  { %1746 = vst [vmem:[%s2728_s5 + $0x60] sm:$0xff] %v1638_v59   ;;  %v964_v4 = vadd.f32 %v2444_v23, %v963_v0  ;;  %v1175_v59 = vadd.f32 %v1174_v42, %v2495_v3  ;;  %v1309_v0 = vadd.f32 %v1308_v49, %v1246_v35 }
 0x16e   :  { %v891_v60 = vpop.f32.mrf.mxu0  ;;  %v1132_v13 = vpop.f32.mrf.mxu3 }
 0x16f   :  { %v1060_v61 = vpop.f32.mrf.mxu1  ;;  %v892_v5 = vadd.f32 %v2444_v23, %v891_v60  ;;  %v2552_v14 = vadd.f32 %v1132_v13, %v964_v4  ;;  %v1247_v60 = vmul.f32 %v2513_v25, %v2513_v25  ;;  %v1176_v1 = vadd.f32 %v1175_v59, %v2513_v25 }
 0x170   :  { %v1250_v25 = vmul.f32 %v2535_v26, %v2535_v26 }
 0x171   :  { %v1061_v17 = vadd.f32 %v1060_v61, %v892_v5  ;;  %v1713_v24 = vpack.c.bf16 %v2552_v14, %v2549_v10 }
 0x173   :  { %1761 = vst [vmem:[%s2728_s5 + $0xd8] sm:$0xff] %v1713_v24  }
 0x174   :  { %v966_v15 = vpop.f32.mrf.mxu2 }
 0x175   :  { %v967_v40 = vadd.f32 %v2444_v23, %v966_v15 }
 0x176   :  { %v893_v6 = vpop.f32.mrf.mxu0 }
 0x177   :  { %v1062_v7 = vpop.f32.mrf.mxu1  ;;  %v894_v12 = vadd.f32 %v2444_v23, %v893_v6  ;;  %v1310_v6 = vadd.f32 %v1309_v0, %v1247_v60 }
 0x179   :  { %v1063_v20 = vadd.f32 %v1062_v7, %v894_v12  ;;  %v1177_v7 = vadd.f32 %v1176_v1, %v2515_v27  ;;  %v1249_v12 = vmul.f32 %v1056_v52, %v1056_v52  ;;  %v1311_v15 = vadd.f32 %v1310_v6, %v1248_v47 }
 0x17a   :  { %v1135_v34 = vpop.f32.mrf.mxu3 }
 0x17b   :  { %v1643_v30 = vpack.c.bf16 %v1063_v20, %v1061_v17  ;;  %v2572_v56 = vadd.f32 %v1135_v34, %v967_v40  ;;  %v1178_v24 = vadd.f32 %v1177_v7, %v1056_v52  ;;  %v1251_v34 = vmul.f32 %v1061_v17, %v1061_v17 }
 0x17c   :  { %v968_v36 = vpop.f32.mrf.mxu2  ;;  %v1252_v52 = vmul.f32 %v1063_v20, %v1063_v20 }
 0x17d   :  { %1747 = vst [vmem:[%s2728_s5 + $0x68] sm:$0xff] %v1643_v30   ;;  %v969_v41 = vadd.f32 %v2444_v23, %v968_v36  ;;  %v1179_v27 = vadd.f32 %v1178_v24, %v2535_v26 }
 0x17e   :  { %v896_v31 = vpop.f32.mrf.mxu0 }
 0x17f   :  { %v1065_v33 = vpop.f32.mrf.mxu1  ;;  %v897_v43 = vadd.f32 %v2444_v23, %v896_v31 }
 0x181   :  { %v1066_v4 = vadd.f32 %v1065_v33, %v897_v43  ;;  %v1312_v33 = vadd.f32 %v1311_v15, %v1249_v12 }
 0x182   :  { %v1137_v62 = vpop.f32.mrf.mxu3 }
 0x183   :  { %v2578_v39 = vadd.f32 %v1137_v62, %v969_v41  ;;  %v1313_v35 = vadd.f32 %v1312_v33, %v1250_v25  ;;  %v1180_v41 = vadd.f32 %v1179_v27, %v1061_v17 }
 0x184   :  { %v971_v8 = vpop.f32.mrf.mxu2 }
 0x185   :  { %v1718_v3 = vpack.c.bf16 %v2578_v39, %v2572_v56  ;;  %v972_v42 = vadd.f32 %v2444_v23, %v971_v8  ;;  %v1314_v43 = vadd.f32 %v1313_v35, %v1251_v34  ;;  %v1181_v49 = vadd.f32 %v1180_v41, %v1063_v20 }
 0x186   :  { %v898_v50 = vpop.f32.mrf.mxu0  ;;  %v1258_v34 = vmul.f32 %v2204_v11, %v2204_v11  ;;  %v1259_v41 = vmul.f32 %v2244_v9, %v2244_v9 }
 0x187   :  { %v1067_v38 = vpop.f32.mrf.mxu1  ;;  %v899_v61 = vadd.f32 %v2444_v23, %v898_v50  ;;  %1762 = vst [vmem:[%s2728_s5 + $0xe0] sm:$0xff] %v1718_v3   ;;  %v1253_v50 = vmul.f32 %v1066_v4, %v1066_v4  ;;  %v1315_v60 = vadd.f32 %v1314_v43, %v1252_v52  ;;  %v1260_v43 = vmul.f32 %v2248_v18, %v2248_v18 }
 0x189   :  { %v1068_v5 = vadd.f32 %v1067_v38, %v899_v61  ;;  %v1182_v61 = vadd.f32 %v1181_v49, %v1066_v4  ;;  %v1316_v1 = vadd.f32 %v1315_v60, %v1253_v50 }
 0x18a   :  { %v1140_v37 = vpop.f32.mrf.mxu3 }
 0x18b   :  { %v1648_v13 = vpack.c.bf16 %v1068_v5, %v1066_v4  ;;  %v1254_v62 = vmul.f32 %v1068_v5, %v1068_v5  ;;  %v2598_v0 = vadd.f32 %v1140_v37, %v972_v42  ;;  %v1183_v47 = vadd.f32 %v1182_v61, %v1068_v5 }
 0x18c   :  { %v973_v40 = vpop.f32.mrf.mxu2  ;;  %v1257_v5 = vmul.f32 %v2200_v2, %v2200_v2 }
 0x18d   :  { %1748 = vst [vmem:[%s2728_s5 + $0x70] sm:$0xff] %v1648_v13   ;;  %v974_v59 = vadd.f32 %v2444_v23, %v973_v40  ;;  %v1317_v12 = vadd.f32 %v1316_v1, %v1254_v62 }
 0x18e   :  { %v901_v30 = vpop.f32.mrf.mxu0 }
 0x18f   :  { %v1070_v31 = vpop.f32.mrf.mxu1  ;;  %v902_v36 = vadd.f32 %v2444_v23, %v901_v30 }
 0x191   :  { %v1071_v38 = vadd.f32 %v1070_v31, %v902_v36 }
 0x192   :  { %v1142_v6 = vpop.f32.mrf.mxu3 }
 0x193   :  { %v1255_v3 = vmul.f32 %v1071_v38, %v1071_v38  ;;  %v2601_v8 = vadd.f32 %v1142_v6, %v974_v59  ;;  %v1184_v13 = vadd.f32 %v1183_v47, %v1071_v38 }
 0x194   :  { %v976_v20 = vpop.f32.mrf.mxu2 }
 0x195   :  { %v1723_v4 = vpack.c.bf16 %v2601_v8, %v2598_v0  ;;  %v1318_v24 = vadd.f32 %v1317_v12, %v1255_v3  ;;  %v1263_v3 = vmul.f32 %v2332_v32, %v2332_v32  ;;  %v1265_v12 = vmul.f32 %v2377_v48, %v2377_v48 }
 0x196   :  { %v903_v26 = vpop.f32.mrf.mxu0 }
 0x197   :  { %v904_v17 = vadd.f32 %v2444_v23, %v903_v26  ;;  %v1072_v7 = vpop.f32.mrf.mxu1  ;;  %1763 = vst [vmem:[%s2728_s5 + $0xe8] sm:$0xff] %v1723_v4  }
 0x199   :  { %v1073_v15 = vadd.f32 %v1072_v7, %v904_v17  ;;  %v1264_v7 = vmul.f32 %v2338_v44, %v2338_v44 }
 0x19a   :  { %v1145_v40 = vpop.f32.mrf.mxu3 }
 0x19b   :  { %v1185_v25 = vadd.f32 %v1184_v13, %v1073_v15  ;;  %v1256_v30 = vmul.f32 %v1073_v15, %v1073_v15  ;;  %v1653_v31 = vpack.c.bf16 %v1073_v15, %v1071_v38  ;;  %v1266_v15 = vmul.f32 %v2383_v58, %v2383_v58 }
 0x19c   :  { %v978_v35 = vpop.f32.mrf.mxu2 }
 0x19d   :  { %v1186_v33 = vadd.f32 %v1185_v25, %v2200_v2  ;;  %v1319_v27 = vadd.f32 %v1318_v24, %v1256_v30  ;;  %1749 = vst [vmem:[%s2728_s5 + $0x78] sm:$0xff] %v1653_v31   ;;  %v977_v2 = vadd.f32 %v2444_v23, %v976_v20  ;;  %v979_v38 = vadd.f32 %v2444_v23, %v978_v35 }
 0x19f   :  { %v1187_v36 = vadd.f32 %v1186_v33, %v2204_v11  ;;  %v1320_v37 = vadd.f32 %v1319_v27, %v1257_v5  ;;  %v1261_v11 = vmul.f32 %v2288_v19, %v2288_v19  ;;  %v2628_v61 = vadd.f32 %v1145_v40, %v977_v2 }
 0x1a1   :  { %v1188_v52 = vadd.f32 %v1187_v36, %v2244_v9  ;;  %v1321_v42 = vadd.f32 %v1320_v37, %v1258_v34  ;;  %v1262_v9 = vmul.f32 %v2292_v29, %v2292_v29 }
 0x1a2   :  { %v1147_v1 = vpop.f32.mrf.mxu3 }
 0x1a3   :  { %v1189_v49 = vadd.f32 %v1188_v52, %v2248_v18  ;;  %v1322_v50 = vadd.f32 %v1321_v42, %v1259_v41  ;;  %v2633_v47 = vadd.f32 %v1147_v1, %v979_v38  ;;  %v1276_v1 = vmul.f32 %v2511_v21, %v2511_v21 }
 0x1a4   :  { %v981_v18 = vpop.f32.mrf.mxu2 }
 0x1a5   :  { %v1190_v59 = vadd.f32 %v1189_v49, %v2288_v19  ;;  %v1323_v60 = vadd.f32 %v1322_v50, %v1260_v43  ;;  %v1728_v19 = vpack.c.bf16 %v2633_v47, %v2628_v61  ;;  %v982_v33 = vadd.f32 %v2444_v23, %v981_v18 }
 0x1a6   :  { %v1272_v50 = vmul.f32 %v2468_v28, %v2468_v28 }
 0x1a7   :  { %v1191_v62 = vadd.f32 %v1190_v59, %v2292_v29  ;;  %v1324_v26 = vadd.f32 %v1323_v60, %v1261_v11  ;;  %1764 = vst [vmem:[%s2728_s5 + $0xf0] sm:$0xff] %v1728_v19  }
 0x1a9   :  { %v1192_v17 = vadd.f32 %v1191_v62, %v2332_v32  ;;  %v1325_v6 = vadd.f32 %v1324_v26, %v1262_v9 }
 0x1aa   :  { %v1150_v25 = vpop.f32.mrf.mxu3 }
 0x1ab   :  { %v1193_v20 = vadd.f32 %v1192_v17, %v2338_v44  ;;  %v1326_v29 = vadd.f32 %v1325_v6, %v1263_v3  ;;  %v1267_v44 = vmul.f32 %v2412_v53, %v2412_v53  ;;  %v1151_v35 = vadd.f32 %v1150_v25, %v982_v33 }
 0x1ac   :  { %v983_v5 = vpop.f32.mrf.mxu2  ;;  %v1285_v33 = vmul.f32 %v2628_v61, %v2628_v61 }
 0x1ad   :  { %v1194_v13 = vadd.f32 %v1193_v20, %v2377_v48  ;;  %v1327_v32 = vadd.f32 %v1326_v29, %v1264_v7  ;;  %v1268_v48 = vmul.f32 %v2417_v63, %v2417_v63  ;;  %v984_v36 = vadd.f32 %v2444_v23, %v983_v5 }
 0x1af   :  { %v1195_v4 = vadd.f32 %v1194_v13, %v2383_v58  ;;  %v1328_v24 = vadd.f32 %v1327_v32, %v1265_v12  ;;  %v1269_v58 = vmul.f32 %v2447_v46, %v2447_v46  ;;  %v1281_v32 = vmul.f32 %v2572_v56, %v2572_v56 }
 0x1b1   :  { %v1196_v30 = vadd.f32 %v1195_v4, %v2412_v53  ;;  %v1329_v31 = vadd.f32 %v1328_v24, %v1266_v15  ;;  %v1270_v53 = vmul.f32 %v2452_v55, %v2452_v55  ;;  %v1282_v24 = vmul.f32 %v2578_v39, %v2578_v39 }
 0x1b2   :  { %v1152_v42 = vpop.f32.mrf.mxu3 }
 0x1b3   :  { %v1197_v27 = vadd.f32 %v1196_v30, %v2417_v63  ;;  %v1330_v34 = vadd.f32 %v1329_v31, %v1267_v44  ;;  %v1153_v2 = vadd.f32 %v1152_v42, %v984_v36  ;;  %v1271_v63 = vmul.f32 %v2465_v22, %v2465_v22 }
 0x1b4   :  { %v1283_v44 = vmul.f32 %v2598_v0, %v2598_v0  ;;  %v1284_v31 = vmul.f32 %v2601_v8, %v2601_v8  ;;  %v1287_v36 = vmul.f32 %v1151_v35, %v1151_v35 }
 0x1b5   :  { %v1331_v37 = vadd.f32 %v1330_v34, %v1268_v48  ;;  %v1198_v40 = vadd.f32 %v1197_v27, %v2447_v46  ;;  %v1733_v49 = vpack.c.bf16 %v1153_v2, %v1151_v35  ;;  %v1286_v27 = vmul.f32 %v2633_v47, %v2633_v47 }
 0x1b7   :  { %v1199_v41 = vadd.f32 %v1198_v40, %v2452_v55  ;;  %v1332_v52 = vadd.f32 %v1331_v37, %v1269_v58  ;;  %1765 = vst [vmem:[%s2728_s5 + $0xf8] sm:$0xff] %v1733_v49   ;;  %v1273_v55 = vmul.f32 %v2485_v54, %v2485_v54  ;;  %v1288_v40 = vmul.f32 %v1153_v2, %v1153_v2 }
 0x1b9   :  { %v1200_v23 = vadd.f32 %v1199_v41, %v2465_v22  ;;  %v1333_v43 = vadd.f32 %v1332_v52, %v1270_v53  ;;  %v1274_v22 = vmul.f32 %v2488_v57, %v2488_v57 }
 0x1bb   :  { %v1201_v46 = vadd.f32 %v1200_v23, %v2468_v28  ;;  %v1334_v38 = vadd.f32 %v1333_v43, %v1271_v63  ;;  %v1275_v28 = vmul.f32 %v2508_v16, %v2508_v16 }
 0x1bd   :  { %v1202_v11 = vadd.f32 %v1201_v46, %v2485_v54  ;;  %v1335_v59 = vadd.f32 %v1334_v38, %v1272_v50  ;;  %v1277_v54 = vmul.f32 %v2530_v45, %v2530_v45 }
 0x1bf   :  { %v1203_v60 = vadd.f32 %v1202_v11, %v2488_v57  ;;  %v1336_v9 = vadd.f32 %v1335_v59, %v1273_v55  ;;  %v1278_v57 = vmul.f32 %v2533_v51, %v2533_v51 }
 0x1c1   :  { %v1204_v62 = vadd.f32 %v1203_v60, %v2508_v16  ;;  %v1337_v26 = vadd.f32 %v1336_v9, %v1274_v22  ;;  %v1279_v16 = vmul.f32 %v2549_v10, %v2549_v10 }
 0x1c3   :  { %v1205_v18 = vadd.f32 %v1204_v62, %v2511_v21  ;;  %v1338_v3 = vadd.f32 %v1337_v26, %v1275_v28  ;;  %v1280_v21 = vmul.f32 %v2552_v14, %v2552_v14 }
 0x1c5   :  { %v1206_v17 = vadd.f32 %v1205_v18, %v2530_v45  ;;  %v1339_v6 = vadd.f32 %v1338_v3, %v1276_v1 }
 0x1c7   :  { %v1207_v19 = vadd.f32 %v1206_v17, %v2533_v51  ;;  %v1340_v7 = vadd.f32 %v1339_v6, %v1277_v54 }
 0x1c9   :  { %v1208_v20 = vadd.f32 %v1207_v19, %v2549_v10  ;;  %v1341_v29 = vadd.f32 %v1340_v7, %v1278_v57 }
 0x1cb   :  { %v1209_v12 = vadd.f32 %v1208_v20, %v2552_v14  ;;  %v1342_v13 = vadd.f32 %v1341_v29, %v1279_v16 }
 0x1cd   :  { %v1210_v45 = vadd.f32 %v1209_v12, %v2572_v56  ;;  %v1343_v15 = vadd.f32 %v1342_v13, %v1280_v21 }
 0x1cf   :  { %v1344_v51 = vadd.f32 %v1343_v15, %v1281_v32  ;;  %v1211_v4 = vadd.f32 %v1210_v45, %v2578_v39 }
 0x1d1   :  { %v1345_v10 = vadd.f32 %v1344_v51, %v1282_v24  ;;  %v1212_v25 = vadd.f32 %v1211_v4, %v2598_v0 }
 0x1d3   :  { %v1346_v14 = vadd.f32 %v1345_v10, %v1283_v44  ;;  %v1213_v30 = vadd.f32 %v1212_v25, %v2601_v8 }
 0x1d5   :  { %v1347_v56 = vadd.f32 %v1346_v14, %v1284_v31  ;;  %v1214_v5 = vadd.f32 %v1213_v30, %v2628_v61 }
 0x1d7   :  { %v1348_v48 = vadd.f32 %v1347_v56, %v1285_v33  ;;  %v1215_v39 = vadd.f32 %v1214_v5, %v2633_v47 }
 0x1d9   :  { %v1349_v34 = vadd.f32 %v1348_v48, %v1286_v27  ;;  %v1216_v0 = vadd.f32 %v1215_v39, %v1151_v35 }
 0x1db   :  { %v1350_v58 = vadd.f32 %v1349_v34, %v1287_v36  ;;  %v1217_v37 = vadd.f32 %v1216_v0, %v1153_v2 }
 0x1dd   :  { %v1218_v53 = vrot.slane %v1217_v37, 4  ;;  %v1351_v8 = vadd.f32 %v1350_v58, %v1288_v40 }
 0x1df   :  { %v1219_v41 = vadd.f32 %v1218_v53, %v1217_v37  ;;  %v1352_v52 = vrot.slane %v1351_v8, 4 }
 0x1e1   :  { %v1220_v42 = vrot.slane %v1219_v41, 2  ;;  %v1353_v63 = vadd.f32 %v1352_v52, %v1351_v8 }
 0x1e3   :  { %v1221_v23 = vadd.f32 %v1220_v42, %v1219_v41  ;;  %v1354_v61 = vrot.slane %v1353_v63, 2 }
 0x1e5   :  { %v1222_v43 = vrot.slane %v1221_v23, 1  ;;  %v1355_v49 = vadd.f32 %v1354_v61, %v1353_v63 }
 0x1e7   :  { %v1223_v50 = vadd.f32 %v1222_v43, %v1221_v23  ;;  %v1356_v46 = vrot.slane %v1355_v49, 1 }
 0x1e9   :  { %1224 = vst [vmem:[%s2729_s6] sm:$0x1] %v1223_v50  ;;  %v1357_v47 = vadd.f32 %v1356_v46, %v1355_v49 }
 0x1eb   :  { %1358 = vst [vmem:[%s2729_s6 + $0x1] sm:$0x1] %v1357_v47 }

// kernel: pointnet_dense_cls.7
= control target key start
LH: loop header
LB: loop body
LE: loop exit
PB: predicated region body
PF: predicated region fallthrough
CT: control target
= control target key end

     0   :  { %vm695_vm4 = vcmask 130048   ;;  %s3597_s3 = inlined_call_operand.vmem [shape: bf16[128,16], index: 3, kind: input, shape index: {}]   ;;  %s3598_s2 = inlined_call_operand.vmem [shape: f32[1,128], index: 2, kind: input, shape index: {}]   ;;  %s3599_s1 = inlined_call_operand.vmem [shape: f32[1,128], index: 1, kind: input, shape index: {}]   ;;  %s3600_s4 = inlined_call_operand.vmem [shape: f32[1,16], index: 4, kind: input, shape index: {}]   ;;  %s3601_s0 = inlined_call_operand.vmem [shape: bf16[512,128], index: 0, kind: input, shape index: {}]   ;;  %s3602_s5 = inlined_call_operand.vmem [shape: f32[512,16], index: 5, kind: output, shape index: {}]  }
   0x1   :  { %v1571_v0 = vld [vmem:[%s3597_s3 + $0x38] sm:$0xff]  ;;  %v1570_v1 = vld [vmem:[%s3597_s3 + $0x30] sm:$0xff]  ;;  %v216_v2 = vld [vmem:[%s3598_s2] sm:$0x1] }
   0x2   :  { %459 = vmatpush.bf16.msra.mxu0 %v1571_v0  ;;  %1731 = vmatpush.bf16.msra.mxu1 %v1571_v0  ;;  %v217_v3 = vadd.f32 1e-05, %v216_v2  ;;  %v1569_v4 = vld [vmem:[%s3597_s3 + $0x28] sm:$0xff]  ;;  %v1568_v5 = vld [vmem:[%s3597_s3 + $0x20] sm:$0xff]  ;;  %v1567_v8 = vld [vmem:[%s3597_s3 + $0x18] sm:$0xff] }
   0x3   :  { %1732 = vmatpush.bf16.msra.mxu2 %v1571_v0  ;;  %1733 = vmatpush.bf16.msra.mxu3 %v1571_v0  ;;  %v1573_v9 = vld [vmem:[%s3601_s0] sm:$0xff]   ;;  %v1566_v17 = vld [vmem:[%s3597_s3 + $0x10] sm:$0xff]  ;;  %v1565_v29 = vld [vmem:[%s3597_s3 + $0x8] sm:$0xff] }
   0x4   :  { %1757 = vrsqrt.f32 %v217_v3  ;;  %v1707_v11 = vld [vmem:[%s3601_s0 + $0x40] sm:$0xff]   ;;  %v1574_v13 = vunpack.c.l.bf16 %v1573_v9  ;;  %vm224_vm0 = vweird.f32 %v217_v3  ;;  %v1575_v18 = vunpack.c.h.bf16 %v1573_v9  ;;  %v1700_v33 = vld [vmem:[%s3601_s0 + $0x8] sm:$0xff]  }
   0x5   :  { %v1715_v12 = vld [vmem:[%s3601_s0 + $0x80] sm:$0xff]   ;;  %v1606_v19 = vunpack.c.l.bf16 %v1707_v11  ;;  %v1607_v20 = vunpack.c.h.bf16 %v1707_v11  ;;  %v1716_v34 = vld [vmem:[%s3601_s0 + $0x88] sm:$0xff]   ;;  %v1578_v42 = vunpack.c.l.bf16 %v1700_v33  ;;  %v1579_v43 = vunpack.c.h.bf16 %v1700_v33 }
   0x6   :  { %460 = vmatpush.bf16.msra.mxu0 %v1570_v1  ;;  %1734 = vmatpush.bf16.msra.mxu1 %v1570_v1  ;;  %v2075_v14 = vld [vmem:[%s3599_s1] ss:$0 sm:$0xff]  ;;  %v1638_v22 = vunpack.c.l.bf16 %v1715_v12  ;;  %v1639_v23 = vunpack.c.h.bf16 %v1715_v12  ;;  %v1708_v38 = vld [vmem:[%s3601_s0 + $0x48] sm:$0xff]   ;;  %v1642_v44 = vunpack.c.l.bf16 %v1716_v34 }
   0x7   :  { %1735 = vmatpush.bf16.msra.mxu2 %v1570_v1  ;;  %1736 = vmatpush.bf16.msra.mxu3 %v1570_v1  ;;  %v1723_v16 = vld [vmem:[%s3601_s0 + $0xc0] sm:$0xff]   ;;  %v152_v26 = vsub.f32 %v1574_v13, %v2075_v14  ;;  %v153_v30 = vsub.f32 %v1575_v18, %v2075_v14  ;;  %v168_v31 = vsub.f32 %v1606_v19, %v2075_v14  ;;  %v1610_v49 = vunpack.c.l.bf16 %v1708_v38  ;;  %v1724_v53 = vld [vmem:[%s3601_s0 + $0xc8] sm:$0xff]  }
   0x8   :  { %v1670_v25 = vunpack.c.l.bf16 %v1723_v16  ;;  %v1671_v28 = vunpack.c.h.bf16 %v1723_v16  ;;  %v169_v32 = vsub.f32 %v1607_v20, %v2075_v14  ;;  %v184_v36 = vsub.f32 %v1638_v22, %v2075_v14  ;;  %v1564_v45 = vld [vmem:[%s3597_s3] sm:$0xff] }
   0x9   :  { %v185_v37 = vsub.f32 %v1639_v23, %v2075_v14  ;;  %v1611_v54 = vunpack.c.h.bf16 %v1708_v38  ;;  %v1643_v1 = vunpack.c.h.bf16 %v1716_v34  ;;  %v1674_v2 = vunpack.c.l.bf16 %v1724_v53  ;;  %v1725_v38 = vld [vmem:[%s3601_s0 + $0xd0] sm:$0xff]  }
   0xa   :  { %461 = vmatpush.bf16.msra.mxu0 %v1569_v4  ;;  %1737 = vmatpush.bf16.msra.mxu1 %v1569_v4  ;;  %v1758_v6 = vpop.eup %1757  ;;  %v200_v40 = vsub.f32 %v1670_v25, %v2075_v14  ;;  %v201_v41 = vsub.f32 %v1671_v28, %v2075_v14  ;;  %v186_v12 = vsub.f32 %v1642_v44, %v2075_v14 }
   0xb   :  { %1738 = vmatpush.bf16.msra.mxu2 %v1569_v4  ;;  %1739 = vmatpush.bf16.msra.mxu3 %v1569_v4  ;;  %v219_v7 = vmul.f32 %v1758_v6, %v217_v3  ;;  %vm225_vm1 = vweird.f32 %v1758_v6  ;;  %v171_v11 = vsub.f32 %v1611_v54, %v2075_v14  ;;  %v187_v13 = vsub.f32 %v1643_v1, %v2075_v14 }
   0xc   :  { %vm2083_vm2 = vmor %vm224_vm0, %vm225_vm1 }
   0xd   :  { %v220_v10 = vmul.f32 %v1758_v6, %v219_v7  ;;  %v154_v7 = vsub.f32 %v1578_v42, %v2075_v14 }
   0xe   :  { %462 = vmatpush.bf16.msra.mxu0 %v1568_v5  ;;  %1740 = vmatpush.bf16.msra.mxu1 %v1568_v5 }
   0xf   :  { %1741 = vmatpush.bf16.msra.mxu2 %v1568_v5  ;;  %1742 = vmatpush.bf16.msra.mxu3 %v1568_v5  ;;  %v221_v15 = vmul.f32 0.5, %v220_v10  ;;  %v170_v10 = vsub.f32 %v1610_v49, %v2075_v14  ;;  %v1679_v49 = vunpack.c.h.bf16 %v1725_v38 }
  0x11   :  { %v222_v21 = vsub.f32 1.5, %v221_v15  ;;  %v202_v15 = vsub.f32 %v1674_v2, %v2075_v14 }
  0x12   :  { %463 = vmatpush.bf16.msra.mxu0 %v1567_v8  ;;  %1743 = vmatpush.bf16.msra.mxu1 %v1567_v8 }
  0x13   :  { %1744 = vmatpush.bf16.msra.mxu2 %v1567_v8  ;;  %1745 = vmatpush.bf16.msra.mxu3 %v1567_v8  ;;  %v223_v27 = vmul.f32 %v1758_v6, %v222_v21  ;;  %v155_v8 = vsub.f32 %v1579_v43, %v2075_v14 }
  0x15   :  { %v227_v35 = vsel %vm2083_vm2, %v1758_v6, %v223_v27  ;;  %v1675_v6 = vunpack.c.h.bf16 %v1724_v53 }
  0x16   :  { %464 = vmatpush.bf16.msra.mxu0 %v1566_v17  ;;  %1746 = vmatpush.bf16.msra.mxu1 %v1566_v17  ;;  %v2107_v39 = vperm.slane %v227_v35, 0  ;;  %v1717_v35 = vld [vmem:[%s3601_s0 + $0x90] sm:$0xff]  }
  0x17   :  { %1747 = vmatpush.bf16.msra.mxu2 %v1566_v17  ;;  %1748 = vmatpush.bf16.msra.mxu3 %v1566_v17  ;;  %v203_v16 = vsub.f32 %v1675_v6, %v2075_v14  ;;  %v1702_v6 = vld [vmem:[%s3601_s0 + $0x18] sm:$0xff]  }
  0x18   :  { %v231_v46 = vmul.f32 %v2107_v39, %v152_v26  ;;  %v232_v47 = vmul.f32 %v2107_v39, %v153_v30  ;;  %v247_v48 = vmul.f32 %v2107_v39, %v168_v31  ;;  %v248_v50 = vmul.f32 %v2107_v39, %v169_v32  ;;  %v1709_v32 = vld [vmem:[%s3601_s0 + $0x50] sm:$0xff]  }
  0x19   :  { %v263_v51 = vmul.f32 %v2107_v39, %v184_v36  ;;  %v264_v52 = vmul.f32 %v2107_v39, %v185_v37  ;;  %v279_v58 = vmul.f32 %v2107_v39, %v200_v40  ;;  %v280_v62 = vmul.f32 %v2107_v39, %v201_v41 }
  0x1a   :  { %465 = vmatpush.bf16.msra.mxu0 %v1565_v29  ;;  %1749 = vmatpush.bf16.msra.mxu1 %v1565_v29  ;;  %v295_v55 = vmax.f32 %v231_v46, 0.0  ;;  %v296_v56 = vmax.f32 %v232_v47, 0.0  ;;  %v311_v57 = vmax.f32 %v247_v48, 0.0  ;;  %v312_v59 = vmax.f32 %v248_v50, 0.0 }
  0x1b   :  { %1750 = vmatpush.bf16.msra.mxu2 %v1565_v29  ;;  %1751 = vmatpush.bf16.msra.mxu3 %v1565_v29  ;;  %v327_v60 = vmax.f32 %v263_v51, 0.0  ;;  %v328_v61 = vmax.f32 %v264_v52, 0.0  ;;  %v343_v0 = vmax.f32 %v279_v58, 0.0  ;;  %v344_v5 = vmax.f32 %v280_v62, 0.0  ;;  %v1701_v29 = vld [vmem:[%s3601_s0 + $0x10] sm:$0xff]  }
  0x1c   :  { %v359_v63 = vpack.c.bf16 %v296_v56, %v295_v55  ;;  %v367_v3 = vpack.c.bf16 %v312_v59, %v311_v57  ;;  %v233_v17 = vmul.f32 %v2107_v39, %v154_v7  ;;  %v234_v18 = vmul.f32 %v2107_v39, %v155_v8 }
  0x1d   :  { %v375_v4 = vpack.c.bf16 %v328_v61, %v327_v60  ;;  %v383_v9 = vpack.c.bf16 %v344_v5, %v343_v0  ;;  %v249_v19 = vmul.f32 %v2107_v39, %v170_v10  ;;  %v250_v20 = vmul.f32 %v2107_v39, %v171_v11 }
  0x1e   :  { %466 = vmatpush.bf16.msra.mxu0 %v1564_v45  ;;  %1752 = vmatpush.bf16.msra.mxu1 %v1564_v45  ;;  %v265_v21 = vmul.f32 %v2107_v39, %v186_v12  ;;  %v266_v22 = vmul.f32 %v2107_v39, %v187_v13  ;;  %v281_v23 = vmul.f32 %v2107_v39, %v202_v15  ;;  %v297_v25 = vmax.f32 %v233_v17, 0.0  ;;  %v1718_v12 = vld [vmem:[%s3601_s0 + $0x98] sm:$0xff]  }
  0x1f   :  { %1753 = vmatpush.bf16.msra.mxu2 %v1564_v45  ;;  %1754 = vmatpush.bf16.msra.mxu3 %v1564_v45  ;;  %v282_v24 = vmul.f32 %v2107_v39, %v203_v16  ;;  %v298_v26 = vmax.f32 %v234_v18, 0.0  ;;  %v313_v27 = vmax.f32 %v249_v19, 0.0  ;;  %v314_v28 = vmax.f32 %v250_v20, 0.0  ;;  %v1726_v16 = vld [vmem:[%s3601_s0 + $0xd8] sm:$0xff]  }
  0x20   :  { %v329_v30 = vmax.f32 %v265_v21, 0.0  ;;  %v330_v31 = vmax.f32 %v266_v22, 0.0  ;;  %v345_v33 = vmax.f32 %v281_v23, 0.0  ;;  %v1582_v36 = vunpack.c.l.bf16 %v1701_v29 }
  0x21   :  { %467 = vmatmul.bf16.vlgmr.msra.gmra.mxu0 %v359_v63  ;;  %507 = vmatmul.bf16.vlgmr.msra.gmra.mxu1 %v367_v3  ;;  %v346_v34 = vmax.f32 %v282_v24, 0.0  ;;  %v1583_v37 = vunpack.c.h.bf16 %v1701_v29  ;;  %v360_v40 = vpack.c.bf16 %v298_v26, %v297_v25  ;;  %v368_v41 = vpack.c.bf16 %v314_v28, %v313_v27 }
  0x22   :  { %547 = vmatmul.bf16.vlgmr.msra.gmra.mxu2 %v375_v4  ;;  %587 = vmatmul.bf16.vlgmr.msra.gmra.mxu3 %v383_v9  ;;  %v1614_v42 = vunpack.c.l.bf16 %v1709_v32  ;;  %v1615_v43 = vunpack.c.h.bf16 %v1709_v32  ;;  %v376_v44 = vpack.c.bf16 %v330_v31, %v329_v30  ;;  %v1646_v45 = vunpack.c.l.bf16 %v1717_v35  ;;  %v1710_v9 = vld [vmem:[%s3601_s0 + $0x58] sm:$0xff]  }
  0x23   :  { %v1647_v46 = vunpack.c.h.bf16 %v1717_v35  ;;  %v384_v47 = vpack.c.bf16 %v346_v34, %v345_v33  ;;  %v1678_v48 = vunpack.c.l.bf16 %v1725_v38  ;;  %v156_v50 = vsub.f32 %v1582_v36, %v2075_v14 }
  0x24   :  { %v157_v51 = vsub.f32 %v1583_v37, %v2075_v14  ;;  %v172_v52 = vsub.f32 %v1614_v42, %v2075_v14  ;;  %v173_v53 = vsub.f32 %v1615_v43, %v2075_v14  ;;  %v188_v54 = vsub.f32 %v1646_v45, %v2075_v14 }
  0x25   :  { %v189_v55 = vsub.f32 %v1647_v46, %v2075_v14  ;;  %v204_v56 = vsub.f32 %v1678_v48, %v2075_v14  ;;  %v205_v57 = vsub.f32 %v1679_v49, %v2075_v14  ;;  %v235_v58 = vmul.f32 %v2107_v39, %v156_v50  ;;  %v1703_v48 = vld [vmem:[%s3601_s0 + $0x20] sm:$0xff]  }
  0x26   :  { %v236_v59 = vmul.f32 %v2107_v39, %v157_v51  ;;  %v251_v60 = vmul.f32 %v2107_v39, %v172_v52  ;;  %v252_v61 = vmul.f32 %v2107_v39, %v173_v53  ;;  %v267_v62 = vmul.f32 %v2107_v39, %v188_v54  ;;  %v1711_v51 = vld [vmem:[%s3601_s0 + $0x60] sm:$0xff]  }
  0x27   :  { %v268_v63 = vmul.f32 %v2107_v39, %v189_v55  ;;  %v283_v0 = vmul.f32 %v2107_v39, %v204_v56  ;;  %v284_v1 = vmul.f32 %v2107_v39, %v205_v57  ;;  %v299_v2 = vmax.f32 %v235_v58, 0.0  ;;  %v1719_v54 = vld [vmem:[%s3601_s0 + $0xa0] sm:$0xff]  }
  0x28   :  { %v300_v3 = vmax.f32 %v236_v59, 0.0  ;;  %v315_v4 = vmax.f32 %v251_v60, 0.0  ;;  %v316_v5 = vmax.f32 %v252_v61, 0.0  ;;  %v331_v7 = vmax.f32 %v267_v62, 0.0  ;;  %v1727_v57 = vld [vmem:[%s3601_s0 + $0xe0] sm:$0xff]  }
  0x29   :  { %v332_v8 = vmax.f32 %v268_v63, 0.0  ;;  %v347_v10 = vmax.f32 %v283_v0, 0.0  ;;  %v348_v11 = vmax.f32 %v284_v1, 0.0  ;;  %v1586_v13 = vunpack.c.l.bf16 %v1702_v6 }
  0x2a   :  { %v1587_v15 = vunpack.c.h.bf16 %v1702_v6  ;;  %v361_v17 = vpack.c.bf16 %v300_v3, %v299_v2  ;;  %v369_v18 = vpack.c.bf16 %v316_v5, %v315_v4  ;;  %v1618_v19 = vunpack.c.l.bf16 %v1710_v9 }
  0x2b   :  { %v1619_v20 = vunpack.c.h.bf16 %v1710_v9  ;;  %v377_v21 = vpack.c.bf16 %v332_v8, %v331_v7  ;;  %v1650_v22 = vunpack.c.l.bf16 %v1718_v12  ;;  %v1651_v23 = vunpack.c.h.bf16 %v1718_v12 }
  0x2c   :  { %v385_v24 = vpack.c.bf16 %v348_v11, %v347_v10  ;;  %v1682_v25 = vunpack.c.l.bf16 %v1726_v16  ;;  %v1683_v26 = vunpack.c.h.bf16 %v1726_v16  ;;  %v158_v27 = vsub.f32 %v1586_v13, %v2075_v14 }
  0x2d   :  { %v159_v28 = vsub.f32 %v1587_v15, %v2075_v14  ;;  %v174_v29 = vsub.f32 %v1618_v19, %v2075_v14  ;;  %v175_v30 = vsub.f32 %v1619_v20, %v2075_v14  ;;  %v190_v31 = vsub.f32 %v1650_v22, %v2075_v14 }
  0x2e   :  { %v191_v32 = vsub.f32 %v1651_v23, %v2075_v14  ;;  %v206_v33 = vsub.f32 %v1682_v25, %v2075_v14  ;;  %v207_v34 = vsub.f32 %v1683_v26, %v2075_v14  ;;  %v237_v35 = vmul.f32 %v2107_v39, %v158_v27  ;;  %v1704_v25 = vld [vmem:[%s3601_s0 + $0x28] sm:$0xff]  }
  0x2f   :  { %v238_v36 = vmul.f32 %v2107_v39, %v159_v28  ;;  %v253_v37 = vmul.f32 %v2107_v39, %v174_v29  ;;  %v254_v38 = vmul.f32 %v2107_v39, %v175_v30  ;;  %v1590_v56 = vunpack.c.l.bf16 %v1703_v48  ;;  %v1712_v28 = vld [vmem:[%s3601_s0 + $0x68] sm:$0xff]  }
  0x30   :  { %v285_v42 = vmul.f32 %v2107_v39, %v206_v33  ;;  %v286_v43 = vmul.f32 %v2107_v39, %v207_v34  ;;  %v1591_v59 = vunpack.c.h.bf16 %v1703_v48  ;;  %v1622_v60 = vunpack.c.l.bf16 %v1711_v51  ;;  %v1728_v34 = vld [vmem:[%s3601_s0 + $0xe8] sm:$0xff]  }
  0x31   :  { %472 = vmatmul.bf16.gmra.mxu0 %v360_v40  ;;  %512 = vmatmul.bf16.gmra.mxu1 %v368_v41  ;;  %v269_v40 = vmul.f32 %v2107_v39, %v190_v31  ;;  %v270_v41 = vmul.f32 %v2107_v39, %v191_v32  ;;  %v302_v45 = vmax.f32 %v238_v36, 0.0  ;;  %v317_v46 = vmax.f32 %v253_v37, 0.0  ;;  %v1720_v31 = vld [vmem:[%s3601_s0 + $0xa8] sm:$0xff]  }
  0x32   :  { %552 = vmatmul.bf16.gmra.mxu2 %v376_v44  ;;  %592 = vmatmul.bf16.gmra.mxu3 %v384_v47  ;;  %v301_v44 = vmax.f32 %v237_v35, 0.0  ;;  %v318_v47 = vmax.f32 %v254_v38, 0.0  ;;  %v349_v52 = vmax.f32 %v285_v42, 0.0  ;;  %v350_v53 = vmax.f32 %v286_v43, 0.0 }
  0x33   :  { %v333_v49 = vmax.f32 %v269_v40, 0.0  ;;  %v334_v50 = vmax.f32 %v270_v41, 0.0  ;;  %v1623_v61 = vunpack.c.h.bf16 %v1711_v51  ;;  %v1654_v63 = vunpack.c.l.bf16 %v1719_v54 }
  0x34   :  { %v362_v55 = vpack.c.bf16 %v302_v45, %v301_v44  ;;  %v370_v58 = vpack.c.bf16 %v318_v47, %v317_v46  ;;  %v1655_v0 = vunpack.c.h.bf16 %v1719_v54  ;;  %v386_v1 = vpack.c.bf16 %v350_v53, %v349_v52 }
  0x35   :  { %v378_v62 = vpack.c.bf16 %v334_v50, %v333_v49  ;;  %v1686_v2 = vunpack.c.l.bf16 %v1727_v57  ;;  %v1687_v3 = vunpack.c.h.bf16 %v1727_v57  ;;  %v160_v4 = vsub.f32 %v1590_v56, %v2075_v14 }
  0x36   :  { %v161_v5 = vsub.f32 %v1591_v59, %v2075_v14  ;;  %v176_v6 = vsub.f32 %v1622_v60, %v2075_v14  ;;  %v177_v7 = vsub.f32 %v1623_v61, %v2075_v14  ;;  %v192_v8 = vsub.f32 %v1654_v63, %v2075_v14 }
  0x37   :  { %v193_v9 = vsub.f32 %v1655_v0, %v2075_v14  ;;  %v208_v10 = vsub.f32 %v1686_v2, %v2075_v14  ;;  %v209_v11 = vsub.f32 %v1687_v3, %v2075_v14  ;;  %v239_v12 = vmul.f32 %v2107_v39, %v160_v4 }
  0x38   :  { %v240_v13 = vmul.f32 %v2107_v39, %v161_v5  ;;  %v255_v15 = vmul.f32 %v2107_v39, %v176_v6  ;;  %v256_v16 = vmul.f32 %v2107_v39, %v177_v7  ;;  %v1594_v32 = vunpack.c.l.bf16 %v1704_v25 }
  0x39   :  { %v287_v19 = vmul.f32 %v2107_v39, %v208_v10  ;;  %v288_v20 = vmul.f32 %v2107_v39, %v209_v11  ;;  %v1595_v33 = vunpack.c.h.bf16 %v1704_v25  ;;  %v1626_v37 = vunpack.c.l.bf16 %v1712_v28  ;;  %v1705_v10 = vld [vmem:[%s3601_s0 + $0x30] sm:$0xff]  }
  0x3a   :  { %v304_v22 = vmax.f32 %v240_v13, 0.0  ;;  %v319_v23 = vmax.f32 %v255_v15, 0.0  ;;  %v1627_v38 = vunpack.c.h.bf16 %v1712_v28  ;;  %v1658_v41 = vunpack.c.l.bf16 %v1720_v31  ;;  %v1713_v11 = vld [vmem:[%s3601_s0 + $0x70] sm:$0xff]  }
  0x3b   :  { %v351_v29 = vmax.f32 %v287_v19, 0.0  ;;  %v352_v30 = vmax.f32 %v288_v20, 0.0  ;;  %v1659_v42 = vunpack.c.h.bf16 %v1720_v31  ;;  %v1690_v44 = vunpack.c.l.bf16 %v1728_v34 }
  0x3c   :  { %v1691_v45 = vunpack.c.h.bf16 %v1728_v34  ;;  %v162_v46 = vsub.f32 %v1594_v32, %v2075_v14  ;;  %v163_v47 = vsub.f32 %v1595_v33, %v2075_v14  ;;  %v178_v48 = vsub.f32 %v1626_v37, %v2075_v14 }
  0x3d   :  { %v387_v43 = vpack.c.bf16 %v352_v30, %v351_v29  ;;  %v179_v49 = vsub.f32 %v1627_v38, %v2075_v14  ;;  %v194_v50 = vsub.f32 %v1658_v41, %v2075_v14  ;;  %v195_v51 = vsub.f32 %v1659_v42, %v2075_v14 }
  0x3e   :  { %v210_v52 = vsub.f32 %v1690_v44, %v2075_v14  ;;  %v211_v53 = vsub.f32 %v1691_v45, %v2075_v14  ;;  %v241_v54 = vmul.f32 %v2107_v39, %v162_v46  ;;  %v257_v56 = vmul.f32 %v2107_v39, %v178_v48 }
  0x3f   :  { %v258_v57 = vmul.f32 %v2107_v39, %v179_v49  ;;  %v274_v59 = vmul.f32 %v2107_v39, %v195_v51  ;;  %v1599_v13 = vunpack.c.h.bf16 %v1705_v10  ;;  %v1630_v15 = vunpack.c.l.bf16 %v1713_v11 }
  0x40   :  { %v289_v60 = vmul.f32 %v2107_v39, %v210_v52  ;;  %v290_v61 = vmul.f32 %v2107_v39, %v211_v53  ;;  %v321_v0 = vmax.f32 %v257_v56, 0.0  ;;  %v1722_v52 = vld [vmem:[%s3601_s0 + $0xb8] sm:$0xff]  }
  0x41   :  { %477 = vmatmul.bf16.gmra.mxu0 %v361_v17  ;;  %517 = vmatmul.bf16.gmra.mxu1 %v369_v18  ;;  %v271_v17 = vmul.f32 %v2107_v39, %v192_v8  ;;  %v272_v18 = vmul.f32 %v2107_v39, %v193_v9  ;;  %v338_v3 = vmax.f32 %v274_v59, 0.0  ;;  %v165_v20 = vsub.f32 %v1599_v13, %v2075_v14  ;;  %v1706_v59 = vld [vmem:[%s3601_s0 + $0x38] sm:$0xff]  }
  0x42   :  { %557 = vmatmul.bf16.gmra.mxu2 %v377_v21  ;;  %597 = vmatmul.bf16.gmra.mxu3 %v385_v24  ;;  %v303_v21 = vmax.f32 %v239_v12, 0.0  ;;  %v320_v24 = vmax.f32 %v256_v16, 0.0  ;;  %v353_v4 = vmax.f32 %v289_v60, 0.0  ;;  %v354_v5 = vmax.f32 %v290_v61, 0.0  ;;  %v1714_v60 = vld [vmem:[%s3601_s0 + $0x78] sm:$0xff]  }
  0x43   :  { %v335_v26 = vmax.f32 %v271_v17, 0.0  ;;  %v336_v27 = vmax.f32 %v272_v18, 0.0  ;;  %v1598_v12 = vunpack.c.l.bf16 %v1705_v10  ;;  %v1631_v16 = vunpack.c.h.bf16 %v1713_v11  ;;  %v1721_v17 = vld [vmem:[%s3601_s0 + $0xb0] sm:$0xff]  }
  0x44   :  { %v363_v35 = vpack.c.bf16 %v304_v22, %v303_v21  ;;  %v371_v36 = vpack.c.bf16 %v320_v24, %v319_v23  ;;  %v388_v9 = vpack.c.bf16 %v354_v5, %v353_v4  ;;  %v1729_v18 = vld [vmem:[%s3601_s0 + $0xf0] sm:$0xff]   ;;  %v180_v21 = vsub.f32 %v1630_v15, %v2075_v14 }
  0x45   :  { %v379_v40 = vpack.c.bf16 %v336_v27, %v335_v26  ;;  %v164_v19 = vsub.f32 %v1598_v12, %v2075_v14  ;;  %v181_v22 = vsub.f32 %v1631_v16, %v2075_v14  ;;  %v1662_v23 = vunpack.c.l.bf16 %v1721_v17 }
  0x46   :  { %v1663_v24 = vunpack.c.h.bf16 %v1721_v17  ;;  %v1694_v25 = vunpack.c.l.bf16 %v1729_v18  ;;  %v1695_v26 = vunpack.c.h.bf16 %v1729_v18  ;;  %v244_v28 = vmul.f32 %v2107_v39, %v165_v20 }
  0x47   :  { %v243_v27 = vmul.f32 %v2107_v39, %v164_v19  ;;  %v259_v29 = vmul.f32 %v2107_v39, %v180_v21  ;;  %v260_v30 = vmul.f32 %v2107_v39, %v181_v22  ;;  %v196_v31 = vsub.f32 %v1662_v23, %v2075_v14 }
  0x48   :  { %v197_v32 = vsub.f32 %v1663_v24, %v2075_v14  ;;  %v212_v33 = vsub.f32 %v1694_v25, %v2075_v14  ;;  %v213_v34 = vsub.f32 %v1695_v26, %v2075_v14  ;;  %v1666_v53 = vunpack.c.l.bf16 %v1722_v52 }
  0x49   :  { %v323_v37 = vmax.f32 %v259_v29, 0.0  ;;  %v324_v38 = vmax.f32 %v260_v30, 0.0  ;;  %v628_v21 = vlaneseq }
  0x4a   :  { %v276_v41 = vmul.f32 %v2107_v39, %v197_v32  ;;  %v291_v42 = vmul.f32 %v2107_v39, %v212_v33 }
  0x4b   :  { %v373_v45 = vpack.c.bf16 %v324_v38, %v323_v37  ;;  %v2309_v29 = vand.u32 127, %v628_v21 }
  0x4c   :  { %v355_v48 = vmax.f32 %v291_v42, 0.0 }
  0x4d   :  { %vm630_vm3 = vcmp.lt.s32.totalorder %v2309_v29, 13 }
  0x51   :  { %482 = vmatmul.bf16.gmra.mxu0 %v362_v55  ;;  %522 = vmatmul.bf16.gmra.mxu1 %v370_v58  ;;  %v242_v55 = vmul.f32 %v2107_v39, %v163_v47  ;;  %v273_v58 = vmul.f32 %v2107_v39, %v194_v50  ;;  %v340_v47 = vmax.f32 %v276_v41, 0.0 }
  0x52   :  { %562 = vmatmul.bf16.gmra.mxu2 %v378_v62  ;;  %602 = vmatmul.bf16.gmra.mxu3 %v386_v1  ;;  %v305_v62 = vmax.f32 %v241_v54, 0.0  ;;  %v322_v1 = vmax.f32 %v258_v57, 0.0  ;;  %v1667_v54 = vunpack.c.h.bf16 %v1722_v52 }
  0x53   :  { %v306_v63 = vmax.f32 %v242_v55, 0.0  ;;  %v337_v2 = vmax.f32 %v273_v58, 0.0  ;;  %v198_v55 = vsub.f32 %v1666_v53, %v2075_v14 }
  0x54   :  { %v372_v7 = vpack.c.bf16 %v322_v1, %v321_v0  ;;  %v199_v56 = vsub.f32 %v1667_v54, %v2075_v14  ;;  %v1603_v0 = vunpack.c.h.bf16 %v1706_v59  ;;  %v1634_v1 = vunpack.c.l.bf16 %v1714_v60 }
  0x55   :  { %v364_v6 = vpack.c.bf16 %v306_v63, %v305_v62  ;;  %v380_v8 = vpack.c.bf16 %v338_v3, %v337_v2  ;;  %v277_v57 = vmul.f32 %v2107_v39, %v198_v55  ;;  %v1602_v63 = vunpack.c.l.bf16 %v1706_v59  ;;  %v1730_v3 = vld [vmem:[%s3601_s0 + $0xf8] sm:$0xff]  }
  0x56   :  { %v278_v58 = vmul.f32 %v2107_v39, %v199_v56  ;;  %v1635_v2 = vunpack.c.h.bf16 %v1714_v60  ;;  %v1699_v10 = vunpack.c.h.bf16 %v1730_v3 }
  0x57   :  { %v341_v61 = vmax.f32 %v277_v57, 0.0  ;;  %v166_v5 = vsub.f32 %v1602_v63, %v2075_v14 }
  0x58   :  { %v342_v62 = vmax.f32 %v278_v58, 0.0  ;;  %v215_v17 = vsub.f32 %v1699_v10, %v2075_v14 }
  0x59   :  { %v245_v11 = vmul.f32 %v2107_v39, %v166_v5 }
  0x5a   :  { %v382_v4 = vpack.c.bf16 %v342_v62, %v341_v61  ;;  %v294_v24 = vmul.f32 %v2107_v39, %v215_v17 }
  0x5b   :  { %v309_v18 = vmax.f32 %v245_v11, 0.0 }
  0x61   :  { %487 = vmatmul.bf16.gmra.mxu0 %v363_v35  ;;  %527 = vmatmul.bf16.gmra.mxu1 %v371_v36  ;;  %v307_v35 = vmax.f32 %v243_v27, 0.0  ;;  %v308_v36 = vmax.f32 %v244_v28, 0.0  ;;  %v358_v28 = vmax.f32 %v294_v24, 0.0 }
  0x62   :  { %567 = vmatmul.bf16.gmra.mxu2 %v379_v40  ;;  %607 = vmatmul.bf16.gmra.mxu3 %v387_v43  ;;  %v275_v40 = vmul.f32 %v2107_v39, %v196_v31  ;;  %v292_v43 = vmul.f32 %v2107_v39, %v213_v34 }
  0x63   :  { %v365_v44 = vpack.c.bf16 %v308_v36, %v307_v35 }
  0x64   :  { %v339_v46 = vmax.f32 %v275_v40, 0.0  ;;  %v356_v49 = vmax.f32 %v292_v43, 0.0 }
  0x66   :  { %v381_v50 = vpack.c.bf16 %v340_v47, %v339_v46  ;;  %v389_v51 = vpack.c.bf16 %v356_v49, %v355_v48 }
  0x71   :  { %492 = vmatmul.bf16.gmra.mxu0 %v364_v6  ;;  %532 = vmatmul.bf16.gmra.mxu1 %v372_v7  ;;  %v167_v6 = vsub.f32 %v1603_v0, %v2075_v14  ;;  %v1698_v7 = vunpack.c.l.bf16 %v1730_v3 }
  0x72   :  { %572 = vmatmul.bf16.gmra.mxu2 %v380_v8  ;;  %612 = vmatmul.bf16.gmra.mxu3 %v388_v9  ;;  %v182_v8 = vsub.f32 %v1634_v1, %v2075_v14  ;;  %v183_v9 = vsub.f32 %v1635_v2, %v2075_v14 }
  0x73   :  { %v246_v12 = vmul.f32 %v2107_v39, %v167_v6  ;;  %v214_v13 = vsub.f32 %v1698_v7, %v2075_v14  ;;  %v2314_v14 = vld [vmem:[%s3600_s4] ss:$0 sm:$0xff] }
  0x74   :  { %v261_v15 = vmul.f32 %v2107_v39, %v182_v8  ;;  %v262_v16 = vmul.f32 %v2107_v39, %v183_v9 }
  0x75   :  { %v310_v19 = vmax.f32 %v246_v12, 0.0  ;;  %v293_v20 = vmul.f32 %v2107_v39, %v214_v13 }
  0x76   :  { %v325_v22 = vmax.f32 %v261_v15, 0.0  ;;  %v326_v23 = vmax.f32 %v262_v16, 0.0 }
  0x77   :  { %v366_v25 = vpack.c.bf16 %v310_v19, %v309_v18  ;;  %v357_v26 = vmax.f32 %v293_v20, 0.0 }
  0x78   :  { %v374_v27 = vpack.c.bf16 %v326_v23, %v325_v22 }
  0x79   :  { %v390_v30 = vpack.c.bf16 %v358_v28, %v357_v26 }
  0x81   :  { %497 = vmatmul.bf16.gmra.mxu0 %v365_v44  ;;  %537 = vmatmul.bf16.gmra.mxu1 %v373_v45 }
  0x82   :  { %577 = vmatmul.bf16.gmra.mxu2 %v381_v50  ;;  %617 = vmatmul.bf16.gmra.mxu3 %v389_v51 }
  0x91   :  { %502 = vmatmul.bf16.gmra.mxu0 %v366_v25  ;;  %542 = vmatmul.bf16.gmra.mxu1 %v374_v27 }
  0x92   :  { %582 = vmatmul.bf16.gmra.mxu2 %v382_v4  ;;  %622 = vmatmul.bf16.gmra.mxu3 %v390_v30 }
  0x9e   :  { %v468_v31 = vpop.f32.mrf.mxu0  ;;  %v508_v32 = vpop.f32.mrf.mxu1 }
  0x9f   :  { %v469_v39 = vadd.f32 %v2314_v14, %v468_v31  ;;  %v509_v33 = vadd.f32 %v2314_v14, %v508_v32 }
  0xa1   :  { %v2321_v34 = vsel %vm630_vm3, %v509_v33, -1e+30  ;;  %v2325_v35 = vsel %vm630_vm3, %v469_v39, -1e+30 }
  0xa2   :  { %v744_v36 = vsel %vm695_vm4, %v2321_v34, -inf  ;;  %v696_v37 = vsel %vm695_vm4, %v2325_v35, -inf }
  0xa3   :  { %745 = vmax.xlane.f32.xlu1 %v744_v36  ;;  %697 = vmax.xlane.f32.xlu0 %v696_v37 }
  0xa5   :  { %v548_v38 = vpop.f32.mrf.mxu2  ;;  %v588_v41 = vpop.f32.mrf.mxu3 }
  0xa6   :  { %v549_v40 = vadd.f32 %v2314_v14, %v548_v38  ;;  %v470_v42 = vpop.f32.mrf.mxu0  ;;  %v589_v43 = vadd.f32 %v2314_v14, %v588_v41  ;;  %v510_v44 = vpop.f32.mrf.mxu1 }
  0xa7   :  { %v511_v48 = vadd.f32 %v2314_v14, %v510_v44  ;;  %v471_v50 = vadd.f32 %v2314_v14, %v470_v42 }
  0xa8   :  { %v2335_v45 = vsel %vm630_vm3, %v549_v40, -1e+30  ;;  %v2341_v47 = vsel %vm630_vm3, %v589_v43, -1e+30 }
  0xa9   :  { %v792_v46 = vsel %vm695_vm4, %v2335_v45, -inf  ;;  %v840_v49 = vsel %vm695_vm4, %v2341_v47, -inf  ;;  %v2349_v54 = vsel %vm630_vm3, %v511_v48, -1e+30  ;;  %v2354_v56 = vsel %vm630_vm3, %v471_v50, -1e+30 }
  0xaa   :  { %793 = vmax.xlane.f32.xlu2 %v792_v46  ;;  %v747_v58 = vsel %vm695_vm4, %v2349_v54, -inf  ;;  %v699_v61 = vsel %vm695_vm4, %v2354_v56, -inf }
  0xab   :  { %841 = vmax.xlane.f32.xlu0 %v840_v49 }
  0xad   :  { %v550_v51 = vpop.f32.mrf.mxu2  ;;  %v590_v52 = vpop.f32.mrf.mxu3 }
  0xae   :  { %v473_v53 = vpop.f32.mrf.mxu0  ;;  %v591_v55 = vadd.f32 %v2314_v14, %v590_v52  ;;  %v513_v62 = vpop.f32.mrf.mxu1  ;;  %v551_v63 = vadd.f32 %v2314_v14, %v550_v51 }
  0xaf   :  { %v474_v57 = vadd.f32 %v2314_v14, %v473_v53  ;;  %v514_v10 = vadd.f32 %v2314_v14, %v513_v62 }
  0xb0   :  { %v2361_v59 = vsel %vm630_vm3, %v591_v55, -1e+30  ;;  %v2377_v6 = vsel %vm630_vm3, %v551_v63, -1e+30 }
  0xb1   :  { %v843_v60 = vsel %vm695_vm4, %v2361_v59, -inf  ;;  %v2370_v1 = vsel %vm630_vm3, %v474_v57, -1e+30  ;;  %v795_v11 = vsel %vm695_vm4, %v2377_v6, -inf  ;;  %v2396_v17 = vsel %vm630_vm3, %v514_v10, -1e+30 }
  0xb2   :  { %748 = vmax.xlane.f32.xlu2 %v747_v58  ;;  %844 = vmax.xlane.f32.xlu1 %v843_v60  ;;  %v702_v5 = vsel %vm695_vm4, %v2370_v1, -inf  ;;  %v750_v23 = vsel %vm695_vm4, %v2396_v17, -inf }
  0xb3   :  { %700 = vmax.xlane.f32.xlu0 %v699_v61 }
  0xb5   :  { %v553_v0 = vpop.f32.mrf.mxu2  ;;  %v593_v2 = vpop.f32.mrf.mxu3 }
  0xb6   :  { %v475_v3 = vpop.f32.mrf.mxu0  ;;  %v594_v4 = vadd.f32 %v2314_v14, %v593_v2  ;;  %v554_v7 = vadd.f32 %v2314_v14, %v553_v0  ;;  %v515_v12 = vpop.f32.mrf.mxu1 }
  0xb7   :  { %v476_v25 = vadd.f32 %v2314_v14, %v475_v3  ;;  %v516_v38 = vadd.f32 %v2314_v14, %v515_v12 }
  0xb8   :  { %v2382_v8 = vsel %vm630_vm3, %v594_v4, -1e+30  ;;  %v2391_v15 = vsel %vm630_vm3, %v554_v7, -1e+30 }
  0xb9   :  { %v846_v9 = vsel %vm695_vm4, %v2382_v8, -inf  ;;  %v798_v20 = vsel %vm695_vm4, %v2391_v15, -inf  ;;  %v2417_v30 = vsel %vm630_vm3, %v476_v25, -1e+30  ;;  %v2442_v44 = vsel %vm630_vm3, %v516_v38, -1e+30 }
  0xba   :  { %847 = vmax.xlane.f32.xlu2 %v846_v9  ;;  %703 = vmax.xlane.f32.xlu1 %v702_v5  ;;  %v705_v36 = vsel %vm695_vm4, %v2417_v30, -inf  ;;  %v753_v52 = vsel %vm695_vm4, %v2442_v44, -inf }
  0xbb   :  { %796 = vmax.xlane.f32.xlu0 %v795_v11 }
  0xbd   :  { %v555_v13 = vpop.f32.mrf.mxu2  ;;  %v595_v21 = vpop.f32.mrf.mxu3 }
  0xbe   :  { %v556_v16 = vadd.f32 %v2314_v14, %v555_v13  ;;  %v478_v18 = vpop.f32.mrf.mxu0  ;;  %v596_v26 = vadd.f32 %v2314_v14, %v595_v21  ;;  %v518_v28 = vpop.f32.mrf.mxu1 }
  0xbf   :  { %v479_v24 = vadd.f32 %v2314_v14, %v478_v18  ;;  %v519_v39 = vadd.f32 %v2314_v14, %v518_v28 }
  0xc0   :  { %v2400_v19 = vsel %vm630_vm3, %v556_v16, -1e+30  ;;  %v2423_v32 = vsel %vm630_vm3, %v596_v26, -1e+30 }
  0xc1   :  { %v801_v22 = vsel %vm695_vm4, %v2400_v19, -inf  ;;  %v2413_v27 = vsel %vm630_vm3, %v479_v24, -1e+30  ;;  %v849_v40 = vsel %vm695_vm4, %v2423_v32, -inf  ;;  %v2434_v41 = vsel %vm630_vm3, %v519_v39, -1e+30 }
  0xc2   :  { %802 = vmax.xlane.f32.xlu2 %v801_v22  ;;  %799 = vmax.xlane.f32.xlu1 %v798_v20  ;;  %v708_v31 = vsel %vm695_vm4, %v2413_v27, -inf  ;;  %v756_v48 = vsel %vm695_vm4, %v2434_v41, -inf }
  0xc3   :  { %751 = vmax.xlane.f32.xlu0 %v750_v23 }
  0xc5   :  { %v558_v33 = vpop.f32.mrf.mxu2  ;;  %v598_v42 = vpop.f32.mrf.mxu3 }
  0xc6   :  { %v559_v37 = vadd.f32 %v2314_v14, %v558_v33  ;;  %v480_v46 = vpop.f32.mrf.mxu0  ;;  %v599_v49 = vadd.f32 %v2314_v14, %v598_v42  ;;  %v520_v51 = vpop.f32.mrf.mxu1 }
  0xc7   :  { %v481_v53 = vadd.f32 %v2314_v14, %v480_v46  ;;  %v521_v55 = vadd.f32 %v2314_v14, %v520_v51 }
  0xc8   :  { %v2438_v43 = vsel %vm630_vm3, %v559_v37, -1e+30  ;;  %v2455_v57 = vsel %vm630_vm3, %v599_v49, -1e+30 }
  0xc9   :  { %v804_v50 = vsel %vm695_vm4, %v2438_v43, -inf  ;;  %v2459_v60 = vsel %vm630_vm3, %v481_v53, -1e+30  ;;  %v852_v62 = vsel %vm695_vm4, %v2455_v57, -inf  ;;  %v2465_v63 = vsel %vm630_vm3, %v521_v55, -1e+30 }
  0xca   :  { %709 = vmax.xlane.f32.xlu2 %v708_v31  ;;  %706 = vmax.xlane.f32.xlu1 %v705_v36  ;;  %v711_v2 = vsel %vm695_vm4, %v2459_v60, -inf  ;;  %v759_v7 = vsel %vm695_vm4, %v2465_v63, -inf }
  0xcb   :  { %850 = vmax.xlane.f32.xlu0 %v849_v40 }
  0xcd   :  { %v560_v58 = vpop.f32.mrf.mxu2  ;;  %v600_v61 = vpop.f32.mrf.mxu3 }
  0xce   :  { %v483_v0 = vpop.f32.mrf.mxu0  ;;  %v561_v4 = vadd.f32 %v2314_v14, %v560_v58  ;;  %v601_v5 = vadd.f32 %v2314_v14, %v600_v61  ;;  %v523_v9 = vpop.f32.mrf.mxu1 }
  0xcf   :  { %v484_v3 = vadd.f32 %v2314_v14, %v483_v0  ;;  %v524_v16 = vadd.f32 %v2314_v14, %v523_v9 }
  0xd0   :  { %v2480_v12 = vsel %vm630_vm3, %v601_v5, -1e+30  ;;  %v2484_v13 = vsel %vm630_vm3, %v561_v4, -1e+30 }
  0xd1   :  { %v2476_v10 = vsel %vm630_vm3, %v484_v3, -1e+30  ;;  %v855_v22 = vsel %vm695_vm4, %v2480_v12, -inf  ;;  %v807_v23 = vsel %vm695_vm4, %v2484_v13, -inf  ;;  %v2501_v26 = vsel %vm630_vm3, %v524_v16, -1e+30 }
  0xd2   :  { %757 = vmax.xlane.f32.xlu2 %v756_v48  ;;  %754 = vmax.xlane.f32.xlu1 %v753_v52  ;;  %v714_v18 = vsel %vm695_vm4, %v2476_v10, -inf  ;;  %v762_v36 = vsel %vm695_vm4, %v2501_v26, -inf }
  0xd3   :  { %805 = vmax.xlane.f32.xlu0 %v804_v50 }
  0xd5   :  { %v563_v11 = vpop.f32.mrf.mxu2  ;;  %v603_v21 = vpop.f32.mrf.mxu3 }
  0xd6   :  { %v564_v20 = vadd.f32 %v2314_v14, %v563_v11  ;;  %v604_v24 = vadd.f32 %v2314_v14, %v603_v21  ;;  %v485_v28 = vpop.f32.mrf.mxu0  ;;  %v525_v39 = vpop.f32.mrf.mxu1 }
  0xd7   :  { %v486_v40 = vadd.f32 %v2314_v14, %v485_v28  ;;  %v526_v42 = vadd.f32 %v2314_v14, %v525_v39 }
  0xd8   :  { %v2497_v25 = vsel %vm630_vm3, %v564_v20, -1e+30  ;;  %v2505_v31 = vsel %vm630_vm3, %v604_v24, -1e+30 }
  0xd9   :  { %v810_v33 = vsel %vm695_vm4, %v2497_v25, -inf  ;;  %v858_v37 = vsel %vm695_vm4, %v2505_v31, -inf  ;;  %v2518_v50 = vsel %vm630_vm3, %v526_v42, -1e+30  ;;  %v2522_v51 = vsel %vm630_vm3, %v486_v40, -1e+30 }
  0xda   :  { %712 = vmax.xlane.f32.xlu2 %v711_v2  ;;  %853 = vmax.xlane.f32.xlu1 %v852_v62  ;;  %v765_v58 = vsel %vm695_vm4, %v2518_v50, -inf  ;;  %v717_v61 = vsel %vm695_vm4, %v2522_v51, -inf }
  0xdb   :  { %760 = vmax.xlane.f32.xlu0 %v759_v7 }
  0xdd   :  { %v565_v38 = vpop.f32.mrf.mxu2  ;;  %v605_v48 = vpop.f32.mrf.mxu3 }
  0xde   :  { %v566_v46 = vadd.f32 %v2314_v14, %v565_v38  ;;  %v488_v49 = vpop.f32.mrf.mxu0  ;;  %v528_v55 = vpop.f32.mrf.mxu1  ;;  %v606_v0 = vadd.f32 %v2314_v14, %v605_v48 }
  0xdf   :  { %v489_v53 = vadd.f32 %v2314_v14, %v488_v49  ;;  %v529_v62 = vadd.f32 %v2314_v14, %v528_v55 }
  0xe0   :  { %v2526_v52 = vsel %vm630_vm3, %v566_v46, -1e+30  ;;  %v2547_v9 = vsel %vm630_vm3, %v606_v0, -1e+30 }
  0xe1   :  { %v813_v2 = vsel %vm695_vm4, %v2526_v52, -inf  ;;  %v2539_v3 = vsel %vm630_vm3, %v489_v53, -1e+30  ;;  %v2543_v5 = vsel %vm630_vm3, %v529_v62, -1e+30 }
  0xe2   :  { %856 = vmax.xlane.f32.xlu2 %v855_v22  ;;  %808 = vmax.xlane.f32.xlu1 %v807_v23  ;;  %v720_v11 = vsel %vm695_vm4, %v2539_v3, -inf  ;;  %v861_v22 = vsel %vm695_vm4, %v2547_v9, -inf }
  0xe3   :  { %715 = vmax.xlane.f32.xlu0 %v714_v18  ;;  %v768_v18 = vsel %vm695_vm4, %v2543_v5, -inf }
  0xe5   :  { %v568_v4 = vpop.f32.mrf.mxu2  ;;  %v608_v7 = vpop.f32.mrf.mxu3 }
  0xe6   :  { %v569_v16 = vadd.f32 %v2314_v14, %v568_v4  ;;  %v490_v20 = vpop.f32.mrf.mxu0  ;;  %v609_v21 = vadd.f32 %v2314_v14, %v608_v7  ;;  %v530_v39 = vpop.f32.mrf.mxu1 }
  0xe7   :  { %v491_v23 = vadd.f32 %v2314_v14, %v490_v20  ;;  %v531_v42 = vadd.f32 %v2314_v14, %v530_v39 }
  0xe8   :  { %v2560_v24 = vsel %vm630_vm3, %v609_v21, -1e+30  ;;  %v2564_v28 = vsel %vm630_vm3, %v569_v16, -1e+30 }
  0xe9   :  { %3654 = vst [vmem:[#allocation2_spill] sm:$0xff] %v2560_v24  ;;  %v2572_v38 = vsel %vm630_vm3, %v491_v23, -1e+30 }
  0xea   :  { %811 = vmax.xlane.f32.xlu2 %v810_v33  ;;  %763 = vmax.xlane.f32.xlu1 %v762_v36  ;;  %3655 = vst [vmem:[#allocation3_spill] sm:$0xff] %v2564_v28  ;;  %v864_v36 = vsel %vm695_vm4, %v2560_v24, -inf  ;;  %v723_v48 = vsel %vm695_vm4, %v2572_v38, -inf }
  0xeb   :  { %859 = vmax.xlane.f32.xlu0 %v858_v37  ;;  %v816_v37 = vsel %vm695_vm4, %v2564_v28, -inf  ;;  %3656 = vst [vmem:[#allocation4_spill] sm:$0xff] %v2572_v38 }
  0xed   :  { %v570_v33 = vpop.f32.mrf.mxu2  ;;  %v610_v40 = vpop.f32.mrf.mxu3 }
  0xee   :  { %v571_v46 = vadd.f32 %v2314_v14, %v570_v33  ;;  %v611_v49 = vadd.f32 %v2314_v14, %v610_v40  ;;  %v493_v53 = vpop.f32.mrf.mxu0  ;;  %v533_v55 = vpop.f32.mrf.mxu1 }
  0xef   :  { %v494_v0 = vadd.f32 %v2314_v14, %v493_v53 }
  0xf0   :  { %v2589_v62 = vsel %vm630_vm3, %v611_v49, -1e+30 }
  0xf1   :  { %3659 = vst [vmem:[#allocation7_spill] sm:$0xff] %v2589_v62  ;;  %v2606_v21 = vsel %vm630_vm3, %v494_v0, -1e+30 }
  0xf2   :  { %766 = vmax.xlane.f32.xlu2 %v765_v58  ;;  %718 = vmax.xlane.f32.xlu1 %v717_v61  ;;  %v2581_v58 = vsel %vm630_vm3, %v571_v46, -1e+30  ;;  %v2585_v61 = vsel %vm630_vm3, %v531_v42, -1e+30  ;;  %3661 = vst [vmem:[#allocation9_spill] sm:$0xff] %v2606_v21 }
  0xf3   :  { %814 = vmax.xlane.f32.xlu0 %v813_v2  ;;  %3657 = vst [vmem:[#allocation5_spill] sm:$0xff] %v2581_v58  ;;  %v534_v2 = vadd.f32 %v2314_v14, %v533_v55  ;;  %v819_v7 = vsel %vm695_vm4, %v2581_v58, -inf }
  0xf4   :  { %3658 = vst [vmem:[#allocation6_spill] sm:$0xff] %v2585_v61 }
  0xf5   :  { %v573_v4 = vpop.f32.mrf.mxu2  ;;  %v2602_v20 = vsel %vm630_vm3, %v534_v2, -1e+30 }
  0xf6   :  { %v574_v16 = vadd.f32 %v2314_v14, %v573_v4  ;;  %3660 = vst [vmem:[#allocation8_spill] sm:$0xff] %v2602_v20  ;;  %v495_v39 = vpop.f32.mrf.mxu0  ;;  %v774_v33 = vsel %vm695_vm4, %v2602_v20, -inf  ;;  %v535_v42 = vpop.f32.mrf.mxu1 }
  0xf7   :  { %v496_v46 = vadd.f32 %v2314_v14, %v495_v39 }
  0xf8   :  { %v2610_v23 = vsel %vm630_vm3, %v574_v16, -1e+30 }
  0xf9   :  { %3662 = vst [vmem:[#allocation10_spill] sm:$0xff] %v2610_v23  ;;  %v822_v40 = vsel %vm695_vm4, %v2610_v23, -inf  ;;  %v2629_v0 = vsel %vm630_vm3, %v496_v46, -1e+30 }
  0xfa   :  { %721 = vmax.xlane.f32.xlu2 %v720_v11  ;;  %862 = vmax.xlane.f32.xlu1 %v861_v22  ;;  %v771_v11 = vsel %vm695_vm4, %v2585_v61, -inf  ;;  %v613_v22 = vpop.f32.mrf.mxu3  ;;  %3664 = vst [vmem:[#allocation12_spill] sm:$0xff] %v2629_v0  ;;  %v729_v16 = vsel %vm695_vm4, %v2629_v0, -inf }
  0xfb   :  { %769 = vmax.xlane.f32.xlu0 %v768_v18  ;;  %v867_v18 = vsel %vm695_vm4, %v2589_v62, -inf }
  0xfd   :  { %v575_v49 = vpop.f32.mrf.mxu2 }
 0x102   :  { %865 = vmax.xlane.f32.xlu2 %v864_v36  ;;  %817 = vmax.xlane.f32.xlu1 %v816_v37  ;;  %v726_v36 = vsel %vm695_vm4, %v2606_v21, -inf  ;;  %v614_v37 = vadd.f32 %v2314_v14, %v613_v22  ;;  %v615_v2 = vpop.f32.mrf.mxu3  ;;  %v576_v22 = vadd.f32 %v2314_v14, %v575_v49 }
 0x103   :  { %724 = vmax.xlane.f32.xlu0 %v723_v48  ;;  %v536_v48 = vadd.f32 %v2314_v14, %v535_v42  ;;  %v616_v39 = vadd.f32 %v2314_v14, %v615_v2 }
 0x104   :  { %v2623_v53 = vsel %vm630_vm3, %v614_v37, -1e+30  ;;  %v2660_v2 = vsel %vm630_vm3, %v576_v22, -1e+30 }
 0x105   :  { %3663 = vst [vmem:[#allocation11_spill] sm:$0xff] %v2623_v53  ;;  %v870_v4 = vsel %vm695_vm4, %v2623_v53, -inf  ;;  %v2656_v49 = vsel %vm630_vm3, %v616_v39, -1e+30 }
 0x106   :  { %3667 = vst [vmem:[#allocation15_spill] sm:$0xff] %v2656_v49 }
 0x107   :  { %3668 = vst [vmem:[#allocation16_spill] sm:$0xff] %v2660_v2 }
 0x10a   :  { %820 = vmax.xlane.f32.xlu2 %v819_v7  ;;  %772 = vmax.xlane.f32.xlu1 %v771_v11  ;;  %v2635_v7 = vsel %vm630_vm3, %v536_v48, -1e+30  ;;  %v498_v11 = vpop.f32.mrf.mxu0 }
 0x10b   :  { %868 = vmax.xlane.f32.xlu0 %v867_v18  ;;  %3665 = vst [vmem:[#allocation13_spill] sm:$0xff] %v2635_v7  ;;  %v499_v18 = vadd.f32 %v2314_v14, %v498_v11 }
 0x10d   :  { %v2652_v48 = vsel %vm630_vm3, %v499_v18, -1e+30  ;;  %v873_v18 = vsel %vm695_vm4, %v2656_v49, -inf }
 0x10e   :  { %3666 = vst [vmem:[#allocation14_spill] sm:$0xff] %v2652_v48  ;;  %v732_v11 = vsel %vm695_vm4, %v2652_v48, -inf }
 0x112   :  { %775 = vmax.xlane.f32.xlu2 %v774_v33  ;;  %727 = vmax.xlane.f32.xlu1 %v726_v36  ;;  %v777_v33 = vsel %vm695_vm4, %v2635_v7, -inf  ;;  %v538_v36 = vpop.f32.mrf.mxu1  ;;  %v825_v7 = vsel %vm695_vm4, %v2660_v2, -inf }
 0x113   :  { %823 = vmax.xlane.f32.xlu0 %v822_v40  ;;  %v578_v40 = vpop.f32.mrf.mxu2 }
 0x116   :  { %v2625_v55 = vpop.xlane.xlu0 %697  ;;  %v2646_v42 = vpop.xlane.xlu1 %745 }
 0x11a   :  { %730 = vmax.xlane.f32.xlu2 %v729_v16  ;;  %871 = vmax.xlane.f32.xlu1 %v870_v4  ;;  %v539_v4 = vadd.f32 %v2314_v14, %v538_v36  ;;  %v579_v16 = vadd.f32 %v2314_v14, %v578_v40  ;;  %v500_v36 = vpop.f32.mrf.mxu0 }
 0x11b   :  { %778 = vmax.xlane.f32.xlu0 %v777_v33  ;;  %v618_v33 = vpop.f32.mrf.mxu3  ;;  %v501_v53 = vadd.f32 %v2314_v14, %v500_v36 }
 0x11c   :  { %v619_v39 = vadd.f32 %v2314_v14, %v618_v33  ;;  %v2675_v48 = vsel %vm630_vm3, %v579_v16, -1e+30  ;;  %v2679_v40 = vsel %vm630_vm3, %v539_v4, -1e+30  ;;  %v580_v4 = vpop.f32.mrf.mxu2 }
 0x11d   :  { %v2644_v37 = vpop.xlane.xlu2 %793  ;;  %3669 = vst [vmem:[#allocation17_spill] sm:$0xff] %v2675_v48  ;;  %v780_v16 = vsel %vm695_vm4, %v2679_v40, -inf  ;;  %v2710_v36 = vsel %vm630_vm3, %v501_v53, -1e+30 }
 0x11e   :  { %v2648_v46 = vpop.xlane.xlu0 %841  ;;  %3670 = vst [vmem:[#allocation18_spill] sm:$0xff] %v2679_v40  ;;  %v2687_v33 = vsel %vm630_vm3, %v619_v39, -1e+30  ;;  %v581_v39 = vadd.f32 %v2314_v14, %v580_v4  ;;  %v735_v4 = vsel %vm695_vm4, %v2710_v36, -inf }
 0x11f   :  { %3671 = vst [vmem:[#allocation19_spill] sm:$0xff] %v2687_v33 }
 0x120   :  { %3673 = vst [vmem:[#allocation21_spill] sm:$0xff] %v2710_v36 }
 0x122   :  { %874 = vmax.xlane.f32.xlu2 %v873_v18  ;;  %826 = vmax.xlane.f32.xlu1 %v825_v7  ;;  %v540_v7 = vpop.f32.mrf.mxu1  ;;  %v876_v18 = vsel %vm695_vm4, %v2687_v33, -inf  ;;  %v503_v20 = vpop.f32.mrf.mxu0 }
 0x123   :  { %733 = vmax.xlane.f32.xlu0 %v732_v11  ;;  %v828_v11 = vsel %vm695_vm4, %v2675_v48, -inf  ;;  %v541_v2 = vadd.f32 %v2314_v14, %v540_v7  ;;  %v620_v23 = vpop.f32.mrf.mxu3  ;;  %v2714_v7 = vsel %vm630_vm3, %v581_v39, -1e+30 }
 0x124   :  { %3674 = vst [vmem:[#allocation22_spill] sm:$0xff] %v2714_v7  ;;  %v621_v62 = vadd.f32 %v2314_v14, %v620_v23  ;;  %v831_v53 = vsel %vm695_vm4, %v2714_v7, -inf  ;;  %v583_v39 = vpop.f32.mrf.mxu2 }
 0x125   :  { %v2671_v22 = vpop.xlane.xlu2 %748  ;;  %v2681_v49 = vpop.xlane.xlu1 %844  ;;  %v2706_v33 = vsel %vm630_vm3, %v541_v2, -1e+30 }
 0x126   :  { %v2683_v0 = vpop.xlane.xlu0 %700  ;;  %3672 = vst [vmem:[#allocation20_spill] sm:$0xff] %v2706_v33 }
 0x12a   :  { %829 = vmax.xlane.f32.xlu2 %v828_v11  ;;  %781 = vmax.xlane.f32.xlu1 %v780_v16  ;;  %v543_v11 = vpop.f32.mrf.mxu1  ;;  %v504_v16 = vadd.f32 %v2314_v14, %v503_v20  ;;  %v505_v7 = vpop.f32.mrf.mxu0 }
 0x12b   :  { %877 = vmax.xlane.f32.xlu0 %v876_v18  ;;  %v783_v18 = vsel %vm695_vm4, %v2706_v33, -inf  ;;  %v544_v2 = vadd.f32 %v2314_v14, %v543_v11  ;;  %v623_v58 = vpop.f32.mrf.mxu3 }
 0x12c   :  { %v2727_v20 = vsel %vm630_vm3, %v504_v16, -1e+30  ;;  %v584_v16 = vadd.f32 %v2314_v14, %v583_v39  ;;  %v624_v36 = vadd.f32 %v2314_v14, %v623_v58 }
 0x12d   :  { %v2698_v21 = vpop.xlane.xlu2 %847  ;;  %v2700_v48 = vpop.xlane.xlu1 %703  ;;  %3675 = vst [vmem:[#allocation23_spill] sm:$0xff] %v2727_v20  ;;  %v2735_v11 = vsel %vm630_vm3, %v544_v2, -1e+30 }
 0x12e   :  { %v2702_v40 = vpop.xlane.xlu0 %796  ;;  %3676 = vst [vmem:[#allocation24_spill] sm:$0xff] %v2735_v11  ;;  %v2754_v38 = vsel %vm630_vm3, %v624_v36, -1e+30  ;;  %v2758_v39 = vsel %vm630_vm3, %v584_v16, -1e+30 }
 0x12f   :  { %3678 = vst [vmem:[#allocation26_spill] sm:$0xff] %v2754_v38  ;;  %v882_v36 = vsel %vm695_vm4, %v2754_v38, -inf }
 0x130   :  { %3679 = vst [vmem:[#allocation27_spill] sm:$0xff] %v2758_v39 }
 0x132   :  { %784 = vmax.xlane.f32.xlu2 %v783_v18  ;;  %736 = vmax.xlane.f32.xlu1 %v735_v4  ;;  %v2741_v18 = vsel %vm630_vm3, %v621_v62, -1e+30  ;;  %v738_v4 = vsel %vm695_vm4, %v2727_v20, -inf  ;;  %v506_v62 = vadd.f32 %v2314_v14, %v505_v7  ;;  %v585_v7 = vpop.f32.mrf.mxu2 }
 0x133   :  { %832 = vmax.xlane.f32.xlu0 %v831_v53  ;;  %3677 = vst [vmem:[#allocation25_spill] sm:$0xff] %v2741_v18  ;;  %v786_v53 = vsel %vm695_vm4, %v2735_v11, -inf  ;;  %v879_v2 = vsel %vm695_vm4, %v2741_v18, -inf  ;;  %v2780_v18 = vsub.f32 %v2325_v35, %v2625_v55  ;;  %v625_v24 = vpop.f32.mrf.mxu3  ;;  %v586_v38 = vadd.f32 %v2314_v14, %v585_v7 }
 0x134   :  { %v2776_v16 = vsel %vm630_vm3, %v506_v62, -1e+30  ;;  %v626_v35 = vadd.f32 %v2314_v14, %v625_v24 }
 0x135   :  { %v2729_v33 = vpop.xlane.xlu2 %802  ;;  %v2731_v61 = vpop.xlane.xlu1 %799  ;;  %v952_v55 = vmul.f32 1.442695, %v2780_v18  ;;  %v2802_v7 = vsel %vm630_vm3, %v586_v38, -1e+30  ;;  %v2822_v38 = vsub.f32 %v2349_v54, %v2671_v22 }
 0x136   :  { %v2737_v23 = vpop.xlane.xlu0 %751  ;;  %v2814_v24 = vsel %vm630_vm3, %v626_v35, -1e+30 }
 0x137   :  { %3680 = vst [vmem:[#allocation28_spill] sm:$0xff] %v2814_v24  ;;  %v885_v29 = vsel %vm695_vm4, %v2814_v24, -inf  ;;  %v986_v54 = vmul.f32 1.442695, %v2822_v38 }
 0x13a   :  { %739 = vmax.xlane.f32.xlu2 %v738_v4  ;;  %880 = vmax.xlane.f32.xlu1 %v879_v2  ;;  %v2768_v4 = vsub.f32 %v2321_v34, %v2646_v42  ;;  %v834_v2 = vsel %vm695_vm4, %v2758_v39, -inf  ;;  %v2784_v34 = vsub.f32 %v2335_v45, %v2644_v37  ;;  %v741_v39 = vsel %vm695_vm4, %v2776_v16, -inf }
 0x13b   :  { %787 = vmax.xlane.f32.xlu0 %v786_v53  ;;  %v545_v53 = vpop.f32.mrf.mxu1 }
 0x13c   :  { %v546_v42 = vadd.f32 %v2314_v14, %v545_v53  ;;  %v984_v62 = vmul.f32 1.442695, %v2768_v4  ;;  %v1016_v28 = vmul.f32 1.442695, %v2784_v34  ;;  %v2810_v14 = vsub.f32 %v2341_v47, %v2648_v46 }
 0x13d   :  { %v2760_v11 = vpop.xlane.xlu2 %709  ;;  %v2762_v20 = vpop.xlane.xlu1 %706 }
 0x13e   :  { %v2764_v58 = vpop.xlane.xlu0 %850  ;;  %1759 = vpow2.f32 %v984_v62  ;;  %v1048_v46 = vmul.f32 1.442695, %v2810_v14 }
 0x13f   :  { %1761 = vpow2.f32 %v952_v55  ;;  %v2841_v55 = vsub.f32 %v2361_v59, %v2681_v49 }
 0x140   :  { %1763 = vpow2.f32 %v1016_v28 }
 0x141   :  { %1765 = vpow2.f32 %v1048_v46  ;;  %v1050_v59 = vmul.f32 1.442695, %v2841_v55 }
 0x142   :  { %883 = vmax.xlane.f32.xlu2 %v882_v36  ;;  %835 = vmax.xlane.f32.xlu1 %v834_v2  ;;  %v2806_v36 = vsel %vm630_vm3, %v546_v42, -1e+30  ;;  %v837_v2 = vsel %vm695_vm4, %v2802_v7, -inf }
 0x143   :  { %742 = vmax.xlane.f32.xlu0 %v741_v39  ;;  %v2818_v39 = vsub.f32 %v2354_v56, %v2683_v0  ;;  %v789_v47 = vsel %vm695_vm4, %v2806_v36, -inf }
 0x144   :  { %v1760_v28 = vpop.eup %1759 }
 0x145   :  { %v2794_v45 = vpop.xlane.xlu2 %757  ;;  %v2796_v37 = vpop.xlane.xlu1 %754  ;;  %v954_v56 = vmul.f32 1.442695, %v2818_v39 }
 0x146   :  { %v2798_v53 = vpop.xlane.xlu0 %805  ;;  %v1762_v42 = vpop.eup %1761 }
 0x147   :  { %v1764_v35 = vpop.eup %1763  ;;  %1767 = vpow2.f32 %v954_v56  ;;  %v1080_v24 = vsel %vm695_vm4, %v1762_v42, 0.0  ;;  %v2869_v42 = vsub.f32 %v2396_v17, %v2737_v23 }
 0x148   :  { %1769 = vpow2.f32 %v986_v54  ;;  %v1176_v46 = vsel %vm695_vm4, %v1764_v35, 0.0  ;;  %v2873_v35 = vsub.f32 %v2382_v8, %v2698_v21 }
 0x149   :  { %1771 = vpow2.f32 %v1050_v59 }
 0x14a   :  { %838 = vmax.xlane.f32.xlu2 %v837_v2  ;;  %790 = vmax.xlane.f32.xlu1 %v789_v47  ;;  %v2845_v2 = vsub.f32 %v2377_v6, %v2702_v40  ;;  %v2849_v47 = vsub.f32 %v2370_v1, %v2700_v48  ;;  %v1766_v6 = vpop.eup %1765  ;;  %v1052_v23 = vmul.f32 1.442695, %v2873_v35 }
 0x14b   :  { %886 = vmax.xlane.f32.xlu0 %v885_v29  ;;  %v1128_v29 = vsel %vm695_vm4, %v1760_v28, 0.0 }
 0x14c   :  { %v1018_v49 = vmul.f32 1.442695, %v2845_v2  ;;  %v956_v40 = vmul.f32 1.442695, %v2849_v47 }
 0x14d   :  { %v2833_v0 = vpop.xlane.xlu2 %712  ;;  %v2835_v22 = vpop.xlane.xlu1 %853 }
 0x14e   :  { %v2837_v62 = vpop.xlane.xlu0 %760  ;;  %v1768_v48 = vpop.eup %1767  ;;  %1773 = vpow2.f32 %v1018_v49 }
 0x14f   :  { %v1770_v54 = vpop.eup %1769  ;;  %1775 = vpow2.f32 %v956_v40 }
 0x150   :  { %v1131_v59 = vsel %vm695_vm4, %v1770_v54, 0.0  ;;  %v1772_v17 = vpop.eup %1771  ;;  %v2893_v54 = vsub.f32 %v2442_v44, %v2796_v37 }
 0x152   :  { %1129 = vadd.xlane.f32.xlu2 %v1128_v29  ;;  %1081 = vadd.xlane.f32.xlu1 %v1080_v24  ;;  %v2865_v24 = vsub.f32 %v2391_v15, %v2731_v61  ;;  %v1224_v29 = vsel %vm695_vm4, %v1766_v6, 0.0  ;;  %v988_v61 = vmul.f32 1.442695, %v2869_v42 }
 0x153   :  { %1177 = vadd.xlane.f32.xlu0 %v1176_v46  ;;  %v1083_v46 = vsel %vm695_vm4, %v1768_v48, 0.0  ;;  %v2889_v48 = vsub.f32 %v2417_v30, %v2762_v20  ;;  %v990_v20 = vmul.f32 1.442695, %v2893_v54 }
 0x154   :  { %v1020_v15 = vmul.f32 1.442695, %v2865_v24  ;;  %v1774_v21 = vpop.eup %1773 }
 0x155   :  { %v2857_v56 = vpop.xlane.xlu2 %856  ;;  %v2859_v1 = vpop.xlane.xlu1 %808  ;;  %v958_v30 = vmul.f32 1.442695, %v2889_v48 }
 0x156   :  { %v2861_v28 = vpop.xlane.xlu0 %715  ;;  %v1776_v40 = vpop.eup %1775  ;;  %1777 = vpow2.f32 %v1020_v15 }
 0x157   :  { %1779 = vpow2.f32 %v988_v61  ;;  %v1086_v15 = vsel %vm695_vm4, %v1776_v40, 0.0  ;;  %v2917_v40 = vsub.f32 %v2423_v32, %v2764_v58 }
 0x158   :  { %1781 = vpow2.f32 %v1052_v23 }
 0x159   :  { %1783 = vpow2.f32 %v958_v30  ;;  %v1054_v32 = vmul.f32 1.442695, %v2917_v40 }
 0x15a   :  { %1225 = vadd.xlane.f32.xlu1 %v1224_v29  ;;  %1084 = vadd.xlane.f32.xlu2 %v1083_v46  ;;  %v2897_v29 = vsub.f32 %v2400_v19, %v2729_v33  ;;  %v1227_v46 = vsel %vm695_vm4, %v1772_v17, 0.0  ;;  %1785 = vpow2.f32 %v990_v20 }
 0x15b   :  { %1132 = vadd.xlane.f32.xlu0 %v1131_v59  ;;  %v1179_v59 = vsel %vm695_vm4, %v1774_v21, 0.0  ;;  %v2913_v21 = vsub.f32 %v2413_v27, %v2760_v11 }
 0x15c   :  { %v1778_v44 = vpop.eup %1777  ;;  %v1022_v37 = vmul.f32 1.442695, %v2897_v29 }
 0x15d   :  { %v2881_v49 = vpop.xlane.xlu2 %811  ;;  %v2883_v8 = vpop.xlane.xlu1 %763  ;;  %v960_v11 = vmul.f32 1.442695, %v2913_v21 }
 0x15e   :  { %v2885_v6 = vpop.xlane.xlu0 %859  ;;  %v1780_v33 = vpop.eup %1779  ;;  %1787 = vpow2.f32 %v1022_v37 }
 0x15f   :  { %v1782_v23 = vpop.eup %1781  ;;  %1789 = vpow2.f32 %v960_v11 }
 0x160   :  { %v1230_v27 = vsel %vm695_vm4, %v1782_v23, 0.0  ;;  %v1784_v58 = vpop.eup %1783  ;;  %1791 = vpow2.f32 %v1054_v32  ;;  %v2941_v23 = vsub.f32 %v2455_v57, %v2835_v22 }
 0x162   :  { %1228 = vadd.xlane.f32.xlu2 %v1227_v46  ;;  %1180 = vadd.xlane.f32.xlu1 %v1179_v59  ;;  %v2921_v46 = vsub.f32 %v2434_v41, %v2794_v45  ;;  %v1182_v59 = vsel %vm695_vm4, %v1778_v44, 0.0  ;;  %v1786_v45 = vpop.eup %1785 }
 0x163   :  { %1087 = vadd.xlane.f32.xlu0 %v1086_v15  ;;  %v1134_v15 = vsel %vm695_vm4, %v1780_v33, 0.0  ;;  %v2937_v33 = vsub.f32 %v2438_v43, %v2798_v53  ;;  %v1056_v53 = vmul.f32 1.442695, %v2941_v23 }
 0x164   :  { %v992_v30 = vmul.f32 1.442695, %v2921_v46  ;;  %v1788_v37 = vpop.eup %1787 }
 0x165   :  { %v2905_v61 = vpop.xlane.xlu2 %766  ;;  %v2907_v19 = vpop.xlane.xlu1 %718  ;;  %v1185_v11 = vsel %vm695_vm4, %v1788_v37, 0.0  ;;  %v1024_v43 = vmul.f32 1.442695, %v2937_v33  ;;  %v2965_v37 = vsub.f32 %v2484_v13, %v2859_v1 }
 0x166   :  { %v2909_v17 = vpop.xlane.xlu0 %814  ;;  %1793 = vpow2.f32 %v992_v30  ;;  %v1790_v57 = vpop.eup %1789 }
 0x167   :  { %1795 = vpow2.f32 %v1024_v43 }
 0x168   :  { %1797 = vpow2.f32 %v1056_v53 }
 0x16a   :  { %1183 = vadd.xlane.f32.xlu2 %v1182_v59  ;;  %1135 = vadd.xlane.f32.xlu1 %v1134_v15  ;;  %v2945_v59 = vsub.f32 %v2459_v60, %v2833_v0  ;;  %v1137_v15 = vsel %vm695_vm4, %v1786_v45, 0.0  ;;  %v1792_v0 = vpop.eup %1791  ;;  %v2961_v45 = vsub.f32 %v2465_v63, %v2837_v62  ;;  %v1026_v62 = vmul.f32 1.442695, %v2965_v37 }
 0x16b   :  { %1231 = vadd.xlane.f32.xlu0 %v1230_v27  ;;  %v1089_v27 = vsel %vm695_vm4, %v1784_v58, 0.0 }
 0x16c   :  { %v962_v22 = vmul.f32 1.442695, %v2945_v59  ;;  %v1794_v58 = vpop.eup %1793  ;;  %v994_v63 = vmul.f32 1.442695, %v2961_v45 }
 0x16d   :  { %v2929_v20 = vpop.xlane.xlu2 %721  ;;  %v2931_v41 = vpop.xlane.xlu1 %862  ;;  %v1140_v43 = vsel %vm695_vm4, %v1794_v58, 0.0  ;;  %v2989_v58 = vsub.f32 %v2501_v26, %v2883_v8 }
 0x16e   :  { %v2933_v44 = vpop.xlane.xlu0 %769  ;;  %1799 = vpow2.f32 %v962_v22  ;;  %v1796_v13 = vpop.eup %1795 }
 0x16f   :  { %1801 = vpow2.f32 %v994_v63 }
 0x170   :  { %1803 = vpow2.f32 %v1026_v62 }
 0x172   :  { %1138 = vadd.xlane.f32.xlu2 %v1137_v15  ;;  %1090 = vadd.xlane.f32.xlu1 %v1089_v27  ;;  %v2969_v15 = vsub.f32 %v2480_v12, %v2857_v56  ;;  %v1092_v27 = vsel %vm695_vm4, %v1790_v57, 0.0  ;;  %v1798_v56 = vpop.eup %1797 }
 0x173   :  { %1186 = vadd.xlane.f32.xlu0 %v1185_v11  ;;  %v1233_v11 = vsel %vm695_vm4, %v1792_v0, 0.0  ;;  %v2985_v0 = vsub.f32 %v2476_v10, %v2861_v28  ;;  %v996_v28 = vmul.f32 1.442695, %v2989_v58 }
 0x174   :  { %v1058_v1 = vmul.f32 1.442695, %v2969_v15  ;;  %v1800_v22 = vpop.eup %1799 }
 0x175   :  { %v2953_v32 = vpop.xlane.xlu2 %865  ;;  %v2955_v60 = vpop.xlane.xlu1 %817  ;;  %v1095_v63 = vsel %vm695_vm4, %v1800_v22, 0.0  ;;  %v964_v10 = vmul.f32 1.442695, %v2985_v0  ;;  %v3013_v22 = vsub.f32 %v2522_v51, %v2907_v19 }
 0x176   :  { %v2957_v30 = vpop.xlane.xlu0 %724  ;;  %1805 = vpow2.f32 %v1058_v1  ;;  %v1802_v26 = vpop.eup %1801 }
 0x177   :  { %1807 = vpow2.f32 %v964_v10 }
 0x178   :  { %1809 = vpow2.f32 %v996_v28 }
 0x17a   :  { %1093 = vadd.xlane.f32.xlu2 %v1092_v27  ;;  %1234 = vadd.xlane.f32.xlu1 %v1233_v11  ;;  %v2993_v27 = vsub.f32 %v2497_v25, %v2881_v49  ;;  %v1236_v11 = vsel %vm695_vm4, %v1798_v56, 0.0  ;;  %v1804_v49 = vpop.eup %1803  ;;  %v3009_v56 = vsub.f32 %v2505_v31, %v2885_v6  ;;  %v966_v6 = vmul.f32 1.442695, %v3013_v22 }
 0x17b   :  { %1141 = vadd.xlane.f32.xlu0 %v1140_v43  ;;  %v1188_v43 = vsel %vm695_vm4, %v1796_v13, 0.0 }
 0x17c   :  { %v1028_v8 = vmul.f32 1.442695, %v2993_v27  ;;  %v1806_v13 = vpop.eup %1805  ;;  %v1060_v31 = vmul.f32 1.442695, %v3009_v56 }
 0x17d   :  { %v2977_v53 = vpop.xlane.xlu2 %820  ;;  %v2979_v12 = vpop.xlane.xlu1 %772  ;;  %v1239_v10 = vsel %vm695_vm4, %v1806_v13, 0.0  ;;  %v3037_v13 = vsub.f32 %v2547_v9, %v2931_v41 }
 0x17e   :  { %v2981_v57 = vpop.xlane.xlu0 %868  ;;  %1811 = vpow2.f32 %v1028_v8  ;;  %v1808_v51 = vpop.eup %1807 }
 0x17f   :  { %1813 = vpow2.f32 %v1060_v31 }
 0x180   :  { %1815 = vpow2.f32 %v966_v6 }
 0x182   :  { %1237 = vadd.xlane.f32.xlu2 %v1236_v11  ;;  %1189 = vadd.xlane.f32.xlu1 %v1188_v43  ;;  %v3017_v11 = vsub.f32 %v2518_v50, %v2905_v61  ;;  %v1191_v43 = vsel %vm695_vm4, %v1804_v49, 0.0  ;;  %v1810_v61 = vpop.eup %1809  ;;  %v3033_v49 = vsub.f32 %v2526_v52, %v2909_v17  ;;  %v1062_v17 = vmul.f32 1.442695, %v3037_v13 }
 0x183   :  { %1096 = vadd.xlane.f32.xlu0 %v1095_v63  ;;  %v1143_v63 = vsel %vm695_vm4, %v1802_v26, 0.0 }
 0x184   :  { %v998_v19 = vmul.f32 1.442695, %v3017_v11  ;;  %v1812_v26 = vpop.eup %1811  ;;  %3681 = vst [vmem:[#allocation29_spill] sm:$0xff] %v3033_v49  ;;  %v1030_v52 = vmul.f32 1.442695, %v3033_v49 }
 0x185   :  { %v3001_v62 = vpop.xlane.xlu2 %775  ;;  %v3003_v25 = vpop.xlane.xlu1 %727  ;;  %v1194_v31 = vsel %vm695_vm4, %v1812_v26, 0.0  ;;  %v3684_v26 = vld [vmem:[#allocation3_spill] sm:$0xff] }
 0x186   :  { %v3005_v1 = vpop.xlane.xlu0 %823  ;;  %1817 = vpow2.f32 %v998_v19  ;;  %v1814_v9 = vpop.eup %1813 }
 0x187   :  { %1819 = vpow2.f32 %v1030_v52  ;;  %v1242_v49 = vsel %vm695_vm4, %v1814_v9, 0.0 }
 0x188   :  { %1821 = vpow2.f32 %v1062_v17 }
 0x18a   :  { %1192 = vadd.xlane.f32.xlu2 %v1191_v43  ;;  %1144 = vadd.xlane.f32.xlu1 %v1143_v63  ;;  %v3041_v43 = vsub.f32 %v2539_v3, %v2929_v20  ;;  %v1146_v63 = vsel %vm695_vm4, %v1810_v61, 0.0  ;;  %v1816_v20 = vpop.eup %1815  ;;  %v3057_v61 = vsub.f32 %v2543_v5, %v2933_v44 }
 0x18b   :  { %1240 = vadd.xlane.f32.xlu0 %v1239_v10  ;;  %v1098_v10 = vsel %vm695_vm4, %v1808_v51, 0.0 }
 0x18c   :  { %3682 = vst [vmem:[#allocation30_spill] sm:$0xff] %v3041_v43  ;;  %v968_v41 = vmul.f32 1.442695, %v3041_v43  ;;  %v1818_v51 = vpop.eup %1817  ;;  %v1101_v43 = vsel %vm695_vm4, %v1816_v20, 0.0  ;;  %v1000_v5 = vmul.f32 1.442695, %v3057_v61 }
 0x18d   :  { %v3025_v28 = vpop.xlane.xlu2 %730  ;;  %v3027_v50 = vpop.xlane.xlu1 %871  ;;  %3683 = vst [vmem:[#allocation31_spill] sm:$0xff] %v3057_v61  ;;  %v1149_v52 = vsel %vm695_vm4, %v1818_v51, 0.0  ;;  %v3690_v51 = vld [vmem:[#allocation6_spill] sm:$0xff] }
 0x18e   :  { %v3029_v8 = vpop.xlane.xlu0 %778  ;;  %1823 = vpow2.f32 %v968_v41 }
 0x18f   :  { %1825 = vpow2.f32 %v1000_v5 }
 0x192   :  { %1147 = vadd.xlane.f32.xlu2 %v1146_v63  ;;  %1099 = vadd.xlane.f32.xlu1 %v1098_v10  ;;  %v3061_v63 = vsub.f32 %v3684_v26, %v2955_v60  ;;  %v3686_v10 = vld [vmem:[#allocation2_spill] sm:$0xff]  ;;  %v1820_v60 = vpop.eup %1819 }
 0x193   :  { %1195 = vadd.xlane.f32.xlu0 %v1194_v31  ;;  %v3065_v31 = vsub.f32 %v3686_v10, %v2953_v32  ;;  %v1822_v26 = vpop.eup %1821  ;;  %v3085_v10 = vsub.f32 %v3690_v51, %v2979_v12 }
 0x194   :  { %3685 = vst [vmem:[#allocation3_spill] sm:$0xff] %v3061_v63  ;;  %v1032_v44 = vmul.f32 1.442695, %v3061_v63  ;;  %v1824_v9 = vpop.eup %1823  ;;  %v1245_v61 = vsel %vm695_vm4, %v1822_v26, 0.0  ;;  %v1197_v63 = vsel %vm695_vm4, %v1820_v60, 0.0 }
 0x195   :  { %v3049_v6 = vpop.xlane.xlu2 %874  ;;  %v3051_v3 = vpop.xlane.xlu1 %826  ;;  %3687 = vst [vmem:[#allocation2_spill] sm:$0xff] %v3065_v31  ;;  %v1064_v17 = vmul.f32 1.442695, %v3065_v31  ;;  %v1104_v5 = vsel %vm695_vm4, %v1824_v9, 0.0  ;;  %v3696_v9 = vld [vmem:[#allocation9_spill] sm:$0xff] }
 0x196   :  { %v3053_v19 = vpop.xlane.xlu0 %733  ;;  %1827 = vpow2.f32 %v1032_v44  ;;  %3691 = vst [vmem:[#allocation6_spill] sm:$0xff] %v3085_v10  ;;  %v1002_v44 = vmul.f32 1.442695, %v3085_v10  ;;  %v1826_v12 = vpop.eup %1825 }
 0x197   :  { %1829 = vpow2.f32 %v1064_v17  ;;  %v1152_v10 = vsel %vm695_vm4, %v1826_v12, 0.0 }
 0x19a   :  { %1102 = vadd.xlane.f32.xlu2 %v1101_v43  ;;  %1243 = vadd.xlane.f32.xlu1 %v1242_v49  ;;  %v3688_v49 = vld [vmem:[#allocation4_spill] sm:$0xff] }
 0x19b   :  { %1150 = vadd.xlane.f32.xlu0 %v1149_v52  ;;  %v3081_v43 = vsub.f32 %v3688_v49, %v2957_v30  ;;  %v3692_v52 = vld [vmem:[#allocation5_spill] sm:$0xff] }
 0x19c   :  { %v3089_v31 = vsub.f32 %v3692_v52, %v2977_v53  ;;  %v1828_v51 = vpop.eup %1827  ;;  %v3109_v52 = vsub.f32 %v3696_v9, %v3003_v25 }
 0x19d   :  { %v3073_v41 = vpop.xlane.xlu2 %829  ;;  %v3075_v32 = vpop.xlane.xlu1 %781  ;;  %3689 = vst [vmem:[#allocation4_spill] sm:$0xff] %v3081_v43  ;;  %v970_v30 = vmul.f32 1.442695, %v3081_v43  ;;  %v1200_v43 = vsel %vm695_vm4, %v1828_v51, 0.0 }
 0x19e   :  { %v3077_v20 = vpop.xlane.xlu0 %877  ;;  %3693 = vst [vmem:[#allocation5_spill] sm:$0xff] %v3089_v31  ;;  %v1034_v17 = vmul.f32 1.442695, %v3089_v31  ;;  %v1830_v60 = vpop.eup %1829 }
 0x19f   :  { %1831 = vpow2.f32 %v970_v30  ;;  %3697 = vst [vmem:[#allocation9_spill] sm:$0xff] %v3109_v52  ;;  %v1248_v30 = vsel %vm695_vm4, %v1830_v60, 0.0  ;;  %v3702_v60 = vld [vmem:[#allocation11_spill] sm:$0xff] }
 0x1a0   :  { %1833 = vpow2.f32 %v1002_v44  ;;  %v972_v44 = vmul.f32 1.442695, %v3109_v52 }
 0x1a1   :  { %1835 = vpow2.f32 %v1034_v17 }
 0x1a2   :  { %1246 = vadd.xlane.f32.xlu2 %v1245_v61  ;;  %1198 = vadd.xlane.f32.xlu1 %v1197_v63  ;;  %v3694_v61 = vld [vmem:[#allocation7_spill] sm:$0xff] }
 0x1a3   :  { %1105 = vadd.xlane.f32.xlu0 %v1104_v5  ;;  %v3105_v63 = vsub.f32 %v3694_v61, %v2981_v57  ;;  %v3698_v5 = vld [vmem:[#allocation8_spill] sm:$0xff] }
 0x1a4   :  { %v3113_v31 = vsub.f32 %v3698_v5, %v3001_v62  ;;  %v3133_v5 = vsub.f32 %v3702_v60, %v3027_v50 }
 0x1a5   :  { %v3097_v49 = vpop.xlane.xlu2 %784  ;;  %v3099_v53 = vpop.xlane.xlu1 %736  ;;  %3695 = vst [vmem:[#allocation7_spill] sm:$0xff] %v3105_v63  ;;  %v1066_v57 = vmul.f32 1.442695, %v3105_v63 }
 0x1a6   :  { %v3101_v26 = vpop.xlane.xlu0 %832  ;;  %3699 = vst [vmem:[#allocation8_spill] sm:$0xff] %v3113_v31  ;;  %v1832_v25 = vpop.eup %1831  ;;  %v1004_v17 = vmul.f32 1.442695, %v3113_v31 }
 0x1a7   :  { %v1834_v9 = vpop.eup %1833  ;;  %1837 = vpow2.f32 %v1066_v57  ;;  %3703 = vst [vmem:[#allocation11_spill] sm:$0xff] %v3133_v5  ;;  %v1107_v52 = vsel %vm695_vm4, %v1832_v25, 0.0 }
 0x1a8   :  { %v1836_v12 = vpop.eup %1835  ;;  %1839 = vpow2.f32 %v972_v44  ;;  %v1155_v63 = vsel %vm695_vm4, %v1834_v9, 0.0  ;;  %v1068_v44 = vmul.f32 1.442695, %v3133_v5 }
 0x1a9   :  { %1841 = vpow2.f32 %v1004_v17  ;;  %v1203_v57 = vsel %vm695_vm4, %v1836_v12, 0.0  ;;  %v3708_v12 = vld [vmem:[#allocation16_spill] sm:$0xff] }
 0x1aa   :  { %1201 = vadd.xlane.f32.xlu2 %v1200_v43  ;;  %1153 = vadd.xlane.f32.xlu1 %v1152_v10  ;;  %v3700_v43 = vld [vmem:[#allocation10_spill] sm:$0xff] }
 0x1ab   :  { %1249 = vadd.xlane.f32.xlu0 %v1248_v30  ;;  %v3129_v10 = vsub.f32 %v3700_v43, %v3005_v1  ;;  %v3704_v30 = vld [vmem:[#allocation12_spill] sm:$0xff] }
 0x1ac   :  { %v3137_v31 = vsub.f32 %v3704_v30, %v3025_v28  ;;  %v3157_v30 = vsub.f32 %v3708_v12, %v3051_v3  ;;  %v3711_v3 = vld [vmem:[#allocation14_spill] sm:$0xff] }
 0x1ad   :  { %v3121_v61 = vpop.xlane.xlu2 %739  ;;  %v3123_v62 = vpop.xlane.xlu1 %880  ;;  %3701 = vst [vmem:[#allocation10_spill] sm:$0xff] %v3129_v10  ;;  %v1036_v1 = vmul.f32 1.442695, %v3129_v10 }
 0x1ae   :  { %v3125_v51 = vpop.xlane.xlu0 %787  ;;  %3705 = vst [vmem:[#allocation12_spill] sm:$0xff] %v3137_v31  ;;  %v1838_v50 = vpop.eup %1837  ;;  %v974_v17 = vmul.f32 1.442695, %v3137_v31 }
 0x1af   :  { %v1840_v60 = vpop.eup %1839  ;;  %1843 = vpow2.f32 %v1036_v1  ;;  %v1251_v5 = vsel %vm695_vm4, %v1838_v50, 0.0 }
 0x1b0   :  { %v1842_v25 = vpop.eup %1841  ;;  %1845 = vpow2.f32 %v1068_v44  ;;  %v1110_v10 = vsel %vm695_vm4, %v1840_v60, 0.0  ;;  %v1038_v44 = vmul.f32 1.442695, %v3157_v30  ;;  %v3713_v60 = vld [vmem:[#allocation18_spill] sm:$0xff] }
 0x1b1   :  { %1847 = vpow2.f32 %v974_v17  ;;  %v1158_v1 = vsel %vm695_vm4, %v1842_v25, 0.0  ;;  %v3170_v17 = vsub.f32 %v3711_v3, %v3053_v19  ;;  %v3175_v12 = vsub.f32 %v3713_v60, %v3075_v32  ;;  %v3715_v3 = vld [vmem:[#allocation17_spill] sm:$0xff] }
 0x1b2   :  { %1156 = vadd.xlane.f32.xlu2 %v1155_v63  ;;  %1108 = vadd.xlane.f32.xlu1 %v1107_v52  ;;  %v3706_v63 = vld [vmem:[#allocation13_spill] sm:$0xff] }
 0x1b3   :  { %1204 = vadd.xlane.f32.xlu0 %v1203_v57  ;;  %v3153_v52 = vsub.f32 %v3706_v63, %v3029_v8  ;;  %v3709_v57 = vld [vmem:[#allocation15_spill] sm:$0xff]  ;;  %3714 = vst [vmem:[#allocation14_spill] sm:$0xff] %v3175_v12  ;;  %v976_v19 = vmul.f32 1.442695, %v3170_v17  ;;  %v1008_v32 = vmul.f32 1.442695, %v3175_v12 }
 0x1b4   :  { %v3161_v31 = vsub.f32 %v3709_v57, %v3049_v6  ;;  %3712 = vst [vmem:[#allocation15_spill] sm:$0xff] %v3170_v17 }
 0x1b5   :  { %v3145_v43 = vpop.xlane.xlu2 %883  ;;  %v3147_v28 = vpop.xlane.xlu1 %835  ;;  %3707 = vst [vmem:[#allocation13_spill] sm:$0xff] %v3153_v52  ;;  %v1006_v8 = vmul.f32 1.442695, %v3153_v52 }
 0x1b6   :  { %v3149_v9 = vpop.xlane.xlu0 %742  ;;  %3710 = vst [vmem:[#allocation16_spill] sm:$0xff] %v3161_v31  ;;  %v1844_v63 = vpop.eup %1843  ;;  %v1070_v6 = vmul.f32 1.442695, %v3161_v31  ;;  %v3187_v31 = vsub.f32 %v3715_v3, %v3073_v41  ;;  %v3719_v41 = vld [vmem:[#allocation21_spill] sm:$0xff] }
 0x1b7   :  { %v1846_v50 = vpop.eup %1845  ;;  %1849 = vpow2.f32 %v1006_v8  ;;  %v3717_v8 = vld [vmem:[#allocation19_spill] sm:$0xff]  ;;  %v3199_v3 = vsub.f32 %v3719_v41, %v3099_v53 }
 0x1b8   :  { %v1848_v57 = vpop.eup %1847  ;;  %1851 = vpow2.f32 %v1038_v44  ;;  %3716 = vst [vmem:[#allocation18_spill] sm:$0xff] %v3187_v31  ;;  %v1254_v60 = vsel %vm695_vm4, %v1846_v50, 0.0  ;;  %v3194_v44 = vsub.f32 %v3717_v8, %v3077_v20 }
 0x1b9   :  { %1853 = vpow2.f32 %v1070_v6  ;;  %v1113_v52 = vsel %vm695_vm4, %v1848_v57, 0.0  ;;  %v1040_v6 = vmul.f32 1.442695, %v3187_v31  ;;  %3720 = vst [vmem:[#allocation19_spill] sm:$0xff] %v3199_v3  ;;  %v978_v53 = vmul.f32 1.442695, %v3199_v3 }
 0x1ba   :  { %1111 = vadd.xlane.f32.xlu2 %v1110_v10  ;;  %1252 = vadd.xlane.f32.xlu1 %v1251_v5  ;;  %1855 = vpow2.f32 %v976_v19  ;;  %3718 = vst [vmem:[#allocation17_spill] sm:$0xff] %v3194_v44  ;;  %v3721_v19 = vld [vmem:[#allocation20_spill] sm:$0xff] }
 0x1bb   :  { %1159 = vadd.xlane.f32.xlu0 %v1158_v1  ;;  %v1206_v1 = vsel %vm695_vm4, %v1844_v63, 0.0  ;;  %1857 = vpow2.f32 %v1008_v32  ;;  %v3205_v32 = vsub.f32 %v3721_v19, %v3097_v49  ;;  %v3724_v49 = vld [vmem:[#allocation23_spill] sm:$0xff] }
 0x1bd   :  { %v3177_v10 = vpop.xlane.xlu2 %838  ;;  %v3179_v5 = vpop.xlane.xlu1 %790  ;;  %3722 = vst [vmem:[#allocation21_spill] sm:$0xff] %v3205_v32 }
 0x1be   :  { %v3181_v25 = vpop.xlane.xlu0 %886  ;;  %v1850_v63 = vpop.eup %1849 }
 0x1bf   :  { %v1161_v20 = vsel %vm695_vm4, %v1850_v63, 0.0 }
 0x1c2   :  { %1255 = vadd.xlane.f32.xlu2 %v1254_v60  ;;  %1207 = vadd.xlane.f32.xlu1 %v1206_v1  ;;  %v1852_v60 = vpop.eup %1851 }
 0x1c3   :  { %1114 = vadd.xlane.f32.xlu0 %v1113_v52  ;;  %v1854_v57 = vpop.eup %1853  ;;  %v1072_v52 = vmul.f32 1.442695, %v3194_v44  ;;  %v1209_v8 = vsel %vm695_vm4, %v1852_v60, 0.0  ;;  %v3723_v44 = vld [vmem:[#allocation22_spill] sm:$0xff]  ;;  %v1010_v60 = vmul.f32 1.442695, %v3205_v32 }
 0x1c4   :  { %v1856_v41 = vpop.eup %1855 }
 0x1c5   :  { %v1130_v17 = vpop.xlane.xlu2 %1129  ;;  %v1082_v50 = vpop.xlane.xlu1 %1081 }
 0x1c6   :  { %1859 = vlog2.f32 %v1130_v17  ;;  %v1178_v1 = vpop.xlane.xlu0 %1177  ;;  %v1257_v17 = vsel %vm695_vm4, %v1854_v57, 0.0 }
 0x1c7   :  { %1861 = vlog2.f32 %v1082_v50  ;;  %v1858_v50 = vpop.eup %1857 }
 0x1c8   :  { %1863 = vlog2.f32 %v1178_v1  ;;  %v3212_v1 = vsub.f32 %v3723_v44, %v3101_v26 }
 0x1c9   :  { %1865 = vpow2.f32 %v1040_v6  ;;  %v3216_v6 = vsub.f32 %v3724_v49, %v3121_v61 }
 0x1ca   :  { %1210 = vadd.xlane.f32.xlu2 %v1209_v8  ;;  %1162 = vadd.xlane.f32.xlu1 %v1161_v20  ;;  %1867 = vpow2.f32 %v1072_v52  ;;  %v3725_v20 = vld [vmem:[#allocation27_spill] sm:$0xff]  ;;  %v1042_v12 = vmul.f32 1.442695, %v3212_v1 }
 0x1cb   :  { %1258 = vadd.xlane.f32.xlu0 %v1257_v17  ;;  %1869 = vpow2.f32 %v978_v53  ;;  %v3221_v8 = vsub.f32 %v3725_v20, %v3147_v28  ;;  %v980_v53 = vmul.f32 1.442695, %v3216_v6  ;;  %v1116_v28 = vsel %vm695_vm4, %v1856_v41, 0.0 }
 0x1cc   :  { %v1860_v63 = vpop.eup %1859 }
 0x1cd   :  { %v1862_v19 = vpop.eup %1861  ;;  %v1305_v57 = vmul.f32 0.6931472, %v1860_v63  ;;  %v1226_v3 = vpop.xlane.xlu1 %1225  ;;  %v1044_v63 = vmul.f32 1.442695, %v3221_v8 }
 0x1ce   :  { %v1085_v31 = vpop.xlane.xlu2 %1084  ;;  %v1864_v26 = vpop.eup %1863  ;;  %v1273_v44 = vmul.f32 0.6931472, %v1862_v19  ;;  %1871 = vlog2.f32 %v1226_v3 }
 0x1cf   :  { %v1133_v17 = vpop.xlane.xlu0 %1132  ;;  %v1866_v52 = vpop.eup %1865  ;;  %v1416_v61 = vsub.f32 %v2768_v4, %v1305_v57  ;;  %v1337_v49 = vmul.f32 0.6931472, %v1864_v26  ;;  %1873 = vlog2.f32 %v1085_v31  ;;  %v1164_v4 = vsel %vm695_vm4, %v1858_v50, 0.0  ;;  %v3726_v50 = vld [vmem:[#allocation24_spill] sm:$0xff] }
 0x1d0   :  { %v1400_v32 = vsub.f32 %v2780_v18, %v1273_v44  ;;  %1875 = vlog2.f32 %v1133_v17  ;;  %v1868_v31 = vpop.eup %1867  ;;  %v1212_v18 = vsel %vm695_vm4, %v1866_v52, 0.0  ;;  %v3246_v19 = vsub.f32 %v3726_v50, %v3125_v51 }
 0x1d1   :  { %1877 = vpow2.f32 %v1010_v60  ;;  %1480 = vst.msk [vmem:[%s3602_s5 + $0x80] sm:$0xff] %vm695_vm4, %v1416_v61  ;;  %v1432_v3 = vsub.f32 %v2784_v34, %v1337_v49  ;;  %v1870_v41 = vpop.eup %1869  ;;  %v3286_v50 = vsub.f32 %v2776_v16, %v3149_v9 }
 0x1d2   :  { %1464 = vst.msk [vmem:[%s3602_s5] sm:$0xff] %vm695_vm4, %v1400_v32  ;;  %1165 = vadd.xlane.f32.xlu2 %v1164_v4  ;;  %1117 = vadd.xlane.f32.xlu1 %v1116_v28  ;;  %1879 = vpow2.f32 %v1042_v12  ;;  %v3250_v32 = vsub.f32 %v2806_v36, %v3179_v5  ;;  %v1012_v51 = vmul.f32 1.442695, %v3246_v19  ;;  %v1260_v36 = vsel %vm695_vm4, %v1868_v31, 0.0  ;;  %v3727_v4 = vld [vmem:[#allocation25_spill] sm:$0xff] }
 0x1d3   :  { %1496 = vst.msk [vmem:[%s3602_s5 + $0x100] sm:$0xff] %vm695_vm4, %v1432_v3  ;;  %1213 = vadd.xlane.f32.xlu0 %v1212_v18  ;;  %1881 = vpow2.f32 %v980_v53  ;;  %v3258_v28 = vsub.f32 %v2802_v7, %v3177_v10  ;;  %v1119_v3 = vsel %vm695_vm4, %v1870_v41, 0.0  ;;  %v3274_v31 = vsub.f32 %v3727_v4, %v3123_v62  ;;  %v3728_v18 = vld [vmem:[#allocation26_spill] sm:$0xff] }
 0x1d4   :  { %v1872_v34 = vpop.eup %1871  ;;  %1883 = vpow2.f32 %v1044_v63  ;;  %v1014_v63 = vmul.f32 1.442695, %v3250_v32  ;;  %v3282_v41 = vsub.f32 %v3728_v18, %v3145_v43 }
 0x1d5   :  { %v1874_v60 = vpop.eup %1873  ;;  %v1369_v20 = vmul.f32 0.6931472, %v1872_v34  ;;  %v1181_v57 = vpop.xlane.xlu1 %1180  ;;  %v1046_v62 = vmul.f32 1.442695, %v3258_v28 }
 0x1d6   :  { %v1229_v12 = vpop.xlane.xlu2 %1228  ;;  %v1876_v26 = vpop.eup %1875  ;;  %v1275_v44 = vmul.f32 0.6931472, %v1874_v60 }
 0x1d7   :  { %1885 = vlog2.f32 %v1229_v12  ;;  %v1088_v17 = vpop.xlane.xlu0 %1087  ;;  %v1878_v52 = vpop.eup %1877  ;;  %v1448_v61 = vsub.f32 %v2810_v14, %v1369_v20  ;;  %v1307_v49 = vmul.f32 0.6931472, %v1876_v26 }
 0x1d8   :  { %1887 = vlog2.f32 %v1181_v57  ;;  %v1401_v53 = vsub.f32 %v2818_v39, %v1275_v44  ;;  %v1880_v5 = vpop.eup %1879  ;;  %v1167_v7 = vsel %vm695_vm4, %v1878_v52, 0.0 }
 0x1d9   :  { %1889 = vlog2.f32 %v1088_v17  ;;  %1512 = vst.msk [vmem:[%s3602_s5 + $0x180] sm:$0xff] %vm695_vm4, %v1448_v61  ;;  %v1417_v14 = vsub.f32 %v2822_v38, %v1307_v49  ;;  %v1882_v39 = vpop.eup %1881  ;;  %v1074_v17 = vmul.f32 1.442695, %v3274_v31  ;;  %v1076_v61 = vmul.f32 1.442695, %v3282_v41 }
 0x1da   :  { %1465 = vst.msk [vmem:[%s3602_s5 + $0x8] sm:$0xff] %vm695_vm4, %v1401_v53  ;;  %1120 = vadd.xlane.f32.xlu2 %v1119_v3  ;;  %1261 = vadd.xlane.f32.xlu1 %v1260_v36  ;;  %v1884_v10 = vpop.eup %1883  ;;  %1891 = vpow2.f32 %v1012_v51  ;;  %v1215_v9 = vsel %vm695_vm4, %v1880_v5, 0.0  ;;  %v982_v49 = vmul.f32 1.442695, %v3286_v50 }
 0x1db   :  { %1481 = vst.msk [vmem:[%s3602_s5 + $0x88] sm:$0xff] %vm695_vm4, %v1417_v14  ;;  %1168 = vadd.xlane.f32.xlu0 %v1167_v7  ;;  %1893 = vpow2.f32 %v1014_v63  ;;  %v3729_v63 = vld [vmem:[#allocation28_spill] sm:$0xff] }
 0x1dc   :  { %v3312_v14 = vsub.f32 %v3729_v63, %v3181_v25 }
 0x1dd   :  { %v1886_v38 = vpop.eup %1885  ;;  %v1136_v12 = vpop.xlane.xlu1 %1135 }
 0x1de   :  { %v1888_v34 = vpop.eup %1887  ;;  %v1371_v60 = vmul.f32 0.6931472, %v1886_v38  ;;  %v1184_v20 = vpop.xlane.xlu2 %1183 }
 0x1df   :  { %v1890_v57 = vpop.eup %1889  ;;  %v1339_v26 = vmul.f32 0.6931472, %v1888_v34  ;;  %1895 = vlog2.f32 %v1184_v20  ;;  %v1232_v44 = vpop.xlane.xlu0 %1231 }
 0x1e0   :  { %v1449_v43 = vsub.f32 %v2841_v55, %v1371_v60  ;;  %v1277_v52 = vmul.f32 0.6931472, %v1890_v57  ;;  %1897 = vlog2.f32 %v1136_v12  ;;  %v1218_v55 = vsel %vm695_vm4, %v1884_v10, 0.0  ;;  %v1892_v53 = vpop.eup %1891 }
 0x1e1   :  { %v1433_v16 = vsub.f32 %v2845_v2, %v1339_v26  ;;  %1899 = vlog2.f32 %v1232_v44  ;;  %v1122_v2 = vsel %vm695_vm4, %v1882_v39, 0.0  ;;  %v1894_v36 = vpop.eup %1893  ;;  %v1078_v12 = vmul.f32 1.442695, %v3312_v14 }
 0x1e2   :  { %1901 = vpow2.f32 %v1046_v62  ;;  %1513 = vst.msk [vmem:[%s3602_s5 + $0x188] sm:$0xff] %vm695_vm4, %v1449_v43  ;;  %v1402_v51 = vsub.f32 %v2849_v47, %v1277_v52  ;;  %1219 = vadd.xlane.f32.xlu2 %v1218_v55  ;;  %1216 = vadd.xlane.f32.xlu1 %v1215_v9  ;;  %v1173_v57 = vsel %vm695_vm4, %v1894_v36, 0.0  ;;  %v1170_v26 = vsel %vm695_vm4, %v1892_v53, 0.0 }
 0x1e3   :  { %1497 = vst.msk [vmem:[%s3602_s5 + $0x108] sm:$0xff] %vm695_vm4, %v1433_v16  ;;  %1903 = vpow2.f32 %v1074_v17  ;;  %1123 = vadd.xlane.f32.xlu0 %v1122_v2 }
 0x1e4   :  { %1466 = vst.msk [vmem:[%s3602_s5 + $0x10] sm:$0xff] %vm695_vm4, %v1402_v51  ;;  %1905 = vpow2.f32 %v1076_v61 }
 0x1e5   :  { %v1896_v47 = vpop.eup %1895  ;;  %1907 = vpow2.f32 %v982_v49  ;;  %v1091_v10 = vpop.xlane.xlu1 %1090 }
 0x1e6   :  { %v1898_v5 = vpop.eup %1897  ;;  %v1341_v3 = vmul.f32 0.6931472, %v1896_v47  ;;  %v1139_v7 = vpop.xlane.xlu2 %1138 }
 0x1e7   :  { %v1900_v39 = vpop.eup %1899  ;;  %v1309_v4 = vmul.f32 0.6931472, %v1898_v5  ;;  %1909 = vlog2.f32 %v1139_v7  ;;  %v1187_v38 = vpop.xlane.xlu0 %1186 }
 0x1e8   :  { %v1902_v18 = vpop.eup %1901  ;;  %v1434_v34 = vsub.f32 %v2865_v24, %v1341_v3  ;;  %v1373_v62 = vmul.f32 0.6931472, %v1900_v39  ;;  %1911 = vlog2.f32 %v1091_v10 }
 0x1e9   :  { %v1418_v60 = vsub.f32 %v2869_v42, %v1309_v4  ;;  %1913 = vlog2.f32 %v1187_v38  ;;  %v1904_v20 = vpop.eup %1903  ;;  %v1221_v42 = vsel %vm695_vm4, %v1902_v18, 0.0 }
 0x1ea   :  { %1498 = vst.msk [vmem:[%s3602_s5 + $0x110] sm:$0xff] %vm695_vm4, %v1434_v34  ;;  %v1450_v25 = vsub.f32 %v2873_v35, %v1373_v62  ;;  %v1906_v24 = vpop.eup %1905  ;;  %1174 = vadd.xlane.f32.xlu2 %v1173_v57  ;;  %1171 = vadd.xlane.f32.xlu1 %v1170_v26  ;;  %1915 = vpow2.f32 %v1078_v12  ;;  %v1263_v36 = vsel %vm695_vm4, %v1904_v20, 0.0 }
 0x1eb   :  { %1482 = vst.msk [vmem:[%s3602_s5 + $0x90] sm:$0xff] %vm695_vm4, %v1418_v60  ;;  %v1908_v44 = vpop.eup %1907  ;;  %1222 = vadd.xlane.f32.xlu0 %v1221_v42 }
 0x1ec   :  { %1514 = vst.msk [vmem:[%s3602_s5 + $0x190] sm:$0xff] %vm695_vm4, %v1450_v25  ;;  %v1125_v47 = vsel %vm695_vm4, %v1908_v44, 0.0 }
 0x1ed   :  { %v1910_v35 = vpop.eup %1909  ;;  %v1235_v61 = vpop.xlane.xlu1 %1234 }
 0x1ee   :  { %v1912_v17 = vpop.eup %1911  ;;  %v1311_v43 = vmul.f32 0.6931472, %v1910_v35  ;;  %v1094_v52 = vpop.xlane.xlu2 %1093 }
 0x1ef   :  { %v1914_v16 = vpop.eup %1913  ;;  %v1279_v9 = vmul.f32 0.6931472, %v1912_v17  ;;  %1917 = vlog2.f32 %v1094_v52  ;;  %v1142_v49 = vpop.xlane.xlu0 %1141 }
 0x1f0   :  { %v1419_v51 = vsub.f32 %v2893_v54, %v1311_v43  ;;  %v1343_v55 = vmul.f32 0.6931472, %v1914_v16  ;;  %1919 = vlog2.f32 %v1235_v61  ;;  %v1916_v54 = vpop.eup %1915 }
 0x1f1   :  { %v1403_v53 = vsub.f32 %v2889_v48, %v1279_v9  ;;  %1921 = vlog2.f32 %v1142_v49  ;;  %v1266_v48 = vsel %vm695_vm4, %v1906_v24, 0.0  ;;  %v1269_v60 = vsel %vm695_vm4, %v1916_v54, 0.0 }
 0x1f2   :  { %1483 = vst.msk [vmem:[%s3602_s5 + $0x98] sm:$0xff] %vm695_vm4, %v1419_v51  ;;  %v1435_v2 = vsub.f32 %v2897_v29, %v1343_v55  ;;  %1264 = vadd.xlane.f32.xlu2 %v1263_v36  ;;  %1126 = vadd.xlane.f32.xlu1 %v1125_v47 }
 0x1f3   :  { %1467 = vst.msk [vmem:[%s3602_s5 + $0x18] sm:$0xff] %vm695_vm4, %v1403_v53  ;;  %1267 = vadd.xlane.f32.xlu0 %v1266_v48 }
 0x1f4   :  { %1499 = vst.msk [vmem:[%s3602_s5 + $0x118] sm:$0xff] %vm695_vm4, %v1435_v2 }
 0x1f5   :  { %v1918_v29 = vpop.eup %1917  ;;  %v1190_v7 = vpop.xlane.xlu1 %1189 }
 0x1f6   :  { %v1920_v5 = vpop.eup %1919  ;;  %v1281_v63 = vmul.f32 0.6931472, %v1918_v29  ;;  %v1238_v3 = vpop.xlane.xlu2 %1237 }
 0x1f7   :  { %v1922_v10 = vpop.eup %1921  ;;  %v1375_v39 = vmul.f32 0.6931472, %v1920_v5  ;;  %1923 = vlog2.f32 %v1238_v3  ;;  %v1097_v4 = vpop.xlane.xlu0 %1096 }
 0x1f8   :  { %v1404_v38 = vsub.f32 %v2913_v21, %v1281_v63  ;;  %v1313_v18 = vmul.f32 0.6931472, %v1922_v10  ;;  %1925 = vlog2.f32 %v1190_v7 }
 0x1f9   :  { %v1451_v34 = vsub.f32 %v2917_v40, %v1375_v39  ;;  %1927 = vlog2.f32 %v1097_v4 }
 0x1fa   :  { %1468 = vst.msk [vmem:[%s3602_s5 + $0x20] sm:$0xff] %vm695_vm4, %v1404_v38  ;;  %v1420_v62 = vsub.f32 %v2921_v46, %v1313_v18  ;;  %1270 = vadd.xlane.f32.xlu1 %v1269_v60 }
 0x1fb   :  { %1515 = vst.msk [vmem:[%s3602_s5 + $0x198] sm:$0xff] %vm695_vm4, %v1451_v34 }
 0x1fc   :  { %1484 = vst.msk [vmem:[%s3602_s5 + $0xa0] sm:$0xff] %vm695_vm4, %v1420_v62 }
 0x1fd   :  { %v1924_v21 = vpop.eup %1923  ;;  %v1145_v25 = vpop.xlane.xlu1 %1144 }
 0x1fe   :  { %v1926_v40 = vpop.eup %1925  ;;  %v1377_v20 = vmul.f32 0.6931472, %v1924_v21  ;;  %v1193_v12 = vpop.xlane.xlu2 %1192 }
 0x1ff   :  { %v1928_v57 = vpop.eup %1927  ;;  %v1345_v46 = vmul.f32 0.6931472, %v1926_v40  ;;  %1929 = vlog2.f32 %v1193_v12  ;;  %v1241_v26 = vpop.xlane.xlu0 %1240 }
 0x200   :  { %v1452_v24 = vsub.f32 %v2941_v23, %v1377_v20  ;;  %v1283_v42 = vmul.f32 0.6931472, %v1928_v57  ;;  %1931 = vlog2.f32 %v1145_v25 }
 0x201   :  { %v1436_v44 = vsub.f32 %v2937_v33, %v1345_v46  ;;  %1933 = vlog2.f32 %v1241_v26  ;;  %v3730_v46 = vld [vmem:[#allocation29_spill] sm:$0xff] }
 0x202   :  { %1516 = vst.msk [vmem:[%s3602_s5 + $0x1a0] sm:$0xff] %vm695_vm4, %v1452_v24  ;;  %v1405_v35 = vsub.f32 %v2945_v59, %v1283_v42  ;;  %v3731_v24 = vld [vmem:[#allocation30_spill] sm:$0xff] }
 0x203   :  { %1500 = vst.msk [vmem:[%s3602_s5 + $0x120] sm:$0xff] %vm695_vm4, %v1436_v44 }
 0x204   :  { %1469 = vst.msk [vmem:[%s3602_s5 + $0x28] sm:$0xff] %vm695_vm4, %v1405_v35 }
 0x205   :  { %v1930_v23 = vpop.eup %1929  ;;  %v1100_v52 = vpop.xlane.xlu1 %1099 }
 0x206   :  { %v1932_v33 = vpop.eup %1931  ;;  %v1347_v17 = vmul.f32 0.6931472, %v1930_v23  ;;  %v1148_v43 = vpop.xlane.xlu2 %1147 }
 0x207   :  { %v1934_v61 = vpop.eup %1933  ;;  %v1315_v16 = vmul.f32 0.6931472, %v1932_v33  ;;  %1935 = vlog2.f32 %v1148_v43  ;;  %v1196_v9 = vpop.xlane.xlu0 %1195 }
 0x208   :  { %v1437_v59 = vsub.f32 %v2965_v37, %v1347_v17  ;;  %v1379_v49 = vmul.f32 0.6931472, %v1934_v61  ;;  %1937 = vlog2.f32 %v1100_v52  ;;  %v3732_v61 = vld [vmem:[#allocation3_spill] sm:$0xff] }
 0x209   :  { %v1421_v51 = vsub.f32 %v2961_v45, %v1315_v16  ;;  %1939 = vlog2.f32 %v1196_v9 }
 0x20a   :  { %1501 = vst.msk [vmem:[%s3602_s5 + $0x128] sm:$0xff] %vm695_vm4, %v1437_v59  ;;  %v1453_v55 = vsub.f32 %v2969_v15, %v1379_v49  ;;  %v3733_v59 = vld [vmem:[#allocation31_spill] sm:$0xff] }
 0x20b   :  { %1485 = vst.msk [vmem:[%s3602_s5 + $0xa8] sm:$0xff] %vm695_vm4, %v1421_v51  ;;  %v3734_v51 = vld [vmem:[#allocation2_spill] sm:$0xff] }
 0x20c   :  { %1517 = vst.msk [vmem:[%s3602_s5 + $0x1a8] sm:$0xff] %vm695_vm4, %v1453_v55 }
 0x20d   :  { %v1936_v37 = vpop.eup %1935  ;;  %v1244_v36 = vpop.xlane.xlu1 %1243 }
 0x20e   :  { %v1938_v45 = vpop.eup %1937  ;;  %v1317_v53 = vmul.f32 0.6931472, %v1936_v37  ;;  %v1103_v2 = vpop.xlane.xlu2 %1102 }
 0x20f   :  { %v1940_v47 = vpop.eup %1939  ;;  %v1285_v48 = vmul.f32 0.6931472, %v1938_v45  ;;  %1941 = vlog2.f32 %v1103_v2  ;;  %v1151_v54 = vpop.xlane.xlu0 %1150 }
 0x210   :  { %v1422_v15 = vsub.f32 %v2989_v58, %v1317_v53  ;;  %v1349_v29 = vmul.f32 0.6931472, %v1940_v47  ;;  %1943 = vlog2.f32 %v1244_v36 }
 0x211   :  { %v1406_v5 = vsub.f32 %v2985_v0, %v1285_v48  ;;  %1945 = vlog2.f32 %v1151_v54 }
 0x212   :  { %1486 = vst.msk [vmem:[%s3602_s5 + $0xb0] sm:$0xff] %vm695_vm4, %v1422_v15  ;;  %v1438_v63 = vsub.f32 %v2993_v27, %v1349_v29  ;;  %v3735_v15 = vld [vmem:[#allocation6_spill] sm:$0xff] }
 0x213   :  { %1470 = vst.msk [vmem:[%s3602_s5 + $0x30] sm:$0xff] %vm695_vm4, %v1406_v5 }
 0x214   :  { %1502 = vst.msk [vmem:[%s3602_s5 + $0x130] sm:$0xff] %vm695_vm4, %v1438_v63  ;;  %v3736_v63 = vld [vmem:[#allocation4_spill] sm:$0xff] }
 0x215   :  { %v1942_v58 = vpop.eup %1941  ;;  %v1199_v10 = vpop.xlane.xlu1 %1198 }
 0x216   :  { %v1944_v0 = vpop.eup %1943  ;;  %v1287_v3 = vmul.f32 0.6931472, %v1942_v58  ;;  %v1247_v7 = vpop.xlane.xlu2 %1246 }
 0x217   :  { %v1946_v39 = vpop.eup %1945  ;;  %v1381_v4 = vmul.f32 0.6931472, %v1944_v0  ;;  %1947 = vlog2.f32 %v1247_v7  ;;  %v1106_v38 = vpop.xlane.xlu0 %1105  ;;  %v3737_v0 = vld [vmem:[#allocation5_spill] sm:$0xff] }
 0x218   :  { %v1407_v27 = vsub.f32 %v3013_v22, %v1287_v3  ;;  %v1319_v18 = vmul.f32 0.6931472, %v1946_v39  ;;  %1949 = vlog2.f32 %v1199_v10 }
 0x219   :  { %v1454_v34 = vsub.f32 %v3009_v56, %v1381_v4  ;;  %1951 = vlog2.f32 %v1106_v38 }
 0x21a   :  { %1471 = vst.msk [vmem:[%s3602_s5 + $0x38] sm:$0xff] %vm695_vm4, %v1407_v27  ;;  %v1423_v62 = vsub.f32 %v3017_v11, %v1319_v18 }
 0x21b   :  { %1518 = vst.msk [vmem:[%s3602_s5 + $0x1b0] sm:$0xff] %vm695_vm4, %v1454_v34 }
 0x21c   :  { %1487 = vst.msk [vmem:[%s3602_s5 + $0xb8] sm:$0xff] %vm695_vm4, %v1423_v62  ;;  %v3738_v62 = vld [vmem:[#allocation9_spill] sm:$0xff] }
 0x21d   :  { %v1948_v22 = vpop.eup %1947  ;;  %v1154_v40 = vpop.xlane.xlu1 %1153 }
 0x21e   :  { %v1950_v56 = vpop.eup %1949  ;;  %v1383_v60 = vmul.f32 0.6931472, %v1948_v22  ;;  %v1202_v21 = vpop.xlane.xlu2 %1201 }
 0x21f   :  { %v1952_v20 = vpop.eup %1951  ;;  %v1351_v12 = vmul.f32 0.6931472, %v1950_v56  ;;  %1953 = vlog2.f32 %v1202_v21  ;;  %v1250_v25 = vpop.xlane.xlu0 %1249 }
 0x220   :  { %v1455_v11 = vsub.f32 %v3037_v13, %v1383_v60  ;;  %v1289_v57 = vmul.f32 0.6931472, %v1952_v20  ;;  %1955 = vlog2.f32 %v1154_v40  ;;  %v3739_v60 = vld [vmem:[#allocation7_spill] sm:$0xff]  ;;  %v3740_v40 = vld [vmem:[#allocation8_spill] sm:$0xff] }
 0x221   :  { %v1439_v26 = vsub.f32 %v3730_v46, %v1351_v12  ;;  %1957 = vlog2.f32 %v1250_v25 }
 0x222   :  { %1519 = vst.msk [vmem:[%s3602_s5 + $0x1b8] sm:$0xff] %vm695_vm4, %v1455_v11  ;;  %v1408_v42 = vsub.f32 %v3731_v24, %v1289_v57 }
 0x223   :  { %1503 = vst.msk [vmem:[%s3602_s5 + $0x138] sm:$0xff] %vm695_vm4, %v1439_v26 }
 0x224   :  { %1472 = vst.msk [vmem:[%s3602_s5 + $0x40] sm:$0xff] %vm695_vm4, %v1408_v42 }
 0x225   :  { %v1954_v13 = vpop.eup %1953  ;;  %v1109_v33 = vpop.xlane.xlu1 %1108 }
 0x226   :  { %v1956_v44 = vpop.eup %1955  ;;  %v1353_v35 = vmul.f32 0.6931472, %v1954_v13  ;;  %v1157_v23 = vpop.xlane.xlu2 %1156  ;;  %v3741_v13 = vld [vmem:[#allocation11_spill] sm:$0xff] }
 0x227   :  { %v1958_v17 = vpop.eup %1957  ;;  %v1321_v43 = vmul.f32 0.6931472, %v1956_v44  ;;  %1959 = vlog2.f32 %v1157_v23  ;;  %v1205_v52 = vpop.xlane.xlu0 %1204  ;;  %v3742_v23 = vld [vmem:[#allocation10_spill] sm:$0xff] }
 0x228   :  { %v1440_v16 = vsub.f32 %v3732_v61, %v1353_v35  ;;  %v1385_v9 = vmul.f32 0.6931472, %v1958_v17  ;;  %1961 = vlog2.f32 %v1109_v33  ;;  %v3743_v17 = vld [vmem:[#allocation12_spill] sm:$0xff] }
 0x229   :  { %v1424_v49 = vsub.f32 %v3733_v59, %v1321_v43  ;;  %1963 = vlog2.f32 %v1205_v52 }
 0x22a   :  { %1504 = vst.msk [vmem:[%s3602_s5 + $0x140] sm:$0xff] %vm695_vm4, %v1440_v16  ;;  %v1456_v55 = vsub.f32 %v3734_v51, %v1385_v9 }
 0x22b   :  { %1488 = vst.msk [vmem:[%s3602_s5 + $0xc0] sm:$0xff] %vm695_vm4, %v1424_v49 }
 0x22c   :  { %1520 = vst.msk [vmem:[%s3602_s5 + $0x1c0] sm:$0xff] %vm695_vm4, %v1456_v55 }
 0x22d   :  { %v1960_v37 = vpop.eup %1959  ;;  %v1253_v36 = vpop.xlane.xlu1 %1252 }
 0x22e   :  { %v1962_v45 = vpop.eup %1961  ;;  %v1323_v53 = vmul.f32 0.6931472, %v1960_v37  ;;  %v1112_v2 = vpop.xlane.xlu2 %1111 }
 0x22f   :  { %v1964_v47 = vpop.eup %1963  ;;  %v1291_v48 = vmul.f32 0.6931472, %v1962_v45  ;;  %1965 = vlog2.f32 %v1112_v2  ;;  %v1160_v54 = vpop.xlane.xlu0 %1159 }
 0x230   :  { %v1425_v29 = vsub.f32 %v3735_v15, %v1323_v53  ;;  %v1355_v5 = vmul.f32 0.6931472, %v1964_v47  ;;  %1967 = vlog2.f32 %v1253_v36  ;;  %v3744_v53 = vld [vmem:[#allocation13_spill] sm:$0xff]  ;;  %v3745_v36 = vld [vmem:[#allocation16_spill] sm:$0xff] }
 0x231   :  { %v1409_v58 = vsub.f32 %v3736_v63, %v1291_v48  ;;  %1969 = vlog2.f32 %v1160_v54 }
 0x232   :  { %1489 = vst.msk [vmem:[%s3602_s5 + $0xc8] sm:$0xff] %vm695_vm4, %v1425_v29  ;;  %v1441_v3 = vsub.f32 %v3737_v0, %v1355_v5  ;;  %v3746_v0 = vld [vmem:[#allocation14_spill] sm:$0xff] }
 0x233   :  { %1473 = vst.msk [vmem:[%s3602_s5 + $0x48] sm:$0xff] %vm695_vm4, %v1409_v58 }
 0x234   :  { %1505 = vst.msk [vmem:[%s3602_s5 + $0x148] sm:$0xff] %vm695_vm4, %v1441_v3 }
 0x235   :  { %v1966_v7 = vpop.eup %1965  ;;  %v1208_v38 = vpop.xlane.xlu1 %1207 }
 0x236   :  { %v1968_v10 = vpop.eup %1967  ;;  %v1293_v39 = vmul.f32 0.6931472, %v1966_v7  ;;  %v1256_v4 = vpop.xlane.xlu2 %1255 }
 0x237   :  { %v1970_v27 = vpop.eup %1969  ;;  %v1387_v18 = vmul.f32 0.6931472, %v1968_v10  ;;  %1971 = vlog2.f32 %v1256_v4  ;;  %v1115_v34 = vpop.xlane.xlu0 %1114  ;;  %v3747_v10 = vld [vmem:[#allocation15_spill] sm:$0xff]  ;;  %v3748_v4 = vld [vmem:[#allocation18_spill] sm:$0xff] }
 0x238   :  { %v1410_v22 = vsub.f32 %v3738_v62, %v1293_v39  ;;  %v1325_v56 = vmul.f32 0.6931472, %v1970_v27  ;;  %1973 = vlog2.f32 %v1208_v38 }
 0x239   :  { %v1457_v21 = vsub.f32 %v3739_v60, %v1387_v18  ;;  %1975 = vlog2.f32 %v1115_v34 }
 0x23a   :  { %1474 = vst.msk [vmem:[%s3602_s5 + $0x50] sm:$0xff] %vm695_vm4, %v1410_v22  ;;  %v1426_v20 = vsub.f32 %v3740_v40, %v1325_v56  ;;  %v3749_v40 = vld [vmem:[#allocation19_spill] sm:$0xff] }
 0x23b   :  { %1521 = vst.msk [vmem:[%s3602_s5 + $0x1c8] sm:$0xff] %vm695_vm4, %v1457_v21 }
 0x23c   :  { %1490 = vst.msk [vmem:[%s3602_s5 + $0xd0] sm:$0xff] %vm695_vm4, %v1426_v20 }
 0x23d   :  { %v1972_v12 = vpop.eup %1971  ;;  %v1163_v46 = vpop.xlane.xlu1 %1162 }
 0x23e   :  { %v1974_v25 = vpop.eup %1973  ;;  %v1389_v11 = vmul.f32 0.6931472, %v1972_v12  ;;  %v1211_v57 = vpop.xlane.xlu2 %1210 }
 0x23f   :  { %v1976_v26 = vpop.eup %1975  ;;  %v1357_v24 = vmul.f32 0.6931472, %v1974_v25  ;;  %1977 = vlog2.f32 %v1211_v57  ;;  %v1259_v42 = vpop.xlane.xlu0 %1258  ;;  %v3750_v25 = vld [vmem:[#allocation17_spill] sm:$0xff] }
 0x240   :  { %v1458_v44 = vsub.f32 %v3741_v13, %v1389_v11  ;;  %v1295_v35 = vmul.f32 0.6931472, %v1976_v26  ;;  %1979 = vlog2.f32 %v1163_v46  ;;  %v3751_v57 = vld [vmem:[#allocation21_spill] sm:$0xff] }
 0x241   :  { %v1442_v33 = vsub.f32 %v3742_v23, %v1357_v24  ;;  %1981 = vlog2.f32 %v1259_v42 }
 0x242   :  { %1522 = vst.msk [vmem:[%s3602_s5 + $0x1d0] sm:$0xff] %vm695_vm4, %v1458_v44  ;;  %v1411_v43 = vsub.f32 %v3743_v17, %v1295_v35 }
 0x243   :  { %1506 = vst.msk [vmem:[%s3602_s5 + $0x150] sm:$0xff] %vm695_vm4, %v1442_v33 }
 0x244   :  { %1475 = vst.msk [vmem:[%s3602_s5 + $0x58] sm:$0xff] %vm695_vm4, %v1411_v43 }
 0x245   :  { %v1978_v52 = vpop.eup %1977  ;;  %v1118_v59 = vpop.xlane.xlu1 %1117 }
 0x246   :  { %v1980_v61 = vpop.eup %1979  ;;  %v1359_v16 = vmul.f32 0.6931472, %v1978_v52  ;;  %v1166_v9 = vpop.xlane.xlu2 %1165 }
 0x247   :  { %v1982_v49 = vpop.eup %1981  ;;  %v1327_v51 = vmul.f32 0.6931472, %v1980_v61  ;;  %1983 = vlog2.f32 %v1166_v9  ;;  %v1214_v55 = vpop.xlane.xlu0 %1213 }
 0x248   :  { %v1443_v37 = vsub.f32 %v3157_v30, %v1359_v16  ;;  %v1391_v45 = vmul.f32 0.6931472, %v1982_v49  ;;  %1985 = vlog2.f32 %v1118_v59 }
 0x249   :  { %v1427_v2 = vsub.f32 %v3744_v53, %v1327_v51  ;;  %1987 = vlog2.f32 %v1214_v55 }
 0x24a   :  { %1507 = vst.msk [vmem:[%s3602_s5 + $0x158] sm:$0xff] %vm695_vm4, %v1443_v37  ;;  %v1459_v47 = vsub.f32 %v3745_v36, %v1391_v45 }
 0x24b   :  { %1491 = vst.msk [vmem:[%s3602_s5 + $0xd8] sm:$0xff] %vm695_vm4, %v1427_v2 }
 0x24c   :  { %1523 = vst.msk [vmem:[%s3602_s5 + $0x1d8] sm:$0xff] %vm695_vm4, %v1459_v47 }
 0x24d   :  { %v1984_v30 = vpop.eup %1983  ;;  %v1262_v29 = vpop.xlane.xlu1 %1261 }
 0x24e   :  { %v1986_v48 = vpop.eup %1985  ;;  %v1329_v54 = vmul.f32 0.6931472, %v1984_v30  ;;  %v1121_v15 = vpop.xlane.xlu2 %1120 }
 0x24f   :  { %v1988_v5 = vpop.eup %1987  ;;  %v1297_v63 = vmul.f32 0.6931472, %v1986_v48  ;;  %1989 = vlog2.f32 %v1121_v15  ;;  %v1169_v58 = vpop.xlane.xlu0 %1168 }
 0x250   :  { %v1428_v3 = vsub.f32 %v3746_v0, %v1329_v54  ;;  %v1361_v7 = vmul.f32 0.6931472, %v1988_v5  ;;  %1991 = vlog2.f32 %v1262_v29 }
 0x251   :  { %v1412_v39 = vsub.f32 %v3747_v10, %v1297_v63  ;;  %1993 = vlog2.f32 %v1169_v58 }
 0x252   :  { %1492 = vst.msk [vmem:[%s3602_s5 + $0xe0] sm:$0xff] %vm695_vm4, %v1428_v3  ;;  %v1444_v38 = vsub.f32 %v3748_v4, %v1361_v7 }
 0x253   :  { %1476 = vst.msk [vmem:[%s3602_s5 + $0x60] sm:$0xff] %vm695_vm4, %v1412_v39 }
 0x254   :  { %1508 = vst.msk [vmem:[%s3602_s5 + $0x160] sm:$0xff] %vm695_vm4, %v1444_v38 }
 0x255   :  { %v1990_v27 = vpop.eup %1989  ;;  %v1217_v22 = vpop.xlane.xlu1 %1216 }
 0x256   :  { %v1992_v18 = vpop.eup %1991  ;;  %v1299_v34 = vmul.f32 0.6931472, %v1990_v27  ;;  %v1220_v62 = vpop.xlane.xlu2 %1219 }
 0x257   :  { %v1994_v56 = vpop.eup %1993  ;;  %v1393_v60 = vmul.f32 0.6931472, %v1992_v18  ;;  %1995 = vlog2.f32 %v1220_v62  ;;  %v1124_v21 = vpop.xlane.xlu0 %1123 }
 0x258   :  { %v1413_v20 = vsub.f32 %v3749_v40, %v1299_v34  ;;  %v1331_v12 = vmul.f32 0.6931472, %v1994_v56  ;;  %1997 = vlog2.f32 %v1217_v22 }
 0x259   :  { %v1460_v11 = vsub.f32 %v3750_v25, %v1393_v60  ;;  %1999 = vlog2.f32 %v1124_v21 }
 0x25a   :  { %1477 = vst.msk [vmem:[%s3602_s5 + $0x68] sm:$0xff] %vm695_vm4, %v1413_v20  ;;  %v1429_v46 = vsub.f32 %v3751_v57, %v1331_v12 }
 0x25b   :  { %1524 = vst.msk [vmem:[%s3602_s5 + $0x1e0] sm:$0xff] %vm695_vm4, %v1460_v11 }
 0x25c   :  { %1493 = vst.msk [vmem:[%s3602_s5 + $0xe8] sm:$0xff] %vm695_vm4, %v1429_v46 }
 0x25d   :  { %v1996_v26 = vpop.eup %1995  ;;  %v1172_v44 = vpop.xlane.xlu1 %1171 }
 0x25e   :  { %v1998_v24 = vpop.eup %1997  ;;  %v1365_v42 = vmul.f32 0.6931472, %v1996_v26  ;;  %v1175_v13 = vpop.xlane.xlu2 %1174 }
 0x25f   :  { %v2000_v35 = vpop.eup %1999  ;;  %v1363_v23 = vmul.f32 0.6931472, %v1998_v24  ;;  %2001 = vlog2.f32 %v1175_v13  ;;  %v1223_v33 = vpop.xlane.xlu0 %1222 }
 0x260   :  { %v1446_v17 = vsub.f32 %v3221_v8, %v1365_v42  ;;  %v1301_v43 = vmul.f32 0.6931472, %v2000_v35  ;;  %2003 = vlog2.f32 %v1172_v44 }
 0x261   :  { %v1445_v52 = vsub.f32 %v3212_v1, %v1363_v23  ;;  %2005 = vlog2.f32 %v1223_v33 }
 0x262   :  { %1510 = vst.msk [vmem:[%s3602_s5 + $0x170] sm:$0xff] %vm695_vm4, %v1446_v17  ;;  %v1414_v61 = vsub.f32 %v3216_v6, %v1301_v43 }
 0x263   :  { %1509 = vst.msk [vmem:[%s3602_s5 + $0x168] sm:$0xff] %vm695_vm4, %v1445_v52 }
 0x264   :  { %1478 = vst.msk [vmem:[%s3602_s5 + $0x70] sm:$0xff] %vm695_vm4, %v1414_v61 }
 0x265   :  { %v2002_v8 = vpop.eup %2001  ;;  %v1127_v59 = vpop.xlane.xlu1 %1126 }
 0x266   :  { %v2004_v1 = vpop.eup %2003  ;;  %v1335_v16 = vmul.f32 0.6931472, %v2002_v8  ;;  %v1265_v9 = vpop.xlane.xlu2 %1264 }
 0x267   :  { %v2006_v49 = vpop.eup %2005  ;;  %v1333_v51 = vmul.f32 0.6931472, %v2004_v1  ;;  %2007 = vlog2.f32 %v1265_v9  ;;  %v1268_v55 = vpop.xlane.xlu0 %1267 }
 0x268   :  { %v1431_v6 = vsub.f32 %v3250_v32, %v1335_v16  ;;  %v1367_v37 = vmul.f32 0.6931472, %v2006_v49  ;;  %2009 = vlog2.f32 %v1127_v59 }
 0x269   :  { %v1430_v45 = vsub.f32 %v3246_v19, %v1333_v51  ;;  %2011 = vlog2.f32 %v1268_v55 }
 0x26a   :  { %1495 = vst.msk [vmem:[%s3602_s5 + $0xf8] sm:$0xff] %vm695_vm4, %v1431_v6  ;;  %v1447_v53 = vsub.f32 %v3258_v28, %v1367_v37 }
 0x26b   :  { %1494 = vst.msk [vmem:[%s3602_s5 + $0xf0] sm:$0xff] %vm695_vm4, %v1430_v45 }
 0x26c   :  { %1511 = vst.msk [vmem:[%s3602_s5 + $0x178] sm:$0xff] %vm695_vm4, %v1447_v53 }
 0x26d   :  { %v2008_v32 = vpop.eup %2007  ;;  %v1271_v36 = vpop.xlane.xlu1 %1270 }
 0x26e   :  { %v2010_v19 = vpop.eup %2009  ;;  %v1395_v2 = vmul.f32 0.6931472, %v2008_v32  ;;  %2013 = vlog2.f32 %v1271_v36 }
 0x26f   :  { %v2012_v47 = vpop.eup %2011  ;;  %v1303_v30 = vmul.f32 0.6931472, %v2010_v19 }
 0x270   :  { %v1461_v48 = vsub.f32 %v3274_v31, %v1395_v2  ;;  %v1397_v28 = vmul.f32 0.6931472, %v2012_v47 }
 0x271   :  { %v1415_v54 = vsub.f32 %v3286_v50, %v1303_v30 }
 0x272   :  { %1525 = vst.msk [vmem:[%s3602_s5 + $0x1e8] sm:$0xff] %vm695_vm4, %v1461_v48  ;;  %v1462_v15 = vsub.f32 %v3282_v41, %v1397_v28 }
 0x273   :  { %1479 = vst.msk [vmem:[%s3602_s5 + $0x78] sm:$0xff] %vm695_vm4, %v1415_v54 }
 0x274   :  { %1526 = vst.msk [vmem:[%s3602_s5 + $0x1f0] sm:$0xff] %vm695_vm4, %v1462_v15  ;;  %v2014_v31 = vpop.eup %2013 }
 0x275   :  { %v1399_v29 = vmul.f32 0.6931472, %v2014_v31 }
 0x277   :  { %v1463_v50 = vsub.f32 %v3312_v14, %v1399_v29 }
 0x279   :  { %1527 = vst.msk [vmem:[%s3602_s5 + $0x1f8] sm:$0xff] %vm695_vm4, %v1463_v50 }

// kernel: pointnet_dense_cls.4
= control target key start
LH: loop header
LB: loop body
LE: loop exit
PB: predicated region body
PF: predicated region fallthrough
CT: control target
= control target key end

     0   :  { %s3920_s17 = smov 0   ;;  %s6959_s0 = inlined_call_operand.vmem [shape: f32[2,256,3], index: 0, kind: input, shape index: {}]   ;;  %s6960_s1 = inlined_call_operand.vmem [shape: f32[3,64], index: 1, kind: input, shape index: {}]   ;;  %s6961_s2 = inlined_call_operand.vmem [shape: f32[1,64], index: 2, kind: input, shape index: {}]   ;;  %s6962_s3 = inlined_call_operand.vmem [shape: bf16[64,128], index: 3, kind: input, shape index: {}]   ;;  %s6963_s4 = inlined_call_operand.vmem [shape: f32[1,128], index: 4, kind: input, shape index: {}]   ;;  %s6964_s5 = inlined_call_operand.vmem [shape: bf16[128,256], index: 5, kind: input, shape index: {}]   ;;  %s6965_s6 = inlined_call_operand.vmem [shape: f32[1,256], index: 6, kind: input, shape index: {}]   ;;  %s6966_s7 = inlined_call_operand.vmem [shape: bf16[256,256], index: 7, kind: input, shape index: {}]   ;;  %s6967_s8 = inlined_call_operand.vmem [shape: bf16[64,256], index: 8, kind: input, shape index: {}]   ;;  %s6968_s9 = inlined_call_operand.vmem [shape: f32[1,256], index: 9, kind: input, shape index: {}]   ;;  %s6969_s10 = inlined_call_operand.vmem [shape: bf16[2,256,256], index: 10, kind: output, shape index: {0}]   ;;  %s6970_s11 = inlined_call_operand.vmem [shape: f32[2,2,256], index: 11, kind: output, shape index: {1}]  }
   0x1 LB: > { %s3402_s18 = sadd.s32 4294967295, %s3854_s17   ;;  %p3406_p0 = scmp.ge.s32.totalorder %s3854_s17, 1  ;;  %s3854_s17 = sphi %s3920_s17, %s22_s17  }
   0x2   : > { %p340_p1 = scmp.lt.s32.totalorder %s3854_s17, 3 }
   0x4   : > { %p341_p2 = pnand %p3406_p0, %p340_p1 }
   0x6   : > { %344 = sbr.rel (%p341_p2) target bundleno = 1991 (0x7c7), region = 60 }
   0xb   : > { %p385_p3 = scmp.lt.s32.totalorder %s3402_s18, 1  ;;  %v3856_v0 = vmov 2   ;;  %v3857_v1 = vmov 1   ;;  %v3858_v2 = vmov 0   ;;  %v433_v21 = vld [vmem:[%s6960_s1] sm:$0x7] }
   0xc   : > { %3794 = vset.pattern.permute.xlu0 %v3856_v0  ;;  %3791 = vset.pattern.permute.xlu1 %v3857_v1  ;;  %v4005_v23 = vperm.slane %v433_v21, 0  ;;  %v4009_v24 = vperm.slane %v433_v21, 1  ;;  %v4019_v31 = vperm.slane %v433_v21, 2  ;;  %vm1049_vm0 = vcmask 523264  }
   0xd   : > { %3792 = vset.pattern.permute.xlu2 %v3858_v2  ;;  %s7150_s18 = smov (!%p385_p3, %s3402_s18), 1  ;;  %vm3097_vm14 = vcmask 1040384  }
   0xe   : > { %s3704_s19 = sshll.u32 %s7150_s18, 8 }
   0xf   : > { %s3939_s22 = scalar_lea.vmem %s6959_s0, %s3704_s19  ;;  %s6651_s27 = scalar_lea.vmem %s6969_s10, %s3704_s19 }
  0x10   : > { %v403_v3 = vld [vmem:[%s3939_s22 + $0x10] sm:$0xff]  ;;  %v401_v4 = vld [vmem:[%s3939_s22] sm:$0xff]  ;;  %v3947_v6 = vld [vmem:[%s3939_s22 + $0x8] sm:$0xff]  ;;  %s3706_s19 = sshll.u32 %s7150_s18, 2 }
  0x11   : > { %446 = vperm.xlu2 %3792, %v403_v3   ;;  %821 = vperm.xlu0 %3794, %v401_v4   ;;  %v3944_v5 = vld [vmem:[%s3939_s22 + $0x20] sm:$0xff]  ;;  %v3953_v7 = vld [vmem:[%s3939_s22 + $0x48] sm:$0xff]  ;;  %v404_v8 = vld [vmem:[%s3939_s22 + $0x18] sm:$0xff]  ;;  %s399_s30 = scalar_lea.vmem %s6970_s11, %s3706_s19 }
  0x12   : > { %628 = vperm.xlu1 %3791, %v401_v4   ;;  %v3961_v9 = vld [vmem:[%s3939_s22 + $0x70] sm:$0xff]  ;;  %v3967_v10 = vld [vmem:[%s3939_s22 + $0x98] sm:$0xff]  ;;  %v3972_v11 = vld [vmem:[%s3939_s22 + $0xc0] sm:$0xff] }
  0x13   : > { %v406_v12 = vld [vmem:[%s3939_s22 + $0x28] sm:$0xff]  ;;  %v408_v13 = vld [vmem:[%s3939_s22 + $0x38] sm:$0xff]  ;;  %v407_v14 = vld [vmem:[%s3939_s22 + $0x30] sm:$0xff] }
  0x14   : > { %v413_v15 = vld [vmem:[%s3939_s22 + $0x60] sm:$0xff]  ;;  %v3985_v16 = vld [vmem:[%s3939_s22 + $0x88] sm:$0xff]  ;;  %v3990_v18 = vld [vmem:[%s3939_s22 + $0xb0] sm:$0xff] }
  0x15   : > { %v409_v17 = vld [vmem:[%s3939_s22 + $0x40] sm:$0xff]  ;;  %v3996_v19 = vld [vmem:[%s3939_s22 + $0xd8] sm:$0xff]  ;;  %v411_v22 = vld [vmem:[%s3939_s22 + $0x50] sm:$0xff] }
  0x16   : > { %v412_v28 = vld [vmem:[%s3939_s22 + $0x58] sm:$0xff]  ;;  %v414_v35 = vld [vmem:[%s3939_s22 + $0x68] sm:$0xff]  ;;  %v417_v55 = vld [vmem:[%s3939_s22 + $0x80] sm:$0xff] }
  0x17   : > { %v416_v50 = vld [vmem:[%s3939_s22 + $0x78] sm:$0xff] }
  0x19   : > { %3793 = vset.pattern.permute.xlu2 %v3857_v1  ;;  %837 = vperm.xlu0 %3794, %v3944_v5  }
  0x1a   : > { %632 = vperm.xlu1 %3791, %v3947_v6   ;;  %636 = vperm.xlu2 %3793, %v403_v3  }
  0x21   : > { %857 = vperm.xlu0 %3794, %v3953_v7  }
  0x22   : > { %3795 = vset.pattern.permute.xlu1 %v3856_v0  ;;  %3796 = vset.pattern.permute.xlu2 %v3858_v2 }
  0x23   : > { %825 = vperm.xlu1 %3795, %v3947_v6   ;;  %451 = vperm.xlu2 %3796, %v404_v8  }
  0x29   : > { %877 = vperm.xlu0 %3794, %v3961_v9  }
  0x2b   : > { %3797 = vset.pattern.permute.xlu1 %v3857_v1  ;;  %3798 = vset.pattern.permute.xlu2 %v3856_v0 }
  0x2c   : > { %640 = vperm.xlu1 %3797, %v404_v8   ;;  %829 = vperm.xlu2 %3798, %v403_v3  }
  0x31   : > { %897 = vperm.xlu0 %3794, %v3967_v10  }
  0x34   : > { %644 = vperm.xlu1 %3797, %v3944_v5   ;;  %833 = vperm.xlu2 %3798, %v404_v8  }
  0x39   : > { %917 = vperm.xlu0 %3794, %v3972_v11  }
  0x3c   : > { %3799 = vset.pattern.permute.xlu1 %v3858_v2  ;;  %3800 = vset.pattern.permute.xlu2 %v3857_v1 }
  0x3d   : > { %461 = vperm.xlu1 %3799, %v406_v12   ;;  %648 = vperm.xlu2 %3800, %v406_v12  }
  0x41   : > { %3825 = vset.pattern.permute.xlu0 %v3857_v1 }
  0x42   : > { %656 = vperm.xlu0 %3825, %v408_v13  }
  0x45   : > { %466 = vperm.xlu1 %3799, %v407_v14   ;;  %652 = vperm.xlu2 %3800, %v407_v14  }
  0x4a   : > { %676 = vperm.xlu0 %3825, %v413_v15  }
  0x4d   : > { %3801 = vset.pattern.permute.xlu1 %v3856_v0  ;;  %3802 = vset.pattern.permute.xlu2 %v3858_v2 }
  0x4e   : > { %841 = vperm.xlu1 %3801, %v406_v12   ;;  %471 = vperm.xlu2 %3802, %v408_v13  }
  0x52   : > { %696 = vperm.xlu0 %3825, %v3985_v16  }
  0x56   : > { %845 = vperm.xlu1 %3801, %v407_v14   ;;  %476 = vperm.xlu2 %3802, %v409_v17  }
  0x5a   : > { %716 = vperm.xlu0 %3825, %v3990_v18  }
  0x5e   : > { %3803 = vset.pattern.permute.xlu1 %v3857_v1  ;;  %3804 = vset.pattern.permute.xlu2 %v3856_v0 }
  0x5f   : > { %660 = vperm.xlu1 %3803, %v409_v17   ;;  %849 = vperm.xlu2 %3804, %v408_v13  }
  0x62   : > { %736 = vperm.xlu0 %3825, %v3996_v19  }
  0x67   : > { %664 = vperm.xlu1 %3803, %v3953_v7   ;;  %853 = vperm.xlu2 %3804, %v409_v17  }
  0x6a   : > { %3828 = vset.pattern.permute.xlu0 %v3858_v2 }
  0x6b   : > { %436 = vperm.xlu0 %3828, %v401_v4   ;;  %v447_v20 = vpop.permute.xlu2 %446 }
  0x6c   : > { %v597_v25 = vmul.f32 %v4005_v23, %v447_v20 }
  0x6f   : > { %3805 = vset.pattern.permute.xlu1 %v3858_v2  ;;  %3806 = vset.pattern.permute.xlu2 %v3857_v1 }
  0x70   : > { %486 = vperm.xlu1 %3805, %v411_v22   ;;  %668 = vperm.xlu2 %3806, %v411_v22  }
  0x73   : > { %441 = vperm.xlu0 %3828, %v3947_v6  }
  0x74   : > { %v637_v26 = vpop.permute.xlu2 %636 }
  0x75   : > { %v758_v27 = vmul.f32 %v4009_v24, %v637_v26 }
  0x77   : > { %v790_v29 = vadd.f32 %v758_v27, %v597_v25 }
  0x78   : > { %491 = vperm.xlu1 %3805, %v412_v28   ;;  %672 = vperm.xlu2 %3806, %v412_v28  }
  0x7b   : > { %456 = vperm.xlu0 %3828, %v3944_v5  }
  0x7d   : > { %v452_v30 = vpop.permute.xlu2 %451 }
  0x7e   : > { %v598_v46 = vmul.f32 %v4005_v23, %v452_v30 }
  0x80   : > { %3807 = vset.pattern.permute.xlu1 %v3856_v0  ;;  %3808 = vset.pattern.permute.xlu2 %v3858_v2 }
  0x81   : > { %861 = vperm.xlu1 %3807, %v411_v22   ;;  %496 = vperm.xlu2 %3808, %v413_v15  }
  0x83   : > { %481 = vperm.xlu0 %3828, %v3953_v7   ;;  %v4021_v32 = vpop.permute.xlu0 %821 }
  0x84   : > { %v4023_v33 = vpop.permute.xlu1 %628 }
  0x86   : > { %v830_v34 = vpop.permute.xlu2 %829 }
  0x87   : > { %v951_v36 = vmul.f32 %v4019_v31, %v830_v34 }
  0x89   : > { %v4027_v37 = vadd.f32 %v951_v36, %v790_v29  ;;  %865 = vperm.xlu1 %3807, %v412_v28   ;;  %501 = vperm.xlu2 %3808, %v414_v35  }
  0x8b   : > { %v4029_v38 = vpop.permute.xlu0 %837  ;;  %506 = vperm.xlu0 %3828, %v3961_v9  }
  0x8c   : > { %v4032_v39 = vpop.permute.xlu1 %632 }
  0x8e   : > { %v834_v40 = vpop.permute.xlu2 %833 }
  0x8f   : > { %v952_v47 = vmul.f32 %v4019_v31, %v834_v40 }
  0x91   : > { %3809 = vset.pattern.permute.xlu1 %v3857_v1  ;;  %3810 = vset.pattern.permute.xlu2 %v3856_v0 }
  0x92   : > { %680 = vperm.xlu1 %3809, %v414_v35   ;;  %869 = vperm.xlu2 %3810, %v413_v15  }
  0x93   : > { %v4036_v41 = vpop.permute.xlu0 %857  ;;  %531 = vperm.xlu0 %3828, %v3967_v10  }
  0x95   : > { %v4039_v42 = vpop.permute.xlu1 %825 }
  0x97   : > { %v649_v43 = vpop.permute.xlu2 %648 }
  0x98   : > { %v761_v58 = vmul.f32 %v4009_v24, %v649_v43 }
  0x9a   : > { %684 = vperm.xlu1 %3809, %v3961_v9   ;;  %873 = vperm.xlu2 %3810, %v414_v35   ;;  %v419_v9 = vld [vmem:[%s3939_s22 + $0x90] sm:$0xff] }
  0x9b   : > { %v4042_v44 = vpop.permute.xlu0 %877  ;;  %556 = vperm.xlu0 %3828, %v3972_v11  }
  0x9e   : > { %v641_v45 = vpop.permute.xlu1 %640 }
  0x9f   : > { %v759_v48 = vmul.f32 %v4009_v24, %v641_v45  ;;  %v653_v49 = vpop.permute.xlu2 %652  ;;  %v421_v45 = vld [vmem:[%s3939_s22 + $0xa0] sm:$0xff] }
  0xa0   : > { %v762_v6 = vmul.f32 %v4009_v24, %v653_v49 }
  0xa1   : > { %v791_v51 = vadd.f32 %v759_v48, %v598_v46 }
  0xa2   : > { %3811 = vset.pattern.permute.xlu1 %v3858_v2  ;;  %3812 = vset.pattern.permute.xlu2 %v3857_v1 }
  0xa3   : > { %v4051_v52 = vadd.f32 %v952_v47, %v791_v51  ;;  %511 = vperm.xlu1 %3811, %v416_v50   ;;  %688 = vperm.xlu2 %3812, %v416_v50   ;;  %v4053_v53 = vpop.permute.xlu0 %897 }
  0xa6   : > { %v4055_v54 = vpop.permute.xlu1 %644 }
  0xa8   : > { %v472_v56 = vpop.permute.xlu2 %471 }
  0xa9   : > { %v602_v63 = vmul.f32 %v4005_v23, %v472_v56  ;;  %v949_v56 = vmul.f32 %v4019_v31, %v4021_v32 }
  0xab   : > { %516 = vperm.xlu1 %3811, %v417_v55   ;;  %692 = vperm.xlu2 %3812, %v417_v55   ;;  %v4058_v57 = vpop.permute.xlu0 %917 }
  0xaf   : > { %v462_v59 = vpop.permute.xlu1 %461 }
  0xb0   : > { %v600_v60 = vmul.f32 %v4005_v23, %v462_v59  ;;  %v477_v61 = vpop.permute.xlu2 %476  ;;  %v756_v59 = vmul.f32 %v4009_v24, %v4023_v33  ;;  %v757_v33 = vmul.f32 %v4009_v24, %v4032_v39 }
  0xb1   : > { %v603_v36 = vmul.f32 %v4005_v23, %v477_v61 }
  0xb2   : > { %v793_v62 = vadd.f32 %v761_v58, %v600_v60 }
  0xb3   : > { %3813 = vset.pattern.permute.xlu1 %v3856_v0  ;;  %3814 = vset.pattern.permute.xlu2 %v3858_v2 }
  0xb4   : > { %881 = vperm.xlu1 %3813, %v416_v50   ;;  %521 = vperm.xlu2 %3814, %v3985_v16   ;;  %v657_v3 = vpop.permute.xlu0 %656  ;;  %v422_v50 = vld [vmem:[%s3939_s22 + $0xa8] sm:$0xff] }
  0xb5   : > { %v763_v4 = vmul.f32 %v4009_v24, %v657_v3 }
  0xb7   : > { %v467_v5 = vpop.permute.xlu1 %466  ;;  %v795_v7 = vadd.f32 %v763_v4, %v602_v63 }
  0xb8   : > { %v601_v8 = vmul.f32 %v4005_v23, %v467_v5 }
  0xb9   : > { %v850_v12 = vpop.permute.xlu2 %849 }
  0xba   : > { %v794_v13 = vadd.f32 %v762_v6, %v601_v8  ;;  %v956_v14 = vmul.f32 %v4019_v31, %v850_v12  ;;  %v950_v12 = vmul.f32 %v4019_v31, %v4039_v42  ;;  %v760_v42 = vmul.f32 %v4009_v24, %v4055_v54 }
  0xbb   : > { %v958_v54 = vmul.f32 %v4019_v31, %v4036_v41 }
  0xbc   : > { %885 = vperm.xlu1 %3813, %v417_v55   ;;  %526 = vperm.xlu2 %3814, %v419_v9   ;;  %v677_v15 = vpop.permute.xlu0 %676  ;;  %v4071_v17 = vadd.f32 %v956_v14, %v795_v7 }
  0xbd   : > { %v768_v49 = vmul.f32 %v4009_v24, %v677_v15 }
  0xc0   : > { %v842_v20 = vpop.permute.xlu1 %841 }
  0xc1   : > { %v954_v21 = vmul.f32 %v4019_v31, %v842_v20  ;;  %v854_v22 = vpop.permute.xlu2 %853 }
  0xc2   : > { %v957_v40 = vmul.f32 %v4019_v31, %v854_v22 }
  0xc3   : > { %v4074_v25 = vadd.f32 %v954_v21, %v793_v62  ;;  %v424_v21 = vld [vmem:[%s3939_s22 + $0xb8] sm:$0xff] }
  0xc4   : > { %3815 = vset.pattern.permute.xlu1 %v3857_v1  ;;  %3816 = vset.pattern.permute.xlu2 %v3856_v0  ;;  %v4078_v26 = vpop.permute.xlu0 %696 }
  0xc5   : > { %700 = vperm.xlu1 %3815, %v419_v9   ;;  %889 = vperm.xlu2 %3816, %v3985_v16  }
  0xc8   : > { %v846_v27 = vpop.permute.xlu1 %845 }
  0xc9   : > { %v955_v28 = vmul.f32 %v4019_v31, %v846_v27 }
  0xca   : > { %v669_v29 = vpop.permute.xlu2 %668 }
  0xcb   : > { %v4082_v30 = vadd.f32 %v955_v28, %v794_v13  ;;  %v766_v63 = vmul.f32 %v4009_v24, %v669_v29 }
  0xcc   : > { %v4084_v34 = vpop.permute.xlu0 %716 }
  0xcd   : > { %704 = vperm.xlu1 %3815, %v3967_v10   ;;  %893 = vperm.xlu2 %3816, %v419_v9   ;;  %v4115_v9 = vld [vmem:[%s3939_s22 + $0xe8] sm:$0xff] }
  0xce   : > { %581 = vperm.xlu0 %3828, %v4115_v9  }
  0xd1   : > { %v661_v35 = vpop.permute.xlu1 %660 }
  0xd2   : > { %v764_v43 = vmul.f32 %v4009_v24, %v661_v35  ;;  %v673_v16 = vpop.permute.xlu2 %672  ;;  %v953_v35 = vmul.f32 %v4019_v31, %v4029_v38 }
  0xd3   : > { %v767_v15 = vmul.f32 %v4009_v24, %v673_v16 }
  0xd4   : > { %v796_v46 = vadd.f32 %v764_v43, %v603_v36  ;;  %v4091_v47 = vpop.permute.xlu0 %736 }
  0xd5   : > { %3817 = vset.pattern.permute.xlu1 %v3858_v2  ;;  %3818 = vset.pattern.permute.xlu2 %v3857_v1 }
  0xd6   : > { %v4095_v48 = vadd.f32 %v957_v40, %v796_v46  ;;  %536 = vperm.xlu1 %3817, %v421_v45   ;;  %708 = vperm.xlu2 %3818, %v421_v45  }
  0xd7   : > { %3833 = vset.pattern.permute.xlu0 %v3856_v0 }
  0xd8   : > { %937 = vperm.xlu0 %3833, %v4115_v9  }
  0xd9   : > { %v665_v10 = vpop.permute.xlu1 %664 }
  0xdb   : > { %v497_v51 = vpop.permute.xlu2 %496 }
  0xdc   : > { %v607_v55 = vmul.f32 %v4005_v23, %v497_v51 }
  0xdd   : > { %v437_v58 = vpop.permute.xlu0 %436 }
  0xde   : > { %v595_v60 = vmul.f32 %v4005_v23, %v437_v58  ;;  %541 = vperm.xlu1 %3817, %v422_v50   ;;  %712 = vperm.xlu2 %3818, %v422_v50   ;;  %v800_v61 = vadd.f32 %v768_v49, %v607_v55 }
  0xe0   : > { %v788_v62 = vadd.f32 %v756_v59, %v595_v60 }
  0xe2   : > { %v4106_v3 = vadd.f32 %v949_v56, %v788_v62  ;;  %v487_v4 = vpop.permute.xlu1 %486 }
  0xe3   : > { %v605_v5 = vmul.f32 %v4005_v23, %v487_v4  ;;  %v502_v6 = vpop.permute.xlu2 %501 }
  0xe4   : > { %v608_v62 = vmul.f32 %v4005_v23, %v502_v6 }
  0xe5   : > { %v798_v32 = vadd.f32 %v766_v63, %v605_v5  ;;  %v442_v7 = vpop.permute.xlu0 %441  ;;  %v426_v5 = vld [vmem:[%s3939_s22 + $0xc8] sm:$0xff] }
  0xe6   : > { %v596_v8 = vmul.f32 %v4005_v23, %v442_v7  ;;  %3819 = vset.pattern.permute.xlu1 %v3856_v0  ;;  %3820 = vset.pattern.permute.xlu2 %v3858_v2 }
  0xe7   : > { %901 = vperm.xlu1 %3819, %v421_v45   ;;  %546 = vperm.xlu2 %3820, %v3990_v18  }
  0xe8   : > { %v789_v13 = vadd.f32 %v757_v33, %v596_v8  ;;  %v963_v8 = vmul.f32 %v4019_v31, %v4042_v44 }
  0xea   : > { %v4121_v14 = vadd.f32 %v950_v12, %v789_v13  ;;  %v492_v39 = vpop.permute.xlu1 %491  ;;  %v773_v12 = vmul.f32 %v4009_v24, %v4078_v26 }
  0xeb   : > { %v606_v20 = vmul.f32 %v4005_v23, %v492_v39  ;;  %v427_v39 = vld [vmem:[%s3939_s22 + $0xd0] sm:$0xff] }
  0xec   : > { %v870_v22 = vpop.permute.xlu2 %869 }
  0xed   : > { %v799_v27 = vadd.f32 %v767_v15, %v606_v20  ;;  %v457_v28 = vpop.permute.xlu0 %456  ;;  %v961_v29 = vmul.f32 %v4019_v31, %v870_v22 }
  0xee   : > { %v599_v36 = vmul.f32 %v4005_v23, %v457_v28 }
  0xef   : > { %905 = vperm.xlu1 %3819, %v422_v50   ;;  %551 = vperm.xlu2 %3820, %v424_v21   ;;  %v4132_v40 = vadd.f32 %v961_v29, %v800_v61  ;;  %v765_v50 = vmul.f32 %v4009_v24, %v665_v10 }
  0xf0   : > { %v792_v43 = vadd.f32 %v760_v42, %v599_v36 }
  0xf2   : > { %v4136_v16 = vadd.f32 %v953_v35, %v792_v43 }
  0xf3   : > { %v862_v45 = vpop.permute.xlu1 %861 }
  0xf4   : > { %v959_v46 = vmul.f32 %v4019_v31, %v862_v45  ;;  %v874_v38 = vpop.permute.xlu2 %873  ;;  %v429_v45 = vld [vmem:[%s3939_s22 + $0xe0] sm:$0xff] }
  0xf5   : > { %v482_v49 = vpop.permute.xlu0 %481  ;;  %v962_v63 = vmul.f32 %v4019_v31, %v874_v38 }
  0xf6   : > { %v4142_v51 = vadd.f32 %v959_v46, %v798_v32  ;;  %v604_v55 = vmul.f32 %v4005_v23, %v482_v49 }
  0xf7   : > { %3821 = vset.pattern.permute.xlu1 %v3857_v1  ;;  %3822 = vset.pattern.permute.xlu2 %v3856_v0 }
  0xf8   : > { %v797_v56 = vadd.f32 %v765_v50, %v604_v55  ;;  %720 = vperm.xlu1 %3821, %v424_v21   ;;  %909 = vperm.xlu2 %3822, %v3990_v18  }
  0xfa   : > { %v4148_v58 = vadd.f32 %v958_v54, %v797_v56 }
  0xfb   : > { %v866_v59 = vpop.permute.xlu1 %865 }
  0xfc   : > { %v960_v41 = vmul.f32 %v4019_v31, %v866_v59 }
  0xfd   : > { %v689_v60 = vpop.permute.xlu2 %688  ;;  %v507_v7 = vpop.permute.xlu0 %506 }
  0xfe   : > { %v4151_v10 = vadd.f32 %v960_v41, %v799_v27  ;;  %v771_v28 = vmul.f32 %v4009_v24, %v689_v60 }
 0x100   : > { %724 = vperm.xlu1 %3821, %v3972_v11   ;;  %913 = vperm.xlu2 %3822, %v424_v21   ;;  %v609_v11 = vmul.f32 %v4005_v23, %v507_v7  ;;  %v431_v7 = vld [vmem:[%s3939_s22 + $0xf0] sm:$0xff] }
 0x104   : > { %v681_v61 = vpop.permute.xlu1 %680 }
 0x105   : > { %v769_v4 = vmul.f32 %v4009_v24, %v681_v61  ;;  %v693_v18 = vpop.permute.xlu2 %692 }
 0x106   : > { %v772_v36 = vmul.f32 %v4009_v24, %v693_v18 }
 0x107   : > { %v801_v32 = vadd.f32 %v769_v4, %v608_v62 }
 0x108   : > { %3823 = vset.pattern.permute.xlu1 %v3858_v2  ;;  %3824 = vset.pattern.permute.xlu2 %v3857_v1 }
 0x109   : > { %v4160_v33 = vadd.f32 %v962_v63, %v801_v32  ;;  %561 = vperm.xlu1 %3823, %v426_v5   ;;  %728 = vperm.xlu2 %3824, %v426_v5  }
 0x10c   : > { %v685_v6 = vpop.permute.xlu1 %684 }
 0x10d   : > { %v770_v13 = vmul.f32 %v4009_v24, %v685_v6 }
 0x10e   : > { %v522_v15 = vpop.permute.xlu2 %521 }
 0x10f   : > { %v802_v20 = vadd.f32 %v770_v13, %v609_v11  ;;  %v612_v21 = vmul.f32 %v4005_v23, %v522_v15  ;;  %v532_v11 = vpop.permute.xlu0 %531  ;;  %v432_v15 = vld [vmem:[%s3939_s22 + $0xf8] sm:$0xff] }
 0x111   : > { %v4170_v22 = vadd.f32 %v963_v8, %v802_v20  ;;  %566 = vperm.xlu1 %3823, %v427_v39   ;;  %732 = vperm.xlu2 %3824, %v427_v39   ;;  %v805_v27 = vadd.f32 %v773_v12, %v612_v21  ;;  %v778_v12 = vmul.f32 %v4009_v24, %v4084_v34 }
 0x115   : > { %v512_v29 = vpop.permute.xlu1 %511 }
 0x116   : > { %v610_v44 = vmul.f32 %v4005_v23, %v512_v29  ;;  %v527_v35 = vpop.permute.xlu2 %526 }
 0x117   : > { %v613_v4 = vmul.f32 %v4005_v23, %v527_v35 }
 0x118   : > { %v803_v26 = vadd.f32 %v771_v28, %v610_v44 }
 0x119   : > { %3826 = vset.pattern.permute.xlu1 %v3856_v0  ;;  %3827 = vset.pattern.permute.xlu2 %v3858_v2 }
 0x11a   : > { %921 = vperm.xlu1 %3826, %v426_v5   ;;  %571 = vperm.xlu2 %3827, %v3996_v19  }
 0x11d   : > { %v517_v42 = vpop.permute.xlu1 %516 }
 0x11e   : > { %v611_v43 = vmul.f32 %v4005_v23, %v517_v42 }
 0x11f   : > { %v890_v46 = vpop.permute.xlu2 %889 }
 0x120   : > { %v804_v38 = vadd.f32 %v772_v36, %v611_v43  ;;  %v966_v49 = vmul.f32 %v4019_v31, %v890_v46 }
 0x122   : > { %925 = vperm.xlu1 %3826, %v427_v39   ;;  %576 = vperm.xlu2 %3827, %v429_v45   ;;  %v4181_v54 = vadd.f32 %v966_v49, %v805_v27 }
 0x126   : > { %v882_v50 = vpop.permute.xlu1 %881 }
 0x127   : > { %v964_v55 = vmul.f32 %v4019_v31, %v882_v50  ;;  %v894_v56 = vpop.permute.xlu2 %893 }
 0x128   : > { %v967_v18 = vmul.f32 %v4019_v31, %v894_v56 }
 0x129   : > { %v4184_v59 = vadd.f32 %v964_v55, %v803_v26 }
 0x12a   : > { %3829 = vset.pattern.permute.xlu1 %v3857_v1  ;;  %3830 = vset.pattern.permute.xlu2 %v3856_v0 }
 0x12b   : > { %740 = vperm.xlu1 %3829, %v429_v45   ;;  %929 = vperm.xlu2 %3830, %v3996_v19  }
 0x12e   : > { %v886_v41 = vpop.permute.xlu1 %885 }
 0x12f   : > { %v965_v60 = vmul.f32 %v4019_v31, %v886_v41 }
 0x130   : > { %v709_v61 = vpop.permute.xlu2 %708 }
 0x131   : > { %v4190_v62 = vadd.f32 %v965_v60, %v804_v38  ;;  %v776_v28 = vmul.f32 %v4009_v24, %v709_v61  ;;  %v4234_v61 = vld [vmem:[%s6961_s2] ss:$0 sm:$0xff] }
 0x133   : > { %744 = vperm.xlu1 %3829, %v4115_v9   ;;  %933 = vperm.xlu2 %3830, %v429_v45   ;;  %v614_v9 = vmul.f32 %v4005_v23, %v532_v11 }
 0x137   : > { %v701_v63 = vpop.permute.xlu1 %700 }
 0x138   : > { %v774_v5 = vmul.f32 %v4009_v24, %v701_v63  ;;  %v713_v32 = vpop.permute.xlu2 %712 }
 0x139   : > { %v777_v35 = vmul.f32 %v4009_v24, %v713_v32 }
 0x13a   : > { %v806_v19 = vadd.f32 %v774_v5, %v613_v4  ;;  %v4240_v4 = vadd.f32 %v4234_v61, %v4121_v14  ;;  %v4246_v5 = vadd.f32 %v4234_v61, %v4106_v3  ;;  %v4262_v3 = vadd.f32 %v4234_v61, %v4051_v52 }
 0x13b   : > { %3831 = vset.pattern.permute.xlu1 %v3858_v2  ;;  %3832 = vset.pattern.permute.xlu2 %v3857_v1  ;;  %v968_v2 = vmul.f32 %v4019_v31, %v4053_v53  ;;  %v4278_v52 = vadd.f32 %v4234_v61, %v4074_v25 }
 0x13c   : > { %v4199_v6 = vadd.f32 %v967_v18, %v806_v19  ;;  %586 = vperm.xlu1 %3831, %v431_v7   ;;  %748 = vperm.xlu2 %3832, %v431_v7   ;;  %v1051_v32 = vsel %vm1049_vm0, %v4240_v4, 0.0  ;;  %v4254_v19 = vadd.f32 %v4234_v61, %v4027_v37  ;;  %v1050_v14 = vsel %vm1049_vm0, %v4246_v5, 0.0 }
 0x13d   : > { %v1052_v11 = vadd.f32 %v1051_v32, %v1050_v14  ;;  %v4326_v14 = vadd.f32 %v4234_v61, %v4132_v40 }
 0x13f   : > { %v705_v8 = vpop.permute.xlu1 %704 }
 0x140   : > { %v775_v13 = vmul.f32 %v4009_v24, %v705_v8  ;;  %v4266_v8 = vadd.f32 %v4234_v61, %v4136_v16  ;;  %v1059_v16 = vsel %vm1049_vm0, %v4278_v52, 0.0 }
 0x141   : > { %v547_v39 = vpop.permute.xlu2 %546 }
 0x142   : > { %v807_v20 = vadd.f32 %v775_v13, %v614_v9  ;;  %v617_v1 = vmul.f32 %v4005_v23, %v547_v39  ;;  %v1053_v9 = vsel %vm1049_vm0, %v4254_v19, 0.0  ;;  %v1055_v39 = vsel %vm1049_vm0, %v4262_v3, 0.0 }
 0x143   : > { %v1054_v13 = vadd.f32 %v1053_v9, %v1052_v11  ;;  %v4332_v11 = vadd.f32 %v4234_v61, %v4160_v33 }
 0x144   : > { %v4209_v21 = vadd.f32 %v968_v2, %v807_v20  ;;  %v4211_v27 = vadd.f32 %v778_v12, %v617_v1  ;;  %591 = vperm.xlu1 %3831, %v432_v15   ;;  %752 = vperm.xlu2 %3832, %v432_v15   ;;  %v4284_v1 = vadd.f32 %v4234_v61, %v4082_v30 }
 0x145   : > { %v1056_v2 = vadd.f32 %v1055_v39, %v1054_v13  ;;  %v4300_v30 = vadd.f32 %v4234_v61, %v4095_v48  ;;  %v4336_v13 = vadd.f32 %v4234_v61, %v4170_v22  ;;  %v1073_v39 = vsel %vm1049_vm0, %v4326_v14, 0.0 }
 0x146   : > { %v1061_v25 = vsel %vm1049_vm0, %v4284_v1, 0.0  ;;  %v1075_v40 = vsel %vm1049_vm0, %v4332_v11, 0.0  ;;  %v4352_v22 = vadd.f32 %v4234_v61, %v4190_v62 }
 0x148   : > { %v537_v29 = vpop.permute.xlu1 %536 }
 0x149   : > { %v615_v34 = vmul.f32 %v4005_v23, %v537_v29  ;;  %v552_v42 = vpop.permute.xlu2 %551 }
 0x14a   : > { %v618_v41 = vmul.f32 %v4005_v23, %v552_v42 }
 0x14b   : > { %v808_v44 = vadd.f32 %v776_v28, %v615_v34 }
 0x14c   : > { %3834 = vset.pattern.permute.xlu1 %v3856_v0  ;;  %3835 = vset.pattern.permute.xlu2 %v3856_v0 }
 0x14d   : > { %941 = vperm.xlu1 %3834, %v431_v7   ;;  %945 = vperm.xlu2 %3835, %v432_v15   ;;  %v1057_v15 = vsel %vm1049_vm0, %v4266_v8, 0.0 }
 0x14e   : > { %v1058_v20 = vadd.f32 %v1057_v15, %v1056_v2  ;;  %v4344_v15 = vadd.f32 %v4234_v61, %v4184_v59  ;;  %v1081_v59 = vsel %vm1049_vm0, %v4352_v22, 0.0 }
 0x150   : > { %v542_v53 = vpop.permute.xlu1 %541  ;;  %v1060_v29 = vadd.f32 %v1059_v16, %v1058_v20  ;;  %v1077_v20 = vsel %vm1049_vm0, %v4336_v13, 0.0 }
 0x151   : > { %v616_v26 = vmul.f32 %v4005_v23, %v542_v53 }
 0x152   : > { %v4220_v46 = vpop.permute.xlu2 %909  ;;  %v1062_v53 = vadd.f32 %v1061_v25, %v1060_v29  ;;  %v1079_v29 = vsel %vm1049_vm0, %v4344_v15, 0.0 }
 0x153   : > { %v809_v36 = vadd.f32 %v777_v35, %v616_v26 }
 0x159   : > { %v902_v43 = vpop.permute.xlu1 %901 }
 0x15a   : > { %v969_v45 = vmul.f32 %v4019_v31, %v902_v43  ;;  %v4225_v0 = vpop.permute.xlu2 %913  ;;  %v1065_v43 = vsel %vm1049_vm0, %v4300_v30, 0.0 }
 0x15c   : > { %v4222_v38 = vadd.f32 %v969_v45, %v808_v44  ;;  %v4292_v44 = vadd.f32 %v4234_v61, %v4071_v17  ;;  %v4308_v17 = vadd.f32 %v4234_v61, %v4148_v58 }
 0x15e   : > { %v1063_v35 = vsel %vm1049_vm0, %v4292_v44, 0.0  ;;  %v1067_v48 = vsel %vm1049_vm0, %v4308_v17, 0.0 }
 0x15f   : > { %v1064_v26 = vadd.f32 %v1063_v35, %v1062_v53  ;;  %v557_v53 = vpop.permute.xlu0 %556 }
 0x161   : > { %v906_v49 = vpop.permute.xlu1 %905  ;;  %v1066_v45 = vadd.f32 %v1065_v43, %v1064_v26  ;;  %v4360_v43 = vadd.f32 %v4234_v61, %v4181_v54  ;;  %v972_v54 = vmul.f32 %v4019_v31, %v4225_v0 }
 0x162   : > { %v970_v50 = vmul.f32 %v4019_v31, %v906_v49  ;;  %v4312_v49 = vadd.f32 %v4234_v61, %v4142_v51 }
 0x163   : > { %v4242_v18 = vpop.permute.xlu2 %728 }
 0x164   : > { %v4227_v55 = vadd.f32 %v970_v50, %v809_v36  ;;  %v1068_v50 = vadd.f32 %v1067_v48, %v1066_v45  ;;  %v4364_v45 = vadd.f32 %v4234_v61, %v4199_v6  ;;  %v4368_v48 = vadd.f32 %v4234_v61, %v4209_v21 }
 0x165   : > { %v1083_v6 = vsel %vm1049_vm0, %v4360_v43, 0.0  ;;  %v4383_v21 = vadd.f32 %v4234_v61, %v4222_v38  ;;  %v781_v0 = vmul.f32 %v4009_v24, %v4242_v18 }
 0x16a   : > { %v721_v56 = vpop.permute.xlu1 %720 }
 0x16b   : > { %v779_v60 = vmul.f32 %v4009_v24, %v721_v56  ;;  %v4268_v12 = vpop.permute.xlu2 %732 }
 0x16d   : > { %v4236_v63 = vadd.f32 %v779_v60, %v618_v41  ;;  %v1069_v41 = vsel %vm1049_vm0, %v4312_v49, 0.0  ;;  %v4320_v60 = vadd.f32 %v4234_v61, %v4151_v10 }
 0x16e   : > { %v1070_v58 = vadd.f32 %v1069_v41, %v1068_v50  ;;  %v619_v50 = vmul.f32 %v4005_v23, %v557_v53 }
 0x16f   : > { %v1071_v51 = vsel %vm1049_vm0, %v4320_v60, 0.0  ;;  %v1004_v38 = vadd.f32 %v972_v54, %v4236_v63 }
 0x170   : > { %v1072_v9 = vadd.f32 %v1071_v51, %v1070_v58  ;;  %v971_v51 = vmul.f32 %v4019_v31, %v4220_v46  ;;  %v1087_v46 = vsel %vm1049_vm0, %v4368_v48, 0.0 }
 0x172   : > { %v4250_v7 = vpop.permute.xlu1 %724  ;;  %v1074_v33 = vadd.f32 %v1073_v39, %v1072_v9  ;;  %v1085_v9 = vsel %vm1049_vm0, %v4364_v45, 0.0 }
 0x173   : > { %v780_v41 = vmul.f32 %v4009_v24, %v4250_v7  ;;  %v4387_v7 = vadd.f32 %v4234_v61, %v4227_v55  ;;  %v973_v55 = vmul.f32 %v4019_v31, %v4058_v57 }
 0x174   : > { %v4286_v28 = vpop.permute.xlu2 %571  ;;  %v1076_v16 = vadd.f32 %v1075_v40, %v1074_v33 }
 0x175   : > { %v812_v40 = vadd.f32 %v780_v41, %v619_v50 }
 0x176   : > { %v1078_v25 = vadd.f32 %v1077_v20, %v1076_v16  ;;  %v1003_v16 = vadd.f32 %v971_v51, %v4211_v27  ;;  %v782_v27 = vmul.f32 %v4009_v24, %v4268_v12  ;;  %v622_v12 = vmul.f32 %v4005_v23, %v4286_v28 }
 0x177   : > { %v1005_v63 = vadd.f32 %v973_v55, %v812_v40  ;;  %v783_v40 = vmul.f32 %v4009_v24, %v4091_v47 }
 0x178   : > { %v1080_v35 = vadd.f32 %v1079_v29, %v1078_v25  ;;  %v582_v29 = vpop.permute.xlu0 %581  ;;  %v1089_v25 = vsel %vm1049_vm0, %v4383_v21, 0.0  ;;  %v4410_v50 = vadd.f32 %v4234_v61, %v1003_v16 }
 0x179   : > { %v624_v28 = vmul.f32 %v4005_v23, %v582_v29 }
 0x17a   : > { %v1082_v62 = vadd.f32 %v1081_v59, %v1080_v35 }
 0x17b   : > { %v4270_v37 = vpop.permute.xlu1 %561 }
 0x17c   : > { %v4302_v42 = vpop.permute.xlu2 %576  ;;  %v1084_v39 = vadd.f32 %v1083_v6, %v1082_v62  ;;  %v620_v33 = vmul.f32 %v4005_v23, %v4270_v37  ;;  %v1091_v37 = vsel %vm1049_vm0, %v4387_v7, 0.0 }
 0x17e   : > { %v1086_v20 = vadd.f32 %v1085_v9, %v1084_v39  ;;  %v813_v62 = vadd.f32 %v781_v0, %v620_v33  ;;  %v4419_v39 = vadd.f32 %v4234_v61, %v1005_v63 }
 0x180   : > { %v1088_v35 = vadd.f32 %v1087_v46, %v1086_v20  ;;  %v938_v20 = vpop.permute.xlu0 %937 }
 0x182   : > { %v1090_v41 = vadd.f32 %v1089_v25, %v1088_v35  ;;  %v815_v25 = vadd.f32 %v783_v40, %v622_v12  ;;  %v978_v35 = vmul.f32 %v4019_v31, %v938_v20 }
 0x183   : > { %v4288_v34 = vpop.permute.xlu1 %566 }
 0x184   : > { %v621_v53 = vmul.f32 %v4005_v23, %v4288_v34  ;;  %v4413_v34 = vadd.f32 %v4234_v61, %v1004_v38  ;;  %v1092_v9 = vadd.f32 %v1091_v37, %v1090_v41 }
 0x185   : > { %v4322_v32 = vpop.permute.xlu2 %929 }
 0x186   : > { %v1095_v33 = vsel %vm1049_vm0, %v4413_v34, 0.0  ;;  %v976_v16 = vmul.f32 %v4019_v31, %v4322_v32 }
 0x188   : > { %v1008_v37 = vadd.f32 %v976_v16, %v815_v25 }
 0x18a   : > { %v4452_v12 = vadd.f32 %v4234_v61, %v1008_v37  ;;  %v3710_v37 = vld [vmem:[%s6962_s3 + $0x18] sm:$0xff] }
 0x18b   : > { %1440 = vmatpush.bf16.msra.mxu0 %v3710_v37  ;;  %3767 = vmatpush.bf16.msra.mxu1 %v3710_v37 }
 0x18c   : > { %v922_v36 = vpop.permute.xlu1 %921  ;;  %3768 = vmatpush.bf16.msra.mxu2 %v3710_v37 }
 0x18d   : > { %v4346_v2 = vpop.permute.xlu2 %933  ;;  %v974_v18 = vmul.f32 %v4019_v31, %v922_v36  ;;  %v814_v36 = vadd.f32 %v782_v27, %v621_v53  ;;  %v1097_v53 = vsel %vm1049_vm0, %v4419_v39, 0.0 }
 0x18f   : > { %v1006_v51 = vadd.f32 %v974_v18, %v813_v62 }
 0x194   : > { %v926_v56 = vpop.permute.xlu1 %925 }
 0x195   : > { %v975_v57 = vmul.f32 %v4019_v31, %v926_v56  ;;  %v623_v56 = vmul.f32 %v4005_v23, %v4302_v42  ;;  %v4434_v42 = vadd.f32 %v4234_v61, %v1006_v51 }
 0x196   : > { %v749_v58 = vpop.permute.xlu2 %748 }
 0x197   : > { %v1007_v46 = vadd.f32 %v975_v57, %v814_v36  ;;  %v1099_v27 = vsel %vm1049_vm0, %v4434_v42, 0.0 }
 0x199   : > { %v4441_v18 = vadd.f32 %v4234_v61, %v1007_v46 }
 0x19b   : > { %v1101_v57 = vsel %vm1049_vm0, %v4441_v18, 0.0 }
 0x19d   : > { %v741_v10 = vpop.permute.xlu1 %740 }
 0x19e   : > { %v784_v54 = vmul.f32 %v4009_v24, %v741_v10  ;;  %v753_v6 = vpop.permute.xlu2 %752  ;;  %v1093_v10 = vsel %vm1049_vm0, %v4410_v50, 0.0 }
 0x19f   : > { %v1094_v55 = vadd.f32 %v1093_v10, %v1092_v9  ;;  %v787_v46 = vmul.f32 %v4009_v24, %v753_v6 }
 0x1a0   : > { %v816_v38 = vadd.f32 %v784_v54, %v623_v56 }
 0x1a1   : > { %v1096_v32 = vadd.f32 %v1095_v33, %v1094_v55 }
 0x1a3   : > { %v1098_v62 = vadd.f32 %v1097_v53, %v1096_v32 }
 0x1a5   : > { %v745_v26 = vpop.permute.xlu1 %744  ;;  %v1100_v9 = vadd.f32 %v1099_v27, %v1098_v62 }
 0x1a6   : > { %v785_v0 = vmul.f32 %v4009_v24, %v745_v26  ;;  %v977_v26 = vmul.f32 %v4019_v31, %v4346_v2  ;;  %v786_v2 = vmul.f32 %v4009_v24, %v749_v58 }
 0x1a7   : > { %v946_v54 = vpop.permute.xlu2 %945 }
 0x1a8   : > { %v817_v29 = vadd.f32 %v785_v0, %v624_v28  ;;  %v1009_v63 = vadd.f32 %v977_v26, %v816_v38  ;;  %v1102_v0 = vadd.f32 %v1101_v57, %v1100_v9  ;;  %v980_v58 = vmul.f32 %v4019_v31, %v946_v54 }
 0x1a9   : > { %v1103_v28 = vsel %vm1049_vm0, %v4452_v12, 0.0 }
 0x1aa   : > { %v1010_v41 = vadd.f32 %v978_v35, %v817_v29  ;;  %v4455_v56 = vadd.f32 %v4234_v61, %v1009_v63  ;;  %v1104_v38 = vadd.f32 %v1103_v28, %v1102_v0  ;;  %v3859_v35 = vmov 256.0   ;;  %v3709_v63 = vld [vmem:[%s6962_s3 + $0x10] sm:$0xff] }
 0x1ab   : > { %3838 = vrcp.f32 %v3859_v35  ;;  %1441 = vmatpush.bf16.msra.mxu0 %v3709_v63  ;;  %3769 = vmatpush.bf16.msra.mxu1 %v3709_v63 }
 0x1ac   : > { %v4460_v10 = vadd.f32 %v4234_v61, %v1010_v41  ;;  %v1105_v20 = vsel %vm1049_vm0, %v4455_v56, 0.0  ;;  %3770 = vmatpush.bf16.msra.mxu2 %v3709_v63 }
 0x1ae   : > { %v587_v59 = vpop.permute.xlu1 %586  ;;  %v1107_v24 = vsel %vm1049_vm0, %v4460_v10, 0.0 }
 0x1af   : > { %v625_v36 = vmul.f32 %v4005_v23, %v587_v59 }
 0x1b1   : > { %v818_v59 = vadd.f32 %v786_v2, %v625_v36  ;;  %v3708_v2 = vld [vmem:[%s6962_s3 + $0x8] sm:$0xff]  ;;  %v3707_v36 = vld [vmem:[%s6962_s3] sm:$0xff] }
 0x1b2   : > { %1442 = vmatpush.bf16.msra.mxu0 %v3708_v2  ;;  %3771 = vmatpush.bf16.msra.mxu1 %v3708_v2 }
 0x1b3   : > { %3772 = vmatpush.bf16.msra.mxu2 %v3708_v2 }
 0x1b6   : > { %v592_v47 = vpop.permute.xlu1 %591  ;;  %1443 = vmatpush.bf16.msra.mxu0 %v3707_v36  ;;  %3773 = vmatpush.bf16.msra.mxu1 %v3707_v36 }
 0x1b7   : > { %v626_v51 = vmul.f32 %v4005_v23, %v592_v47  ;;  %v1106_v47 = vadd.f32 %v1105_v20, %v1104_v38  ;;  %3774 = vmatpush.bf16.msra.mxu2 %v3707_v36 }
 0x1b9   : > { %v819_v33 = vadd.f32 %v787_v46, %v626_v51 }
 0x1bb   : > { %v1012_v6 = vadd.f32 %v980_v58, %v819_v33 }
 0x1bd   : > { %v4475_v25 = vadd.f32 %v4234_v61, %v1012_v6 }
 0x1bf   : > { %v942_v40 = vpop.permute.xlu1 %941  ;;  %v1111_v29 = vsel %vm1049_vm0, %v4475_v25, 0.0 }
 0x1c0   : > { %v979_v23 = vmul.f32 %v4019_v31, %v942_v40  ;;  %v1108_v31 = vadd.f32 %v1107_v24, %v1106_v47 }
 0x1c2   : > { %v1011_v16 = vadd.f32 %v979_v23, %v818_v59 }
 0x1c4   : > { %v4470_v26 = vadd.f32 %v4234_v61, %v1011_v16  ;;  %v3839_v61 = vpop.eup %3838 }
 0x1c5   : > { %v1120_v57 = vmul.f32 256.0, %v3839_v61  ;;  %vm1124_vm1 = vweird.f32 %v3839_v61 }
 0x1c6   : > { %v1109_v55 = vsel %vm1049_vm0, %v4470_v26, 0.0 }
 0x1c7   : > { %v1110_v53 = vadd.f32 %v1109_v55, %v1108_v31  ;;  %v1121_v51 = vsub.f32 1.0, %v1120_v57 }
 0x1c9   : > { %v1112_v32 = vadd.f32 %v1111_v29, %v1110_v53  ;;  %v1122_v9 = vmul.f32 %v3839_v61, %v1121_v51 }
 0x1cb   : > { %v1113_v27 = vrot.slane %v1112_v32, 4  ;;  %v1123_v0 = vadd.f32 %v3839_v61, %v1122_v9 }
 0x1cd   : > { %v1114_v62 = vadd.f32 %v1113_v27, %v1112_v32  ;;  %v4491_v40 = vsel %vm1124_vm1, %v3839_v61, %v1123_v0 }
 0x1cf   : > { %v1115_v41 = vrot.slane %v1114_v62, 2 }
 0x1d1   : > { %v1116_v54 = vadd.f32 %v1115_v41, %v1114_v62 }
 0x1d3   : > { %v1117_v46 = vrot.slane %v1116_v54, 1 }
 0x1d5   : > { %v1118_v58 = vadd.f32 %v1117_v46, %v1116_v54 }
 0x1d7   : > { %v4494_v59 = vmul.f32 %v4491_v40, %v1118_v58 }
 0x1d9   : > { %v4498_v33 = vsub.f32 %v4254_v19, %v4494_v59  ;;  %v4502_v23 = vsub.f32 %v4262_v3, %v4494_v59  ;;  %v4506_v28 = vsub.f32 %v4246_v5, %v4494_v59  ;;  %v4510_v20 = vsub.f32 %v4240_v4, %v4494_v59 }
 0x1da   : > { %v4514_v16 = vsub.f32 %v4266_v8, %v4494_v59  ;;  %v4524_v5 = vsub.f32 %v4278_v52, %v4494_v59  ;;  %v4532_v47 = vsub.f32 %v4284_v1, %v4494_v59  ;;  %v4539_v52 = vsub.f32 %v4292_v44, %v4494_v59 }
 0x1db   : > { %v1161_v19 = vmul.f32 %v4498_v33, %v4498_v33  ;;  %v1159_v38 = vmul.f32 %v4506_v28, %v4506_v28  ;;  %v1160_v3 = vmul.f32 %v4510_v20, %v4510_v20  ;;  %v1162_v4 = vmul.f32 %v4502_v23, %v4502_v23 }
 0x1dc   : > { %v1163_v55 = vmul.f32 %v4514_v16, %v4514_v16  ;;  %v1164_v29 = vmul.f32 %v4524_v5, %v4524_v5  ;;  %v4546_v1 = vsub.f32 %v4300_v30, %v4494_v59  ;;  %v1165_v37 = vmul.f32 %v4532_v47, %v4532_v47 }
 0x1dd   : > { %v1191_v24 = vsel %vm1049_vm0, %v1159_v38, 0.0  ;;  %v1192_v8 = vsel %vm1049_vm0, %v1160_v3, 0.0  ;;  %v1194_v31 = vsel %vm1049_vm0, %v1161_v19, 0.0  ;;  %v1196_v35 = vsel %vm1049_vm0, %v1162_v4, 0.0 }
 0x1de   : > { %v1193_v6 = vadd.f32 %v1192_v8, %v1191_v24  ;;  %v1198_v27 = vsel %vm1049_vm0, %v1163_v55, 0.0  ;;  %v4553_v44 = vsub.f32 %v4308_v17, %v4494_v59  ;;  %v1166_v61 = vmul.f32 %v4539_v52, %v4539_v52 }
 0x1df   : > { %v1200_v62 = vsel %vm1049_vm0, %v1164_v29, 0.0  ;;  %v4560_v30 = vsub.f32 %v4312_v49, %v4494_v59  ;;  %v1167_v57 = vmul.f32 %v4546_v1, %v4546_v1  ;;  %v1202_v41 = vsel %vm1049_vm0, %v1165_v37, 0.0 }
 0x1e0   : > { %v1195_v53 = vadd.f32 %v1194_v31, %v1193_v6  ;;  %v4567_v17 = vsub.f32 %v4320_v60, %v4494_v59  ;;  %v1168_v51 = vmul.f32 %v4553_v44, %v4553_v44  ;;  %v1204_v54 = vsel %vm1049_vm0, %v1166_v61, 0.0 }
 0x1e1   : > { %v4574_v49 = vsub.f32 %v4326_v14, %v4494_v59  ;;  %v1169_v46 = vmul.f32 %v4560_v30, %v4560_v30  ;;  %v1206_v0 = vsel %vm1049_vm0, %v1167_v57, 0.0  ;;  %v4581_v60 = vsub.f32 %v4332_v11, %v4494_v59 }
 0x1e2   : > { %v1197_v32 = vadd.f32 %v1196_v35, %v1195_v53  ;;  %v1170_v19 = vmul.f32 %v4567_v17, %v4567_v17  ;;  %v1208_v38 = vsel %vm1049_vm0, %v1168_v51, 0.0  ;;  %v4588_v14 = vsub.f32 %v4336_v13, %v4494_v59 }
 0x1e3   : > { %v1171_v4 = vmul.f32 %v4574_v49, %v4574_v49  ;;  %v1210_v24 = vsel %vm1049_vm0, %v1169_v46, 0.0  ;;  %v4595_v11 = vsub.f32 %v4344_v15, %v4494_v59  ;;  %v1172_v6 = vmul.f32 %v4581_v60, %v4581_v60 }
 0x1e4   : > { %v1199_v63 = vadd.f32 %v1198_v27, %v1197_v32  ;;  %v1212_v55 = vsel %vm1049_vm0, %v1170_v19, 0.0  ;;  %v4602_v13 = vsub.f32 %v4352_v22, %v4494_v59  ;;  %v1173_v53 = vmul.f32 %v4588_v14, %v4588_v14 }
 0x1e5   : > { %v1214_v29 = vsel %vm1049_vm0, %v1171_v4, 0.0  ;;  %v4609_v15 = vsub.f32 %v4360_v43, %v4494_v59  ;;  %v1174_v32 = vmul.f32 %v4595_v11, %v4595_v11  ;;  %v1216_v37 = vsel %vm1049_vm0, %v1172_v6, 0.0 }
 0x1e6   : > { %v1201_v2 = vadd.f32 %v1200_v62, %v1199_v63  ;;  %v4616_v22 = vsub.f32 %v4364_v45, %v4494_v59  ;;  %v1175_v63 = vmul.f32 %v4602_v13, %v4602_v13  ;;  %v1218_v61 = vsel %vm1049_vm0, %v1173_v53, 0.0 }
 0x1e7   : > { %v4623_v43 = vsub.f32 %v4368_v48, %v4494_v59  ;;  %v1220_v57 = vsel %vm1049_vm0, %v1174_v32, 0.0  ;;  %v4630_v45 = vsub.f32 %v4383_v21, %v4494_v59  ;;  %v4637_v48 = vsub.f32 %v4387_v7, %v4494_v59 }
 0x1e8   : > { %v1203_v36 = vadd.f32 %v1202_v41, %v1201_v2  ;;  %v1176_v2 = vmul.f32 %v4609_v15, %v4609_v15  ;;  %v1222_v51 = vsel %vm1049_vm0, %v1175_v63, 0.0  ;;  %v4644_v21 = vsub.f32 %v4410_v50, %v4494_v59 }
 0x1e9   : > { %v4651_v7 = vsub.f32 %v4413_v34, %v4494_v59  ;;  %v4658_v50 = vsub.f32 %v4419_v39, %v4494_v59  ;;  %v4665_v34 = vsub.f32 %v4434_v42, %v4494_v59  ;;  %v1153_v39 = vsub.f32 %v4441_v18, %v4494_v59 }
 0x1ea   : > { %v1205_v9 = vadd.f32 %v1204_v54, %v1203_v36  ;;  %v1177_v36 = vmul.f32 %v4616_v22, %v4616_v22  ;;  %v1224_v46 = vsel %vm1049_vm0, %v1176_v2, 0.0 }
 0x1eb   : > { %v1184_v42 = vmul.f32 %v4665_v34, %v4665_v34  ;;  %v1185_v2 = vmul.f32 %v1153_v39, %v1153_v39 }
 0x1ec   : > { %v1207_v58 = vadd.f32 %v1206_v0, %v1205_v9  ;;  %v1178_v9 = vmul.f32 %v4623_v43, %v4623_v43  ;;  %v1226_v19 = vsel %vm1049_vm0, %v1177_v36, 0.0 }
 0x1ee   : > { %v1209_v3 = vadd.f32 %v1208_v38, %v1207_v58  ;;  %v1179_v58 = vmul.f32 %v4630_v45, %v4630_v45  ;;  %v1228_v4 = vsel %vm1049_vm0, %v1178_v9, 0.0 }
 0x1f0   : > { %v1211_v8 = vadd.f32 %v1210_v24, %v1209_v3  ;;  %v1180_v3 = vmul.f32 %v4637_v48, %v4637_v48  ;;  %v1230_v6 = vsel %vm1049_vm0, %v1179_v58, 0.0 }
 0x1f2   : > { %v1213_v31 = vadd.f32 %v1212_v55, %v1211_v8  ;;  %v1181_v8 = vmul.f32 %v4644_v21, %v4644_v21  ;;  %v1232_v53 = vsel %vm1049_vm0, %v1180_v3, 0.0 }
 0x1f4   : > { %v1215_v35 = vadd.f32 %v1214_v29, %v1213_v31  ;;  %v1182_v31 = vmul.f32 %v4651_v7, %v4651_v7  ;;  %v1234_v32 = vsel %vm1049_vm0, %v1181_v8, 0.0 }
 0x1f6   : > { %v1217_v27 = vadd.f32 %v1216_v37, %v1215_v35  ;;  %v1183_v35 = vmul.f32 %v4658_v50, %v4658_v50  ;;  %v1236_v63 = vsel %vm1049_vm0, %v1182_v31, 0.0 }
 0x1f8   : > { %v1219_v62 = vadd.f32 %v1218_v61, %v1217_v27  ;;  %v1154_v27 = vsub.f32 %v4452_v12, %v4494_v59  ;;  %v1238_v18 = vsel %vm1049_vm0, %v1183_v35, 0.0 }
 0x1fa   : > { %v1221_v41 = vadd.f32 %v1220_v57, %v1219_v62  ;;  %v1155_v62 = vsub.f32 %v4455_v56, %v4494_v59  ;;  %v1186_v36 = vmul.f32 %v1154_v27, %v1154_v27  ;;  %v4693_v56 = vsub.f32 %v4475_v25, %v4494_v59 }
 0x1fc   : > { %v1223_v54 = vadd.f32 %v1222_v51, %v1221_v41  ;;  %v1156_v41 = vsub.f32 %v4460_v10, %v4494_v59  ;;  %v1240_v51 = vsel %vm1049_vm0, %v1184_v42, 0.0  ;;  %v1187_v9 = vmul.f32 %v1155_v62, %v1155_v62 }
 0x1fe   : > { %v1225_v0 = vadd.f32 %v1224_v46, %v1223_v54  ;;  %v4688_v54 = vsub.f32 %v4470_v26, %v4494_v59  ;;  %v1242_v46 = vsel %vm1049_vm0, %v1185_v2, 0.0  ;;  %v1188_v58 = vmul.f32 %v1156_v41, %v1156_v41 }
 0x1ff   : > { %v1246_v3 = vsel %vm1049_vm0, %v1187_v9, 0.0  ;;  %v1190_v26 = vmul.f32 %v4693_v56, %v4693_v56 }
 0x200   : > { %v1227_v38 = vadd.f32 %v1226_v19, %v1225_v0  ;;  %v1244_v19 = vsel %vm1049_vm0, %v1186_v36, 0.0 }
 0x201   : > { %v1252_v59 = vsel %vm1049_vm0, %v1190_v26, 0.0 }
 0x202   : > { %v1229_v24 = vadd.f32 %v1228_v4, %v1227_v38  ;;  %v1189_v38 = vmul.f32 %v4688_v54, %v4688_v54 }
 0x204   : > { %v1231_v55 = vadd.f32 %v1230_v6, %v1229_v24  ;;  %v1248_v24 = vsel %vm1049_vm0, %v1188_v58, 0.0  ;;  %v1250_v6 = vsel %vm1049_vm0, %v1189_v38, 0.0 }
 0x206   : > { %v1233_v29 = vadd.f32 %v1232_v53, %v1231_v55 }
 0x208   : > { %v1235_v37 = vadd.f32 %v1234_v32, %v1233_v29 }
 0x20a   : > { %v1237_v61 = vadd.f32 %v1236_v63, %v1235_v37 }
 0x20c   : > { %v1239_v57 = vadd.f32 %v1238_v18, %v1237_v61 }
 0x20e   : > { %v1241_v12 = vadd.f32 %v1240_v51, %v1239_v57 }
 0x210   : > { %v1243_v0 = vadd.f32 %v1242_v46, %v1241_v12 }
 0x212   : > { %v1245_v10 = vadd.f32 %v1244_v19, %v1243_v0 }
 0x214   : > { %v1247_v4 = vadd.f32 %v1246_v3, %v1245_v10 }
 0x216   : > { %v1249_v8 = vadd.f32 %v1248_v24, %v1247_v4 }
 0x218   : > { %v1251_v25 = vadd.f32 %v1250_v6, %v1249_v8 }
 0x21a   : > { %v1253_v55 = vadd.f32 %v1252_v59, %v1251_v25 }
 0x21c   : > { %v1254_v31 = vrot.slane %v1253_v55, 4 }
 0x21e   : > { %v1255_v53 = vadd.f32 %v1254_v31, %v1253_v55 }
 0x220   : > { %v1256_v29 = vrot.slane %v1255_v53, 2 }
 0x222   : > { %v1257_v35 = vadd.f32 %v1256_v29, %v1255_v53 }
 0x224   : > { %v1258_v32 = vrot.slane %v1257_v35, 1 }
 0x226   : > { %v1259_v37 = vadd.f32 %v1258_v32, %v1257_v35 }
 0x228   : > { %v1260_v42 = vmul.f32 %v1259_v37, %v4491_v40 }
 0x22a   : > { %v1261_v63 = vadd.f32 1e-05, %v1260_v42 }
 0x22c   : > { %3840 = vrsqrt.f32 %v1261_v63  ;;  %vm1268_vm3 = vweird.f32 %v1261_v63 }
 0x232   : > { %v3841_v61 = vpop.eup %3840 }
 0x233   : > { %v1263_v2 = vmul.f32 %v3841_v61, %v1261_v63  ;;  %vm1269_vm2 = vweird.f32 %v3841_v61 }
 0x234   : > { %vm1270_vm4 = vmor %vm1268_vm3, %vm1269_vm2 }
 0x235   : > { %v1264_v18 = vmul.f32 %v3841_v61, %v1263_v2 }
 0x237   : > { %v1265_v57 = vmul.f32 0.5, %v1264_v18 }
 0x239   : > { %v1266_v36 = vsub.f32 1.5, %v1265_v57 }
 0x23b   : > { %v1267_v51 = vmul.f32 %v3841_v61, %v1266_v36 }
 0x23d   : > { %v4705_v12 = vsel %vm1270_vm4, %v3841_v61, %v1267_v51 }
 0x23e   : > { %v1272_v9 = vmul.f32 %v4705_v12, %v4506_v28  ;;  %v1273_v46 = vmul.f32 %v4705_v12, %v4510_v20  ;;  %v1286_v0 = vmul.f32 %v4705_v12, %v4588_v14  ;;  %v1287_v58 = vmul.f32 %v4705_v12, %v4595_v11 }
 0x23f   : > { %v1298_v19 = vmul.f32 %v4705_v12, %v1153_v39  ;;  %v1299_v10 = vmul.f32 %v4705_v12, %v1154_v27  ;;  %v1300_v14 = vmul.f32 %v4705_v12, %v1155_v62  ;;  %v1301_v11 = vmul.f32 %v4705_v12, %v1156_v41 }
 0x240   : > { %v1304_v38 = vmax.f32 %v1272_v9, 0.0  ;;  %v1305_v3 = vmax.f32 %v1273_v46, 0.0  ;;  %v1318_v4 = vmax.f32 %v1286_v0, 0.0  ;;  %v1319_v26 = vmax.f32 %v1287_v58, 0.0 }
 0x241   : > { %v1330_v24 = vmax.f32 %v1298_v19, 0.0  ;;  %v1331_v8 = vmax.f32 %v1299_v10, 0.0  ;;  %v1332_v39 = vmax.f32 %v1300_v14, 0.0  ;;  %v1333_v27 = vmax.f32 %v1301_v11, 0.0  ;;  %v3657_v11 = vld [vmem:[%s6967_s8 + $0x28] sm:$0xf0] }
 0x242   : > { %v4717_v28 = vpack.c.bf16 %v1305_v3, %v1304_v38  ;;  %v4719_v6 = vpack.c.bf16 %v1319_v26, %v1318_v4  ;;  %v1274_v59 = vmul.f32 %v4705_v12, %v4498_v33  ;;  %v1275_v62 = vmul.f32 %v4705_v12, %v4502_v23 }
 0x243   : > { %v4721_v20 = vpack.c.bf16 %v1331_v8, %v1330_v24  ;;  %v4731_v25 = vpack.c.bf16 %v1333_v27, %v1332_v39  ;;  %v1288_v41 = vmul.f32 %v4705_v12, %v4602_v13  ;;  %v1289_v55 = vmul.f32 %v4705_v12, %v4609_v15  ;;  %v3761_v27 = vld [vmem:[%s6967_s8 + $0x14] sm:$0xf] }
 0x244   : > { %7027 = vst [vmem:[#allocation2_spill] sm:$0xff] %v4717_v28  ;;  %3429 = vmatmul.msk.bf16.vlgmr.msra.gmra.mxu0 %vm1049_vm0, %v4717_v28  ;;  %3436 = vmatmul.msk.bf16.vlgmr.msra.gmra.mxu1 %vm1049_vm0, %v4719_v6  ;;  %v1306_v31 = vmax.f32 %v1274_v59, 0.0  ;;  %v1307_v53 = vmax.f32 %v1275_v62, 0.0  ;;  %v1276_v33 = vmul.f32 %v4705_v12, %v4514_v16  ;;  %v1277_v23 = vmul.f32 %v4705_v12, %v4524_v5  ;;  %v3649_v59 = vld [vmem:[%s6967_s8 + $0x18] sm:$0xf0] }
 0x245   : > { %7028 = vst [vmem:[#allocation3_spill] sm:$0xff] %v4719_v6  ;;  %3442 = vmatmul.msk.bf16.vlgmr.msra.gmra.mxu2 %vm1049_vm0, %v4721_v20  ;;  %v1320_v29 = vmax.f32 %v1288_v41, 0.0  ;;  %v1321_v35 = vmax.f32 %v1289_v55, 0.0  ;;  %v1290_v13 = vmul.f32 %v4705_v12, %v4616_v22  ;;  %v1291_v15 = vmul.f32 %v4705_v12, %v4623_v43 }
 0x246   : > { %7029 = vst [vmem:[#allocation4_spill] sm:$0xff] %v4721_v20  ;;  %v4741_v32 = vpack.c.bf16 %v1307_v53, %v1306_v31  ;;  %v1302_v42 = vmul.f32 %v4705_v12, %v4688_v54  ;;  %v1303_v63 = vmul.f32 %v4705_v12, %v4693_v56  ;;  %v1308_v61 = vmax.f32 %v1276_v33, 0.0 }
 0x247   : > { %7030 = vst [vmem:[#allocation5_spill] sm:$0xff] %v4731_v25  ;;  %v4743_v37 = vpack.c.bf16 %v1321_v35, %v1320_v29  ;;  %v1309_v2 = vmax.f32 %v1277_v23, 0.0  ;;  %v1322_v18 = vmax.f32 %v1290_v13, 0.0  ;;  %v1323_v57 = vmax.f32 %v1291_v15, 0.0  ;;  %v3759_v29 = vld [vmem:[%s6967_s8 + $0x4] sm:$0xf] }
 0x248   : > { %7031 = vst [vmem:[#allocation6_spill] sm:$0xff] %v4741_v32  ;;  %v1334_v16 = vmax.f32 %v1302_v42, 0.0  ;;  %v1335_v36 = vmax.f32 %v1303_v63, 0.0  ;;  %v1278_v43 = vmul.f32 %v4705_v12, %v4532_v47  ;;  %v1279_v54 = vmul.f32 %v4705_v12, %v4539_v52 }
 0x249   : > { %7032 = vst [vmem:[#allocation7_spill] sm:$0xff] %v4743_v37  ;;  %v4763_v51 = vpack.c.bf16 %v1309_v2, %v1308_v61  ;;  %v4765_v5 = vpack.c.bf16 %v1323_v57, %v1322_v18  ;;  %v1292_v56 = vmul.f32 %v4705_v12, %v4630_v45  ;;  %v1293_v9 = vmul.f32 %v4705_v12, %v4637_v48 }
 0x24a   : > { %v4767_v22 = vpack.c.bf16 %v1335_v36, %v1334_v16  ;;  %v1310_v46 = vmax.f32 %v1278_v43, 0.0  ;;  %v1311_v0 = vmax.f32 %v1279_v54, 0.0  ;;  %v1280_v47 = vmul.f32 %v4705_v12, %v4546_v1  ;;  %v3765_v1 = vld [vmem:[%s6967_s8 + $0x34] sm:$0xf] }
 0x24b   : > { %7033 = vst [vmem:[#allocation8_spill] sm:$0xff] %v4763_v51  ;;  %v1324_v58 = vmax.f32 %v1292_v56, 0.0  ;;  %v1325_v19 = vmax.f32 %v1293_v9, 0.0  ;;  %v1281_v52 = vmul.f32 %v4705_v12, %v4553_v44  ;;  %v1294_v45 = vmul.f32 %v4705_v12, %v4644_v21  ;;  %v3665_v44 = vld [vmem:[%s6967_s8 + $0x38] sm:$0xf0] }
 0x24c   : > { %7034 = vst [vmem:[#allocation9_spill] sm:$0xff] %v4765_v5  ;;  %v4783_v10 = vpack.c.bf16 %v1311_v0, %v1310_v46  ;;  %v1295_v48 = vmul.f32 %v4705_v12, %v4651_v7  ;;  %v1312_v3 = vmax.f32 %v1280_v47, 0.0  ;;  %v3763_v21 = vld [vmem:[%s6967_s8 + $0x24] sm:$0xf]  ;;  %v4816_v7 = vor.u32 %v3765_v1, %v3665_v44 }
 0x24d   : > { %7035 = vst [vmem:[#allocation10_spill] sm:$0xff] %v4767_v22  ;;  %v4785_v38 = vpack.c.bf16 %v1325_v19, %v1324_v58  ;;  %v1313_v4 = vmax.f32 %v1281_v52, 0.0  ;;  %v1326_v26 = vmax.f32 %v1294_v45, 0.0  ;;  %v4822_v39 = vor.u32 %v3763_v21, %v3657_v11  ;;  %v4882_v45 = vld [vmem:[%s6963_s4] ss:$0 sm:$0xff] }
 0x24e   : > { %7036 = vst [vmem:[#allocation11_spill] sm:$0xff] %v4783_v10  ;;  %v1327_v24 = vmax.f32 %v1295_v48, 0.0  ;;  %2865 = vmatpush.bf16.msrb.mxu0 %v4816_v7  ;;  %v1282_v62 = vmul.f32 %v4705_v12, %v4560_v30  ;;  %v1283_v41 = vmul.f32 %v4705_v12, %v4567_v17  ;;  %v1296_v55 = vmul.f32 %v4705_v12, %v4658_v50  ;;  %v3641_v30 = vld [vmem:[%s6967_s8 + $0x8] sm:$0xf0] }
 0x24f   : > { %7037 = vst [vmem:[#allocation12_spill] sm:$0xff] %v4785_v38  ;;  %v4799_v8 = vpack.c.bf16 %v1313_v4, %v1312_v3  ;;  %v1297_v31 = vmul.f32 %v4705_v12, %v4665_v34  ;;  %v4839_v53 = vor.u32 %v3761_v27, %v3649_v59  ;;  %v4848_v50 = vor.u32 %v3759_v29, %v3641_v30 }
 0x250   : > { %v4801_v14 = vpack.c.bf16 %v1327_v24, %v1326_v26  ;;  %7040 = vst [vmem:[#allocation15_spill] sm:$0xff] %v4816_v7  ;;  %v1314_v35 = vmax.f32 %v1282_v62, 0.0  ;;  %v1315_v17 = vmax.f32 %v1283_v41, 0.0  ;;  %v1328_v33 = vmax.f32 %v1296_v55, 0.0 }
 0x251   : > { %7038 = vst [vmem:[#allocation13_spill] sm:$0xff] %v4799_v8  ;;  %v1329_v23 = vmax.f32 %v1297_v31, 0.0  ;;  %v1284_v15 = vmul.f32 %v4705_v12, %v4574_v49  ;;  %v1285_v42 = vmul.f32 %v4705_v12, %v4581_v60 }
 0x252   : > { %7039 = vst [vmem:[#allocation14_spill] sm:$0xff] %v4801_v14  ;;  %2866 = vmatpush.bf16.msrb.mxu0 %v4822_v39  ;;  %v4850_v34 = vpack.c.bf16 %v1315_v17, %v1314_v35 }
 0x253   : > { %7041 = vst [vmem:[#allocation16_spill] sm:$0xff] %v4822_v39  ;;  %v4852_v13 = vpack.c.bf16 %v1329_v23, %v1328_v33  ;;  %v1316_v63 = vmax.f32 %v1284_v15, 0.0  ;;  %v1317_v61 = vmax.f32 %v1285_v42, 0.0 }
 0x254   : > { %3430 = vmatmul.msk.bf16.gmra.mxu0 %vm1049_vm0, %v4741_v32  ;;  %3437 = vmatmul.msk.bf16.gmra.mxu1 %vm1049_vm0, %v4743_v37  ;;  %7042 = vst [vmem:[#allocation17_spill] sm:$0xff] %v4839_v53 }
 0x255   : > { %3443 = vmatmul.msk.bf16.gmra.mxu2 %vm1049_vm0, %v4731_v25  ;;  %7043 = vst [vmem:[#allocation18_spill] sm:$0xff] %v4848_v50  ;;  %v4863_v2 = vpack.c.bf16 %v1317_v61, %v1316_v63 }
 0x256   : > { %2867 = vmatpush.bf16.msrb.mxu0 %v4839_v53  ;;  %7044 = vst [vmem:[#allocation19_spill] sm:$0xff] %v4850_v34 }
 0x257   : > { %7045 = vst [vmem:[#allocation20_spill] sm:$0xff] %v4852_v13 }
 0x258   : > { %7046 = vst [vmem:[#allocation21_spill] sm:$0xff] %v4863_v2 }
 0x25a   : > { %2868 = vmatpush.bf16.msrb.mxu0 %v4848_v50 }
 0x264   : > { %3431 = vmatmul.msk.bf16.gmra.mxu0 %vm1049_vm0, %v4763_v51  ;;  %3438 = vmatmul.msk.bf16.gmra.mxu1 %vm1049_vm0, %v4765_v5 }
 0x265   : > { %3444 = vmatmul.msk.bf16.gmra.mxu2 %vm1049_vm0, %v4767_v22 }
 0x274   : > { %3432 = vmatmul.msk.bf16.gmra.mxu0 %vm1049_vm0, %v4783_v10  ;;  %3439 = vmatmul.msk.bf16.gmra.mxu1 %vm1049_vm0, %v4785_v38 }
 0x284   : > { %3433 = vmatmul.msk.bf16.gmra.mxu0 %vm1049_vm0, %v4799_v8  ;;  %3440 = vmatmul.msk.bf16.gmra.mxu1 %vm1049_vm0, %v4801_v14 }
 0x294   : > { %3434 = vmatmul.msk.bf16.gmra.mxu0 %vm1049_vm0, %v4850_v34  ;;  %3441 = vmatmul.msk.bf16.gmra.mxu1 %vm1049_vm0, %v4852_v13 }
 0x2a4   : > { %3435 = vmatmul.msk.bf16.gmra.mxu0 %vm1049_vm0, %v4863_v2 }
 0x2b4   : > { %3685 = vmatmul.msk.bf16.vlgmr.msrb.gmra.mxu0 %vm1049_vm0, %v4717_v28 }
 0x2c1   : > { %v1445_v18 = vpop.f32.mrf.mxu0  ;;  %v1480_v16 = vpop.f32.mrf.mxu1 }
 0x2c2   : > { %v4888_v4 = vadd.f32 %v4882_v45, %v1445_v18 }
 0x2c4   : > { %3686 = vmatmul.msk.bf16.gmra.mxu0 %vm1049_vm0, %v4741_v32 }
 0x2c8   : > { %v1510_v62 = vpop.f32.mrf.mxu2 }
 0x2c9   : > { %v1447_v57 = vpop.f32.mrf.mxu0  ;;  %v1482_v12 = vpop.f32.mrf.mxu1 }
 0x2ca   : > { %v4885_v48 = vadd.f32 %v4882_v45, %v1447_v57 }
 0x2cc   : > { %v1525_v24 = vadd.f32 %v4885_v48, %v4888_v4 }
 0x2d0   : > { %v1512_v18 = vpop.f32.mrf.mxu2 }
 0x2d1   : > { %v1450_v49 = vpop.f32.mrf.mxu0  ;;  %v1485_v43 = vpop.f32.mrf.mxu1 }
 0x2d2   : > { %v4891_v26 = vadd.f32 %v4882_v45, %v1450_v49 }
 0x2d4   : > { %3687 = vmatmul.msk.bf16.gmra.mxu0 %vm1049_vm0, %v4763_v51  ;;  %v1526_v44 = vadd.f32 %v1525_v24, %v4891_v26 }
 0x2d9   : > { %v1452_v60 = vpop.f32.mrf.mxu0  ;;  %v1487_v56 = vpop.f32.mrf.mxu1 }
 0x2da   : > { %v4896_v1 = vadd.f32 %v4882_v45, %v1452_v60 }
 0x2dc   : > { %v1527_v27 = vadd.f32 %v1526_v44, %v4896_v1  ;;  %v1515_v44 = vpop.f32.mrf.mxu2 }
 0x2e1   : > { %v1455_v36 = vpop.f32.mrf.mxu0  ;;  %v1490_v46 = vpop.f32.mrf.mxu1 }
 0x2e2   : > { %v4902_v21 = vadd.f32 %v4882_v45, %v1455_v36 }
 0x2e4   : > { %3688 = vmatmul.msk.bf16.gmra.mxu0 %vm1049_vm0, %v4783_v10  ;;  %v1528_v55 = vadd.f32 %v1527_v27, %v4902_v21  ;;  %v1483_v27 = vadd.f32 %v4882_v45, %v1482_v12 }
 0x2e9   : > { %v1457_v54 = vpop.f32.mrf.mxu0  ;;  %v1492_v19 = vpop.f32.mrf.mxu1 }
 0x2ea   : > { %v4906_v59 = vadd.f32 %v4882_v45, %v1457_v54 }
 0x2ec   : > { %v1529_v29 = vadd.f32 %v1528_v55, %v4906_v59  ;;  %v1486_v55 = vadd.f32 %v4882_v45, %v1485_v43 }
 0x2f1   : > { %v1460_v9 = vpop.f32.mrf.mxu0  ;;  %v1495_v52 = vpop.f32.mrf.mxu1 }
 0x2f2   : > { %v4910_v31 = vadd.f32 %v4882_v45, %v1460_v9  ;;  %v1496_v12 = vadd.f32 %v4882_v45, %v1495_v52  ;;  %v1511_v52 = vadd.f32 %v4882_v45, %v1510_v62 }
 0x2f4   : > { %3689 = vmatmul.msk.bf16.gmra.mxu0 %vm1049_vm0, %v4799_v8  ;;  %v1530_v35 = vadd.f32 %v1529_v29, %v4910_v31 }
 0x2f9   : > { %v1462_v0 = vpop.f32.mrf.mxu0  ;;  %v1497_v11 = vpop.f32.mrf.mxu1 }
 0x2fa   : > { %v4914_v30 = vadd.f32 %v4882_v45, %v1462_v0  ;;  %v1498_v43 = vadd.f32 %v4882_v45, %v1497_v11  ;;  %v1513_v11 = vadd.f32 %v4882_v45, %v1512_v18 }
 0x2fc   : > { %v1531_v33 = vadd.f32 %v1530_v35, %v4914_v30  ;;  %v1488_v35 = vadd.f32 %v4882_v45, %v1487_v56 }
 0x301   : > { %v1465_v58 = vpop.f32.mrf.mxu0  ;;  %v1500_v15 = vpop.f32.mrf.mxu1 }
 0x302   : > { %v4918_v17 = vadd.f32 %v4882_v45, %v1465_v58  ;;  %v1501_v56 = vadd.f32 %v4882_v45, %v1500_v15 }
 0x304   : > { %3690 = vmatmul.msk.bf16.gmra.mxu0 %vm1049_vm0, %v4850_v34  ;;  %v1532_v63 = vadd.f32 %v1531_v33, %v4918_v17 }
 0x309   : > { %v1467_v47 = vpop.f32.mrf.mxu0 }
 0x30a   : > { %v4922_v23 = vadd.f32 %v4882_v45, %v1467_v47  ;;  %v1502_v47 = vpop.f32.mrf.mxu1 }
 0x30c   : > { %v1533_v57 = vadd.f32 %v1532_v63, %v4922_v23 }
 0x311   : > { %v1470_v3 = vpop.f32.mrf.mxu0 }
 0x312   : > { %v4926_v61 = vadd.f32 %v4882_v45, %v1470_v3  ;;  %v1481_v3 = vadd.f32 %v4882_v45, %v1480_v16  ;;  %v1493_v16 = vadd.f32 %v4882_v45, %v1492_v19 }
 0x314   : > { %3691 = vmatmul.msk.bf16.gmra.mxu0 %vm1049_vm0, %v4863_v2  ;;  %v1534_v60 = vadd.f32 %v1533_v57, %v4926_v61  ;;  %v1505_v57 = vpop.f32.mrf.mxu1 }
 0x319   : > { %v1472_v41 = vpop.f32.mrf.mxu0 }
 0x31a   : > { %v4930_v49 = vadd.f32 %v4882_v45, %v1472_v41 }
 0x31c   : > { %v1535_v54 = vadd.f32 %v1534_v60, %v4930_v49 }
 0x321   : > { %v1475_v42 = vpop.f32.mrf.mxu0 }
 0x322   : > { %v1476_v36 = vadd.f32 %v4882_v45, %v1475_v42  ;;  %v1491_v42 = vadd.f32 %v4882_v45, %v1490_v46  ;;  %v1503_v46 = vadd.f32 %v4882_v45, %v1502_v47  ;;  %v1516_v47 = vadd.f32 %v4882_v45, %v1515_v44 }
 0x324   : > { %3692 = vmatmul.msk.bf16.gmra.mxu0 %vm1049_vm0, %v4719_v6  ;;  %v1536_v0 = vadd.f32 %v1535_v54, %v1476_v36  ;;  %v1517_v54 = vpop.f32.mrf.mxu2 }
 0x329   : > { %v1477_v9 = vpop.f32.mrf.mxu0 }
 0x32a   : > { %v1478_v58 = vadd.f32 %v4882_v45, %v1477_v9 }
 0x32c   : > { %v1537_v24 = vadd.f32 %v1536_v0, %v1478_v58  ;;  %v1520_v6 = vpop.f32.mrf.mxu2 }
 0x32e   : > { %v1538_v41 = vadd.f32 %v1537_v24, %v1481_v3 }
 0x330   : > { %v1539_v29 = vadd.f32 %v1538_v41, %v1483_v27 }
 0x332   : > { %v1540_v33 = vadd.f32 %v1539_v29, %v1486_v55  ;;  %v1507_v29 = vpop.f32.mrf.mxu1 }
 0x333   : > { %v1508_v19 = vadd.f32 %v4882_v45, %v1507_v29 }
 0x334   : > { %v1541_v63 = vadd.f32 %v1540_v33, %v1488_v35  ;;  %3693 = vmatmul.msk.bf16.gmra.mxu0 %vm1049_vm0, %v4743_v37  ;;  %v1506_v33 = vadd.f32 %v4882_v45, %v1505_v57 }
 0x336   : > { %v1542_v60 = vadd.f32 %v1541_v63, %v1491_v42 }
 0x338   : > { %v1543_v9 = vadd.f32 %v1542_v60, %v1493_v16 }
 0x33a   : > { %v1544_v0 = vadd.f32 %v1543_v9, %v1496_v12 }
 0x33c   : > { %v1545_v24 = vadd.f32 %v1544_v0, %v1498_v43  ;;  %v1518_v0 = vadd.f32 %v4882_v45, %v1517_v54 }
 0x33e   : > { %v1546_v41 = vadd.f32 %v1545_v24, %v1501_v56  ;;  %v1522_v24 = vpop.f32.mrf.mxu2 }
 0x340   : > { %v1547_v37 = vadd.f32 %v1546_v41, %v1503_v46  ;;  %v1521_v41 = vadd.f32 %v4882_v45, %v1520_v6 }
 0x342   : > { %v1548_v63 = vadd.f32 %v1547_v37, %v1506_v33  ;;  %v1523_v37 = vadd.f32 %v4882_v45, %v1522_v24 }
 0x344   : > { %v1549_v60 = vadd.f32 %v1548_v63, %v1508_v19  ;;  %3694 = vmatmul.msk.bf16.gmra.mxu0 %vm1049_vm0, %v4765_v5 }
 0x346   : > { %v1550_v15 = vadd.f32 %v1549_v60, %v1511_v52 }
 0x348   : > { %v1551_v9 = vadd.f32 %v1550_v15, %v1513_v11 }
 0x34a   : > { %v1552_v57 = vadd.f32 %v1551_v9, %v1516_v47  ;;  %v4963_v9 = vpop.f32.mrf.mxu0 }
 0x34b   : > { %7047 = vst [vmem:[#allocation22_spill] sm:$0xff] %v4963_v9 }
 0x34c   : > { %v1553_v29 = vadd.f32 %v1552_v57, %v1518_v0 }
 0x34e   : > { %v1554_v62 = vadd.f32 %v1553_v29, %v1521_v41 }
 0x350   : > { %v1555_v63 = vadd.f32 %v1554_v62, %v1523_v37 }
 0x352   : > { %v1556_v2 = vrot.slane %v1555_v63, 4 }
 0x354   : > { %v1557_v34 = vadd.f32 %v1556_v2, %v1555_v63  ;;  %3695 = vmatmul.msk.bf16.gmra.mxu0 %vm1049_vm0, %v4785_v38 }
 0x356   : > { %v1558_v18 = vrot.slane %v1557_v34, 2 }
 0x358   : > { %v1559_v60 = vadd.f32 %v1558_v18, %v1557_v34 }
 0x35a   : > { %v1560_v44 = vrot.slane %v1559_v60, 1 }
 0x35c   : > { %v1561_v15 = vadd.f32 %v1560_v44, %v1559_v60 }
 0x35e   : > { %v1562_v54 = vmul.f32 %v1561_v15, %v4491_v40 }
 0x360   : > { %v4965_v5 = vsub.f32 %v1476_v36, %v1562_v54  ;;  %v4967_v6 = vsub.f32 %v1478_v58, %v1562_v54  ;;  %v4969_v45 = vsub.f32 %v1481_v3, %v1562_v54  ;;  %v4971_v57 = vsub.f32 %v1483_v27, %v1562_v54 }
 0x361   : > { %v4973_v2 = vsub.f32 %v1486_v55, %v1562_v54  ;;  %v4975_v24 = vsub.f32 %v1488_v35, %v1562_v54  ;;  %v4977_v29 = vsub.f32 %v1491_v42, %v1562_v54  ;;  %v4979_v34 = vsub.f32 %v1493_v16, %v1562_v54 }
 0x362   : > { %v4983_v62 = vsub.f32 %v1496_v12, %v1562_v54  ;;  %v4985_v36 = vsub.f32 %v1498_v43, %v1562_v54  ;;  %v4987_v58 = vsub.f32 %v1501_v56, %v1562_v54  ;;  %v4989_v3 = vsub.f32 %v1503_v46, %v1562_v54 }
 0x363   : > { %v4991_v27 = vsub.f32 %v1506_v33, %v1562_v54  ;;  %v4993_v55 = vsub.f32 %v1508_v19, %v1562_v54  ;;  %v4995_v35 = vsub.f32 %v1511_v52, %v1562_v54  ;;  %v4997_v42 = vsub.f32 %v1513_v11, %v1562_v54  ;;  %v5020_v11 = vpop.f32.mrf.mxu0 }
 0x364   : > { %3696 = vmatmul.msk.bf16.gmra.mxu0 %vm1049_vm0, %v4801_v14  ;;  %v4999_v16 = vsub.f32 %v1516_v47, %v1562_v54  ;;  %v5001_v63 = vsub.f32 %v1518_v0, %v1562_v54  ;;  %v5003_v12 = vsub.f32 %v1521_v41, %v1562_v54  ;;  %v5005_v43 = vsub.f32 %v1523_v37, %v1562_v54 }
 0x365   : > { %v5008_v56 = vsub.f32 %v4888_v4, %v1562_v54  ;;  %v5011_v46 = vsub.f32 %v4885_v48, %v1562_v54  ;;  %v5014_v33 = vsub.f32 %v4891_v26, %v1562_v54  ;;  %7048 = vst [vmem:[#allocation23_spill] sm:$0xff] %v5020_v11  ;;  %v5023_v47 = vsub.f32 %v4896_v1, %v1562_v54 }
 0x366   : > { %v5026_v4 = vsub.f32 %v4902_v21, %v1562_v54  ;;  %v5031_v26 = vsub.f32 %v4906_v59, %v1562_v54  ;;  %v5036_v18 = vsub.f32 %v4910_v31, %v1562_v54  ;;  %v5043_v21 = vsub.f32 %v4914_v30, %v1562_v54 }
 0x367   : > { %v1595_v19 = vmul.f32 %v5008_v56, %v5008_v56  ;;  %v1596_v52 = vmul.f32 %v5011_v46, %v5011_v46  ;;  %v1597_v48 = vmul.f32 %v5014_v33, %v5014_v33  ;;  %v1598_v41 = vmul.f32 %v5023_v47, %v5023_v47 }
 0x368   : > { %v1599_v1 = vmul.f32 %v5026_v4, %v5026_v4  ;;  %v1600_v59 = vmul.f32 %v5031_v26, %v5031_v26  ;;  %v1601_v31 = vmul.f32 %v5036_v18, %v5036_v18  ;;  %v1602_v30 = vmul.f32 %v5043_v21, %v5043_v21 }
 0x369   : > { %v1627_v0 = vadd.f32 %v1596_v52, %v1595_v19  ;;  %v5050_v19 = vsub.f32 %v4918_v17, %v1562_v54  ;;  %v5065_v17 = vsub.f32 %v4930_v49, %v1562_v54  ;;  %v1608_v49 = vmul.f32 %v4967_v6, %v4967_v6 }
 0x36b   : > { %v1628_v37 = vadd.f32 %v1627_v0, %v1597_v48  ;;  %v5047_v15 = vpop.f32.mrf.mxu0  ;;  %v5055_v48 = vsub.f32 %v4922_v23, %v1562_v54 }
 0x36c   : > { %7049 = vst [vmem:[#allocation24_spill] sm:$0xff] %v5047_v15 }
 0x36d   : > { %v1629_v60 = vadd.f32 %v1628_v37, %v1598_v41  ;;  %v5060_v41 = vsub.f32 %v4926_v61, %v1562_v54  ;;  %v1603_v37 = vmul.f32 %v5050_v19, %v5050_v19  ;;  %v1606_v61 = vmul.f32 %v5065_v17, %v5065_v17 }
 0x36f   : > { %v1630_v44 = vadd.f32 %v1629_v60, %v1599_v1  ;;  %v1604_v60 = vmul.f32 %v5055_v48, %v5055_v48  ;;  %v1605_v23 = vmul.f32 %v5060_v41, %v5060_v41 }
 0x371   : > { %v1631_v52 = vadd.f32 %v1630_v44, %v1600_v59 }
 0x373   : > { %v1632_v0 = vadd.f32 %v1631_v52, %v1601_v31  ;;  %v1607_v52 = vmul.f32 %v4965_v5, %v4965_v5 }
 0x374   : > { %3697 = vmatmul.msk.bf16.gmra.mxu0 %vm1049_vm0, %v4852_v13  ;;  %v5071_v13 = vpop.f32.mrf.mxu0 }
 0x375   : > { %v1633_v1 = vadd.f32 %v1632_v0, %v1602_v30  ;;  %7050 = vst [vmem:[#allocation25_spill] sm:$0xff] %v5071_v13  ;;  %v1609_v0 = vmul.f32 %v4969_v45, %v4969_v45 }
 0x377   : > { %v1634_v59 = vadd.f32 %v1633_v1, %v1603_v37  ;;  %v1610_v1 = vmul.f32 %v4971_v57, %v4971_v57 }
 0x379   : > { %v1635_v44 = vadd.f32 %v1634_v59, %v1604_v60 }
 0x37b   : > { %v1636_v31 = vadd.f32 %v1635_v44, %v1605_v23  ;;  %v1611_v23 = vmul.f32 %v4973_v2, %v4973_v2 }
 0x37c   : > { %v5085_v59 = vpop.f32.mrf.mxu0 }
 0x37d   : > { %v1637_v30 = vadd.f32 %v1636_v31, %v1606_v61  ;;  %7051 = vst [vmem:[#allocation26_spill] sm:$0xff] %v5085_v59  ;;  %v1612_v61 = vmul.f32 %v4975_v24, %v4975_v24 }
 0x37f   : > { %v1638_v54 = vadd.f32 %v1637_v30, %v1607_v52  ;;  %v1613_v52 = vmul.f32 %v4977_v29, %v4977_v29 }
 0x381   : > { %v1639_v37 = vadd.f32 %v1638_v54, %v1608_v49  ;;  %v1614_v49 = vmul.f32 %v4979_v34, %v4979_v34 }
 0x383   : > { %v1640_v60 = vadd.f32 %v1639_v37, %v1609_v0  ;;  %v1615_v0 = vmul.f32 %v4983_v62, %v4983_v62 }
 0x384   : > { %3698 = vmatmul.msk.bf16.gmra.mxu0 %vm1049_vm0, %v4721_v20  ;;  %v5097_v20 = vpop.f32.mrf.mxu0 }
 0x385   : > { %v1641_v44 = vadd.f32 %v1640_v60, %v1610_v1  ;;  %7052 = vst [vmem:[#allocation27_spill] sm:$0xff] %v5097_v20  ;;  %v1616_v1 = vmul.f32 %v4985_v36, %v4985_v36 }
 0x387   : > { %v1642_v31 = vadd.f32 %v1641_v44, %v1611_v23  ;;  %v1617_v23 = vmul.f32 %v4987_v58, %v4987_v58 }
 0x389   : > { %v1643_v30 = vadd.f32 %v1642_v31, %v1612_v61  ;;  %v1618_v61 = vmul.f32 %v4989_v3, %v4989_v3 }
 0x38b   : > { %v1644_v54 = vadd.f32 %v1643_v30, %v1613_v52  ;;  %v3503_v52 = vld [vmem:[%s6964_s5 + $0x70] sm:$0xf]  ;;  %v3726_v30 = vld [vmem:[%s6964_s5 + $0x74] sm:$0xf0] }
 0x38d   : > { %v1645_v37 = vadd.f32 %v1644_v54, %v1614_v49  ;;  %v3725_v49 = vld [vmem:[%s6964_s5 + $0x74] sm:$0xf]  ;;  %v3504_v54 = vor.u32 %v3726_v30, %v3503_v52  ;;  %v3724_v52 = vld [vmem:[%s6964_s5 + $0x64] sm:$0xf0]  ;;  %v3723_v30 = vld [vmem:[%s6964_s5 + $0x64] sm:$0xf] }
 0x38f   : > { %v1646_v60 = vadd.f32 %v1645_v37, %v1615_v0  ;;  %v3505_v0 = vld [vmem:[%s6964_s5 + $0x78] sm:$0xf0]  ;;  %v1619_v37 = vmul.f32 %v4991_v27, %v4991_v27  ;;  %1858 = vmatpush.bf16.msrb.mxu1 %v3504_v54 }
 0x391   : > { %v1647_v44 = vadd.f32 %v1646_v60, %v1616_v1  ;;  %v3508_v60 = vor.u32 %v3725_v49, %v3505_v0  ;;  %v1621_v49 = vmul.f32 %v4995_v35, %v4995_v35 }
 0x393   : > { %v1648_v31 = vadd.f32 %v1647_v44, %v1617_v23  ;;  %v1620_v23 = vmul.f32 %v4993_v55, %v4993_v55  ;;  %1947 = vmatpush.bf16.msrb.mxu2 %v3508_v60  ;;  %v3487_v60 = vld [vmem:[%s6964_s5 + $0x50] sm:$0xf] }
 0x394   : > { %3699 = vmatmul.msk.bf16.gmra.mxu0 %vm1049_vm0, %v4731_v25  ;;  %v3495_v25 = vld [vmem:[%s6964_s5 + $0x60] sm:$0xf] }
 0x395   : > { %v1649_v1 = vadd.f32 %v1648_v31, %v1618_v61  ;;  %v3496_v61 = vor.u32 %v3724_v52, %v3495_v25  ;;  %v3497_v31 = vld [vmem:[%s6964_s5 + $0x68] sm:$0xf0]  ;;  %v3722_v25 = vld [vmem:[%s6964_s5 + $0x54] sm:$0xf0]  ;;  %v3721_v52 = vld [vmem:[%s6964_s5 + $0x54] sm:$0xf] }
 0x396   : > { %v3500_v0 = vor.u32 %v3723_v30, %v3497_v31  ;;  %v1623_v30 = vmul.f32 %v4999_v16, %v4999_v16 }
 0x397   : > { %v1650_v44 = vadd.f32 %v1649_v1, %v1619_v37  ;;  %1859 = vmatpush.bf16.msrb.mxu1 %v3496_v61  ;;  %v1622_v37 = vmul.f32 %v4997_v42, %v4997_v42 }
 0x398   : > { %1948 = vmatpush.bf16.msrb.mxu2 %v3500_v0  ;;  %v3479_v0 = vld [vmem:[%s6964_s5 + $0x40] sm:$0xf] }
 0x399   : > { %v1651_v54 = vadd.f32 %v1650_v44, %v1620_v23  ;;  %v3488_v23 = vor.u32 %v3722_v25, %v3487_v60  ;;  %v3489_v44 = vld [vmem:[%s6964_s5 + $0x58] sm:$0xf0]  ;;  %v3720_v60 = vld [vmem:[%s6964_s5 + $0x44] sm:$0xf0]  ;;  %v3719_v25 = vld [vmem:[%s6964_s5 + $0x44] sm:$0xf] }
 0x39a   : > { %v3492_v31 = vor.u32 %v3721_v52, %v3489_v44  ;;  %v1625_v52 = vmul.f32 %v5003_v12, %v5003_v12 }
 0x39b   : > { %v1652_v1 = vadd.f32 %v1651_v54, %v1621_v49  ;;  %1860 = vmatpush.bf16.msrb.mxu1 %v3488_v23  ;;  %v1624_v49 = vmul.f32 %v5001_v63, %v5001_v63 }
 0x39c   : > { %1949 = vmatpush.bf16.msrb.mxu2 %v3492_v31  ;;  %v3471_v31 = vld [vmem:[%s6964_s5 + $0x30] sm:$0xf] }
 0x39d   : > { %v1653_v61 = vadd.f32 %v1652_v1, %v1622_v37  ;;  %v3480_v37 = vor.u32 %v3720_v60, %v3479_v0  ;;  %v3481_v1 = vld [vmem:[%s6964_s5 + $0x48] sm:$0xf0]  ;;  %v3718_v0 = vld [vmem:[%s6964_s5 + $0x34] sm:$0xf0]  ;;  %v3717_v60 = vld [vmem:[%s6964_s5 + $0x34] sm:$0xf] }
 0x39e   : > { %v3484_v44 = vor.u32 %v3719_v25, %v3481_v1 }
 0x39f   : > { %v1654_v54 = vadd.f32 %v1653_v61, %v1623_v30  ;;  %1861 = vmatpush.bf16.msrb.mxu1 %v3480_v37  ;;  %v1626_v30 = vmul.f32 %v5005_v43, %v5005_v43 }
 0x3a0   : > { %1950 = vmatpush.bf16.msrb.mxu2 %v3484_v44 }
 0x3a1   : > { %v1655_v23 = vadd.f32 %v1654_v54, %v1624_v49  ;;  %v3472_v49 = vor.u32 %v3718_v0, %v3471_v31  ;;  %v3473_v54 = vld [vmem:[%s6964_s5 + $0x38] sm:$0xf0]  ;;  %v3463_v31 = vld [vmem:[%s6964_s5 + $0x20] sm:$0xf] }
 0x3a2   : > { %v3476_v37 = vor.u32 %v3717_v60, %v3473_v54  ;;  %v3457_v54 = vld [vmem:[%s6964_s5 + $0x18] sm:$0xf0] }
 0x3a3   : > { %v1656_v61 = vadd.f32 %v1655_v23, %v1625_v52  ;;  %1862 = vmatpush.bf16.msrb.mxu1 %v3472_v49  ;;  %v3715_v52 = vld [vmem:[%s6964_s5 + $0x24] sm:$0xf]  ;;  %v3465_v23 = vld [vmem:[%s6964_s5 + $0x28] sm:$0xf0]  ;;  %v3713_v49 = vld [vmem:[%s6964_s5 + $0x14] sm:$0xf] }
 0x3a4   : > { %1951 = vmatpush.bf16.msrb.mxu2 %v3476_v37  ;;  %v3468_v44 = vor.u32 %v3715_v52, %v3465_v23  ;;  %v3460_v37 = vor.u32 %v3713_v49, %v3457_v54  ;;  %v3455_v52 = vld [vmem:[%s6964_s5 + $0x10] sm:$0xf]  ;;  %v3447_v49 = vld [vmem:[%s6964_s5] sm:$0xf] }
 0x3a5   : > { %v1657_v25 = vadd.f32 %v1656_v61, %v1626_v30  ;;  %v3716_v30 = vld [vmem:[%s6964_s5 + $0x24] sm:$0xf0] }
 0x3a6   : > { %v3464_v0 = vor.u32 %v3716_v30, %v3463_v31  ;;  %v3711_v31 = vld [vmem:[%s6964_s5 + $0x4] sm:$0xf]  ;;  %v3449_v30 = vld [vmem:[%s6964_s5 + $0x8] sm:$0xf0] }
 0x3a7   : > { %v1658_v1 = vrot.slane %v1657_v25, 4 }
 0x3a8   : > { %1952 = vmatpush.bf16.msrb.mxu2 %v3468_v44  ;;  %1863 = vmatpush.bf16.msrb.mxu1 %v3464_v0  ;;  %v3452_v0 = vor.u32 %v3711_v31, %v3449_v30 }
 0x3a9   : > { %v1659_v61 = vadd.f32 %v1658_v1, %v1657_v25  ;;  %v3714_v25 = vld [vmem:[%s6964_s5 + $0x14] sm:$0xf0] }
 0x3aa   : > { %v3456_v23 = vor.u32 %v3714_v25, %v3455_v52 }
 0x3ab   : > { %v1660_v60 = vrot.slane %v1659_v61, 2 }
 0x3ac   : > { %1953 = vmatpush.bf16.msrb.mxu2 %v3460_v37  ;;  %1864 = vmatpush.bf16.msrb.mxu1 %v3456_v23 }
 0x3ad   : > { %v1661_v1 = vadd.f32 %v1660_v60, %v1659_v61  ;;  %v3712_v61 = vld [vmem:[%s6964_s5 + $0x4] sm:$0xf0] }
 0x3ae   : > { %v3448_v54 = vor.u32 %v3712_v61, %v3447_v49 }
 0x3af   : > { %v1662_v44 = vrot.slane %v1661_v1, 1 }
 0x3b0   : > { %1954 = vmatpush.bf16.msrb.mxu2 %v3452_v0  ;;  %1865 = vmatpush.bf16.msrb.mxu1 %v3448_v54 }
 0x3b1   : > { %v1663_v60 = vadd.f32 %v1662_v44, %v1661_v1 }
 0x3b3   : > { %v1664_v37 = vmul.f32 %v1663_v60, %v4491_v40 }
 0x3b5   : > { %v1665_v52 = vadd.f32 1e-05, %v1664_v37 }
 0x3b7   : > { %3842 = vrsqrt.f32 %v1665_v52  ;;  %vm1672_vm6 = vweird.f32 %v1665_v52 }
 0x3bd   : > { %v3843_v25 = vpop.eup %3842 }
 0x3be   : > { %v1667_v23 = vmul.f32 %v3843_v25, %v1665_v52  ;;  %vm1673_vm5 = vweird.f32 %v3843_v25 }
 0x3bf   : > { %vm1674_vm7 = vmor %vm1672_vm6, %vm1673_vm5 }
 0x3c0   : > { %v1668_v14 = vmul.f32 %v3843_v25, %v1667_v23 }
 0x3c2   : > { %v1669_v31 = vmul.f32 0.5, %v1668_v14 }
 0x3c4   : > { %v1670_v30 = vsub.f32 1.5, %v1669_v31 }
 0x3c6   : > { %v1671_v38 = vmul.f32 %v3843_v25, %v1670_v30 }
 0x3c8   : > { %v5220_v20 = vsel %vm1674_vm7, %v3843_v25, %v1671_v38 }
 0x3c9   : > { %v1676_v1 = vmul.f32 %v5220_v20, %v5008_v56  ;;  %v1677_v44 = vmul.f32 %v5220_v20, %v5011_v46  ;;  %v1678_v14 = vmul.f32 %v5220_v20, %v5014_v33  ;;  %v1679_v60 = vmul.f32 %v5220_v20, %v5023_v47 }
 0x3ca   : > { %v1680_v56 = vmul.f32 %v5220_v20, %v5026_v4  ;;  %v1681_v46 = vmul.f32 %v5220_v20, %v5031_v26  ;;  %v1682_v33 = vmul.f32 %v5220_v20, %v5036_v18  ;;  %v1683_v47 = vmul.f32 %v5220_v20, %v5043_v21 }
 0x3cb   : > { %v1708_v0 = vmax.f32 %v1676_v1, 0.0  ;;  %v1709_v49 = vmax.f32 %v1677_v44, 0.0  ;;  %v1710_v54 = vmax.f32 %v1678_v14, 0.0  ;;  %v1711_v38 = vmax.f32 %v1679_v60, 0.0 }
 0x3cc   : > { %v1712_v52 = vmax.f32 %v1680_v56, 0.0  ;;  %v1713_v25 = vmax.f32 %v1681_v46, 0.0  ;;  %v1714_v31 = vmax.f32 %v1682_v33, 0.0  ;;  %v1715_v30 = vmax.f32 %v1683_v47, 0.0 }
 0x3cd   : > { %v1740_v61 = vpack.c.bf16 %v1709_v49, %v1708_v0  ;;  %v1741_v37 = vpack.c.bf16 %v1711_v38, %v1710_v54  ;;  %v1684_v4 = vmul.f32 %v5220_v20, %v5050_v19  ;;  %v1685_v26 = vmul.f32 %v5220_v20, %v5055_v48 }
 0x3ce   : > { %v1742_v23 = vpack.c.bf16 %v1713_v25, %v1712_v52  ;;  %v1743_v1 = vpack.c.bf16 %v1715_v30, %v1714_v31  ;;  %v1686_v18 = vmul.f32 %v5220_v20, %v5060_v41  ;;  %v1687_v21 = vmul.f32 %v5220_v20, %v5065_v17 }
 0x3cf   : > { %1866 = vmatmul.bf16.vlgmr.msrb.gmra.mxu1 %v1740_v61  ;;  %1955 = vmatmul.bf16.vlgmr.msrb.gmra.mxu2 %v1740_v61  ;;  %v1716_v44 = vmax.f32 %v1684_v4, 0.0  ;;  %v1717_v0 = vmax.f32 %v1685_v26, 0.0  ;;  %v1689_v19 = vmul.f32 %v5220_v20, %v4967_v6  ;;  %v1688_v48 = vmul.f32 %v5220_v20, %v4965_v5 }
 0x3d0   : > { %v1718_v61 = vmax.f32 %v1686_v18, 0.0  ;;  %v1719_v14 = vmax.f32 %v1687_v21, 0.0  ;;  %v1690_v41 = vmul.f32 %v5220_v20, %v4969_v45  ;;  %v1691_v17 = vmul.f32 %v5220_v20, %v4971_v57 }
 0x3d1   : > { %v1744_v49 = vpack.c.bf16 %v1717_v0, %v1716_v44  ;;  %v1720_v54 = vmax.f32 %v1688_v48, 0.0  ;;  %v1721_v38 = vmax.f32 %v1689_v19, 0.0  ;;  %v1692_v6 = vmul.f32 %v5220_v20, %v4973_v2 }
 0x3d2   : > { %v1745_v60 = vpack.c.bf16 %v1719_v14, %v1718_v61  ;;  %v1722_v56 = vmax.f32 %v1690_v41, 0.0  ;;  %v1723_v46 = vmax.f32 %v1691_v17, 0.0  ;;  %v1693_v5 = vmul.f32 %v5220_v20, %v4975_v24 }
 0x3d3   : > { %v1724_v25 = vmax.f32 %v1692_v6, 0.0  ;;  %v1694_v31 = vmul.f32 %v5220_v20, %v4977_v29  ;;  %v1695_v2 = vmul.f32 %v5220_v20, %v4979_v34  ;;  %v1697_v29 = vmul.f32 %v5220_v20, %v4985_v36 }
 0x3d4   : > { %v1747_v52 = vpack.c.bf16 %v1723_v46, %v1722_v56  ;;  %v1698_v48 = vmul.f32 %v5220_v20, %v4987_v58  ;;  %v1700_v46 = vmul.f32 %v5220_v20, %v4991_v27  ;;  %v1701_v58 = vmul.f32 %v5220_v20, %v4993_v55 }
 0x3d5   : > { %v1726_v30 = vmax.f32 %v1694_v31, 0.0  ;;  %v1729_v18 = vmax.f32 %v1697_v29, 0.0  ;;  %v1702_v31 = vmul.f32 %v5220_v20, %v4995_v35  ;;  %v1703_v27 = vmul.f32 %v5220_v20, %v4997_v42 }
 0x3d6   : > { %v1730_v36 = vmax.f32 %v1698_v48, 0.0  ;;  %v1705_v35 = vmul.f32 %v5220_v20, %v5001_v63 }
 0x3d7   : > { %v1734_v55 = vmax.f32 %v1702_v31, 0.0 }
 0x3df   : > { %1871 = vmatmul.bf16.gmra.mxu1 %v1741_v37  ;;  %1960 = vmatmul.bf16.gmra.mxu2 %v1741_v37  ;;  %v1746_v37 = vpack.c.bf16 %v1721_v38, %v1720_v54 }
 0x3ef   : > { %1876 = vmatmul.bf16.gmra.mxu1 %v1742_v23  ;;  %1965 = vmatmul.bf16.gmra.mxu2 %v1742_v23  ;;  %v1725_v23 = vmax.f32 %v1693_v5, 0.0 }
 0x3f1   : > { %v1748_v47 = vpack.c.bf16 %v1725_v23, %v1724_v25 }
 0x3ff   : > { %1881 = vmatmul.bf16.gmra.mxu1 %v1743_v1  ;;  %1970 = vmatmul.bf16.gmra.mxu2 %v1743_v1  ;;  %v1727_v1 = vmax.f32 %v1695_v2, 0.0  ;;  %v1735_v2 = vmax.f32 %v1703_v27, 0.0 }
 0x401   : > { %v1749_v26 = vpack.c.bf16 %v1727_v1, %v1726_v30 }
 0x40f   : > { %1886 = vmatmul.bf16.gmra.mxu1 %v1744_v49  ;;  %1975 = vmatmul.bf16.gmra.mxu2 %v1744_v49  ;;  %v1696_v49 = vmul.f32 %v5220_v20, %v4983_v62  ;;  %v1699_v62 = vmul.f32 %v5220_v20, %v4989_v3  ;;  %v1732_v3 = vmax.f32 %v1700_v46, 0.0 }
 0x411   : > { %v1728_v34 = vmax.f32 %v1696_v49, 0.0  ;;  %v1731_v54 = vmax.f32 %v1699_v62, 0.0 }
 0x413   : > { %v1750_v14 = vpack.c.bf16 %v1729_v18, %v1728_v34  ;;  %v1751_v41 = vpack.c.bf16 %v1731_v54, %v1730_v36  ;;  %v1704_v34 = vmul.f32 %v5220_v20, %v4999_v16  ;;  %v1737_v18 = vmax.f32 %v1705_v35, 0.0 }
 0x414   : > { %v1707_v16 = vmul.f32 %v5220_v20, %v5005_v43 }
 0x415   : > { %v1736_v42 = vmax.f32 %v1704_v34, 0.0 }
 0x416   : > { %v1739_v46 = vmax.f32 %v1707_v16, 0.0 }
 0x417   : > { %v1754_v62 = vpack.c.bf16 %v1737_v18, %v1736_v42 }
 0x41f   : > { %1891 = vmatmul.bf16.gmra.mxu1 %v1745_v60  ;;  %1980 = vmatmul.bf16.gmra.mxu2 %v1745_v60 }
 0x42f   : > { %1896 = vmatmul.bf16.gmra.mxu1 %v1746_v37  ;;  %1985 = vmatmul.bf16.gmra.mxu2 %v1746_v37 }
 0x43f   : > { %1901 = vmatmul.bf16.gmra.mxu1 %v1747_v52  ;;  %1990 = vmatmul.bf16.gmra.mxu2 %v1747_v52  ;;  %v1733_v52 = vmax.f32 %v1701_v58, 0.0 }
 0x441   : > { %v1752_v25 = vpack.c.bf16 %v1733_v52, %v1732_v3 }
 0x44c   : > { %v5258_v33 = vpop.f32.mrf.mxu1 }
 0x44f   : > { %1906 = vmatmul.bf16.gmra.mxu1 %v1748_v47  ;;  %1995 = vmatmul.bf16.gmra.mxu2 %v1748_v47 }
 0x452   : > { %v5260_v45 = vpop.f32.mrf.mxu2 }
 0x454   : > { %v5262_v57 = vpop.f32.mrf.mxu1 }
 0x45a   : > { %v5268_v24 = vpop.f32.mrf.mxu2 }
 0x45c   : > { %v5270_v4 = vpop.f32.mrf.mxu1 }
 0x45f   : > { %1911 = vmatmul.bf16.gmra.mxu1 %v1749_v26  ;;  %2000 = vmatmul.bf16.gmra.mxu2 %v1749_v26  ;;  %v1753_v26 = vpack.c.bf16 %v1735_v2, %v1734_v55 }
 0x462   : > { %v5272_v44 = vpop.f32.mrf.mxu2 }
 0x464   : > { %v5274_v0 = vpop.f32.mrf.mxu1 }
 0x46a   : > { %v5280_v21 = vpop.f32.mrf.mxu2 }
 0x46c   : > { %v5282_v61 = vpop.f32.mrf.mxu1 }
 0x46f   : > { %1916 = vmatmul.bf16.gmra.mxu1 %v1750_v14  ;;  %2005 = vmatmul.bf16.gmra.mxu2 %v1750_v14 }
 0x472   : > { %v5284_v60 = vpop.f32.mrf.mxu2 }
 0x474   : > { %v5286_v19 = vpop.f32.mrf.mxu1 }
 0x47a   : > { %v5292_v38 = vpop.f32.mrf.mxu2 }
 0x47c   : > { %v5294_v37 = vpop.f32.mrf.mxu1 }
 0x47f   : > { %1921 = vmatmul.bf16.gmra.mxu1 %v1751_v41  ;;  %2010 = vmatmul.bf16.gmra.mxu2 %v1751_v41  ;;  %v1706_v41 = vmul.f32 %v5220_v20, %v5003_v12 }
 0x481   : > { %v1738_v63 = vmax.f32 %v1706_v41, 0.0 }
 0x482   : > { %v5296_v17 = vpop.f32.mrf.mxu2 }
 0x483   : > { %v1755_v52 = vpack.c.bf16 %v1739_v46, %v1738_v63  ;;  %v1772_v63 = vld [vmem:[%s6965_s6] sm:$0x3] }
 0x484   : > { %v5298_v56 = vpop.f32.mrf.mxu1  ;;  %v5383_v59 = vperm.slane %v1772_v63, 0 }
 0x486   : > { %v5387_v13 = vadd.f32 %v5262_v57, %v5383_v59  ;;  %v5391_v15 = vadd.f32 %v5258_v33, %v5383_v59  ;;  %v5395_v11 = vadd.f32 %v5270_v4, %v5383_v59  ;;  %v5403_v10 = vadd.f32 %v5274_v0, %v5383_v59 }
 0x487   : > { %v5410_v33 = vadd.f32 %v5282_v61, %v5383_v59  ;;  %v5415_v32 = vadd.f32 %v5286_v19, %v5383_v59  ;;  %v5420_v0 = vadd.f32 %v5294_v37, %v5383_v59  ;;  %v5427_v61 = vadd.f32 %v5298_v56, %v5383_v59 }
 0x488   : > { %v2036_v8 = vadd.f32 %v5387_v13, %v5391_v15 }
 0x48a   : > { %v5304_v6 = vpop.f32.mrf.mxu2  ;;  %v2037_v57 = vadd.f32 %v2036_v8, %v5395_v11 }
 0x48c   : > { %v5306_v5 = vpop.f32.mrf.mxu1  ;;  %v2038_v4 = vadd.f32 %v2037_v57, %v5403_v10  ;;  %v5431_v57 = vperm.slane %v1772_v63, 1 }
 0x48e   : > { %v2039_v28 = vadd.f32 %v2038_v4, %v5410_v33  ;;  %v5436_v4 = vadd.f32 %v5306_v5, %v5383_v59  ;;  %v5440_v37 = vadd.f32 %v5268_v24, %v5431_v57  ;;  %v5449_v63 = vadd.f32 %v5260_v45, %v5431_v57 }
 0x48f   : > { %1926 = vmatmul.bf16.gmra.mxu1 %v1752_v25  ;;  %2015 = vmatmul.bf16.gmra.mxu2 %v1752_v25  ;;  %v5478_v39 = vadd.f32 %v5284_v60, %v5431_v57 }
 0x490   : > { %v2040_v8 = vadd.f32 %v2039_v28, %v5415_v32  ;;  %7053 = vst [vmem:[#allocation28_spill] sm:$0xff] %v5440_v37 }
 0x491   : > { %7055 = vst [vmem:[#allocation30_spill] sm:$0xff] %v5478_v39 }
 0x492   : > { %v5308_v23 = vpop.f32.mrf.mxu2  ;;  %v2041_v19 = vadd.f32 %v2040_v8, %v5420_v0  ;;  %v5453_v8 = vadd.f32 %v5272_v44, %v5431_v57 }
 0x494   : > { %v5310_v47 = vpop.f32.mrf.mxu1  ;;  %v2042_v28 = vadd.f32 %v2041_v19, %v5427_v61  ;;  %v5466_v19 = vadd.f32 %v5280_v21, %v5431_v57 }
 0x495   : > { %v5445_v56 = vadd.f32 %v5310_v47, %v5383_v59  ;;  %v2073_v47 = vadd.f32 %v5440_v37, %v5449_v63 }
 0x496   : > { %v2043_v5 = vadd.f32 %v2042_v28, %v5436_v4  ;;  %7054 = vst [vmem:[#allocation29_spill] sm:$0xff] %v5466_v19 }
 0x498   : > { %v2044_v45 = vadd.f32 %v2043_v5, %v5445_v56 }
 0x49a   : > { %v5316_v30 = vpop.f32.mrf.mxu2 }
 0x49c   : > { %v5318_v1 = vpop.f32.mrf.mxu1 }
 0x49d   : > { %v5458_v24 = vadd.f32 %v5318_v1, %v5383_v59  ;;  %v2074_v1 = vadd.f32 %v2073_v47, %v5453_v8 }
 0x49f   : > { %1931 = vmatmul.bf16.gmra.mxu1 %v1753_v26  ;;  %2020 = vmatmul.bf16.gmra.mxu2 %v1753_v26  ;;  %v2045_v7 = vadd.f32 %v2044_v45, %v5458_v24  ;;  %v2075_v5 = vadd.f32 %v2074_v1, %v5466_v19  ;;  %v5498_v45 = vadd.f32 %v5296_v17, %v5431_v57 }
 0x4a1   : > { %v2076_v60 = vadd.f32 %v2075_v5, %v5478_v39 }
 0x4a2   : > { %v5320_v49 = vpop.f32.mrf.mxu2 }
 0x4a4   : > { %v5322_v29 = vpop.f32.mrf.mxu1 }
 0x4a5   : > { %v5471_v44 = vadd.f32 %v5322_v29, %v5383_v59  ;;  %v5488_v29 = vadd.f32 %v5292_v38, %v5431_v57 }
 0x4a7   : > { %v2046_v37 = vadd.f32 %v2045_v7, %v5471_v44  ;;  %v2077_v7 = vadd.f32 %v2076_v60, %v5488_v29 }
 0x4aa   : > { %v5328_v14 = vpop.f32.mrf.mxu2 }
 0x4ac   : > { %v5330_v48 = vpop.f32.mrf.mxu1 }
 0x4ad   : > { %v5483_v21 = vadd.f32 %v5330_v48, %v5383_v59 }
 0x4af   : > { %1936 = vmatmul.bf16.gmra.mxu1 %v1754_v62  ;;  %2025 = vmatmul.bf16.gmra.mxu2 %v1754_v62  ;;  %v2047_v48 = vadd.f32 %v2046_v37, %v5483_v21  ;;  %v2078_v37 = vadd.f32 %v2077_v7, %v5498_v45 }
 0x4b2   : > { %v5332_v36 = vpop.f32.mrf.mxu2 }
 0x4b4   : > { %v5334_v54 = vpop.f32.mrf.mxu1 }
 0x4b5   : > { %v5493_v47 = vadd.f32 %v5334_v54, %v5383_v59  ;;  %v5510_v54 = vadd.f32 %v5304_v6, %v5431_v57 }
 0x4b7   : > { %7056 = vst [vmem:[#allocation31_spill] sm:$0xff] %v5510_v54  ;;  %v2048_v5 = vadd.f32 %v2047_v48, %v5493_v47  ;;  %v2079_v6 = vadd.f32 %v2078_v37, %v5510_v54  ;;  %v5530_v48 = vadd.f32 %v5316_v30, %v5431_v57 }
 0x4ba   : > { %v5340_v58 = vpop.f32.mrf.mxu2 }
 0x4bc   : > { %v5342_v3 = vpop.f32.mrf.mxu1 }
 0x4bd   : > { %v5503_v1 = vadd.f32 %v5342_v3, %v5383_v59  ;;  %v5520_v3 = vadd.f32 %v5308_v23, %v5431_v57 }
 0x4bf   : > { %1941 = vmatmul.bf16.gmra.mxu1 %v1755_v52  ;;  %2030 = vmatmul.bf16.gmra.mxu2 %v1755_v52  ;;  %7057 = vst [vmem:[#allocation32_spill] sm:$0xff] %v5520_v3  ;;  %v2049_v19 = vadd.f32 %v2048_v5, %v5503_v1  ;;  %v2080_v23 = vadd.f32 %v2079_v6, %v5520_v3 }
 0x4c0   : > { %v5540_v5 = vadd.f32 %v5320_v49, %v5431_v57 }
 0x4c2   : > { %v5344_v25 = vpop.f32.mrf.mxu2 }
 0x4c4   : > { %v5346_v31 = vpop.f32.mrf.mxu1 }
 0x4c5   : > { %v5515_v17 = vadd.f32 %v5346_v31, %v5383_v59 }
 0x4c7   : > { %v2050_v31 = vadd.f32 %v2049_v19, %v5515_v17  ;;  %v2081_v19 = vadd.f32 %v2080_v23, %v5530_v48 }
 0x4ca   : > { %v5348_v27 = vpop.f32.mrf.mxu2 }
 0x4cc   : > { %v5350_v55 = vpop.f32.mrf.mxu1 }
 0x4cd   : > { %v5525_v60 = vadd.f32 %v5350_v55, %v5383_v59 }
 0x4cf   : > { %v2051_v55 = vadd.f32 %v2050_v31, %v5525_v60  ;;  %v2082_v31 = vadd.f32 %v2081_v19, %v5540_v5 }
 0x4d2   : > { %v5352_v12 = vpop.f32.mrf.mxu2 }
 0x4d4   : > { %v5354_v20 = vpop.f32.mrf.mxu1 }
 0x4d5   : > { %v5535_v7 = vadd.f32 %v5354_v20, %v5383_v59  ;;  %v5552_v20 = vadd.f32 %v5328_v14, %v5431_v57 }
 0x4d7   : > { %7058 = vst [vmem:[#allocation33_spill] sm:$0xff] %v5552_v20  ;;  %v2052_v6 = vadd.f32 %v2051_v55, %v5535_v7  ;;  %v2083_v14 = vadd.f32 %v2082_v31, %v5552_v20  ;;  %v5572_v55 = vadd.f32 %v5340_v58, %v5431_v57 }
 0x4da   : > { %v5356_v43 = vpop.f32.mrf.mxu2 }
 0x4dc   : > { %v5358_v2 = vpop.f32.mrf.mxu1 }
 0x4dd   : > { %v5545_v37 = vadd.f32 %v5358_v2, %v5383_v59  ;;  %v5562_v2 = vadd.f32 %v5332_v36, %v5431_v57 }
 0x4df   : > { %7059 = vst [vmem:[#allocation34_spill] sm:$0xff] %v5562_v2  ;;  %v2053_v54 = vadd.f32 %v2052_v6, %v5545_v37  ;;  %v2084_v36 = vadd.f32 %v2083_v14, %v5562_v2  ;;  %v5582_v6 = vadd.f32 %v5344_v25, %v5431_v57 }
 0x4e1   : > { %v2085_v20 = vadd.f32 %v2084_v36, %v5572_v55 }
 0x4e2   : > { %v5360_v26 = vpop.f32.mrf.mxu2 }
 0x4e4   : > { %v5362_v34 = vpop.f32.mrf.mxu1 }
 0x4e5   : > { %v5557_v49 = vadd.f32 %v5362_v34, %v5383_v59 }
 0x4e7   : > { %v2054_v34 = vadd.f32 %v2053_v54, %v5557_v49  ;;  %v5592_v54 = vadd.f32 %v5348_v27, %v5431_v57 }
 0x4e9   : > { %7060 = vst [vmem:[#allocation35_spill] sm:$0xff] %v5592_v54 }
 0x4ea   : > { %v5364_v35 = vpop.f32.mrf.mxu2 }
 0x4ec   : > { %v5366_v42 = vpop.f32.mrf.mxu1 }
 0x4ed   : > { %v5567_v23 = vadd.f32 %v5366_v42, %v5383_v59 }
 0x4ef   : > { %v2055_v42 = vadd.f32 %v2054_v34, %v5567_v23  ;;  %v2086_v34 = vadd.f32 %v2085_v20, %v5582_v6 }
 0x4f1   : > { %v2087_v27 = vadd.f32 %v2086_v34, %v5592_v54 }
 0x4f2   : > { %v5368_v18 = vpop.f32.mrf.mxu2 }
 0x4f4   : > { %v5370_v62 = vpop.f32.mrf.mxu1 }
 0x4f5   : > { %v5577_v19 = vadd.f32 %v5370_v62, %v5383_v59 }
 0x4f7   : > { %v2056_v62 = vadd.f32 %v2055_v42, %v5577_v19  ;;  %v5612_v42 = vadd.f32 %v5356_v43, %v5431_v57 }
 0x4f9   : > { %7062 = vst [vmem:[#allocation37_spill] sm:$0xff] %v5612_v42 }
 0x4fa   : > { %v5372_v41 = vpop.f32.mrf.mxu2 }
 0x4fc   : > { %v5374_v16 = vpop.f32.mrf.mxu1 }
 0x4fd   : > { %v5587_v31 = vadd.f32 %v5374_v16, %v5383_v59  ;;  %v5602_v16 = vadd.f32 %v5352_v12, %v5431_v57 }
 0x4ff   : > { %7061 = vst [vmem:[#allocation36_spill] sm:$0xff] %v5602_v16  ;;  %v2057_v2 = vadd.f32 %v2056_v62, %v5587_v31  ;;  %v2088_v12 = vadd.f32 %v2087_v27, %v5602_v16  ;;  %v5622_v62 = vadd.f32 %v5360_v26, %v5431_v57 }
 0x501   : > { %v2089_v43 = vadd.f32 %v2088_v12, %v5612_v42 }
 0x502   : > { %v5379_v46 = vpop.f32.mrf.mxu2 }
 0x503   : > { %v2090_v54 = vadd.f32 %v2089_v43, %v5622_v62 }
 0x504   : > { %v5381_v52 = vpop.f32.mrf.mxu1 }
 0x505   : > { %v5597_v14 = vadd.f32 %v5381_v52, %v5383_v59 }
 0x507   : > { %v2058_v52 = vadd.f32 %v2057_v2, %v5597_v14  ;;  %v5632_v2 = vadd.f32 %v5364_v35, %v5431_v57 }
 0x509   : > { %v2091_v35 = vadd.f32 %v2090_v54, %v5632_v2 }
 0x50a   : > { %v5397_v9 = vpop.f32.mrf.mxu2 }
 0x50c   : > { %v5405_v51 = vpop.f32.mrf.mxu1 }
 0x50d   : > { %v5607_v36 = vadd.f32 %v5405_v51, %v5383_v59 }
 0x50f   : > { %v2059_v51 = vadd.f32 %v2058_v52, %v5607_v36  ;;  %v5641_v52 = vadd.f32 %v5368_v18, %v5431_v57  ;;  %v5659_v18 = vadd.f32 %v5379_v46, %v5431_v57 }
 0x511   : > { %7063 = vst [vmem:[#allocation38_spill] sm:$0xff] %v5641_v52  ;;  %v2092_v43 = vadd.f32 %v2091_v35, %v5641_v52 }
 0x512   : > { %v5422_v22 = vpop.f32.mrf.mxu2  ;;  %7064 = vst [vmem:[#allocation39_spill] sm:$0xff] %v5659_v18 }
 0x513   : > { %v5674_v46 = vadd.f32 %v5422_v22, %v5431_v57 }
 0x514   : > { %v5429_v50 = vpop.f32.mrf.mxu1 }
 0x515   : > { %v5617_v20 = vadd.f32 %v5429_v50, %v5383_v59  ;;  %7066 = vst [vmem:[#allocation41_spill] sm:$0xff] %v5674_v46 }
 0x517   : > { %v2060_v50 = vadd.f32 %v2059_v51, %v5617_v20  ;;  %v5650_v51 = vadd.f32 %v5372_v41, %v5431_v57  ;;  %v5668_v41 = vadd.f32 %v5397_v9, %v5431_v57 }
 0x519   : > { %v2093_v54 = vadd.f32 %v2092_v43, %v5650_v51  ;;  %7065 = vst [vmem:[#allocation40_spill] sm:$0xff] %v5668_v41 }
 0x51a   : > { %v5460_v53 = vpop.f32.mrf.mxu2 }
 0x51b   : > { %v2094_v35 = vadd.f32 %v2093_v54, %v5659_v18  ;;  %v5683_v9 = vadd.f32 %v5460_v53, %v5431_v57 }
 0x51c   : > { %v5473_v28 = vpop.f32.mrf.mxu1 }
 0x51d   : > { %v5627_v34 = vadd.f32 %v5473_v28, %v5383_v59  ;;  %v2095_v43 = vadd.f32 %v2094_v35, %v5668_v41  ;;  %7067 = vst [vmem:[#allocation42_spill] sm:$0xff] %v5683_v9 }
 0x51f   : > { %v2061_v28 = vadd.f32 %v2060_v50, %v5627_v34  ;;  %v2096_v54 = vadd.f32 %v2095_v43, %v5674_v46 }
 0x522   : > { %v5505_v38 = vpop.f32.mrf.mxu2 }
 0x523   : > { %v5689_v22 = vadd.f32 %v5505_v38, %v5431_v57 }
 0x524   : > { %v1934_v39 = vpop.f32.mrf.mxu1 }
 0x525   : > { %v5636_v27 = vadd.f32 %v1934_v39, %v5383_v59 }
 0x527   : > { %v2062_v39 = vadd.f32 %v2061_v28, %v5636_v27 }
 0x52a   : > { %v5547_v30 = vpop.f32.mrf.mxu2 }
 0x52c   : > { %v1937_v3 = vpop.f32.mrf.mxu1 }
 0x52d   : > { %v5645_v12 = vadd.f32 %v1937_v3, %v5383_v59 }
 0x52f   : > { %v2063_v3 = vadd.f32 %v2062_v39, %v5645_v12 }
 0x532   : > { %v2026_v58 = vpop.f32.mrf.mxu2 }
 0x533   : > { %v5698_v53 = vadd.f32 %v2026_v58, %v5431_v57 }
 0x534   : > { %v1939_v25 = vpop.f32.mrf.mxu1 }
 0x535   : > { %v5654_v42 = vadd.f32 %v1939_v25, %v5383_v59 }
 0x537   : > { %v2064_v25 = vadd.f32 %v2063_v3, %v5654_v42 }
 0x53a   : > { %v2028_v16 = vpop.f32.mrf.mxu2 }
 0x53b   : > { %v5702_v46 = vadd.f32 %v2028_v16, %v5431_v57 }
 0x53c   : > { %v1942_v26 = vpop.f32.mrf.mxu1 }
 0x53d   : > { %v5663_v50 = vadd.f32 %v1942_v26, %v5383_v59 }
 0x53f   : > { %v2065_v39 = vadd.f32 %v2064_v25, %v5663_v50  ;;  %v2097_v25 = vadd.f32 %v2096_v54, %v5683_v9 }
 0x541   : > { %v2098_v35 = vadd.f32 %v2097_v25, %v5689_v22 }
 0x542   : > { %v2031_v52 = vpop.f32.mrf.mxu2 }
 0x543   : > { %v5706_v9 = vadd.f32 %v2031_v52, %v5431_v57 }
 0x544   : > { %v1944_v28 = vpop.f32.mrf.mxu1 }
 0x545   : > { %v5678_v26 = vadd.f32 %v1944_v28, %v5383_v59  ;;  %v5694_v59 = vadd.f32 %v5547_v30, %v5431_v57 }
 0x547   : > { %v2066_v3 = vadd.f32 %v2065_v39, %v5678_v26  ;;  %v2099_v43 = vadd.f32 %v2098_v35, %v5694_v59 }
 0x549   : > { %v2067_v18 = vrot.slane %v2066_v3, 4  ;;  %v2100_v54 = vadd.f32 %v2099_v43, %v5698_v53 }
 0x54a   : > { %v2033_v41 = vpop.f32.mrf.mxu2 }
 0x54b   : > { %v2068_v28 = vadd.f32 %v2067_v18, %v2066_v3  ;;  %v2101_v30 = vadd.f32 %v2100_v54, %v5702_v46  ;;  %v5710_v3 = vadd.f32 %v2033_v41, %v5431_v57 }
 0x54d   : > { %v2069_v39 = vrot.slane %v2068_v28, 2  ;;  %v2102_v58 = vadd.f32 %v2101_v30, %v5706_v9 }
 0x54f   : > { %v2070_v38 = vadd.f32 %v2069_v39, %v2068_v28  ;;  %v2103_v35 = vadd.f32 %v2102_v58, %v5710_v3 }
 0x551   : > { %v2071_v18 = vrot.slane %v2070_v38, 1  ;;  %v2104_v28 = vrot.slane %v2103_v35, 4 }
 0x553   : > { %v2072_v25 = vadd.f32 %v2071_v18, %v2070_v38  ;;  %v2105_v43 = vadd.f32 %v2104_v28, %v2103_v35 }
 0x555   : > { %v5715_v16 = vmul.f32 %v2072_v25, %v4491_v40  ;;  %v2106_v54 = vrot.slane %v2105_v43, 2 }
 0x557   : > { %v5719_v39 = vsub.f32 %v5391_v15, %v5715_v16  ;;  %v5723_v52 = vsub.f32 %v5387_v13, %v5715_v16  ;;  %v5727_v57 = vsub.f32 %v5395_v11, %v5715_v16  ;;  %v5735_v15 = vsub.f32 %v5403_v10, %v5715_v16 }
 0x558   : > { %v5739_v13 = vsub.f32 %v5410_v33, %v5715_v16  ;;  %v2107_v18 = vadd.f32 %v2106_v54, %v2105_v43  ;;  %v5745_v58 = vsub.f32 %v5415_v32, %v5715_v16  ;;  %v5751_v10 = vsub.f32 %v5420_v0, %v5715_v16 }
 0x559   : > { %7068 = vst [vmem:[#allocation43_spill] sm:$0xff] %v5723_v52  ;;  %v2176_v41 = vmul.f32 %v5719_v39, %v5719_v39  ;;  %v2178_v38 = vmul.f32 %v5723_v52, %v5723_v52  ;;  %v2180_v30 = vmul.f32 %v5727_v57, %v5727_v57  ;;  %v2182_v25 = vmul.f32 %v5735_v15, %v5735_v15 }
 0x55a   : > { %v2184_v33 = vmul.f32 %v5739_v13, %v5739_v13  ;;  %v2108_v52 = vrot.slane %v2107_v18, 1  ;;  %v5757_v43 = vsub.f32 %v5427_v61, %v5715_v16  ;;  %v2186_v32 = vmul.f32 %v5745_v58, %v5745_v58 }
 0x55b   : > { %v2240_v11 = vadd.f32 %v2178_v38, %v2176_v41  ;;  %v5763_v38 = vsub.f32 %v5436_v4, %v5715_v16  ;;  %v2188_v0 = vmul.f32 %v5751_v10, %v5751_v10 }
 0x55c   : > { %v2190_v61 = vmul.f32 %v5757_v43, %v5757_v43 }
 0x55d   : > { %v2241_v35 = vadd.f32 %v2240_v11, %v2180_v30  ;;  %v2109_v30 = vadd.f32 %v2108_v52, %v2107_v18  ;;  %v5769_v11 = vsub.f32 %v5445_v56, %v5715_v16  ;;  %v2192_v4 = vmul.f32 %v5763_v38, %v5763_v38 }
 0x55e   : > { %v5784_v52 = vsub.f32 %v5471_v44, %v5715_v16 }
 0x55f   : > { %v2242_v28 = vadd.f32 %v2241_v35, %v2182_v25  ;;  %v5775_v35 = vsub.f32 %v5458_v24, %v5715_v16  ;;  %v2194_v56 = vmul.f32 %v5769_v11, %v5769_v11 }
 0x561   : > { %v2243_v41 = vadd.f32 %v2242_v28, %v2184_v33  ;;  %v5780_v28 = vmul.f32 %v2109_v30, %v4491_v40  ;;  %v2196_v24 = vmul.f32 %v5775_v35, %v5775_v35  ;;  %v5804_v30 = vsub.f32 %v5493_v47, %v5715_v16 }
 0x563   : > { %v2244_v54 = vadd.f32 %v2243_v41, %v2186_v32  ;;  %v5790_v32 = vsub.f32 %v5483_v21, %v5715_v16  ;;  %v2198_v21 = vmul.f32 %v5784_v52, %v5784_v52 }
 0x565   : > { %v2245_v25 = vadd.f32 %v2244_v54, %v2188_v0  ;;  %v5796_v0 = vsub.f32 %v5449_v63, %v5780_v28  ;;  %v7070_v54 = vld [vmem:[#allocation28_spill] sm:$0xff]  ;;  %v2200_v63 = vmul.f32 %v5790_v32, %v5790_v32 }
 0x566   : > { %v5800_v44 = vsub.f32 %v7070_v54, %v5780_v28 }
 0x567   : > { %v2246_v33 = vadd.f32 %v2245_v25, %v2190_v61  ;;  %7069 = vst [vmem:[#allocation44_spill] sm:$0xff] %v5796_v0  ;;  %v5810_v25 = vsub.f32 %v5503_v1, %v5715_v16  ;;  %v2177_v47 = vmul.f32 %v5796_v0, %v5796_v0  ;;  %v2202_v1 = vmul.f32 %v5804_v30, %v5804_v30  ;;  %v7075_v0 = vld [vmem:[#allocation30_spill] sm:$0xff] }
 0x568   : > { %7071 = vst [vmem:[#allocation28_spill] sm:$0xff] %v5800_v44 }
 0x569   : > { %v2247_v18 = vadd.f32 %v2246_v33, %v2192_v4  ;;  %7072 = vst [vmem:[#allocation45_spill] sm:$0xff] %v5810_v25  ;;  %v5816_v33 = vsub.f32 %v5453_v8, %v5780_v28  ;;  %v5834_v8 = vsub.f32 %v5525_v60, %v5715_v16 }
 0x56b   : > { %v2248_v41 = vadd.f32 %v2247_v18, %v2194_v56  ;;  %7073 = vst [vmem:[#allocation46_spill] sm:$0xff] %v5816_v33  ;;  %v2179_v56 = vmul.f32 %v5800_v44, %v5800_v44  ;;  %v5824_v18 = vsub.f32 %v5515_v17, %v5715_v16  ;;  %v5840_v17 = vsub.f32 %v7075_v0, %v5780_v28 }
 0x56c   : > { %v2181_v44 = vmul.f32 %v5816_v33, %v5816_v33 }
 0x56d   : > { %v2249_v61 = vadd.f32 %v2248_v41, %v2196_v24  ;;  %v7074_v41 = vld [vmem:[#allocation29_spill] sm:$0xff]  ;;  %v2206_v60 = vmul.f32 %v5824_v18, %v5824_v18 }
 0x56e   : > { %v5830_v54 = vsub.f32 %v7074_v41, %v5780_v28  ;;  %7076 = vst [vmem:[#allocation29_spill] sm:$0xff] %v5840_v17 }
 0x56f   : > { %v2250_v4 = vadd.f32 %v2249_v61, %v2198_v21  ;;  %v2204_v21 = vmul.f32 %v5810_v25, %v5810_v25  ;;  %v5852_v25 = vsub.f32 %v5488_v29, %v5780_v28  ;;  %v2185_v29 = vmul.f32 %v5840_v17, %v5840_v17 }
 0x570   : > { %v2183_v0 = vmul.f32 %v5830_v54, %v5830_v54 }
 0x571   : > { %v2251_v24 = vadd.f32 %v2250_v4, %v2200_v63  ;;  %v2277_v63 = vadd.f32 %v2179_v56, %v2177_v47  ;;  %v5846_v4 = vsub.f32 %v5535_v7, %v5715_v16  ;;  %v2208_v7 = vmul.f32 %v5834_v8, %v5834_v8 }
 0x572   : > { %v5864_v56 = vsub.f32 %v5498_v45, %v5780_v28  ;;  %v2187_v45 = vmul.f32 %v5852_v25, %v5852_v25 }
 0x573   : > { %v2252_v61 = vadd.f32 %v2251_v24, %v2202_v1  ;;  %v2278_v1 = vadd.f32 %v2277_v63, %v2181_v44  ;;  %v5858_v24 = vsub.f32 %v5545_v37, %v5715_v16  ;;  %v2210_v37 = vmul.f32 %v5846_v4, %v5846_v4  ;;  %v7078_v63 = vld [vmem:[#allocation31_spill] sm:$0xff] }
 0x574   : > { %7077 = vst [vmem:[#allocation30_spill] sm:$0xff] %v5864_v56  ;;  %v5876_v33 = vsub.f32 %v7078_v63, %v5780_v28  ;;  %v5894_v63 = vsub.f32 %v5577_v19, %v5715_v16 }
 0x575   : > { %v2253_v41 = vadd.f32 %v2252_v61, %v2204_v21  ;;  %v2279_v21 = vadd.f32 %v2278_v1, %v2183_v0  ;;  %v5870_v61 = vsub.f32 %v5557_v49, %v5715_v16  ;;  %v2212_v49 = vmul.f32 %v5858_v24, %v5858_v24  ;;  %v7079_v1 = vld [vmem:[#allocation32_spill] sm:$0xff] }
 0x576   : > { %v5888_v17 = vsub.f32 %v7079_v1, %v5780_v28  ;;  %v5906_v1 = vsub.f32 %v5587_v31, %v5715_v16  ;;  %v2218_v31 = vmul.f32 %v5894_v63, %v5894_v63 }
 0x577   : > { %v2254_v47 = vadd.f32 %v2253_v41, %v2206_v60  ;;  %v2280_v60 = vadd.f32 %v2279_v21, %v2185_v29  ;;  %v5882_v41 = vsub.f32 %v5567_v23, %v5715_v16  ;;  %v2214_v23 = vmul.f32 %v5870_v61, %v5870_v61 }
 0x578   : > { %7080 = vst [vmem:[#allocation31_spill] sm:$0xff] %v5888_v17  ;;  %v5900_v21 = vsub.f32 %v5530_v48, %v5780_v28  ;;  %v2193_v48 = vmul.f32 %v5888_v17, %v5888_v17 }
 0x579   : > { %v2255_v44 = vadd.f32 %v2254_v47, %v2208_v7  ;;  %v2189_v7 = vmul.f32 %v5864_v56, %v5864_v56  ;;  %v2281_v47 = vadd.f32 %v2280_v60, %v2187_v45  ;;  %v2216_v19 = vmul.f32 %v5882_v41, %v5882_v41 }
 0x57a   : > { %v5912_v60 = vsub.f32 %v5540_v5, %v5780_v28  ;;  %v2195_v5 = vmul.f32 %v5900_v21, %v5900_v21 }
 0x57b   : > { %v2256_v0 = vadd.f32 %v2255_v44, %v2210_v37  ;;  %v2191_v37 = vmul.f32 %v5876_v33, %v5876_v33  ;;  %v2282_v44 = vadd.f32 %v2281_v47, %v2189_v7  ;;  %v7082_v47 = vld [vmem:[#allocation33_spill] sm:$0xff] }
 0x57c   : > { %7081 = vst [vmem:[#allocation32_spill] sm:$0xff] %v5912_v60  ;;  %v5924_v56 = vsub.f32 %v7082_v47, %v5780_v28  ;;  %v5942_v47 = vsub.f32 %v5617_v20, %v5715_v16 }
 0x57d   : > { %v2257_v29 = vadd.f32 %v2256_v0, %v2212_v49  ;;  %v2283_v49 = vadd.f32 %v2282_v44, %v2191_v37  ;;  %v5918_v0 = vsub.f32 %v5597_v14, %v5715_v16  ;;  %v2220_v14 = vmul.f32 %v5906_v1, %v5906_v1  ;;  %v7083_v44 = vld [vmem:[#allocation34_spill] sm:$0xff] }
 0x57e   : > { %v5936_v17 = vsub.f32 %v7083_v44, %v5780_v28  ;;  %v5954_v44 = vsub.f32 %v5627_v34, %v5715_v16  ;;  %v2226_v34 = vmul.f32 %v5942_v47, %v5942_v47 }
 0x57f   : > { %v2258_v45 = vadd.f32 %v2257_v29, %v2214_v23  ;;  %v2284_v23 = vadd.f32 %v2283_v49, %v2193_v48  ;;  %v5930_v29 = vsub.f32 %v5607_v36, %v5715_v16  ;;  %v2222_v36 = vmul.f32 %v5918_v0, %v5918_v0 }
 0x580   : > { %7084 = vst [vmem:[#allocation33_spill] sm:$0xff] %v5936_v17  ;;  %v5948_v49 = vsub.f32 %v5572_v55, %v5780_v28  ;;  %v2201_v55 = vmul.f32 %v5936_v17, %v5936_v17 }
 0x581   : > { %v2259_v7 = vadd.f32 %v2258_v45, %v2216_v19  ;;  %v2197_v19 = vmul.f32 %v5912_v60, %v5912_v60  ;;  %v2285_v45 = vadd.f32 %v2284_v23, %v2195_v5  ;;  %v2224_v20 = vmul.f32 %v5930_v29, %v5930_v29 }
 0x582   : > { %7085 = vst [vmem:[#allocation34_spill] sm:$0xff] %v5948_v49  ;;  %v5960_v23 = vsub.f32 %v5582_v6, %v5780_v28  ;;  %v2203_v6 = vmul.f32 %v5948_v49, %v5948_v49 }
 0x583   : > { %v2260_v37 = vadd.f32 %v2259_v7, %v2218_v31  ;;  %v2199_v31 = vmul.f32 %v5924_v56, %v5924_v56  ;;  %v2286_v7 = vadd.f32 %v2285_v45, %v2197_v19  ;;  %v7087_v45 = vld [vmem:[#allocation35_spill] sm:$0xff] }
 0x584   : > { %7086 = vst [vmem:[#allocation47_spill] sm:$0xff] %v5960_v23  ;;  %v5972_v60 = vsub.f32 %v7087_v45, %v5780_v28  ;;  %v5990_v45 = vsub.f32 %v5654_v42, %v5715_v16 }
 0x585   : > { %v2261_v48 = vadd.f32 %v2260_v37, %v2220_v14  ;;  %v2287_v14 = vadd.f32 %v2286_v7, %v2199_v31  ;;  %v5966_v37 = vsub.f32 %v5636_v27, %v5715_v16  ;;  %v2228_v27 = vmul.f32 %v5954_v44, %v5954_v44  ;;  %v7088_v7 = vld [vmem:[#allocation36_spill] sm:$0xff] }
 0x586   : > { %v5984_v17 = vsub.f32 %v7088_v7, %v5780_v28  ;;  %v6002_v7 = vsub.f32 %v5663_v50, %v5715_v16  ;;  %v2234_v50 = vmul.f32 %v5990_v45, %v5990_v45 }
 0x587   : > { %v2262_v5 = vadd.f32 %v2261_v48, %v2222_v36  ;;  %v2288_v36 = vadd.f32 %v2287_v14, %v2201_v55  ;;  %v5978_v48 = vsub.f32 %v5645_v12, %v5715_v16  ;;  %v2230_v12 = vmul.f32 %v5966_v37, %v5966_v37  ;;  %v7090_v14 = vld [vmem:[#allocation37_spill] sm:$0xff] }
 0x588   : > { %7089 = vst [vmem:[#allocation35_spill] sm:$0xff] %v5984_v17  ;;  %v5996_v49 = vsub.f32 %v7090_v14, %v5780_v28  ;;  %v6014_v14 = vsub.f32 %v5678_v26, %v5715_v16 }
 0x589   : > { %v2263_v19 = vadd.f32 %v2262_v5, %v2224_v20  ;;  %v2205_v20 = vmul.f32 %v5960_v23, %v5960_v23  ;;  %v2289_v5 = vadd.f32 %v2288_v36, %v2203_v6  ;;  %v2232_v42 = vmul.f32 %v5978_v48, %v5978_v48 }
 0x58a   : > { %v6008_v36 = vsub.f32 %v5622_v62, %v5780_v28  ;;  %v2211_v62 = vmul.f32 %v5996_v49, %v5996_v49 }
 0x58b   : > { %v2264_v31 = vadd.f32 %v2263_v19, %v2226_v34  ;;  %v2207_v34 = vmul.f32 %v5972_v60, %v5972_v60  ;;  %v2290_v19 = vadd.f32 %v2289_v5, %v2205_v20  ;;  %v6020_v5 = vsub.f32 %v5632_v2, %v5780_v28 }
 0x58c   : > { %7091 = vst [vmem:[#allocation36_spill] sm:$0xff] %v6008_v36  ;;  %v2213_v16 = vmul.f32 %v6008_v36, %v6008_v36  ;;  %v2238_v2 = vmul.f32 %v6014_v14, %v6014_v14 }
 0x58d   : > { %v2265_v55 = vadd.f32 %v2264_v31, %v2228_v27  ;;  %v2209_v27 = vmul.f32 %v5984_v17, %v5984_v17  ;;  %v2291_v31 = vadd.f32 %v2290_v19, %v2207_v34  ;;  %7092 = vst [vmem:[#allocation37_spill] sm:$0xff] %v6020_v5  ;;  %v7093_v19 = vld [vmem:[#allocation38_spill] sm:$0xff]  ;;  %v6036_v17 = vsub.f32 %v5650_v51, %v5780_v28 }
 0x58e   : > { %v6028_v26 = vsub.f32 %v7093_v19, %v5780_v28 }
 0x58f   : > { %v2266_v6 = vadd.f32 %v2265_v55, %v2230_v12  ;;  %v2292_v12 = vadd.f32 %v2291_v31, %v2209_v27  ;;  %v2236_v55 = vmul.f32 %v6002_v7, %v6002_v7  ;;  %7095 = vst [vmem:[#allocation48_spill] sm:$0xff] %v6036_v17  ;;  %v2215_v27 = vmul.f32 %v6020_v5, %v6020_v5 }
 0x590   : > { %7094 = vst [vmem:[#allocation38_spill] sm:$0xff] %v6028_v26  ;;  %v2219_v51 = vmul.f32 %v6036_v17, %v6036_v17 }
 0x591   : > { %v2267_v20 = vadd.f32 %v2266_v6, %v2232_v42  ;;  %v2293_v42 = vadd.f32 %v2292_v12, %v2211_v62  ;;  %v2217_v62 = vmul.f32 %v6028_v26, %v6028_v26 }
 0x593   : > { %v2268_v34 = vadd.f32 %v2267_v20, %v2234_v50  ;;  %v2294_v31 = vadd.f32 %v2293_v42, %v2213_v16  ;;  %v7096_v20 = vld [vmem:[#allocation39_spill] sm:$0xff]  ;;  %v7098_v16 = vld [vmem:[#allocation41_spill] sm:$0xff] }
 0x594   : > { %v6042_v19 = vsub.f32 %v7096_v20, %v5780_v28  ;;  %v6054_v42 = vsub.f32 %v7098_v16, %v5780_v28 }
 0x595   : > { %v2269_v6 = vadd.f32 %v2268_v34, %v2236_v55  ;;  %v2295_v12 = vadd.f32 %v2294_v31, %v2215_v27  ;;  %v7097_v55 = vld [vmem:[#allocation40_spill] sm:$0xff]  ;;  %v7100_v27 = vld [vmem:[#allocation42_spill] sm:$0xff] }
 0x596   : > { %v6048_v34 = vsub.f32 %v7097_v55, %v5780_v28  ;;  %7099 = vst [vmem:[#allocation39_spill] sm:$0xff] %v6054_v42  ;;  %v6060_v31 = vsub.f32 %v7100_v27, %v5780_v28 }
 0x597   : > { %v2270_v50 = vadd.f32 %v2269_v6, %v2238_v2  ;;  %v2296_v23 = vadd.f32 %v2295_v12, %v2217_v62  ;;  %v2221_v2 = vmul.f32 %v6042_v19, %v6042_v19 }
 0x598   : > { %v2223_v55 = vmul.f32 %v6048_v34, %v6048_v34 }
 0x599   : > { %v2271_v36 = vrot.slane %v2270_v50, 4  ;;  %v2297_v6 = vadd.f32 %v2296_v23, %v2219_v51  ;;  %v6072_v23 = vsub.f32 %v5694_v59, %v5780_v28  ;;  %v2227_v51 = vmul.f32 %v6060_v31, %v6060_v31 }
 0x59b   : > { %v2272_v5 = vadd.f32 %v2271_v36, %v2270_v50  ;;  %v2298_v26 = vadd.f32 %v2297_v6, %v2221_v2  ;;  %v6066_v36 = vsub.f32 %v5689_v22, %v5780_v28  ;;  %v2225_v50 = vmul.f32 %v6054_v42, %v6054_v42 }
 0x59c   : > { %v6085_v6 = vsub.f32 %v5702_v46, %v5780_v28  ;;  %v2231_v59 = vmul.f32 %v6072_v23, %v6072_v23 }
 0x59d   : > { %v2273_v20 = vrot.slane %v2272_v5, 2  ;;  %7101 = vst [vmem:[#allocation40_spill] sm:$0xff] %v6066_v36  ;;  %v2299_v62 = vadd.f32 %v2298_v26, %v2223_v55  ;;  %v2229_v22 = vmul.f32 %v6066_v36, %v6066_v36 }
 0x59e   : > { %v2235_v46 = vmul.f32 %v6085_v6, %v6085_v6 }
 0x59f   : > { %v2274_v17 = vadd.f32 %v2273_v20, %v2272_v5  ;;  %v2300_v16 = vadd.f32 %v2299_v62, %v2225_v50  ;;  %v6078_v5 = vsub.f32 %v5698_v53, %v5780_v28  ;;  %v6097_v62 = vsub.f32 %v5710_v3, %v5780_v28 }
 0x5a1   : > { %v2275_v12 = vrot.slane %v2274_v17, 1  ;;  %7102 = vst [vmem:[#allocation41_spill] sm:$0xff] %v6078_v5  ;;  %v2301_v2 = vadd.f32 %v2300_v16, %v2227_v51  ;;  %v2233_v53 = vmul.f32 %v6078_v5, %v6078_v5 }
 0x5a3   : > { %v2276_v27 = vadd.f32 %v2275_v12, %v2274_v17  ;;  %v2302_v20 = vadd.f32 %v2301_v2, %v2229_v22  ;;  %v6091_v17 = vsub.f32 %v5706_v9, %v5780_v28  ;;  %v2239_v9 = vmul.f32 %v6097_v62, %v6097_v62 }
 0x5a5   : > { %v2314_v26 = vmul.f32 %v2276_v27, %v4491_v40  ;;  %v2303_v50 = vadd.f32 %v2302_v20, %v2231_v59  ;;  %v2237_v51 = vmul.f32 %v6091_v17, %v6091_v17 }
 0x5a7   : > { %v2316_v55 = vadd.f32 1e-05, %v2314_v26  ;;  %v2304_v12 = vadd.f32 %v2303_v50, %v2233_v53  ;;  %v3631_v53 = vld [vmem:[%s6966_s7 + $0xf0] sm:$0xf]  ;;  %v3758_v50 = vld [vmem:[%s6966_s7 + $0xf4] sm:$0xf0] }
 0x5a9   : > { %3844 = vrsqrt.f32 %v2316_v55  ;;  %v2305_v16 = vadd.f32 %v2304_v12, %v2235_v46  ;;  %vm2324_vm9 = vweird.f32 %v2316_v55  ;;  %v3632_v12 = vor.u32 %v3758_v50, %v3631_v53 }
 0x5ab   : > { %v2306_v27 = vadd.f32 %v2305_v16, %v2237_v51  ;;  %2683 = vmatpush.bf16.msra.mxu3 %v3632_v12 }
 0x5ad   : > { %v2307_v2 = vadd.f32 %v2306_v27, %v2239_v9  ;;  %v7103_v27 = vld [vmem:[#allocation43_spill] sm:$0xff] }
 0x5af   : > { %v3845_v22 = vpop.eup %3844  ;;  %v2308_v59 = vrot.slane %v2307_v2, 4 }
 0x5b0   : > { %v2319_v26 = vmul.f32 %v3845_v22, %v2316_v55  ;;  %vm2325_vm8 = vweird.f32 %v3845_v22 }
 0x5b1   : > { %v2309_v5 = vadd.f32 %v2308_v59, %v2307_v2  ;;  %vm2326_vm10 = vmor %vm2324_vm9, %vm2325_vm8 }
 0x5b2   : > { %v2320_v20 = vmul.f32 %v3845_v22, %v2319_v26 }
 0x5b3   : > { %v2310_v36 = vrot.slane %v2309_v5, 2 }
 0x5b4   : > { %v2321_v3 = vmul.f32 0.5, %v2320_v20 }
 0x5b5   : > { %v2311_v46 = vadd.f32 %v2310_v36, %v2309_v5  ;;  %v3623_v36 = vld [vmem:[%s6966_s7 + $0xe0] sm:$0xf] }
 0x5b6   : > { %v2322_v28 = vsub.f32 1.5, %v2321_v3 }
 0x5b7   : > { %v2312_v16 = vrot.slane %v2311_v46, 1 }
 0x5b8   : > { %v2323_v42 = vmul.f32 %v3845_v22, %v2322_v28 }
 0x5b9   : > { %v2313_v20 = vadd.f32 %v2312_v16, %v2311_v46  ;;  %v3607_v46 = vld [vmem:[%s6966_s7 + $0xc0] sm:$0xf] }
 0x5ba   : > { %v6111_v51 = vsel %vm2326_vm10, %v3845_v22, %v2323_v42  ;;  %v3756_v42 = vld [vmem:[%s6966_s7 + $0xe4] sm:$0xf0] }
 0x5bb   : > { %v2338_v9 = vmul.f32 %v6111_v51, %v5719_v39  ;;  %v2340_v2 = vmul.f32 %v6111_v51, %v7103_v27  ;;  %v2342_v26 = vmul.f32 %v6111_v51, %v5727_v57  ;;  %v2344_v59 = vmul.f32 %v6111_v51, %v5735_v15  ;;  %v3615_v57 = vld [vmem:[%s6966_s7 + $0xd0] sm:$0xf]  ;;  %v3754_v15 = vld [vmem:[%s6966_s7 + $0xd4] sm:$0xf0] }
 0x5bc   : > { %v2346_v39 = vmul.f32 %v6111_v51, %v5739_v13  ;;  %v2348_v5 = vmul.f32 %v6111_v51, %v5745_v58  ;;  %v3624_v3 = vor.u32 %v3756_v42, %v3623_v36  ;;  %v2350_v28 = vmul.f32 %v6111_v51, %v5751_v10  ;;  %v3752_v10 = vld [vmem:[%s6966_s7 + $0xc4] sm:$0xf0]  ;;  %v3750_v42 = vld [vmem:[%s6966_s7 + $0xb4] sm:$0xf0] }
 0x5bd   : > { %v2402_v55 = vmax.f32 %v2338_v9, %v2342_v26  ;;  %v2403_v22 = vmax.f32 %v2340_v2, %v2344_v59  ;;  %v2352_v13 = vmul.f32 %v6111_v51, %v5757_v43  ;;  %v2315_v50 = vmul.f32 %v2313_v20, %v4491_v40 }
 0x5be   : > { %2684 = vmatpush.bf16.msra.mxu3 %v3624_v3  ;;  %v3616_v12 = vor.u32 %v3754_v15, %v3615_v57  ;;  %v2354_v27 = vmul.f32 %v6111_v51, %v5763_v38  ;;  %v2356_v43 = vmul.f32 %v6111_v51, %v5769_v11  ;;  %v2358_v40 = vmul.f32 %v6111_v51, %v5775_v35  ;;  %v3599_v11 = vld [vmem:[%s6966_s7 + $0xb0] sm:$0xf]  ;;  %v7104_v57 = vld [vmem:[#allocation45_spill] sm:$0xff] }
 0x5bf   : > { %v2404_v53 = vmax.f32 %v2402_v55, %v2346_v39  ;;  %v2405_v58 = vmax.f32 %v2403_v22, %v2348_v5  ;;  %v6152_v2 = vadd.f32 1e-05, %v2315_v50  ;;  %v2360_v38 = vmul.f32 %v6111_v51, %v5784_v52 }
 0x5c0   : > { %v3608_v36 = vor.u32 %v3752_v10, %v3607_v46  ;;  %v2362_v35 = vmul.f32 %v6111_v51, %v5790_v32  ;;  %v2364_v52 = vmul.f32 %v6111_v51, %v5804_v30  ;;  %v2366_v15 = vmul.f32 %v6111_v51, %v7104_v57  ;;  %v3742_v32 = vld [vmem:[%s6966_s7 + $0x74] sm:$0xf0] }
 0x5c1   : > { %v2406_v16 = vmax.f32 %v2404_v53, %v2350_v28  ;;  %v2407_v9 = vmax.f32 %v2405_v58, %v2352_v13  ;;  %3846 = vrsqrt.f32 %v6152_v2  ;;  %v2368_v55 = vmul.f32 %v6111_v51, %v5824_v18  ;;  %v3567_v28 = vld [vmem:[%s6966_s7 + $0x70] sm:$0xf]  ;;  %v3591_v13 = vld [vmem:[%s6966_s7 + $0xa0] sm:$0xf]  ;;  %v3748_v18 = vld [vmem:[%s6966_s7 + $0xa4] sm:$0xf0] }
 0x5c2   : > { %2685 = vmatpush.bf16.msra.mxu3 %v3616_v12  ;;  %v3600_v3 = vor.u32 %v3750_v42, %v3599_v11  ;;  %v3568_v30 = vor.u32 %v3742_v32, %v3567_v28  ;;  %v2370_v58 = vmul.f32 %v6111_v51, %v5834_v8  ;;  %v2372_v50 = vmul.f32 %v6111_v51, %v5846_v4  ;;  %v3559_v8 = vld [vmem:[%s6966_s7 + $0x60] sm:$0xf]  ;;  %v3740_v4 = vld [vmem:[%s6966_s7 + $0x64] sm:$0xf0] }
 0x5c3   : > { %v2408_v26 = vmax.f32 %v2406_v16, %v2354_v27  ;;  %v2409_v59 = vmax.f32 %v2407_v9, %v2356_v43  ;;  %v2374_v46 = vmul.f32 %v6111_v51, %v5858_v24  ;;  %v2376_v43 = vmul.f32 %v6111_v51, %v5870_v61  ;;  %v3746_v61 = vld [vmem:[%s6966_s7 + $0x94] sm:$0xf0] }
 0x5c4   : > { %2670 = vmatpush.bf16.msra.mxu2 %v3568_v30  ;;  %v3560_v24 = vor.u32 %v3740_v4, %v3559_v8  ;;  %v3741_v30 = vld [vmem:[%s6966_s7 + $0x74] sm:$0xf]  ;;  %vm2334_vm12 = vweird.f32 %v6152_v2 }
 0x5c5   : > { %v2410_v39 = vmax.f32 %v2408_v26, %v2358_v40  ;;  %v2411_v5 = vmax.f32 %v2409_v59, %v2360_v38  ;;  %v3592_v40 = vor.u32 %v3748_v18, %v3591_v13  ;;  %v3583_v26 = vld [vmem:[%s6966_s7 + $0x90] sm:$0xf]  ;;  %v2378_v59 = vmul.f32 %v6111_v51, %v5882_v41  ;;  %v3569_v13 = vld [vmem:[%s6966_s7 + $0x78] sm:$0xf0] }
 0x5c6   : > { %2686 = vmatpush.bf16.msra.mxu3 %v3608_v36  ;;  %v2380_v36 = vmul.f32 %v6111_v51, %v5894_v63  ;;  %v3551_v41 = vld [vmem:[%s6966_s7 + $0x50] sm:$0xf]  ;;  %v3738_v63 = vld [vmem:[%s6966_s7 + $0x54] sm:$0xf0]  ;;  %v2390_v18 = vmul.f32 %v6111_v51, %v5954_v44  ;;  %v3736_v44 = vld [vmem:[%s6966_s7 + $0x44] sm:$0xf0] }
 0x5c7   : > { %v2412_v22 = vmax.f32 %v2410_v39, %v2362_v35  ;;  %v2413_v20 = vmax.f32 %v2411_v5, %v2364_v52  ;;  %v3847_v53 = vpop.eup %3846  ;;  %v2382_v35 = vmul.f32 %v6111_v51, %v5906_v1  ;;  %v2384_v39 = vmul.f32 %v6111_v51, %v5918_v0  ;;  %v3744_v0 = vld [vmem:[%s6966_s7 + $0x84] sm:$0xf0] }
 0x5c8   : > { %v2329_v10 = vmul.f32 %v3847_v53, %v6152_v2  ;;  %2671 = vmatpush.bf16.msra.mxu2 %v3560_v24  ;;  %vm2335_vm11 = vweird.f32 %v3847_v53  ;;  %v3552_v1 = vor.u32 %v3738_v63, %v3551_v41  ;;  %v3572_v2 = vor.u32 %v3741_v30, %v3569_v13  ;;  %v3553_v41 = vld [vmem:[%s6966_s7 + $0x58] sm:$0xf0]  ;;  %v7109_v13 = vld [vmem:[#allocation34_spill] sm:$0xff] }
 0x5c9   : > { %v2414_v12 = vmax.f32 %v2412_v22, %v2366_v15  ;;  %v2415_v27 = vmax.f32 %v2413_v20, %v2368_v55  ;;  %v3584_v15 = vor.u32 %v3746_v61, %v3583_v26  ;;  %v3575_v22 = vld [vmem:[%s6966_s7 + $0x80] sm:$0xf]  ;;  %v2386_v20 = vmul.f32 %v6111_v51, %v5930_v29  ;;  %vm2336_vm13 = vmor %vm2334_vm12, %vm2335_vm11 }
 0x5ca   : > { %2687 = vmatpush.bf16.msra.mxu3 %v3600_v3  ;;  %v2330_v38 = vmul.f32 %v3847_v53, %v2329_v10  ;;  %v2388_v3 = vmul.f32 %v6111_v51, %v5942_v47  ;;  %v2392_v29 = vmul.f32 %v6111_v51, %v5966_v37  ;;  %v2394_v37 = vmul.f32 %v6111_v51, %v5978_v48 }
 0x5cb   : > { %v2416_v16 = vmax.f32 %v2414_v12, %v2370_v58  ;;  %v2417_v9 = vmax.f32 %v2415_v27, %v2372_v50  ;;  %v3576_v12 = vor.u32 %v3744_v0, %v3575_v22  ;;  %v3543_v27 = vld [vmem:[%s6966_s7 + $0x40] sm:$0xf]  ;;  %v3732_v0 = vld [vmem:[%s6966_s7 + $0x24] sm:$0xf0] }
 0x5cc   : > { %v2331_v52 = vmul.f32 0.5, %v2330_v38  ;;  %2672 = vmatpush.bf16.msra.mxu2 %v3552_v1  ;;  %v3544_v10 = vor.u32 %v3736_v44, %v3543_v27  ;;  %v2400_v38 = vmul.f32 %v6111_v51, %v6014_v14  ;;  %v7108_v1 = vld [vmem:[#allocation29_spill] sm:$0xff]  ;;  %v3735_v27 = vld [vmem:[%s6966_s7 + $0x44] sm:$0xf]  ;;  %v3545_v44 = vld [vmem:[%s6966_s7 + $0x48] sm:$0xf0] }
 0x5cd   : > { %v2418_v11 = vmax.f32 %v2416_v16, %v2374_v46  ;;  %v2419_v42 = vmax.f32 %v2417_v9, %v2376_v43  ;;  %v2396_v43 = vmul.f32 %v6111_v51, %v5990_v45 }
 0x5ce   : > { %2688 = vmatpush.bf16.msra.mxu3 %v3592_v40  ;;  %v2332_v55 = vsub.f32 1.5, %v2331_v52  ;;  %v7105_v40 = vld [vmem:[#allocation28_spill] sm:$0xff] }
 0x5cf   : > { %v2420_v5 = vmax.f32 %v2418_v11, %v2378_v59  ;;  %v2421_v57 = vmax.f32 %v2419_v42, %v2380_v36  ;;  %v7106_v42 = vld [vmem:[#allocation44_spill] sm:$0xff] }
 0x5d0   : > { %v2333_v58 = vmul.f32 %v3847_v53, %v2332_v55  ;;  %2673 = vmatpush.bf16.msra.mxu2 %v3544_v10  ;;  %v3519_v10 = vld [vmem:[%s6966_s7 + $0x10] sm:$0xf] }
 0x5d1   : > { %v2422_v28 = vmax.f32 %v2420_v5, %v2382_v35  ;;  %v2423_v32 = vmax.f32 %v2421_v57, %v2384_v39  ;;  %v7107_v35 = vld [vmem:[#allocation46_spill] sm:$0xff]  ;;  %v3734_v39 = vld [vmem:[%s6966_s7 + $0x34] sm:$0xf0] }
 0x5d2   : > { %2689 = vmatpush.bf16.msra.mxu3 %v3584_v15  ;;  %v6248_v46 = vsel %vm2336_vm13, %v3847_v53, %v2333_v58  ;;  %v2398_v53 = vmul.f32 %v6111_v51, %v6002_v7  ;;  %v3739_v51 = vld [vmem:[%s6966_s7 + $0x64] sm:$0xf]  ;;  %v3737_v15 = vld [vmem:[%s6966_s7 + $0x54] sm:$0xf] }
 0x5d3   : > { %v2424_v47 = vmax.f32 %v2422_v28, %v2386_v20  ;;  %v2425_v50 = vmax.f32 %v2423_v32, %v2388_v3  ;;  %v2341_v8 = vmul.f32 %v6248_v46, %v7105_v40  ;;  %v2345_v4 = vmul.f32 %v6248_v46, %v5830_v54 }
 0x5d4   : > { %v2349_v61 = vmul.f32 %v6248_v46, %v5852_v25  ;;  %v2353_v54 = vmul.f32 %v6248_v46, %v5876_v33  ;;  %v2339_v7 = vmul.f32 %v6248_v46, %v7106_v42  ;;  %v2343_v14 = vmul.f32 %v6248_v46, %v7107_v35  ;;  %v3561_v25 = vld [vmem:[%s6966_s7 + $0x68] sm:$0xf0]  ;;  %v3535_v33 = vld [vmem:[%s6966_s7 + $0x30] sm:$0xf] }
 0x5d5   : > { %v2426_v16 = vmax.f32 %v2424_v47, %v2390_v18  ;;  %v2427_v9 = vmax.f32 %v2425_v50, %v2392_v29  ;;  %v2440_v59 = vmax.f32 %v2341_v8, %v2345_v4  ;;  %v2357_v5 = vmul.f32 %v6248_v46, %v5900_v21  ;;  %v3527_v21 = vld [vmem:[%s6966_s7 + $0x20] sm:$0xf] }
 0x5d6   : > { %2690 = vmatpush.bf16.msra.mxu3 %v3576_v12  ;;  %v2361_v55 = vmul.f32 %v6248_v46, %v5924_v56  ;;  %v2347_v22 = vmul.f32 %v6248_v46, %v7108_v1  ;;  %v2439_v3 = vmax.f32 %v2339_v7, %v2343_v14  ;;  %v3564_v28 = vor.u32 %v3739_v51, %v3561_v25  ;;  %v7110_v56 = vld [vmem:[#allocation30_spill] sm:$0xff]  ;;  %v7114_v7 = vld [vmem:[#allocation33_spill] sm:$0xff]  ;;  %v7115_v51 = vld [vmem:[#allocation48_spill] sm:$0xff] }
 0x5d7   : > { %v2428_v24 = vmax.f32 %v2426_v16, %v2394_v37  ;;  %v2429_v48 = vmax.f32 %v2427_v9, %v2396_v43  ;;  %v2442_v11 = vmax.f32 %v2440_v59, %v2349_v61  ;;  %v3536_v32 = vor.u32 %v3734_v39, %v3535_v33  ;;  %v3730_v37 = vld [vmem:[%s6966_s7 + $0x14] sm:$0xf0]  ;;  %v7111_v9 = vld [vmem:[#allocation31_spill] sm:$0xff]  ;;  %v3537_v59 = vld [vmem:[%s6966_s7 + $0x38] sm:$0xf0] }
 0x5d8   : > { %v2365_v18 = vmul.f32 %v6248_v46, %v7109_v13  ;;  %v2351_v58 = vmul.f32 %v6248_v46, %v7110_v56  ;;  %v3556_v29 = vor.u32 %v3737_v15, %v3553_v41  ;;  %v2441_v50 = vmax.f32 %v2439_v3, %v2347_v22  ;;  %v6360_v13 = vpop.f32.mrf.mxu0 }
 0x5d9   : > { %v2430_v45 = vmax.f32 %v2428_v24, %v2398_v53  ;;  %v2431_v26 = vmax.f32 %v2429_v48, %v2400_v38  ;;  %v2444_v57 = vmax.f32 %v2442_v11, %v2353_v54  ;;  %2674 = vmatpush.bf16.msra.mxu2 %v3536_v32  ;;  %v3528_v12 = vor.u32 %v3732_v0, %v3527_v21  ;;  %v7112_v53 = vld [vmem:[#allocation32_spill] sm:$0xff]  ;;  %v7113_v54 = vld [vmem:[#allocation37_spill] sm:$0xff]  ;;  %v7117_v21 = vld [vmem:[#allocation35_spill] sm:$0xff] }
 0x5da   : > { %2696 = vmatpush.bf16.msrb.mxu3 %v3572_v2  ;;  %v2369_v43 = vmul.f32 %v6248_v46, %v5972_v60  ;;  %v2355_v40 = vmul.f32 %v6248_v46, %v7111_v9  ;;  %v2443_v8 = vmax.f32 %v2441_v50, %v2351_v58  ;;  %v2373_v4 = vmul.f32 %v6248_v46, %v5996_v49  ;;  %v3733_v60 = vld [vmem:[%s6966_s7 + $0x34] sm:$0xf]  ;;  %v3511_v49 = vld [vmem:[%s6966_s7] sm:$0xf]  ;;  %v7119_v58 = vld [vmem:[#allocation15_spill] sm:$0xff] }
 0x5db   : > { %v2432_v36 = vmax.f32 %v2430_v45, %v2431_v26  ;;  %v2446_v20 = vmax.f32 %v2444_v57, %v2357_v5  ;;  %v2359_v38 = vmul.f32 %v6248_v46, %v7112_v53  ;;  %v3548_v24 = vor.u32 %v3735_v27, %v3545_v44  ;;  %v3513_v9 = vld [vmem:[%s6966_s7 + $0x8] sm:$0xf0] }
 0x5dc   : > { %v2445_v26 = vmax.f32 %v2443_v8, %v2355_v40  ;;  %v3520_v61 = vor.u32 %v3730_v37, %v3519_v10  ;;  %v2377_v11 = vmul.f32 %v6248_v46, %v7113_v54  ;;  %v2363_v35 = vmul.f32 %v6248_v46, %v7114_v7  ;;  %v7122_v8 = vld [vmem:[#allocation39_spill] sm:$0xff] }
 0x5dd   : > { %v2433_v52 = vrot.slane %v2432_v36, 4  ;;  %v2448_v47 = vmax.f32 %v2446_v20, %v2361_v55  ;;  %2675 = vmatpush.bf16.msra.mxu2 %v3528_v12  ;;  %v2381_v25 = vmul.f32 %v6248_v46, %v7115_v51  ;;  %v3540_v39 = vor.u32 %v3733_v60, %v3537_v59  ;;  %v3529_v55 = vld [vmem:[%s6966_s7 + $0x28] sm:$0xf0]  ;;  %v7120_v12 = vld [vmem:[#allocation38_spill] sm:$0xff]  ;;  %v7125_v59 = vld [vmem:[#allocation41_spill] sm:$0xff] }
 0x5de   : > { %2697 = vmatpush.bf16.msrb.mxu3 %v3564_v28  ;;  %v2447_v14 = vmax.f32 %v2445_v26, %v2359_v38  ;;  %v2385_v1 = vmul.f32 %v6248_v46, %v6048_v34  ;;  %v2371_v0 = vmul.f32 %v6248_v46, %v7117_v21  ;;  %v2389_v3 = vmul.f32 %v6248_v46, %v6060_v31  ;;  %v7118_v28 = vld [vmem:[#allocation36_spill] sm:$0xff]  ;;  %v3521_v31 = vld [vmem:[%s6966_s7 + $0x18] sm:$0xf0]  ;;  %v7127_v51 = vld [vmem:[#allocation10_spill] sm:$0xff] }
 0x5df   : > { %v2434_v63 = vmax.f32 %v2432_v36, %v2433_v52  ;;  %v2450_v16 = vmax.f32 %v2448_v47, %v2365_v18  ;;  %v3728_v36 = vld [vmem:[%s6966_s7 + $0x4] sm:$0xf0]  ;;  %v2375_v32 = vmul.f32 %v6248_v46, %v7118_v28  ;;  %v2393_v47 = vmul.f32 %v6248_v46, %v6072_v23  ;;  %v3727_v23 = vld [vmem:[%s6966_s7 + $0x4] sm:$0xf]  ;;  %v7123_v38 = vld [vmem:[#allocation40_spill] sm:$0xff] }
 0x5e0   : > { %v7116_v52 = vld [vmem:[#allocation47_spill] sm:$0xff]  ;;  %v2449_v15 = vmax.f32 %v2447_v14, %v2363_v35  ;;  %v3512_v41 = vor.u32 %v3728_v36, %v3511_v49  ;;  %v2379_v27 = vmul.f32 %v6248_v46, %v7120_v12  ;;  %v2383_v10 = vmul.f32 %v6248_v46, %v6042_v19  ;;  %v7124_v26 = vld [vmem:[#allocation17_spill] sm:$0xff] }
 0x5e1   : > { %v2435_v30 = vrot.slane %v2434_v63, 2  ;;  %v2452_v45 = vmax.f32 %v2450_v16, %v2369_v43  ;;  %v2367_v33 = vmul.f32 %v6248_v46, %v7116_v52  ;;  %2676 = vmatpush.bf16.msra.mxu2 %v3520_v61  ;;  %v7121_v16 = vld [vmem:[#allocation16_spill] sm:$0xff]  ;;  %v2397_v40 = vmul.f32 %v6248_v46, %v6085_v6  ;;  %v6390_v61 = vpop.f32.mrf.mxu0  ;;  %v3617_v21 = vld [vmem:[%s6966_s7 + $0xd8] sm:$0xf0] }
 0x5e2   : > { %2698 = vmatpush.bf16.msrb.mxu3 %v3556_v29  ;;  %v3729_v29 = vld [vmem:[%s6966_s7 + $0x14] sm:$0xf]  ;;  %v2401_v60 = vmul.f32 %v6248_v46, %v6097_v62  ;;  %v2395_v6 = vmul.f32 %v6248_v46, %v7125_v59  ;;  %v2399_v54 = vmul.f32 %v6248_v46, %v6091_v17  ;;  %v3585_v12 = vld [vmem:[%s6966_s7 + $0x98] sm:$0xf0]  ;;  %v7129_v59 = vld [vmem:[#allocation6_spill] sm:$0xff] }
 0x5e3   : > { %v2436_v2 = vmax.f32 %v2434_v63, %v2435_v30  ;;  %v2454_v42 = vmax.f32 %v2452_v45, %v2373_v4  ;;  %v3731_v63 = vld [vmem:[%s6966_s7 + $0x24] sm:$0xf]  ;;  %v2451_v20 = vmax.f32 %v2449_v15, %v2367_v33  ;;  %v3524_v43 = vor.u32 %v3729_v29, %v3521_v31  ;;  %v3757_v17 = vld [vmem:[%s6966_s7 + $0xf4] sm:$0xf]  ;;  %v3593_v29 = vld [vmem:[%s6966_s7 + $0xa8] sm:$0xf0] }
 0x5e4   : > { %v3532_v34 = vor.u32 %v3731_v63, %v3529_v55  ;;  %v2387_v4 = vmul.f32 %v6248_v46, %v7122_v8  ;;  %v3516_v45 = vor.u32 %v3727_v23, %v3513_v9  ;;  %v3755_v63 = vld [vmem:[%s6966_s7 + $0xe4] sm:$0xf]  ;;  %v3625_v55 = vld [vmem:[%s6966_s7 + $0xe8] sm:$0xf0]  ;;  %v3764_v23 = vld [vmem:[%s6967_s8 + $0x24] sm:$0xf0] }
 0x5e5   : > { %v2437_v48 = vrot.slane %v2436_v2, 1  ;;  %v2456_v57 = vmax.f32 %v2454_v42, %v2377_v11  ;;  %v2453_v56 = vmax.f32 %v2451_v20, %v2371_v0  ;;  %2677 = vmatpush.bf16.msra.mxu2 %v3512_v41  ;;  %v7126_v42 = vld [vmem:[#allocation18_spill] sm:$0xff]  ;;  %v3647_v8 = vld [vmem:[%s6967_s8 + $0x10] sm:$0xf] }
 0x5e6   : > { %2699 = vmatpush.bf16.msrb.mxu3 %v3548_v24  ;;  %v2391_v24 = vmul.f32 %v6248_v46, %v7123_v38  ;;  %v3633_v46 = vld [vmem:[%s6966_s7 + $0xf8] sm:$0xf0]  ;;  %v3751_v20 = vld [vmem:[%s6966_s7 + $0xc4] sm:$0xf]  ;;  %v3760_v38 = vld [vmem:[%s6967_s8 + $0x4] sm:$0xf0] }
 0x5e7   : > { %v2438_v5 = vmax.f32 %v2436_v2, %v2437_v48  ;;  %v2458_v22 = vmax.f32 %v2456_v57, %v2381_v25  ;;  %v2455_v44 = vmax.f32 %v2453_v56, %v2375_v32  ;;  %v3636_v57 = vor.u32 %v3757_v17, %v3633_v46  ;;  %v3601_v56 = vld [vmem:[%s6966_s7 + $0xb8] sm:$0xf0] }
 0x5e9   : > { %v6358_v30 = vpack.c.bf16 %v2438_v5, %v2438_v5  ;;  %v2460_v18 = vmax.f32 %v2458_v22, %v2385_v1  ;;  %3775 = vmatpush.bf16.msrb.mxu2 %v7119_v58  ;;  %v2457_v37 = vmax.f32 %v2455_v44, %v2379_v27  ;;  %v6401_v25 = vpop.f32.mrf.mxu0  ;;  %v3628_v1 = vor.u32 %v3755_v63, %v3625_v55  ;;  %v3753_v22 = vld [vmem:[%s6966_s7 + $0xd4] sm:$0xf]  ;;  %v3747_v58 = vld [vmem:[%s6966_s7 + $0xa4] sm:$0xf] }
 0x5ea   : > { %2700 = vmatpush.bf16.msrb.mxu3 %v3540_v39  ;;  %v3620_v0 = vor.u32 %v3753_v22, %v3617_v21  ;;  %v3596_v31 = vor.u32 %v3747_v58, %v3593_v29  ;;  %v3743_v44 = vld [vmem:[%s6966_s7 + $0x84] sm:$0xf]  ;;  %v7135_v22 = vld [vmem:[#allocation3_spill] sm:$0xff] }
 0x5eb   : > { %v2462_v50 = vmax.f32 %v2460_v18, %v2389_v3  ;;  %2678 = vmatmul.bf16.vlgmr.msra.gmra.mxu2 %v6358_v30  ;;  %v2459_v19 = vmax.f32 %v2457_v37, %v2383_v10  ;;  %v3609_v3 = vld [vmem:[%s6966_s7 + $0xc8] sm:$0xf0]  ;;  %v3749_v18 = vld [vmem:[%s6966_s7 + $0xb4] sm:$0xf]  ;;  %v3766_v10 = vld [vmem:[%s6967_s8 + $0x34] sm:$0xf0] }
 0x5ec   : > { %v3612_v32 = vor.u32 %v3751_v20, %v3609_v3  ;;  %v7137_v29 = vld [vmem:[#allocation23_spill] sm:$0xff] }
 0x5ed   : > { %v2464_v2 = vmax.f32 %v2462_v50, %v2393_v47  ;;  %3776 = vmatpush.bf16.msrb.mxu2 %v7121_v16  ;;  %v2461_v48 = vmax.f32 %v2459_v19, %v2387_v4  ;;  %v3745_v50 = vld [vmem:[%s6966_s7 + $0x94] sm:$0xf]  ;;  %v3655_v16 = vld [vmem:[%s6967_s8 + $0x20] sm:$0xf]  ;;  %v3762_v4 = vld [vmem:[%s6967_s8 + $0x14] sm:$0xf0] }
 0x5ee   : > { %2701 = vmatpush.bf16.msrb.mxu3 %v3532_v34  ;;  %v3604_v34 = vor.u32 %v3749_v18, %v3601_v56  ;;  %v3588_v27 = vor.u32 %v3745_v50, %v3585_v12  ;;  %v3648_v19 = vor.u32 %v3762_v4, %v3647_v8  ;;  %v7138_v50 = vld [vmem:[#allocation24_spill] sm:$0xff] }
 0x5ef   : > { %v2466_v53 = vmax.f32 %v2464_v2, %v2397_v40  ;;  %v2463_v49 = vmax.f32 %v2461_v48, %v2391_v24  ;;  %v3663_v2 = vld [vmem:[%s6967_s8 + $0x30] sm:$0xf]  ;;  %v3656_v40 = vor.u32 %v3764_v23, %v3655_v16 }
 0x5f1   : > { %3777 = vmatpush.bf16.msrb.mxu2 %v7124_v26  ;;  %v2468_v36 = vmax.f32 %v2466_v53, %v2401_v60  ;;  %v2465_v11 = vmax.f32 %v2463_v49, %v2395_v6  ;;  %v6409_v15 = vpop.f32.mrf.mxu0  ;;  %v3639_v53 = vld [vmem:[%s6967_s8] sm:$0xf] }
 0x5f2   : > { %2702 = vmatpush.bf16.msrb.mxu3 %v3524_v43  ;;  %v3664_v43 = vor.u32 %v3766_v10, %v3663_v2  ;;  %v3640_v48 = vor.u32 %v3760_v38, %v3639_v53  ;;  %v7128_v26 = vld [vmem:[#allocation2_spill] sm:$0xff]  ;;  %v7141_v10 = vld [vmem:[#allocation27_spill] sm:$0xff] }
 0x5f3   : > { %v2467_v7 = vmax.f32 %v2465_v11, %v2399_v54  ;;  %v7131_v11 = vld [vmem:[#allocation11_spill] sm:$0xff] }
 0x5f5   : > { %3778 = vmatpush.bf16.msrb.mxu2 %v7126_v42  ;;  %v2469_v35 = vmax.f32 %v2467_v7, %v2468_v36  ;;  %v7130_v36 = vld [vmem:[#allocation8_spill] sm:$0xff] }
 0x5f6   : > { %2703 = vmatpush.bf16.msrb.mxu3 %v3516_v45 }
 0x5f7   : > { %v2470_v14 = vrot.slane %v2469_v35, 4 }
 0x5f9   : > { %v2471_v62 = vmax.f32 %v2469_v35, %v2470_v14  ;;  %v6429_v28 = vpop.f32.mrf.mxu0 }
 0x5fb   : > { %3700 = vmatmul.msk.bf16.vlgmr.msrb.gmra.mxu2 %vm1049_vm0, %v7127_v51  ;;  %v2472_v52 = vrot.slane %v2471_v62, 2 }
 0x5fd   : > { %v2473_v33 = vmax.f32 %v2471_v62, %v2472_v52  ;;  %v7132_v62 = vld [vmem:[#allocation13_spill] sm:$0xff] }
 0x5ff   : > { %v2474_v39 = vrot.slane %v2473_v33, 1 }
 0x601   : > { %v2475_v5 = vmax.f32 %v2473_v33, %v2474_v39  ;;  %v6444_v47 = vpop.f32.mrf.mxu0  ;;  %v7133_v39 = vld [vmem:[#allocation19_spill] sm:$0xff] }
 0x603   : > { %v2477_v41 = vpack.c.bf16 %v2475_v5, %v2475_v5 }
 0x605   : > { %2691 = vmatmul.bf16.vlgmr.msra.gmra.mxu3 %v2477_v41 }
 0x606   : > { %2709 = vmatpush.bf16.msra.mxu3 %v3636_v57  ;;  %v7134_v57 = vld [vmem:[#allocation21_spill] sm:$0xff] }
 0x609   : > { %v6470_v9 = vpop.f32.mrf.mxu0 }
 0x60a   : > { %2710 = vmatpush.bf16.msra.mxu3 %v3628_v1 }
 0x60e   : > { %2711 = vmatpush.bf16.msra.mxu3 %v3620_v0  ;;  %v2950_v0 = vld [vmem:[%s6968_s9] sm:$0x3] }
 0x60f   : > { %v6563_v53 = vperm.slane %v2950_v0, 0 }
 0x611   : > { %v6484_v24 = vpop.f32.mrf.mxu0 }
 0x612   : > { %2712 = vmatpush.bf16.msra.mxu3 %v3612_v32  ;;  %v6531_v32 = vperm.slane %v2950_v0, 1 }
 0x615   : > { %2704 = vmatmul.bf16.vlgmr.msrb.gmra.mxu3 %v6358_v30  ;;  %v3577_v30 = vld [vmem:[%s6966_s7 + $0x88] sm:$0xf0] }
 0x616   : > { %2713 = vmatpush.bf16.msra.mxu3 %v3604_v34  ;;  %v3580_v37 = vor.u32 %v3743_v44, %v3577_v30  ;;  %v7136_v34 = vld [vmem:[#allocation22_spill] sm:$0xff] }
 0x617   : > { %v7140_v30 = vld [vmem:[#allocation26_spill] sm:$0xff] }
 0x619   : > { %v6486_v45 = vpop.f32.mrf.mxu0 }
 0x61a   : > { %2714 = vmatpush.bf16.msra.mxu3 %v3596_v31 }
 0x61e   : > { %2715 = vmatpush.bf16.msra.mxu3 %v3588_v27  ;;  %v7139_v27 = vld [vmem:[#allocation25_spill] sm:$0xff] }
 0x621   : > { %v6490_v60 = vpop.f32.mrf.mxu0 }
 0x622   : > { %2716 = vmatpush.bf16.msra.mxu3 %v3580_v37 }
 0x625   : > { %2717 = vmatmul.bf16.vlgmr.msra.gmra.mxu3 %v2477_v41 }
 0x626   : > { %2776 = vmatpush.bf16.msrb.mxu3 %v3664_v43 }
 0x629   : > { %v6494_v6 = vpop.f32.mrf.mxu0 }
 0x62a   : > { %2777 = vmatpush.bf16.msrb.mxu3 %v3656_v40 }
 0x62e   : > { %2778 = vmatpush.bf16.msrb.mxu3 %v3648_v19 }
 0x631   : > { %v6496_v49 = vpop.f32.mrf.mxu0 }
 0x632   : > { %2779 = vmatpush.bf16.msrb.mxu3 %v3640_v48 }
 0x635   : > { %3669 = vmatmul.msk.bf16.vlgmr.msrb.gmra.mxu3 %vm1049_vm0, %v7128_v26 }
 0x639   : > { %v6500_v54 = vpop.f32.mrf.mxu0 }
 0x641   : > { %v6504_v42 = vpop.f32.mrf.mxu0 }
 0x645   : > { %3670 = vmatmul.msk.bf16.gmra.mxu3 %vm1049_vm0, %v7129_v59 }
 0x649   : > { %v6506_v35 = vpop.f32.mrf.mxu0 }
 0x651   : > { %v6510_v52 = vpop.f32.mrf.mxu0 }
 0x655   : > { %3671 = vmatmul.msk.bf16.gmra.mxu3 %vm1049_vm0, %v7130_v36 }
 0x659   : > { %v6512_v33 = vpop.f32.mrf.mxu0 }
 0x661   : > { %v6516_v46 = vpop.f32.mrf.mxu0 }
 0x665   : > { %3672 = vmatmul.msk.bf16.gmra.mxu3 %vm1049_vm0, %v7131_v11 }
 0x669   : > { %v6520_v63 = vpop.f32.mrf.mxu0 }
 0x66e   : > { %v2679_v7 = vpop.f32.mrf.mxu2 }
 0x671   : > { %v6522_v1 = vpop.f32.mrf.mxu0 }
 0x675   : > { %3673 = vmatmul.msk.bf16.gmra.mxu3 %vm1049_vm0, %v7132_v62 }
 0x676   : > { %v2681_v14 = vpop.f32.mrf.mxu2 }
 0x679   : > { %v6533_v56 = vpop.f32.mrf.mxu0 }
 0x685   : > { %3674 = vmatmul.msk.bf16.gmra.mxu3 %vm1049_vm0, %v7133_v39 }
 0x688   : > { %v2692_v17 = vpop.f32.mrf.mxu3 }
 0x689   : > { %v2693_v18 = vadd.f32 %v2692_v17, %v2679_v7 }
 0x68b   : > { %v6561_v4 = vperm.slane %v2693_v18, 0 }
 0x690   : > { %v2694_v5 = vpop.f32.mrf.mxu3 }
 0x695   : > { %3675 = vmatmul.msk.bf16.gmra.mxu3 %vm1049_vm0, %v7134_v57 }
 0x698   : > { %v2705_v41 = vpop.f32.mrf.mxu3 }
 0x6a0   : > { %v2707_v55 = vpop.f32.mrf.mxu3 }
 0x6a1   : > { %v7142_v55 = vld [vmem:[#allocation7_spill] sm:$0xff] }
 0x6a5   : > { %3676 = vmatmul.msk.bf16.gmra.mxu3 %vm1049_vm0, %v7135_v22 }
 0x6a8   : > { %v2718_v21 = vpop.f32.mrf.mxu3 }
 0x6a9   : > { %v2719_v20 = vadd.f32 %v2718_v21, %v2705_v41 }
 0x6ab   : > { %v6529_v3 = vperm.slane %v2719_v20, 0  ;;  %v6617_v20 = vpop.f32.mrf.mxu0 }
 0x6ad   : > { %v2871_v58 = vadd.f32 %v7136_v34, %v6529_v3  ;;  %v2873_v31 = vadd.f32 %v7137_v29, %v6529_v3  ;;  %v2876_v12 = vadd.f32 %v7138_v50, %v6529_v3  ;;  %v2878_v44 = vadd.f32 %v7139_v27, %v6529_v3 }
 0x6ae   : > { %v2881_v2 = vadd.f32 %v7140_v30, %v6529_v3  ;;  %v2883_v37 = vadd.f32 %v7141_v10, %v6529_v3  ;;  %v2886_v43 = vadd.f32 %v6360_v13, %v6529_v3  ;;  %v2888_v26 = vadd.f32 %v6390_v61, %v6529_v3 }
 0x6af   : > { %v6550_v16 = vadd.f32 %v6531_v32, %v2871_v58  ;;  %v6553_v23 = vadd.f32 %v6531_v32, %v2873_v31  ;;  %v6556_v40 = vadd.f32 %v6531_v32, %v2876_v12  ;;  %v6559_v8 = vadd.f32 %v6531_v32, %v2878_v44 }
 0x6b0   : > { %v2720_v19 = vpop.f32.mrf.mxu3  ;;  %v6576_v36 = vadd.f32 %v6531_v32, %v2881_v2  ;;  %v6579_v11 = vadd.f32 %v6531_v32, %v2883_v37  ;;  %v6582_v7 = vadd.f32 %v6531_v32, %v2886_v43  ;;  %v2891_v61 = vadd.f32 %v6401_v25, %v6529_v3 }
 0x6b1   : > { %v3106_v13 = vmul.f32 %v6550_v16, %v6550_v16  ;;  %v3057_v38 = vadd.f32 %v6553_v23, %v6550_v16  ;;  %v3108_v48 = vmul.f32 %v6553_v23, %v6553_v23  ;;  %v3110_v59 = vmul.f32 %v6556_v40, %v6556_v40 }
 0x6b2   : > { %v3112_v39 = vmul.f32 %v6559_v8, %v6559_v8  ;;  %v2893_v17 = vadd.f32 %v6409_v15, %v6529_v3  ;;  %v2896_v5 = vadd.f32 %v6429_v28, %v6529_v3  ;;  %v2898_v57 = vadd.f32 %v6444_v47, %v6529_v3 }
 0x6b3   : > { %v3206_v14 = vadd.f32 %v3108_v48, %v3106_v13  ;;  %v3058_v62 = vadd.f32 %v3057_v38, %v6556_v40  ;;  %v2901_v41 = vadd.f32 %v6470_v9, %v6529_v3  ;;  %v6601_v25 = vadd.f32 %v6531_v32, %v2891_v61 }
 0x6b4   : > { %v2903_v15 = vadd.f32 %v6484_v24, %v6529_v3  ;;  %v6606_v28 = vadd.f32 %v6531_v32, %v2893_v17  ;;  %v6609_v47 = vadd.f32 %v6531_v32, %v2896_v5  ;;  %v6612_v9 = vadd.f32 %v6531_v32, %v2898_v57 }
 0x6b5   : > { %3677 = vmatmul.msk.bf16.gmra.mxu3 %vm1049_vm0, %v7142_v55  ;;  %v3207_v22 = vadd.f32 %v3206_v14, %v3110_v59  ;;  %v3059_v21 = vadd.f32 %v3058_v62, %v6559_v8  ;;  %v6615_v0 = vadd.f32 %v6531_v32, %v2901_v41  ;;  %v3114_v24 = vmul.f32 %v6576_v36, %v6576_v36 }
 0x6b6   : > { %v6623_v58 = vadd.f32 %v6531_v32, %v2903_v15  ;;  %v3116_v31 = vmul.f32 %v6579_v11, %v6579_v11  ;;  %v6628_v50 = vadd.f32 %v6531_v32, %v2888_v26  ;;  %v3118_v30 = vmul.f32 %v6582_v7, %v6582_v7  ;;  %v2940_v15 = vpop.f32.mrf.mxu0 }
 0x6b7   : > { %v3208_v18 = vadd.f32 %v3207_v22, %v3112_v39  ;;  %v3060_v34 = vadd.f32 %v3059_v21, %v6576_v36  ;;  %v2906_v2 = vadd.f32 %v6486_v45, %v6529_v3  ;;  %v2908_v10 = vadd.f32 %v6490_v60, %v6529_v3 }
 0x6b8   : > { %v2781_v29 = vpop.f32.mrf.mxu3  ;;  %v2911_v37 = vadd.f32 %v6494_v6, %v6529_v3  ;;  %v2913_v43 = vadd.f32 %v6496_v49, %v6529_v3  ;;  %v2916_v48 = vadd.f32 %v6500_v54, %v6529_v3  ;;  %v3120_v14 = vmul.f32 %v6628_v50, %v6628_v50 }
 0x6b9   : > { %v2782_v12 = vadd.f32 %v2781_v29, %v6561_v4  ;;  %v3209_v27 = vadd.f32 %v3208_v18, %v3114_v24  ;;  %v3061_v44 = vadd.f32 %v3060_v34, %v6579_v11  ;;  %v6654_v45 = vadd.f32 %v6531_v32, %v2906_v2  ;;  %v2945_v29 = vpop.f32.mrf.mxu2 }
 0x6ba   : > { %v6657_v60 = vadd.f32 %v6531_v32, %v2908_v10  ;;  %v6660_v6 = vadd.f32 %v6531_v32, %v2911_v37  ;;  %v6663_v49 = vadd.f32 %v6531_v32, %v2913_v43  ;;  %v3122_v62 = vmul.f32 %v6601_v25, %v6601_v25 }
 0x6bb   : > { %v2956_v19 = vadd.f32 %v6563_v53, %v2782_v12  ;;  %v3210_v13 = vadd.f32 %v3209_v27, %v3116_v31  ;;  %v3062_v38 = vadd.f32 %v3061_v44, %v6582_v7  ;;  %v3124_v39 = vmul.f32 %v6606_v28, %v6606_v28 }
 0x6bc   : > { %v6676_v5 = vadd.f32 %v6531_v32, %v2916_v48  ;;  %v2921_v41 = vadd.f32 %v6506_v35, %v6529_v3  ;;  %v2923_v55 = vadd.f32 %v6510_v52, %v6529_v3  ;;  %v2926_v22 = vadd.f32 %v6512_v33, %v6529_v3 }
 0x6bd   : > { %v3250_v54 = vpack.c.bf16 %v6550_v16, %v2956_v19  ;;  %v3211_v26 = vadd.f32 %v3210_v13, %v3118_v30  ;;  %v3063_v59 = vadd.f32 %v3062_v38, %v6628_v50  ;;  %v2918_v16 = vadd.f32 %v6504_v42, %v6529_v3  ;;  %v7143_v38 = vld [vmem:[#allocation9_spill] sm:$0xff] }
 0x6be   : > { %v2928_v21 = vadd.f32 %v6516_v46, %v6529_v3  ;;  %v3126_v42 = vmul.f32 %v6609_v47, %v6609_v47  ;;  %v6696_v52 = vadd.f32 %v6531_v32, %v2921_v41  ;;  %v6699_v33 = vadd.f32 %v6531_v32, %v2923_v55 }
 0x6bf   : > { %3282 = vst [vmem:[%s6651_s27] sm:$0xff] %v3250_v54  ;;  %v3212_v61 = vadd.f32 %v3211_v26, %v3120_v14  ;;  %v3064_v17 = vadd.f32 %v3063_v59, %v6601_v25  ;;  %v6693_v35 = vadd.f32 %v6531_v32, %v2918_v16  ;;  %v6702_v46 = vadd.f32 %v6531_v32, %v2926_v22 }
 0x6c0   : > { %v2783_v57 = vpop.f32.mrf.mxu3  ;;  %v6707_v44 = vadd.f32 %v6531_v32, %v2928_v21  ;;  %v3105_v30 = vmul.f32 %v2956_v19, %v2956_v19  ;;  %v3128_v2 = vmul.f32 %v6612_v9, %v6612_v9  ;;  %v3130_v10 = vmul.f32 %v6615_v0, %v6615_v0  ;;  %v2942_v21 = vpop.f32.mrf.mxu0 }
 0x6c1   : > { %v2784_v18 = vadd.f32 %v2783_v57, %v6561_v4  ;;  %v3213_v34 = vadd.f32 %v3212_v61, %v3122_v62  ;;  %v3065_v24 = vadd.f32 %v3064_v17, %v6606_v28  ;;  %v3132_v26 = vmul.f32 %v6623_v58, %v6623_v58 }
 0x6c2   : > { %v2931_v59 = vadd.f32 %v6520_v63, %v6529_v3  ;;  %v2933_v14 = vadd.f32 %v6522_v1, %v6529_v3  ;;  %v2941_v1 = vadd.f32 %v2940_v15, %v6529_v3  ;;  %v3134_v15 = vmul.f32 %v6654_v45, %v6654_v45 }
 0x6c3   : > { %v2958_v31 = vadd.f32 %v6563_v53, %v2784_v18  ;;  %v3214_v12 = vadd.f32 %v3213_v34, %v3124_v39  ;;  %v3066_v27 = vadd.f32 %v3065_v24, %v6609_v47  ;;  %v2938_v39 = vadd.f32 %v6617_v20, %v6529_v3 }
 0x6c4   : > { %v6730_v16 = vadd.f32 %v6531_v32, %v2931_v59  ;;  %v6733_v63 = vadd.f32 %v6531_v32, %v2933_v14  ;;  %v6745_v22 = vadd.f32 %v6531_v32, %v2941_v1 }
 0x6c5   : > { %v3020_v37 = vadd.f32 %v2958_v31, %v2956_v19  ;;  %v3107_v43 = vmul.f32 %v2958_v31, %v2958_v31  ;;  %v3251_v13 = vpack.c.bf16 %v6553_v23, %v2958_v31  ;;  %3678 = vmatmul.msk.bf16.gmra.mxu3 %vm1049_vm0, %v7143_v38  ;;  %v3215_v48 = vadd.f32 %v3214_v12, %v3126_v42 }
 0x6c6   : > { %v3067_v54 = vadd.f32 %v3066_v27, %v6612_v9  ;;  %v2936_v23 = vadd.f32 %v6533_v56, %v6529_v3  ;;  %v6741_v56 = vadd.f32 %v6531_v32, %v2938_v39  ;;  %v3136_v42 = vmul.f32 %v6657_v60, %v6657_v60  ;;  %v2947_v27 = vpop.f32.mrf.mxu2 }
 0x6c7   : > { %v3169_v62 = vadd.f32 %v3107_v43, %v3105_v30  ;;  %3283 = vst [vmem:[%s6651_s27 + $0x8] sm:$0xff] %v3251_v13  ;;  %v3216_v19 = vadd.f32 %v3215_v48, %v3128_v2  ;;  %v2943_v31 = vadd.f32 %v2942_v21, %v6529_v3  ;;  %v2946_v12 = vadd.f32 %v2945_v29, %v6529_v3  ;;  %v7144_v21 = vld [vmem:[#allocation12_spill] sm:$0xff] }
 0x6c8   : > { %v2786_v61 = vpop.f32.mrf.mxu3  ;;  %v3068_v17 = vadd.f32 %v3067_v54, %v6615_v0  ;;  %v6738_v55 = vadd.f32 %v6531_v32, %v2936_v23  ;;  %v2948_v54 = vadd.f32 %v2947_v27, %v6529_v3  ;;  %v3138_v29 = vmul.f32 %v6660_v6, %v6660_v6 }
 0x6c9   : > { %v2787_v57 = vadd.f32 %v2786_v61, %v6561_v4  ;;  %v3217_v41 = vadd.f32 %v3216_v19, %v3130_v10  ;;  %v6758_v38 = vadd.f32 %v6531_v32, %v2943_v31  ;;  %v6761_v48 = vadd.f32 %v6531_v32, %v2946_v12 }
 0x6ca   : > { %v3069_v20 = vadd.f32 %v3068_v17, %v6623_v58  ;;  %v6769_v14 = vadd.f32 %v6531_v32, %v2948_v54  ;;  %v3140_v39 = vmul.f32 %v6663_v49, %v6663_v49  ;;  %v3142_v17 = vmul.f32 %v6676_v5, %v6676_v5 }
 0x6cb   : > { %v2960_v18 = vadd.f32 %v6563_v53, %v2787_v57  ;;  %v3218_v34 = vadd.f32 %v3217_v41, %v3132_v26  ;;  %v3144_v32 = vmul.f32 %v6693_v35, %v6693_v35 }
 0x6cc   : > { %v3070_v24 = vadd.f32 %v3069_v20, %v6654_v45 }
 0x6cd   : > { %v3021_v30 = vadd.f32 %v3020_v37, %v2960_v18  ;;  %v3109_v2 = vmul.f32 %v2960_v18, %v2960_v18  ;;  %v3252_v10 = vpack.c.bf16 %v6556_v40, %v2960_v18  ;;  %v3219_v43 = vadd.f32 %v3218_v34, %v3134_v15 }
 0x6ce   : > { %v3071_v13 = vadd.f32 %v3070_v24, %v6657_v60 }
 0x6cf   : > { %v3170_v26 = vadd.f32 %v3169_v62, %v3109_v2  ;;  %3284 = vst [vmem:[%s6651_s27 + $0x10] sm:$0xff] %v3252_v10  ;;  %v3220_v59 = vadd.f32 %v3219_v43, %v3136_v42  ;;  %v3146_v42 = vmul.f32 %v6696_v52, %v6696_v52 }
 0x6d0   : > { %v2788_v37 = vpop.f32.mrf.mxu3  ;;  %v3072_v40 = vadd.f32 %v3071_v13, %v6660_v6  ;;  %v3150_v13 = vmul.f32 %v6702_v46, %v6702_v46 }
 0x6d1   : > { %v2789_v19 = vadd.f32 %v2788_v37, %v6561_v4  ;;  %v3221_v23 = vadd.f32 %v3220_v59, %v3138_v29 }
 0x6d2   : > { %v3073_v3 = vadd.f32 %v3072_v40, %v6663_v49 }
 0x6d3   : > { %v2962_v62 = vadd.f32 %v6563_v53, %v2789_v19  ;;  %v3222_v61 = vadd.f32 %v3221_v23, %v3140_v39 }
 0x6d4   : > { %v3074_v1 = vadd.f32 %v3073_v3, %v6676_v5  ;;  %v3154_v3 = vmul.f32 %v6730_v16, %v6730_v16 }
 0x6d5   : > { %v3022_v57 = vadd.f32 %v3021_v30, %v2962_v62  ;;  %v3111_v41 = vmul.f32 %v2962_v62, %v2962_v62  ;;  %v3253_v20 = vpack.c.bf16 %v6559_v8, %v2962_v62  ;;  %3679 = vmatmul.msk.bf16.gmra.mxu3 %vm1049_vm0, %v7144_v21  ;;  %v3223_v18 = vadd.f32 %v3222_v61, %v3142_v17 }
 0x6d6   : > { %v3075_v34 = vadd.f32 %v3074_v1, %v6693_v35  ;;  %v3148_v8 = vmul.f32 %v6699_v33, %v6699_v33 }
 0x6d7   : > { %v3171_v15 = vadd.f32 %v3170_v26, %v3111_v41  ;;  %3285 = vst [vmem:[%s6651_s27 + $0x18] sm:$0xff] %v3253_v20  ;;  %v3224_v24 = vadd.f32 %v3223_v18, %v3144_v32  ;;  %v3152_v26 = vmul.f32 %v6707_v44, %v6707_v44  ;;  %v3156_v32 = vmul.f32 %v6733_v63, %v6733_v63 }
 0x6d8   : > { %v2791_v31 = vpop.f32.mrf.mxu3  ;;  %v3076_v12 = vadd.f32 %v3075_v34, %v6696_v52  ;;  %v3158_v20 = vmul.f32 %v6738_v55, %v6738_v55  ;;  %v3160_v18 = vmul.f32 %v6741_v56, %v6741_v56 }
 0x6d9   : > { %v2792_v27 = vadd.f32 %v2791_v31, %v6561_v4  ;;  %v3225_v30 = vadd.f32 %v3224_v24, %v3146_v42  ;;  %v7145_v42 = vld [vmem:[#allocation14_spill] sm:$0xff] }
 0x6da   : > { %v3077_v2 = vadd.f32 %v3076_v12, %v6699_v33 }
 0x6db   : > { %v2964_v10 = vadd.f32 %v6563_v53, %v2792_v27  ;;  %v3226_v43 = vadd.f32 %v3225_v30, %v3148_v8  ;;  %v3162_v8 = vmul.f32 %v6745_v22, %v6745_v22 }
 0x6dc   : > { %v3078_v54 = vadd.f32 %v3077_v2, %v6702_v46 }
 0x6dd   : > { %v3023_v59 = vadd.f32 %v3022_v57, %v2964_v10  ;;  %v3113_v29 = vmul.f32 %v2964_v10, %v2964_v10  ;;  %v3254_v37 = vpack.c.bf16 %v6576_v36, %v2964_v10  ;;  %v3227_v40 = vadd.f32 %v3226_v43, %v3150_v13 }
 0x6de   : > { %v3079_v19 = vadd.f32 %v3078_v54, %v6707_v44 }
 0x6df   : > { %v3172_v23 = vadd.f32 %v3171_v15, %v3113_v29  ;;  %3286 = vst [vmem:[%s6651_s27 + $0x20] sm:$0xff] %v3254_v37  ;;  %v3228_v39 = vadd.f32 %v3227_v40, %v3152_v26  ;;  %v3166_v29 = vmul.f32 %v6761_v48, %v6761_v48 }
 0x6e0   : > { %v2793_v62 = vpop.f32.mrf.mxu3  ;;  %v3080_v61 = vadd.f32 %v3079_v19, %v6730_v16 }
 0x6e1   : > { %v2794_v17 = vadd.f32 %v2793_v62, %v6561_v4  ;;  %v3229_v1 = vadd.f32 %v3228_v39, %v3154_v3  ;;  %v3168_v62 = vmul.f32 %v6769_v14, %v6769_v14 }
 0x6e2   : > { %v3081_v36 = vadd.f32 %v3080_v61, %v6733_v63 }
 0x6e3   : > { %v2966_v57 = vadd.f32 %v6563_v53, %v2794_v17  ;;  %v3230_v41 = vadd.f32 %v3229_v1, %v3156_v32 }
 0x6e4   : > { %v3082_v21 = vadd.f32 %v3081_v36, %v6738_v55 }
 0x6e5   : > { %v3024_v34 = vadd.f32 %v3023_v59, %v2966_v57  ;;  %v3115_v15 = vmul.f32 %v2966_v57, %v2966_v57  ;;  %v3255_v24 = vpack.c.bf16 %v6579_v11, %v2966_v57  ;;  %3680 = vmatmul.msk.bf16.gmra.mxu3 %vm1049_vm0, %v7145_v42  ;;  %v3231_v31 = vadd.f32 %v3230_v41, %v3158_v20  ;;  %v7146_v20 = vld [vmem:[#allocation20_spill] sm:$0xff] }
 0x6e6   : > { %v3083_v12 = vadd.f32 %v3082_v21, %v6741_v56  ;;  %v3164_v11 = vmul.f32 %v6758_v38, %v6758_v38 }
 0x6e7   : > { %v3173_v27 = vadd.f32 %v3172_v23, %v3115_v15  ;;  %3287 = vst [vmem:[%s6651_s27 + $0x28] sm:$0xff] %v3255_v24  ;;  %v3232_v30 = vadd.f32 %v3231_v31, %v3160_v18 }
 0x6e8   : > { %v2796_v2 = vpop.f32.mrf.mxu3  ;;  %v3084_v10 = vadd.f32 %v3083_v12, %v6745_v22 }
 0x6e9   : > { %v2797_v43 = vadd.f32 %v2796_v2, %v6561_v4  ;;  %v3233_v13 = vadd.f32 %v3232_v30, %v3162_v8 }
 0x6ea   : > { %v3085_v54 = vadd.f32 %v3084_v10, %v6758_v38 }
 0x6eb   : > { %v2968_v26 = vadd.f32 %v6563_v53, %v2797_v43  ;;  %v3234_v59 = vadd.f32 %v3233_v13, %v3164_v11  ;;  %v7147_v43 = vld [vmem:[#allocation4_spill] sm:$0xff] }
 0x6ec   : > { %v3086_v37 = vadd.f32 %v3085_v54, %v6761_v48 }
 0x6ed   : > { %v3025_v40 = vadd.f32 %v3024_v34, %v2968_v26  ;;  %v3117_v19 = vmul.f32 %v2968_v26, %v2968_v26  ;;  %v3256_v23 = vpack.c.bf16 %v6582_v7, %v2968_v26  ;;  %v3235_v39 = vadd.f32 %v3234_v59, %v3166_v29 }
 0x6ee   : > { %v6833_v3 = vadd.f32 %v3086_v37, %v6769_v14 }
 0x6ef   : > { %v3174_v61 = vadd.f32 %v3173_v27, %v3117_v19  ;;  %3288 = vst [vmem:[%s6651_s27 + $0x30] sm:$0xff] %v3256_v23  ;;  %v6838_v1 = vadd.f32 %v3235_v39, %v3168_v62 }
 0x6f0   : > { %v2798_v17 = vpop.f32.mrf.mxu3 }
 0x6f1   : > { %v2799_v32 = vadd.f32 %v2798_v17, %v6561_v4 }
 0x6f3   : > { %v2970_v36 = vadd.f32 %v6563_v53, %v2799_v32 }
 0x6f5   : > { %v3026_v57 = vadd.f32 %v3025_v40, %v2970_v36  ;;  %v3119_v41 = vmul.f32 %v2970_v36, %v2970_v36  ;;  %v3257_v7 = vpack.c.bf16 %v6628_v50, %v2970_v36  ;;  %3681 = vmatmul.msk.bf16.gmra.mxu3 %vm1049_vm0, %v7146_v20 }
 0x6f7   : > { %v3175_v21 = vadd.f32 %v3174_v61, %v3119_v41  ;;  %3289 = vst [vmem:[%s6651_s27 + $0x38] sm:$0xff] %v3257_v7  ;;  %v7148_v61 = vld [vmem:[#allocation5_spill] sm:$0xff] }
 0x6f8   : > { %v2801_v18 = vpop.f32.mrf.mxu3 }
 0x6f9   : > { %v2802_v34 = vadd.f32 %v2801_v18, %v6561_v4 }
 0x6fb   : > { %v2972_v15 = vadd.f32 %v6563_v53, %v2802_v34 }
 0x6fd   : > { %v3027_v24 = vadd.f32 %v3026_v57, %v2972_v15  ;;  %v3121_v42 = vmul.f32 %v2972_v15, %v2972_v15  ;;  %v3258_v31 = vpack.c.bf16 %v6601_v25, %v2972_v15 }
 0x6ff   : > { %v3176_v12 = vadd.f32 %v3175_v21, %v3121_v42  ;;  %3290 = vst [vmem:[%s6651_s27 + $0x40] sm:$0xff] %v3258_v31 }
 0x700   : > { %v2803_v27 = vpop.f32.mrf.mxu3 }
 0x701   : > { %v2804_v50 = vadd.f32 %v2803_v27, %v6561_v4 }
 0x703   : > { %v2974_v30 = vadd.f32 %v6563_v53, %v2804_v50 }
 0x705   : > { %v3028_v8 = vadd.f32 %v3027_v24, %v2974_v30  ;;  %v3123_v2 = vmul.f32 %v2974_v30, %v2974_v30  ;;  %v3259_v10 = vpack.c.bf16 %v6606_v28, %v2974_v30  ;;  %3682 = vmatmul.msk.bf16.gmra.mxu3 %vm1049_vm0, %v7147_v43 }
 0x707   : > { %v3177_v13 = vadd.f32 %v3176_v12, %v3123_v2  ;;  %3291 = vst [vmem:[%s6651_s27 + $0x48] sm:$0xff] %v3259_v10 }
 0x708   : > { %v2806_v11 = vpop.f32.mrf.mxu3 }
 0x709   : > { %v2807_v25 = vadd.f32 %v2806_v11, %v6561_v4 }
 0x70b   : > { %v2976_v54 = vadd.f32 %v6563_v53, %v2807_v25 }
 0x70d   : > { %v3029_v26 = vadd.f32 %v3028_v8, %v2976_v54  ;;  %v3125_v59 = vmul.f32 %v2976_v54, %v2976_v54  ;;  %v3260_v29 = vpack.c.bf16 %v6609_v47, %v2976_v54 }
 0x70f   : > { %v3178_v37 = vadd.f32 %v3177_v13, %v3125_v59  ;;  %3292 = vst [vmem:[%s6651_s27 + $0x50] sm:$0xff] %v3260_v29 }
 0x710   : > { %v2808_v40 = vpop.f32.mrf.mxu3 }
 0x711   : > { %v2809_v28 = vadd.f32 %v2808_v40, %v6561_v4 }
 0x713   : > { %v2978_v19 = vadd.f32 %v6563_v53, %v2809_v28 }
 0x715   : > { %v3030_v23 = vadd.f32 %v3029_v26, %v2978_v19  ;;  %v3127_v39 = vmul.f32 %v2978_v19, %v2978_v19  ;;  %v3261_v62 = vpack.c.bf16 %v6612_v9, %v2978_v19  ;;  %3683 = vmatmul.msk.bf16.gmra.mxu3 %vm1049_vm0, %v7148_v61 }
 0x717   : > { %v3179_v17 = vadd.f32 %v3178_v37, %v3127_v39  ;;  %3293 = vst [vmem:[%s6651_s27 + $0x58] sm:$0xff] %v3261_v62 }
 0x718   : > { %v2811_v32 = vpop.f32.mrf.mxu3 }
 0x719   : > { %v2812_v47 = vadd.f32 %v2811_v32, %v6561_v4 }
 0x71b   : > { %v2980_v36 = vadd.f32 %v6563_v53, %v2812_v47 }
 0x71d   : > { %v3031_v57 = vadd.f32 %v3030_v23, %v2980_v36  ;;  %v3129_v41 = vmul.f32 %v2980_v36, %v2980_v36  ;;  %v3262_v7 = vpack.c.bf16 %v6615_v0, %v2980_v36 }
 0x71f   : > { %v3180_v20 = vadd.f32 %v3179_v17, %v3129_v41  ;;  %3294 = vst [vmem:[%s6651_s27 + $0x60] sm:$0xff] %v3262_v7 }
 0x720   : > { %v2813_v21 = vpop.f32.mrf.mxu3 }
 0x721   : > { %v2814_v9 = vadd.f32 %v2813_v21, %v6561_v4 }
 0x723   : > { %v2982_v18 = vadd.f32 %v6563_v53, %v2814_v9 }
 0x725   : > { %v3032_v34 = vadd.f32 %v3031_v57, %v2982_v18  ;;  %v3131_v15 = vmul.f32 %v2982_v18, %v2982_v18  ;;  %v3263_v24 = vpack.c.bf16 %v6623_v58, %v2982_v18  ;;  %3684 = vmatmul.msk.bf16.gmra.mxu3 %vm1049_vm0, %v7127_v51 }
 0x727   : > { %v3181_v42 = vadd.f32 %v3180_v20, %v3131_v15  ;;  %3295 = vst [vmem:[%s6651_s27 + $0x68] sm:$0xff] %v3263_v24 }
 0x728   : > { %v2816_v31 = vpop.f32.mrf.mxu3 }
 0x729   : > { %v2817_v0 = vadd.f32 %v2816_v31, %v6561_v4 }
 0x72b   : > { %v2984_v12 = vadd.f32 %v6563_v53, %v2817_v0 }
 0x72d   : > { %v3033_v27 = vadd.f32 %v3032_v34, %v2984_v12  ;;  %v3133_v50 = vmul.f32 %v2984_v12, %v2984_v12  ;;  %v3264_v30 = vpack.c.bf16 %v6654_v45, %v2984_v12 }
 0x72f   : > { %v3182_v8 = vadd.f32 %v3181_v42, %v3133_v50  ;;  %3296 = vst [vmem:[%s6651_s27 + $0x70] sm:$0xff] %v3264_v30 }
 0x730   : > { %v2818_v2 = vpop.f32.mrf.mxu3 }
 0x731   : > { %v2819_v58 = vadd.f32 %v2818_v2, %v6561_v4 }
 0x733   : > { %v2986_v51 = vadd.f32 %v6563_v53, %v2819_v58 }
 0x735   : > { %v3034_v10 = vadd.f32 %v3033_v27, %v2986_v51  ;;  %v3135_v43 = vmul.f32 %v2986_v51, %v2986_v51  ;;  %v3265_v13 = vpack.c.bf16 %v6657_v60, %v2986_v51 }
 0x737   : > { %v3183_v11 = vadd.f32 %v3182_v8, %v3135_v43  ;;  %3297 = vst [vmem:[%s6651_s27 + $0x78] sm:$0xff] %v3265_v13 }
 0x738   : > { %v2821_v25 = vpop.f32.mrf.mxu3 }
 0x739   : > { %v2822_v54 = vadd.f32 %v2821_v25, %v6561_v4 }
 0x73b   : > { %v2988_v45 = vadd.f32 %v6563_v53, %v2822_v54 }
 0x73d   : > { %v3035_v26 = vadd.f32 %v3034_v10, %v2988_v45  ;;  %v3137_v59 = vmul.f32 %v2988_v45, %v2988_v45  ;;  %v3266_v29 = vpack.c.bf16 %v6660_v6, %v2988_v45 }
 0x73f   : > { %v3184_v37 = vadd.f32 %v3183_v11, %v3137_v59  ;;  %3298 = vst [vmem:[%s6651_s27 + $0x80] sm:$0xff] %v3266_v29 }
 0x740   : > { %v2823_v40 = vpop.f32.mrf.mxu3 }
 0x741   : > { %v2824_v28 = vadd.f32 %v2823_v40, %v6561_v4 }
 0x743   : > { %v2990_v60 = vadd.f32 %v6563_v53, %v2824_v28 }
 0x745   : > { %v3036_v19 = vadd.f32 %v3035_v26, %v2990_v60  ;;  %v3139_v23 = vmul.f32 %v2990_v60, %v2990_v60  ;;  %v3267_v39 = vpack.c.bf16 %v6663_v49, %v2990_v60 }
 0x747   : > { %v3185_v62 = vadd.f32 %v3184_v37, %v3139_v23  ;;  %3299 = vst [vmem:[%s6651_s27 + $0x88] sm:$0xff] %v3267_v39 }
 0x748   : > { %v2826_v61 = vpop.f32.mrf.mxu3 }
 0x749   : > { %v2827_v17 = vadd.f32 %v2826_v61, %v6561_v4 }
 0x74b   : > { %v2992_v6 = vadd.f32 %v6563_v53, %v2827_v17 }
 0x74d   : > { %v3037_v32 = vadd.f32 %v3036_v19, %v2992_v6  ;;  %v3141_v47 = vmul.f32 %v2992_v6, %v2992_v6  ;;  %v3268_v36 = vpack.c.bf16 %v6676_v5, %v2992_v6 }
 0x74f   : > { %v3186_v57 = vadd.f32 %v3185_v62, %v3141_v47  ;;  %3300 = vst [vmem:[%s6651_s27 + $0x90] sm:$0xff] %v3268_v36 }
 0x750   : > { %v2828_v41 = vpop.f32.mrf.mxu3 }
 0x751   : > { %v2829_v7 = vadd.f32 %v2828_v41, %v6561_v4 }
 0x753   : > { %v2994_v49 = vadd.f32 %v6563_v53, %v2829_v7 }
 0x755   : > { %v3038_v20 = vadd.f32 %v3037_v32, %v2994_v49  ;;  %v3143_v21 = vmul.f32 %v2994_v49, %v2994_v49  ;;  %v3269_v9 = vpack.c.bf16 %v6693_v35, %v2994_v49 }
 0x757   : > { %v3187_v18 = vadd.f32 %v3186_v57, %v3143_v21  ;;  %3301 = vst [vmem:[%s6651_s27 + $0x98] sm:$0xff] %v3269_v9 }
 0x758   : > { %v2831_v34 = vpop.f32.mrf.mxu3 }
 0x759   : > { %v2832_v15 = vadd.f32 %v2831_v34, %v6561_v4 }
 0x75b   : > { %v2996_v5 = vadd.f32 %v6563_v53, %v2832_v15 }
 0x75d   : > { %v3039_v24 = vadd.f32 %v3038_v20, %v2996_v5  ;;  %v3145_v42 = vmul.f32 %v2996_v5, %v2996_v5  ;;  %v3270_v31 = vpack.c.bf16 %v6696_v52, %v2996_v5 }
 0x75f   : > { %v3188_v0 = vadd.f32 %v3187_v18, %v3145_v42  ;;  %3302 = vst [vmem:[%s6651_s27 + $0xa0] sm:$0xff] %v3270_v31  ;;  %v3088_v18 = vrot.slane %v6833_v3, 4  ;;  %v3237_v42 = vrot.slane %v6838_v1, 4 }
 0x760   : > { %v2833_v12 = vpop.f32.mrf.mxu3 }
 0x761   : > { %v2834_v27 = vadd.f32 %v2833_v12, %v6561_v4 }
 0x763   : > { %v2998_v35 = vadd.f32 %v6563_v53, %v2834_v27  ;;  %v3089_v27 = vadd.f32 %v3088_v18, %v6833_v3 }
 0x765   : > { %v3271_v50 = vpack.c.bf16 %v6699_v33, %v2998_v35  ;;  %v3147_v62 = vmul.f32 %v2998_v35, %v2998_v35  ;;  %v3040_v61 = vadd.f32 %v3039_v24, %v2998_v35 }
 0x767   : > { %3303 = vst [vmem:[%s6651_s27 + $0xa8] sm:$0xff] %v3271_v50  ;;  %v3189_v32 = vadd.f32 %v3188_v0, %v3147_v62 }
 0x768   : > { %v2836_v30 = vpop.f32.mrf.mxu3 }
 0x769   : > { %v2837_v8 = vadd.f32 %v2836_v30, %v6561_v4 }
 0x76b   : > { %v3000_v2 = vadd.f32 %v6563_v53, %v2837_v8 }
 0x76d   : > { %v3272_v58 = vpack.c.bf16 %v6702_v46, %v3000_v2  ;;  %v3149_v17 = vmul.f32 %v3000_v2, %v3000_v2  ;;  %v3041_v47 = vadd.f32 %v3040_v61, %v3000_v2 }
 0x76f   : > { %3304 = vst [vmem:[%s6651_s27 + $0xb0] sm:$0xff] %v3272_v58  ;;  %v3190_v57 = vadd.f32 %v3189_v32, %v3149_v17 }
 0x770   : > { %v2838_v52 = vpop.f32.mrf.mxu3 }
 0x771   : > { %v2839_v51 = vadd.f32 %v2838_v52, %v6561_v4 }
 0x773   : > { %v3002_v10 = vadd.f32 %v6563_v53, %v2839_v51  ;;  %v3238_v51 = vadd.f32 %v3237_v42, %v6838_v1 }
 0x775   : > { %v3273_v43 = vpack.c.bf16 %v6707_v44, %v3002_v10  ;;  %v3151_v36 = vmul.f32 %v3002_v10, %v3002_v10  ;;  %v3042_v41 = vadd.f32 %v3041_v47, %v3002_v10 }
 0x777   : > { %3305 = vst [vmem:[%s6651_s27 + $0xb8] sm:$0xff] %v3273_v43  ;;  %v3191_v20 = vadd.f32 %v3190_v57, %v3151_v36  ;;  %v3090_v43 = vrot.slane %v3089_v27, 2 }
 0x778   : > { %v2841_v33 = vpop.f32.mrf.mxu3 }
 0x779   : > { %v2842_v13 = vadd.f32 %v2841_v33, %v6561_v4 }
 0x77b   : > { %v3004_v11 = vadd.f32 %v6563_v53, %v2842_v13 }
 0x77d   : > { %v3274_v25 = vpack.c.bf16 %v6730_v16, %v3004_v11  ;;  %v3153_v7 = vmul.f32 %v3004_v11, %v3004_v11 }
 0x77f   : > { %3306 = vst [vmem:[%s6651_s27 + $0xc0] sm:$0xff] %v3274_v25  ;;  %v3192_v34 = vadd.f32 %v3191_v20, %v3153_v7 }
 0x780   : > { %v2843_v46 = vpop.f32.mrf.mxu3 }
 0x781   : > { %v2844_v54 = vadd.f32 %v2843_v46, %v6561_v4 }
 0x783   : > { %v3006_v45 = vadd.f32 %v6563_v53, %v2844_v54 }
 0x785   : > { %v3275_v26 = vpack.c.bf16 %v6733_v63, %v3006_v45  ;;  %v3155_v21 = vmul.f32 %v3006_v45, %v3006_v45 }
 0x787   : > { %3307 = vst [vmem:[%s6651_s27 + $0xc8] sm:$0xff] %v3275_v26  ;;  %v3193_v31 = vadd.f32 %v3192_v34, %v3155_v21 }
 0x788   : > { %v2846_v44 = vpop.f32.mrf.mxu3 }
 0x789   : > { %v2847_v59 = vadd.f32 %v2846_v44, %v6561_v4 }
 0x78b   : > { %v3008_v29 = vadd.f32 %v6563_v53, %v2847_v59 }
 0x78d   : > { %v3276_v37 = vpack.c.bf16 %v6738_v55, %v3008_v29  ;;  %v3157_v5 = vmul.f32 %v3008_v29, %v3008_v29 }
 0x78f   : > { %3308 = vst [vmem:[%s6651_s27 + $0xd0] sm:$0xff] %v3276_v37  ;;  %v3194_v35 = vadd.f32 %v3193_v31, %v3157_v5 }
 0x790   : > { %v2848_v16 = vpop.f32.mrf.mxu3 }
 0x791   : > { %v2849_v40 = vadd.f32 %v2848_v16, %v6561_v4 }
 0x793   : > { %v3010_v28 = vadd.f32 %v6563_v53, %v2849_v40 }
 0x795   : > { %v3277_v60 = vpack.c.bf16 %v6741_v56, %v3010_v28  ;;  %v3159_v12 = vmul.f32 %v3010_v28, %v3010_v28 }
 0x797   : > { %3309 = vst [vmem:[%s6651_s27 + $0xd8] sm:$0xff] %v3277_v60  ;;  %v3195_v2 = vadd.f32 %v3194_v35, %v3159_v12 }
 0x798   : > { %v2851_v19 = vpop.f32.mrf.mxu3 }
 0x799   : > { %v2852_v63 = vadd.f32 %v2851_v19, %v6561_v4 }
 0x79b   : > { %v3012_v23 = vadd.f32 %v6563_v53, %v2852_v63 }
 0x79d   : > { %v3278_v39 = vpack.c.bf16 %v6745_v22, %v3012_v23  ;;  %v3043_v22 = vadd.f32 %v3042_v41, %v3004_v11  ;;  %v3161_v30 = vmul.f32 %v3012_v23, %v3012_v23 }
 0x79f   : > { %3310 = vst [vmem:[%s6651_s27 + $0xe0] sm:$0xff] %v3278_v39  ;;  %v3044_v15 = vadd.f32 %v3043_v22, %v3006_v45  ;;  %v3196_v33 = vadd.f32 %v3195_v2, %v3161_v30  ;;  %v3239_v45 = vrot.slane %v3238_v51, 2  ;;  %v3100_v39 = vlaneseq }
 0x7a0   : > { %v2853_v55 = vpop.f32.mrf.mxu3 }
 0x7a1   : > { %v2854_v6 = vadd.f32 %v2853_v55, %v6561_v4  ;;  %v3045_v0 = vadd.f32 %v3044_v15, %v3008_v29  ;;  %v3240_v16 = vadd.f32 %v3239_v45, %v3238_v51  ;;  %vm3102_vm15 = vcmp.lt.s32.totalorder %v3100_v39, 256 }
 0x7a3   : > { %v3014_v56 = vadd.f32 %v6563_v53, %v2854_v6  ;;  %v3046_v50 = vadd.f32 %v3045_v0, %v3010_v28  ;;  %v3241_v63 = vrot.slane %v3240_v16, 1 }
 0x7a5   : > { %v3279_v49 = vpack.c.bf16 %v6758_v38, %v3014_v56  ;;  %v3047_v58 = vadd.f32 %v3046_v50, %v3012_v23  ;;  %v3163_v52 = vmul.f32 %v3014_v56, %v3014_v56  ;;  %v3242_v17 = vadd.f32 %v3241_v63, %v3240_v16 }
 0x7a7   : > { %3311 = vst [vmem:[%s6651_s27 + $0xe8] sm:$0xff] %v3279_v49  ;;  %v3048_v13 = vadd.f32 %v3047_v58, %v3014_v56  ;;  %v3197_v3 = vadd.f32 %v3196_v33, %v3163_v52  ;;  %v3245_v56 = vrot.slane %v3242_v17, 7 }
 0x7a8   : > { %v2856_v9 = vpop.f32.mrf.mxu3 }
 0x7a9   : > { %v2857_v24 = vadd.f32 %v2856_v9, %v6561_v4 }
 0x7ab   : > { %v3016_v38 = vadd.f32 %v6563_v53, %v2857_v24 }
 0x7ad   : > { %v3280_v8 = vpack.c.bf16 %v6761_v48, %v3016_v38  ;;  %v3165_v11 = vmul.f32 %v3016_v38, %v3016_v38  ;;  %v3049_v46 = vadd.f32 %v3048_v13, %v3016_v38  ;;  %v3091_v48 = vadd.f32 %v3090_v43, %v3089_v27 }
 0x7af   : > { %3312 = vst [vmem:[%s6651_s27 + $0xf0] sm:$0xff] %v3280_v8  ;;  %v3198_v26 = vadd.f32 %v3197_v3, %v3165_v11  ;;  %v3092_v28 = vrot.slane %v3091_v48, 1 }
 0x7b0   : > { %v2858_v10 = vpop.f32.mrf.mxu3 }
 0x7b1   : > { %v2859_v25 = vadd.f32 %v2858_v10, %v6561_v4 }
 0x7b3   : > { %v3018_v54 = vadd.f32 %v6563_v53, %v2859_v25  ;;  %v3093_v53 = vadd.f32 %v3092_v28, %v3091_v48 }
 0x7b5   : > { %v3050_v44 = vadd.f32 %v3049_v46, %v3018_v54  ;;  %v3167_v59 = vmul.f32 %v3018_v54, %v3018_v54  ;;  %v3281_v1 = vpack.c.bf16 %v6769_v14, %v3018_v54  ;;  %v3096_v6 = vrot.slane %v3093_v53, 7 }
 0x7b7   : > { %v3051_v29 = vrot.slane %v3050_v44, 4  ;;  %v3199_v37 = vadd.f32 %v3198_v26, %v3167_v59  ;;  %3313 = vst [vmem:[%s6651_s27 + $0xf8] sm:$0xff] %v3281_v1 }
 0x7b9   : > { %v3052_v40 = vadd.f32 %v3051_v29, %v3050_v44  ;;  %v3200_v60 = vrot.slane %v3199_v37, 4 }
 0x7bb   : > { %v3053_v4 = vrot.slane %v3052_v40, 2  ;;  %v3201_v19 = vadd.f32 %v3200_v60, %v3199_v37 }
 0x7bd   : > { %v3054_v23 = vadd.f32 %v3053_v4, %v3052_v40  ;;  %v3202_v62 = vrot.slane %v3201_v19, 2 }
 0x7bf   : > { %v3055_v55 = vrot.slane %v3054_v23, 1  ;;  %v3203_v61 = vadd.f32 %v3202_v62, %v3201_v19 }
 0x7c1   : > { %v3056_v14 = vadd.f32 %v3055_v55, %v3054_v23  ;;  %v3204_v32 = vrot.slane %v3203_v61, 1 }
 0x7c3   : > { %v3098_v47 = vsel %vm3097_vm14, %v3056_v14, %v3096_v6  ;;  %v3205_v36 = vadd.f32 %v3204_v32, %v3203_v61 }
 0x7c4   : > { %3104 = vst.msk [vmem:[%s399_s30] ss:$2 sm:$0x3] %vm3102_vm15, %v3098_v47 }
 0x7c5   : > { %v3246_v57 = vsel %vm3097_vm14, %v3205_v36, %v3245_v56 }
 0x7c6   : > { %3701 = vst.msk [vmem:[%s399_s30 + $0x1] ss:$2 sm:$0x3] %vm3102_vm15, %v3246_v57 }
 0x7c7 PF: > { %s22_s17 = sadd.s32 1, %s3854_s17  }
 0x7c8   : > { %p19_p4 = scmp.ge.s32.totalorder %s22_s17, 4  }
 0x7ca   :  { %21 = sbr.rel (!%p19_p4) target bundleno = 1 (0x1), region = 103 }

</bundles_post_ra>
